<compile_context>
chip_gen: v5e
topology: v5e:2x2
jax: 0.10.0
libtpu: 0.0.40
codegen_flags: <defaults>
</compile_context>

<pallas_src>
import jax
import jax.numpy as jnp
from jax.experimental import pallas as pl
from jax.experimental.pallas import tpu as pltpu

MAX_NODE = 20          # real nodes per graph (external I/O)
NODE_PAD = 32          # padded nodes per graph (kernel-internal)
NUM_DEPTH = 8          # message-passing depth
SLAB_W = 32            # packed-weight slab width

# original layers (for parameter generation / reference)
LAYER_DIMS = [
    ("h1", 5, 16), ("h2", 16, 8), ("h3", 8, 8),
    ("f1", 8, 16), ("f2", 16, 8), ("f3", 8, 8),
    ("d1", 13, 16), ("d2", 16, 8), ("d3", 8, 8),
    ("g1", 8, 16), ("g2", 16, 8), ("g3", 8, 8),
    ("c1", 29, 32), ("c2", 32, 16), ("c3", 16, 8), ("c4", 8, 1),
]


def _ceil8(n):
    return (n + 7) & ~7


# W^T storage blocks: (key, dout, din_stored, (src_layer, row0, row1))
# concat-consuming layers (dag_gc1, fc1) are split into per-source blocks.
_WT_BLOCKS = [
    ("h1", 16, 8, ("h1", 0, 5)),
    ("h2", 8, 16, ("h2", 0, 16)),
    ("h3", 8, 8, ("h3", 0, 8)),
    ("f1", 16, 8, ("f1", 0, 8)),
    ("f2", 8, 16, ("f2", 0, 16)),
    ("f3", 8, 8, ("f3", 0, 8)),
    ("d1a", 16, 8, ("d1", 0, 5)),
    ("d1b", 16, 8, ("d1", 5, 13)),
    ("d2", 8, 16, ("d2", 0, 16)),
    ("d3", 8, 8, ("d3", 0, 8)),
    ("g1", 16, 8, ("g1", 0, 8)),
    ("g2", 8, 16, ("g2", 0, 16)),
    ("g3", 8, 8, ("g3", 0, 8)),
    ("c1a", 32, 8, ("c1", 0, 5)),
    ("c1b", 32, 8, ("c1", 5, 13)),
    ("c1c", 32, 8, ("c1", 13, 21)),
    ("c1d", 32, 8, ("c1", 21, 29)),
    ("c2", 16, 32, ("c2", 0, 32)),
    ("c3", 8, 16, ("c3", 0, 16)),
    ("c4", 1, 8, ("c4", 0, 8)),
]
_B_BLOCKS = [("h1", 16), ("h2", 8), ("h3", 8), ("f1", 16), ("f2", 8), ("f3", 8),
             ("d1", 16), ("d2", 8), ("d3", 8), ("g1", 16), ("g2", 8), ("g3", 8),
             ("c1", 32), ("c2", 16), ("c3", 8), ("c4", 1)]

_WT_DIMS = {k: (do, di) for k, do, di, _ in _WT_BLOCKS}
_B_DIMS = dict(_B_BLOCKS)

# 8-aligned row offsets inside the packed weight slab
_WT_OFF, _B_OFF = {}, {}
_r = 0
for _k, _do, _di, _s in _WT_BLOCKS:
    _WT_OFF[_k] = _r
    _r += _ceil8(_do)
for _k, _do in _B_BLOCKS:
    _B_OFF[_k] = _r
    _r += _ceil8(_do)
SLAB_ROWS = _ceil8(_r)      # = 496


# ----------------------------- parameters -----------------------------------
def init_params(key):
    """Deterministic synthetic parameters (same shapes as the nn.Module)."""
    params = []
    for _, din, dout in LAYER_DIMS:
        key, kw, kb = jax.random.split(key, 3)
        params.append(jax.random.normal(kw, (din, dout), jnp.float32) * 0.1)
        params.append(jax.random.normal(kb, (1, dout), jnp.float32) * 0.1)
    return params


def pack_params(params):
    """Pack all weights (transposed) / biases into one (SLAB_ROWS, 32) slab."""
    Ws = {}
    it = iter(params)
    for name, _, _ in LAYER_DIMS:
        Ws[name] = (next(it), next(it))
    slab = jnp.zeros((SLAB_ROWS, SLAB_W), jnp.float32)
    for key, dout, dins, (src, r0, r1) in _WT_BLOCKS:
        wt = Ws[src][0][r0:r1, :].T                       # (dout, r1-r0)
        off = _WT_OFF[key]
        slab = slab.at[off:off + dout, 0:(r1 - r0)].set(wt)
    for key, dout in _B_BLOCKS:
        b = Ws[key][1][0]                                 # (dout,)
        off = _B_OFF[key]
        slab = slab.at[off:off + dout, 0].set(b)
    return slab


# ------------------------------- wrapper --------------------------------------
def _split_input(inp):
    B = inp.shape[0]
    ni = inp[:, 0:100].reshape(B, MAX_NODE, 5)
    nvm = inp[:, 100:120].reshape(B, MAX_NODE)
    gm = inp[:, 120:3320].reshape(B, NUM_DEPTH, MAX_NODE, MAX_NODE)
    gmask = inp[:, 3320:3480].reshape(B, NUM_DEPTH, MAX_NODE)
    summ = inp[:, 3480:3880].reshape(B, MAX_NODE, MAX_NODE)
    run = inp[:, 3880:3900].reshape(B, MAX_NODE)
    back = inp[:, 3900:4300].reshape(B, MAX_NODE, MAX_NODE)
    return ni, nvm, gm, gmask, summ, run, back


def _pick_tb(batch):
    """Largest graphs/step keeping >= 2 grid steps (v7x has 2 TensorCores)."""
    for tb in (32, 16, 8, 4):
        if -(-batch // tb) >= 2:
            return tb
    return 4


def model_benchmark_forward(inp, wslab):
    """inp: [B, 4300] float32 packed input; wslab: packed parameter slab."""
    B = inp.shape[0]
    NP = NODE_PAD
    TB = _pick_tb(B)
    ROWS = TB * NP                           # lanes per grid step (multiple of 128)
    G = -(-B // TB)
    Bpad = G * TB
    pad_b = Bpad - B
    pn = NP - MAX_NODE
    L = Bpad * NP

    ni, nvm, gm, gmask, summ, run, back = _split_input(inp)
    if pad_b:
        ni = jnp.pad(ni, ((0, pad_b), (0, 0), (0, 0)))
        nvm = jnp.pad(nvm, ((0, pad_b), (0, 0)))
        gm = jnp.pad(gm, ((0, pad_b), (0, 0), (0, 0), (0, 0)))
        gmask = jnp.pad(gmask, ((0, pad_b), (0, 0), (0, 0)))
        summ = jnp.pad(summ, ((0, pad_b), (0, 0), (0, 0)))
        run = jnp.pad(run, ((0, pad_b), (0, 0)))
        back = jnp.pad(back, ((0, pad_b), (0, 0), (0, 0)))

    # feature-major node inputs: (8, L); feature rows 5..7 are zero
    ni_p = jnp.pad(ni, ((0, 0), (0, pn), (0, 3)))                    # (Bpad, 32, 8)
    nodes_fm = jnp.transpose(ni_p, (2, 0, 1)).reshape(8, L)

    # aux rows: [0..7] per-depth node masks, [8] node_valid_mask, [9] running vec
    gmask_p = jnp.pad(gmask, ((0, 0), (0, 0), (0, pn)))              # (Bpad, 8, 32)
    masks_fm = jnp.transpose(gmask_p, (1, 0, 2)).reshape(8, L)
    nvm_row = jnp.pad(nvm, ((0, 0), (0, pn))).reshape(1, L)
    run_row = jnp.pad(run, ((0, 0), (0, pn))).reshape(1, L)
    aux = jnp.concatenate(
        [masks_fm, nvm_row, run_row, jnp.zeros((6, L), jnp.float32)], axis=0)

    # per-graph matrices, transposed (right-multiply in feature-major), bf16
    gm_p = jnp.pad(gm, ((0, 0), (0, 0), (0, pn), (0, pn)))
    gcn_T = jnp.transpose(gm_p, (1, 0, 3, 2)).astype(jnp.bfloat16)   # (8, Bpad, 32, 32)
    summ_T = jnp.transpose(jnp.pad(summ, ((0, 0), (0, pn), (0, pn))),
                           (0, 2, 1)).astype(jnp.bfloat16)           # (Bpad, 32, 32)
    back_T = jnp.transpose(jnp.pad(back, ((0, 0), (0, pn), (0, pn))),
                           (0, 2, 1)).astype(jnp.bfloat16)           # (Bpad, 32, 32)

    def kernel(nodes_ref, aux_ref, gcn_ref, summ_ref, back_ref, w_ref, out_ref):
        f32 = jnp.float32
        bf16 = jnp.bfloat16

        # hoisted weight loads / bf16 casts (once per grid step)
        Wb, Bf = {}, {}
        for key, (dout, dins) in _WT_DIMS.items():
            r = _WT_OFF[key]
            Wb[key] = w_ref[r:r + dout, 0:dins].astype(bf16)
        for key, dout in _B_DIMS.items():
            r = _B_OFF[key]
            Bf[key] = w_ref[r:r + dout, 0:1]

        def lrelu(v):
            return jnp.where(v >= 0, v, 0.01 * v)

        def lin(key, x_bf):
            return jnp.dot(Wb[key], x_bf, preferred_element_type=f32) + Bf[key]

        def stack3(k1, k2, k3, x_bf):
            v = lrelu(lin(k1, x_bf))
            v = lrelu(lin(k2, v.astype(bf16)))
            v = lrelu(lin(k3, v.astype(bf16)))
            return v

        def block_mm(y_f32, mat_of_g):
            # per-graph right-multiply of the feature-major (F, ROWS) tile by
            # the graph's pre-transposed (32, 32) matrix (no block-diag in HBM)
            yb = y_f32.astype(bf16)
            parts = []
            for g in range(TB):
                yg = yb[:, g * NP:(g + 1) * NP]
                parts.append(jnp.dot(yg, mat_of_g(g), preferred_element_type=f32))
            return jnp.concatenate(parts, axis=1)

        nodes_bf = nodes_ref[...].astype(bf16)                       # (8, ROWS)

        # --- h_gc stack ---
        x = stack3("h1", "h2", "h3", nodes_bf)                       # (8, ROWS) f32

        # --- 8 message-passing steps ---
        for d in range(NUM_DEPTH):
            y = stack3("f1", "f2", "f3", x.astype(bf16))
            y = block_mm(y, lambda g, d=d: gcn_ref[d, g])
            y = stack3("f1", "f2", "f3", y.astype(bf16))
            y = y * aux_ref[d:d + 1, :]                              # per-depth node mask
            x = x + y

        gcn_bf = x.astype(bf16)                                      # gcn_output

        # --- DAG summary (dag_gc1 split: node part + gcn part) ---
        s = lrelu(jnp.dot(Wb["d1a"], nodes_bf, preferred_element_type=f32)
                  + jnp.dot(Wb["d1b"], gcn_bf, preferred_element_type=f32)
                  + Bf["d1"])
        s = lrelu(lin("d2", s.astype(bf16)))
        s = lrelu(lin("d3", s.astype(bf16)))                         # (8, ROWS)

        dag = block_mm(s, lambda g: summ_ref[g])                     # gsn_dag_summary

        gsum = stack3("g1", "g2", "g3", dag.astype(bf16))            # (8, ROWS)

        # --- global summary (weighted lane-sum per graph) + backward extension ---
        run_r = aux_ref[9:10, :]                                     # (1, ROWS)
        grun = gsum * run_r
        dag_bf = dag.astype(bf16)
        glob_parts, ext_parts = [], []
        for g in range(TB):
            lo, hi = g * NP, (g + 1) * NP
            glob_g = jnp.sum(grun[:, lo:hi], axis=1, keepdims=True)  # (8, 1)
            glob_parts.append(jnp.broadcast_to(glob_g, (8, NP)))
            ext_parts.append(jnp.dot(dag_bf[:, lo:hi], back_ref[g],
                                     preferred_element_type=f32))
        glob_ext = jnp.concatenate(glob_parts, axis=1)               # (8, ROWS)
        dag_ext = jnp.concatenate(ext_parts, axis=1)                 # (8, ROWS)

        # --- per-node MLP head (fc1 applied as 4 split matmuls) ---
        y = lrelu(jnp.dot(Wb["c1a"], nodes_bf, preferred_element_type=f32)
                  + jnp.dot(Wb["c1b"], gcn_bf, preferred_element_type=f32)
                  + jnp.dot(Wb["c1c"], dag_ext.astype(bf16), preferred_element_type=f32)
                  + jnp.dot(Wb["c1d"], glob_ext.astype(bf16), preferred_element_type=f32)
                  + Bf["c1"])
        y = lrelu(lin("c2", y.astype(bf16)))
        y = lrelu(lin("c3", y.astype(bf16)))                         # (8, ROWS)

        row = jnp.dot(Wb["c4"], y.astype(bf16), preferred_element_type=f32) + Bf["c4"]
        nvm_r = aux_ref[8:9, :]                                      # (1, ROWS)
        out_ref[0:1, :] = row + (nvm_r - 1.0) * 10000.0              # lane-dense store

    # advisory cost estimate
    per_node_mac = ((5 * 16 + 16 * 8 + 8 * 8)
                    + 16 * (8 * 16 + 16 * 8 + 8 * 8)
                    + (13 * 16 + 16 * 8 + 8 * 8)
                    + (8 * 16 + 16 * 8 + 8 * 8)
                    + (29 * 32 + 32 * 16 + 16 * 8 + 8))
    flops = 2 * Bpad * NP * per_node_mac + 2 * Bpad * 10 * NP * NP * 8
    bytes_accessed = (4 * (nodes_fm.size + aux.size + wslab.size + 8 * L)
                      + 2 * (gcn_T.size + summ_T.size + back_T.size))
    ce = pl.CostEstimate(flops=int(flops), transcendentals=0,
                         bytes_accessed=int(bytes_accessed))

    out = pl.pallas_call(
        kernel,
        out_shape=jax.ShapeDtypeStruct((8, L), jnp.float32),
        grid=(G,),
        in_specs=[
            pl.BlockSpec((8, ROWS), lambda g: (0, g)),
            pl.BlockSpec((16, ROWS), lambda g: (0, g)),
            pl.BlockSpec((NUM_DEPTH, TB, NP, NP), lambda g: (0, g, 0, 0)),
            pl.BlockSpec((TB, NP, NP), lambda g: (g, 0, 0)),
            pl.BlockSpec((TB, NP, NP), lambda g: (g, 0, 0)),
            pl.BlockSpec((SLAB_ROWS, SLAB_W), lambda g: (0, 0)),
        ],
        out_specs=pl.BlockSpec((8, ROWS), lambda g: (0, g)),
        compiler_params=pltpu.CompilerParams(
            dimension_semantics=("parallel",)),
        cost_estimate=ce,
    )(nodes_fm, aux, gcn_T, summ_T, back_T, wslab)

    # row 0 holds the result; rows 1..7 are scratch/stale and discarded
    return out[0].reshape(Bpad, NP)[:B, :MAX_NODE]                   # (B, 20)


# ---------------- plain-JAX reference (for correctness check) ----------------
def reference_forward(inp, params):
    ni, nvm, gm, gmask, summ, run, back = _split_input(inp)
    Ws = {}
    it = iter(params)
    for name, _, _ in LAYER_DIMS:
        Ws[name] = (next(it), next(it))

    def gl(x, name):
        Wm, b = Ws[name]
        return jnp.matmul(x, Wm) + b

    def lr(x):
        return jnp.where(x >= 0, x, 0.01 * x)

    x = lr(gl(ni, "h1")); x = lr(gl(x, "h2")); x = lr(gl(x, "h3"))

    def f_stack(v):
        v = lr(gl(v, "f1")); v = lr(gl(v, "f2")); v = lr(gl(v, "f3"))
        return v

    for d in range(NUM_DEPTH):
        y = f_stack(x)
        y = jnp.matmul(gm[:, d], y)
        y = f_stack(y)
        y = y * gmask[:, d][..., None]
        x = x + y

    gcn_out = x
    xc = jnp.concatenate([ni, gcn_out], axis=2)
    s = lr(gl(xc, "d1")); s = lr(gl(s, "d2")); s = lr(gl(s, "d3"))
    s = jnp.matmul(summ, s)
    dag_summary = s
    s = lr(gl(s, "g1")); s = lr(gl(s, "g2")); s = lr(gl(s, "g3"))
    glob = jnp.matmul(run[:, None, :], s)                            # (B, 1, 8)
    dag_ext = jnp.matmul(back, dag_summary)                          # (B, 20, 8)
    glob_ext = jnp.broadcast_to(glob, dag_ext.shape)
    merge = jnp.concatenate([ni, gcn_out, dag_ext, glob_ext], axis=2)
    y = lr(gl(merge, "c1")); y = lr(gl(y, "c2")); y = lr(gl(y, "c3"))
    no = gl(y, "c4")                                                 # (B, 20, 1)
    return no[..., 0] + (nvm - 1.0) * 10000.0                        # (B, 20)


if __name__ == "__main__":
    B = 16
    key = jax.random.PRNGKey(0)
    k_in, k_param = jax.random.split(key)
    inp = jax.random.normal(k_in, (B, 4300), jnp.float32)
    params = init_params(k_param)
    wslab = pack_params(params)

    fwd = jax.jit(model_benchmark_forward)
    out = jax.block_until_ready(fwd(inp, wslab))

    ref = reference_forward(inp, params)
    assert out.shape == (B, MAX_NODE)
    # bf16 matmul operands (f32 accumulation) per perf guidance -> slightly
    # looser absolute tolerance than a pure-f32 comparison.
    assert jnp.allclose(out, ref, atol=1e-1, rtol=2e-2), (
        "mismatch vs reference",
        float(jnp.max(jnp.abs(out - ref))))
    print("KERNEL_OK")
</pallas_src>

<mosaic_0001>
module attributes {stable_mosaic.version = 11 : i64} {
  func.func @kernel(%arg0: i32, %arg1: memref<8x256xf32, #tpu.memory_space<vmem>>, %arg2: memref<16x256xf32, #tpu.memory_space<vmem>>, %arg3: memref<8x8x32x32xbf16, #tpu.memory_space<vmem>>, %arg4: memref<8x32x32xbf16, #tpu.memory_space<vmem>>, %arg5: memref<8x32x32xbf16, #tpu.memory_space<vmem>>, %arg6: memref<496x32xf32, #tpu.memory_space<vmem>>, %arg7: memref<8x256xf32, #tpu.memory_space<vmem>>) attributes {dimension_semantics = [#tpu.dimension_semantics<parallel>], iteration_bounds = array<i64: 2>, scalar_prefetch = 0 : i64, scratch_operands = 0 : i64, tpu.core_type = #tpu.core_type<tc>, window_params = [{transform_indices = @transform_0, window_bounds = array<i64: 8, 256>}, {transform_indices = @transform_1, window_bounds = array<i64: 16, 256>}, {transform_indices = @transform_2, window_bounds = array<i64: 8, 8, 32, 32>}, {transform_indices = @transform_3, window_bounds = array<i64: 8, 32, 32>}, {transform_indices = @transform_4, window_bounds = array<i64: 8, 32, 32>}, {pipeline_mode = #tpu.pipeline_mode<synchronous>, transform_indices = @transform_5, window_bounds = array<i64: 496, 32>}, {transform_indices = @transform_6, window_bounds = array<i64: 8, 256>}]} {
    %c0 = arith.constant 0 : index
    %c0_0 = arith.constant 0 : index
    %0 = vector.load %arg6[%c0, %c0_0] : memref<496x32xf32, #tpu.memory_space<vmem>>, vector<16x8xf32>
    %1 = arith.truncf %0 : vector<16x8xf32> to vector<16x8xbf16>
    %c16 = arith.constant 16 : index
    %c0_1 = arith.constant 0 : index
    %2 = vector.load %arg6[%c16, %c0_1] : memref<496x32xf32, #tpu.memory_space<vmem>>, vector<8x16xf32>
    %3 = arith.truncf %2 : vector<8x16xf32> to vector<8x16xbf16>
    %c24 = arith.constant 24 : index
    %c0_2 = arith.constant 0 : index
    %4 = vector.load %arg6[%c24, %c0_2] : memref<496x32xf32, #tpu.memory_space<vmem>>, vector<8x8xf32>
    %5 = arith.truncf %4 : vector<8x8xf32> to vector<8x8xbf16>
    %c32 = arith.constant 32 : index
    %c0_3 = arith.constant 0 : index
    %6 = vector.load %arg6[%c32, %c0_3] : memref<496x32xf32, #tpu.memory_space<vmem>>, vector<16x8xf32>
    %7 = arith.truncf %6 : vector<16x8xf32> to vector<16x8xbf16>
    %c48 = arith.constant 48 : index
    %c0_4 = arith.constant 0 : index
    %8 = vector.load %arg6[%c48, %c0_4] : memref<496x32xf32, #tpu.memory_space<vmem>>, vector<8x16xf32>
    %9 = arith.truncf %8 : vector<8x16xf32> to vector<8x16xbf16>
    %c56 = arith.constant 56 : index
    %c0_5 = arith.constant 0 : index
    %10 = vector.load %arg6[%c56, %c0_5] : memref<496x32xf32, #tpu.memory_space<vmem>>, vector<8x8xf32>
    %11 = arith.truncf %10 : vector<8x8xf32> to vector<8x8xbf16>
    %c64 = arith.constant 64 : index
    %c0_6 = arith.constant 0 : index
    %12 = vector.load %arg6[%c64, %c0_6] : memref<496x32xf32, #tpu.memory_space<vmem>>, vector<16x8xf32>
    %13 = arith.truncf %12 : vector<16x8xf32> to vector<16x8xbf16>
    %c80 = arith.constant 80 : index
    %c0_7 = arith.constant 0 : index
    %14 = vector.load %arg6[%c80, %c0_7] : memref<496x32xf32, #tpu.memory_space<vmem>>, vector<16x8xf32>
    %15 = arith.truncf %14 : vector<16x8xf32> to vector<16x8xbf16>
    %c96 = arith.constant 96 : index
    %c0_8 = arith.constant 0 : index
    %16 = vector.load %arg6[%c96, %c0_8] : memref<496x32xf32, #tpu.memory_space<vmem>>, vector<8x16xf32>
    %17 = arith.truncf %16 : vector<8x16xf32> to vector<8x16xbf16>
    %c104 = arith.constant 104 : index
    %c0_9 = arith.constant 0 : index
    %18 = vector.load %arg6[%c104, %c0_9] : memref<496x32xf32, #tpu.memory_space<vmem>>, vector<8x8xf32>
    %19 = arith.truncf %18 : vector<8x8xf32> to vector<8x8xbf16>
    %c112 = arith.constant 112 : index
    %c0_10 = arith.constant 0 : index
    %20 = vector.load %arg6[%c112, %c0_10] : memref<496x32xf32, #tpu.memory_space<vmem>>, vector<16x8xf32>
    %21 = arith.truncf %20 : vector<16x8xf32> to vector<16x8xbf16>
    %c128 = arith.constant 128 : index
    %c0_11 = arith.constant 0 : index
    %22 = vector.load %arg6[%c128, %c0_11] : memref<496x32xf32, #tpu.memory_space<vmem>>, vector<8x16xf32>
    %23 = arith.truncf %22 : vector<8x16xf32> to vector<8x16xbf16>
    %c136 = arith.constant 136 : index
    %c0_12 = arith.constant 0 : index
    %24 = vector.load %arg6[%c136, %c0_12] : memref<496x32xf32, #tpu.memory_space<vmem>>, vector<8x8xf32>
    %25 = arith.truncf %24 : vector<8x8xf32> to vector<8x8xbf16>
    %c144 = arith.constant 144 : index
    %c0_13 = arith.constant 0 : index
    %26 = vector.load %arg6[%c144, %c0_13] : memref<496x32xf32, #tpu.memory_space<vmem>>, vector<32x8xf32>
    %27 = arith.truncf %26 : vector<32x8xf32> to vector<32x8xbf16>
    %c176 = arith.constant 176 : index
    %c0_14 = arith.constant 0 : index
    %28 = vector.load %arg6[%c176, %c0_14] : memref<496x32xf32, #tpu.memory_space<vmem>>, vector<32x8xf32>
    %29 = arith.truncf %28 : vector<32x8xf32> to vector<32x8xbf16>
    %c208 = arith.constant 208 : index
    %c0_15 = arith.constant 0 : index
    %30 = vector.load %arg6[%c208, %c0_15] : memref<496x32xf32, #tpu.memory_space<vmem>>, vector<32x8xf32>
    %31 = arith.truncf %30 : vector<32x8xf32> to vector<32x8xbf16>
    %c240 = arith.constant 240 : index
    %c0_16 = arith.constant 0 : index
    %32 = vector.load %arg6[%c240, %c0_16] : memref<496x32xf32, #tpu.memory_space<vmem>>, vector<32x8xf32>
    %33 = arith.truncf %32 : vector<32x8xf32> to vector<32x8xbf16>
    %c272 = arith.constant 272 : index
    %c0_17 = arith.constant 0 : index
    %34 = vector.load %arg6[%c272, %c0_17] : memref<496x32xf32, #tpu.memory_space<vmem>>, vector<16x32xf32>
    %35 = arith.truncf %34 : vector<16x32xf32> to vector<16x32xbf16>
    %c288 = arith.constant 288 : index
    %c0_18 = arith.constant 0 : index
    %36 = vector.load %arg6[%c288, %c0_18] : memref<496x32xf32, #tpu.memory_space<vmem>>, vector<8x16xf32>
    %37 = arith.truncf %36 : vector<8x16xf32> to vector<8x16xbf16>
    %c296 = arith.constant 296 : index
    %c0_19 = arith.constant 0 : index
    %38 = vector.load %arg6[%c296, %c0_19] : memref<496x32xf32, #tpu.memory_space<vmem>>, vector<1x8xf32>
    %39 = arith.truncf %38 : vector<1x8xf32> to vector<1x8xbf16>
    %c304 = arith.constant 304 : index
    %c0_20 = arith.constant 0 : index
    %40 = vector.load %arg6[%c304, %c0_20] : memref<496x32xf32, #tpu.memory_space<vmem>>, vector<16x1xf32>
    %c320 = arith.constant 320 : index
    %c0_21 = arith.constant 0 : index
    %41 = vector.load %arg6[%c320, %c0_21] : memref<496x32xf32, #tpu.memory_space<vmem>>, vector<8x1xf32>
    %c328 = arith.constant 328 : index
    %c0_22 = arith.constant 0 : index
    %42 = vector.load %arg6[%c328, %c0_22] : memref<496x32xf32, #tpu.memory_space<vmem>>, vector<8x1xf32>
    %c336 = arith.constant 336 : index
    %c0_23 = arith.constant 0 : index
    %43 = vector.load %arg6[%c336, %c0_23] : memref<496x32xf32, #tpu.memory_space<vmem>>, vector<16x1xf32>
    %c352 = arith.constant 352 : index
    %c0_24 = arith.constant 0 : index
    %44 = vector.load %arg6[%c352, %c0_24] : memref<496x32xf32, #tpu.memory_space<vmem>>, vector<8x1xf32>
    %c360 = arith.constant 360 : index
    %c0_25 = arith.constant 0 : index
    %45 = vector.load %arg6[%c360, %c0_25] : memref<496x32xf32, #tpu.memory_space<vmem>>, vector<8x1xf32>
    %c368 = arith.constant 368 : index
    %c0_26 = arith.constant 0 : index
    %46 = vector.load %arg6[%c368, %c0_26] : memref<496x32xf32, #tpu.memory_space<vmem>>, vector<16x1xf32>
    %c384 = arith.constant 384 : index
    %c0_27 = arith.constant 0 : index
    %47 = vector.load %arg6[%c384, %c0_27] : memref<496x32xf32, #tpu.memory_space<vmem>>, vector<8x1xf32>
    %c392 = arith.constant 392 : index
    %c0_28 = arith.constant 0 : index
    %48 = vector.load %arg6[%c392, %c0_28] : memref<496x32xf32, #tpu.memory_space<vmem>>, vector<8x1xf32>
    %c400 = arith.constant 400 : index
    %c0_29 = arith.constant 0 : index
    %49 = vector.load %arg6[%c400, %c0_29] : memref<496x32xf32, #tpu.memory_space<vmem>>, vector<16x1xf32>
    %c416 = arith.constant 416 : index
    %c0_30 = arith.constant 0 : index
    %50 = vector.load %arg6[%c416, %c0_30] : memref<496x32xf32, #tpu.memory_space<vmem>>, vector<8x1xf32>
    %c424 = arith.constant 424 : index
    %c0_31 = arith.constant 0 : index
    %51 = vector.load %arg6[%c424, %c0_31] : memref<496x32xf32, #tpu.memory_space<vmem>>, vector<8x1xf32>
    %c432 = arith.constant 432 : index
    %c0_32 = arith.constant 0 : index
    %52 = vector.load %arg6[%c432, %c0_32] : memref<496x32xf32, #tpu.memory_space<vmem>>, vector<32x1xf32>
    %c464 = arith.constant 464 : index
    %c0_33 = arith.constant 0 : index
    %53 = vector.load %arg6[%c464, %c0_33] : memref<496x32xf32, #tpu.memory_space<vmem>>, vector<16x1xf32>
    %c480 = arith.constant 480 : index
    %c0_34 = arith.constant 0 : index
    %54 = vector.load %arg6[%c480, %c0_34] : memref<496x32xf32, #tpu.memory_space<vmem>>, vector<8x1xf32>
    %c488 = arith.constant 488 : index
    %c0_35 = arith.constant 0 : index
    %55 = vector.load %arg6[%c488, %c0_35] : memref<496x32xf32, #tpu.memory_space<vmem>>, vector<1x1xf32>
    %c0_36 = arith.constant 0 : index
    %c0_37 = arith.constant 0 : index
    %56 = vector.load %arg1[%c0_36, %c0_37] : memref<8x256xf32, #tpu.memory_space<vmem>>, vector<8x256xf32>
    %57 = arith.truncf %56 : vector<8x256xf32> to vector<8x256xbf16>
    %cst = arith.constant dense<0.000000e+00> : vector<16x256xf32>
    %58 = tpu.matmul %1, %57, %cst {dimension_numbers = #tpu.dot_dimension_numbers<[1], [0], [0], [1], [0, 0, 1, 1], [], []>} : vector<16x8xbf16>, vector<8x256xbf16>, vector<16x256xf32> -> vector<16x256xf32>
    %59 = vector.broadcast %40 : vector<16x1xf32> to vector<16x256xf32>
    %60 = arith.addf %58, %59 : vector<16x256xf32>
    %cst_38 = arith.constant 0.000000e+00 : f32
    %61 = vector.broadcast %cst_38 : f32 to vector<16x256xf32>
    %62 = arith.cmpf oge, %60, %61 : vector<16x256xf32>
    %cst_39 = arith.constant 0.00999999977 : f32
    %63 = vector.broadcast %cst_39 : f32 to vector<16x256xf32>
    %64 = arith.mulf %63, %60 : vector<16x256xf32>
    %65 = arith.select %62, %60, %64 : vector<16x256xi1>, vector<16x256xf32>
    %66 = arith.truncf %65 : vector<16x256xf32> to vector<16x256xbf16>
    %cst_40 = arith.constant dense<0.000000e+00> : vector<8x256xf32>
    %67 = tpu.matmul %3, %66, %cst_40 {dimension_numbers = #tpu.dot_dimension_numbers<[1], [0], [0], [1], [0, 0, 1, 1], [], []>} : vector<8x16xbf16>, vector<16x256xbf16>, vector<8x256xf32> -> vector<8x256xf32>
    %68 = vector.broadcast %41 : vector<8x1xf32> to vector<8x256xf32>
    %69 = arith.addf %67, %68 : vector<8x256xf32>
    %cst_41 = arith.constant 0.000000e+00 : f32
    %70 = vector.broadcast %cst_41 : f32 to vector<8x256xf32>
    %71 = arith.cmpf oge, %69, %70 : vector<8x256xf32>
    %cst_42 = arith.constant 0.00999999977 : f32
    %72 = vector.broadcast %cst_42 : f32 to vector<8x256xf32>
    %73 = arith.mulf %72, %69 : vector<8x256xf32>
    %74 = arith.select %71, %69, %73 : vector<8x256xi1>, vector<8x256xf32>
    %75 = arith.truncf %74 : vector<8x256xf32> to vector<8x256xbf16>
    %cst_43 = arith.constant dense<0.000000e+00> : vector<8x256xf32>
    %76 = tpu.matmul %5, %75, %cst_43 {dimension_numbers = #tpu.dot_dimension_numbers<[1], [0], [0], [1], [0, 0, 1, 1], [], []>} : vector<8x8xbf16>, vector<8x256xbf16>, vector<8x256xf32> -> vector<8x256xf32>
    %77 = vector.broadcast %42 : vector<8x1xf32> to vector<8x256xf32>
    %78 = arith.addf %76, %77 : vector<8x256xf32>
    %cst_44 = arith.constant 0.000000e+00 : f32
    %79 = vector.broadcast %cst_44 : f32 to vector<8x256xf32>
    %80 = arith.cmpf oge, %78, %79 : vector<8x256xf32>
    %cst_45 = arith.constant 0.00999999977 : f32
    %81 = vector.broadcast %cst_45 : f32 to vector<8x256xf32>
    %82 = arith.mulf %81, %78 : vector<8x256xf32>
    %83 = arith.select %80, %78, %82 : vector<8x256xi1>, vector<8x256xf32>
    %84 = arith.truncf %83 : vector<8x256xf32> to vector<8x256xbf16>
    %cst_46 = arith.constant dense<0.000000e+00> : vector<16x256xf32>
    %85 = tpu.matmul %7, %84, %cst_46 {dimension_numbers = #tpu.dot_dimension_numbers<[1], [0], [0], [1], [0, 0, 1, 1], [], []>} : vector<16x8xbf16>, vector<8x256xbf16>, vector<16x256xf32> -> vector<16x256xf32>
    %86 = vector.broadcast %43 : vector<16x1xf32> to vector<16x256xf32>
    %87 = arith.addf %85, %86 : vector<16x256xf32>
    %cst_47 = arith.constant 0.000000e+00 : f32
    %88 = vector.broadcast %cst_47 : f32 to vector<16x256xf32>
    %89 = arith.cmpf oge, %87, %88 : vector<16x256xf32>
    %cst_48 = arith.constant 0.00999999977 : f32
    %90 = vector.broadcast %cst_48 : f32 to vector<16x256xf32>
    %91 = arith.mulf %90, %87 : vector<16x256xf32>
    %92 = arith.select %89, %87, %91 : vector<16x256xi1>, vector<16x256xf32>
    %93 = arith.truncf %92 : vector<16x256xf32> to vector<16x256xbf16>
    %cst_49 = arith.constant dense<0.000000e+00> : vector<8x256xf32>
    %94 = tpu.matmul %9, %93, %cst_49 {dimension_numbers = #tpu.dot_dimension_numbers<[1], [0], [0], [1], [0, 0, 1, 1], [], []>} : vector<8x16xbf16>, vector<16x256xbf16>, vector<8x256xf32> -> vector<8x256xf32>
    %95 = vector.broadcast %44 : vector<8x1xf32> to vector<8x256xf32>
    %96 = arith.addf %94, %95 : vector<8x256xf32>
    %cst_50 = arith.constant 0.000000e+00 : f32
    %97 = vector.broadcast %cst_50 : f32 to vector<8x256xf32>
    %98 = arith.cmpf oge, %96, %97 : vector<8x256xf32>
    %cst_51 = arith.constant 0.00999999977 : f32
    %99 = vector.broadcast %cst_51 : f32 to vector<8x256xf32>
    %100 = arith.mulf %99, %96 : vector<8x256xf32>
    %101 = arith.select %98, %96, %100 : vector<8x256xi1>, vector<8x256xf32>
    %102 = arith.truncf %101 : vector<8x256xf32> to vector<8x256xbf16>
    %cst_52 = arith.constant dense<0.000000e+00> : vector<8x256xf32>
    %103 = tpu.matmul %11, %102, %cst_52 {dimension_numbers = #tpu.dot_dimension_numbers<[1], [0], [0], [1], [0, 0, 1, 1], [], []>} : vector<8x8xbf16>, vector<8x256xbf16>, vector<8x256xf32> -> vector<8x256xf32>
    %104 = vector.broadcast %45 : vector<8x1xf32> to vector<8x256xf32>
    %105 = arith.addf %103, %104 : vector<8x256xf32>
    %cst_53 = arith.constant 0.000000e+00 : f32
    %106 = vector.broadcast %cst_53 : f32 to vector<8x256xf32>
    %107 = arith.cmpf oge, %105, %106 : vector<8x256xf32>
    %cst_54 = arith.constant 0.00999999977 : f32
    %108 = vector.broadcast %cst_54 : f32 to vector<8x256xf32>
    %109 = arith.mulf %108, %105 : vector<8x256xf32>
    %110 = arith.select %107, %105, %109 : vector<8x256xi1>, vector<8x256xf32>
    %111 = arith.truncf %110 : vector<8x256xf32> to vector<8x256xbf16>
    %112 = vector.extract_strided_slice %111 {offsets = [0, 0], sizes = [8, 32], strides = [1, 1]} : vector<8x256xbf16> to vector<8x32xbf16>
    %c0_55 = arith.constant 0 : index
    %c0_56 = arith.constant 0 : index
    %c0_57 = arith.constant 0 : index
    %c0_58 = arith.constant 0 : index
    %113 = vector.load %arg3[%c0_55, %c0_56, %c0_57, %c0_58] : memref<8x8x32x32xbf16, #tpu.memory_space<vmem>>, vector<1x1x32x32xbf16>
    %114 = vector.shape_cast %113 : vector<1x1x32x32xbf16> to vector<32x32xbf16>
    %cst_59 = arith.constant dense<0.000000e+00> : vector<8x32xf32>
    %115 = tpu.matmul %112, %114, %cst_59 {dimension_numbers = #tpu.dot_dimension_numbers<[1], [0], [0], [1], [0, 0, 1, 1], [], []>} : vector<8x32xbf16>, vector<32x32xbf16>, vector<8x32xf32> -> vector<8x32xf32>
    %116 = vector.extract_strided_slice %111 {offsets = [0, 32], sizes = [8, 32], strides = [1, 1]} : vector<8x256xbf16> to vector<8x32xbf16>
    %c0_60 = arith.constant 0 : index
    %c1 = arith.constant 1 : index
    %c0_61 = arith.constant 0 : index
    %c0_62 = arith.constant 0 : index
    %117 = vector.load %arg3[%c0_60, %c1, %c0_61, %c0_62] : memref<8x8x32x32xbf16, #tpu.memory_space<vmem>>, vector<1x1x32x32xbf16>
    %118 = vector.shape_cast %117 : vector<1x1x32x32xbf16> to vector<32x32xbf16>
    %cst_63 = arith.constant dense<0.000000e+00> : vector<8x32xf32>
    %119 = tpu.matmul %116, %118, %cst_63 {dimension_numbers = #tpu.dot_dimension_numbers<[1], [0], [0], [1], [0, 0, 1, 1], [], []>} : vector<8x32xbf16>, vector<32x32xbf16>, vector<8x32xf32> -> vector<8x32xf32>
    %120 = vector.extract_strided_slice %111 {offsets = [0, 64], sizes = [8, 32], strides = [1, 1]} : vector<8x256xbf16> to vector<8x32xbf16>
    %c0_64 = arith.constant 0 : index
    %c2 = arith.constant 2 : index
    %c0_65 = arith.constant 0 : index
    %c0_66 = arith.constant 0 : index
    %121 = vector.load %arg3[%c0_64, %c2, %c0_65, %c0_66] : memref<8x8x32x32xbf16, #tpu.memory_space<vmem>>, vector<1x1x32x32xbf16>
    %122 = vector.shape_cast %121 : vector<1x1x32x32xbf16> to vector<32x32xbf16>
    %cst_67 = arith.constant dense<0.000000e+00> : vector<8x32xf32>
    %123 = tpu.matmul %120, %122, %cst_67 {dimension_numbers = #tpu.dot_dimension_numbers<[1], [0], [0], [1], [0, 0, 1, 1], [], []>} : vector<8x32xbf16>, vector<32x32xbf16>, vector<8x32xf32> -> vector<8x32xf32>
    %124 = vector.extract_strided_slice %111 {offsets = [0, 96], sizes = [8, 32], strides = [1, 1]} : vector<8x256xbf16> to vector<8x32xbf16>
    %c0_68 = arith.constant 0 : index
    %c3 = arith.constant 3 : index
    %c0_69 = arith.constant 0 : index
    %c0_70 = arith.constant 0 : index
    %125 = vector.load %arg3[%c0_68, %c3, %c0_69, %c0_70] : memref<8x8x32x32xbf16, #tpu.memory_space<vmem>>, vector<1x1x32x32xbf16>
    %126 = vector.shape_cast %125 : vector<1x1x32x32xbf16> to vector<32x32xbf16>
    %cst_71 = arith.constant dense<0.000000e+00> : vector<8x32xf32>
    %127 = tpu.matmul %124, %126, %cst_71 {dimension_numbers = #tpu.dot_dimension_numbers<[1], [0], [0], [1], [0, 0, 1, 1], [], []>} : vector<8x32xbf16>, vector<32x32xbf16>, vector<8x32xf32> -> vector<8x32xf32>
    %128 = vector.extract_strided_slice %111 {offsets = [0, 128], sizes = [8, 32], strides = [1, 1]} : vector<8x256xbf16> to vector<8x32xbf16>
    %c0_72 = arith.constant 0 : index
    %c4 = arith.constant 4 : index
    %c0_73 = arith.constant 0 : index
    %c0_74 = arith.constant 0 : index
    %129 = vector.load %arg3[%c0_72, %c4, %c0_73, %c0_74] : memref<8x8x32x32xbf16, #tpu.memory_space<vmem>>, vector<1x1x32x32xbf16>
    %130 = vector.shape_cast %129 : vector<1x1x32x32xbf16> to vector<32x32xbf16>
    %cst_75 = arith.constant dense<0.000000e+00> : vector<8x32xf32>
    %131 = tpu.matmul %128, %130, %cst_75 {dimension_numbers = #tpu.dot_dimension_numbers<[1], [0], [0], [1], [0, 0, 1, 1], [], []>} : vector<8x32xbf16>, vector<32x32xbf16>, vector<8x32xf32> -> vector<8x32xf32>
    %132 = vector.extract_strided_slice %111 {offsets = [0, 160], sizes = [8, 32], strides = [1, 1]} : vector<8x256xbf16> to vector<8x32xbf16>
    %c0_76 = arith.constant 0 : index
    %c5 = arith.constant 5 : index
    %c0_77 = arith.constant 0 : index
    %c0_78 = arith.constant 0 : index
    %133 = vector.load %arg3[%c0_76, %c5, %c0_77, %c0_78] : memref<8x8x32x32xbf16, #tpu.memory_space<vmem>>, vector<1x1x32x32xbf16>
    %134 = vector.shape_cast %133 : vector<1x1x32x32xbf16> to vector<32x32xbf16>
    %cst_79 = arith.constant dense<0.000000e+00> : vector<8x32xf32>
    %135 = tpu.matmul %132, %134, %cst_79 {dimension_numbers = #tpu.dot_dimension_numbers<[1], [0], [0], [1], [0, 0, 1, 1], [], []>} : vector<8x32xbf16>, vector<32x32xbf16>, vector<8x32xf32> -> vector<8x32xf32>
    %136 = vector.extract_strided_slice %111 {offsets = [0, 192], sizes = [8, 32], strides = [1, 1]} : vector<8x256xbf16> to vector<8x32xbf16>
    %c0_80 = arith.constant 0 : index
    %c6 = arith.constant 6 : index
    %c0_81 = arith.constant 0 : index
    %c0_82 = arith.constant 0 : index
    %137 = vector.load %arg3[%c0_80, %c6, %c0_81, %c0_82] : memref<8x8x32x32xbf16, #tpu.memory_space<vmem>>, vector<1x1x32x32xbf16>
    %138 = vector.shape_cast %137 : vector<1x1x32x32xbf16> to vector<32x32xbf16>
    %cst_83 = arith.constant dense<0.000000e+00> : vector<8x32xf32>
    %139 = tpu.matmul %136, %138, %cst_83 {dimension_numbers = #tpu.dot_dimension_numbers<[1], [0], [0], [1], [0, 0, 1, 1], [], []>} : vector<8x32xbf16>, vector<32x32xbf16>, vector<8x32xf32> -> vector<8x32xf32>
    %140 = vector.extract_strided_slice %111 {offsets = [0, 224], sizes = [8, 32], strides = [1, 1]} : vector<8x256xbf16> to vector<8x32xbf16>
    %c0_84 = arith.constant 0 : index
    %c7 = arith.constant 7 : index
    %c0_85 = arith.constant 0 : index
    %c0_86 = arith.constant 0 : index
    %141 = vector.load %arg3[%c0_84, %c7, %c0_85, %c0_86] : memref<8x8x32x32xbf16, #tpu.memory_space<vmem>>, vector<1x1x32x32xbf16>
    %142 = vector.shape_cast %141 : vector<1x1x32x32xbf16> to vector<32x32xbf16>
    %cst_87 = arith.constant dense<0.000000e+00> : vector<8x32xf32>
    %143 = tpu.matmul %140, %142, %cst_87 {dimension_numbers = #tpu.dot_dimension_numbers<[1], [0], [0], [1], [0, 0, 1, 1], [], []>} : vector<8x32xbf16>, vector<32x32xbf16>, vector<8x32xf32> -> vector<8x32xf32>
    %144 = tpu.concatenate %115, %119, %123, %127, %131, %135, %139, %143 in 1 : vector<8x32xf32>, vector<8x32xf32>, vector<8x32xf32>, vector<8x32xf32>, vector<8x32xf32>, vector<8x32xf32>, vector<8x32xf32>, vector<8x32xf32> -> vector<8x256xf32>
    %145 = arith.truncf %144 : vector<8x256xf32> to vector<8x256xbf16>
    %cst_88 = arith.constant dense<0.000000e+00> : vector<16x256xf32>
    %146 = tpu.matmul %7, %145, %cst_88 {dimension_numbers = #tpu.dot_dimension_numbers<[1], [0], [0], [1], [0, 0, 1, 1], [], []>} : vector<16x8xbf16>, vector<8x256xbf16>, vector<16x256xf32> -> vector<16x256xf32>
    %147 = vector.broadcast %43 : vector<16x1xf32> to vector<16x256xf32>
    %148 = arith.addf %146, %147 : vector<16x256xf32>
    %cst_89 = arith.constant 0.000000e+00 : f32
    %149 = vector.broadcast %cst_89 : f32 to vector<16x256xf32>
    %150 = arith.cmpf oge, %148, %149 : vector<16x256xf32>
    %cst_90 = arith.constant 0.00999999977 : f32
    %151 = vector.broadcast %cst_90 : f32 to vector<16x256xf32>
    %152 = arith.mulf %151, %148 : vector<16x256xf32>
    %153 = arith.select %150, %148, %152 : vector<16x256xi1>, vector<16x256xf32>
    %154 = arith.truncf %153 : vector<16x256xf32> to vector<16x256xbf16>
    %cst_91 = arith.constant dense<0.000000e+00> : vector<8x256xf32>
    %155 = tpu.matmul %9, %154, %cst_91 {dimension_numbers = #tpu.dot_dimension_numbers<[1], [0], [0], [1], [0, 0, 1, 1], [], []>} : vector<8x16xbf16>, vector<16x256xbf16>, vector<8x256xf32> -> vector<8x256xf32>
    %156 = vector.broadcast %44 : vector<8x1xf32> to vector<8x256xf32>
    %157 = arith.addf %155, %156 : vector<8x256xf32>
    %cst_92 = arith.constant 0.000000e+00 : f32
    %158 = vector.broadcast %cst_92 : f32 to vector<8x256xf32>
    %159 = arith.cmpf oge, %157, %158 : vector<8x256xf32>
    %cst_93 = arith.constant 0.00999999977 : f32
    %160 = vector.broadcast %cst_93 : f32 to vector<8x256xf32>
    %161 = arith.mulf %160, %157 : vector<8x256xf32>
    %162 = arith.select %159, %157, %161 : vector<8x256xi1>, vector<8x256xf32>
    %163 = arith.truncf %162 : vector<8x256xf32> to vector<8x256xbf16>
    %cst_94 = arith.constant dense<0.000000e+00> : vector<8x256xf32>
    %164 = tpu.matmul %11, %163, %cst_94 {dimension_numbers = #tpu.dot_dimension_numbers<[1], [0], [0], [1], [0, 0, 1, 1], [], []>} : vector<8x8xbf16>, vector<8x256xbf16>, vector<8x256xf32> -> vector<8x256xf32>
    %165 = vector.broadcast %45 : vector<8x1xf32> to vector<8x256xf32>
    %166 = arith.addf %164, %165 : vector<8x256xf32>
    %cst_95 = arith.constant 0.000000e+00 : f32
    %167 = vector.broadcast %cst_95 : f32 to vector<8x256xf32>
    %168 = arith.cmpf oge, %166, %167 : vector<8x256xf32>
    %cst_96 = arith.constant 0.00999999977 : f32
    %169 = vector.broadcast %cst_96 : f32 to vector<8x256xf32>
    %170 = arith.mulf %169, %166 : vector<8x256xf32>
    %171 = arith.select %168, %166, %170 : vector<8x256xi1>, vector<8x256xf32>
    %c0_97 = arith.constant 0 : index
    %c0_98 = arith.constant 0 : index
    %172 = vector.load %arg2[%c0_97, %c0_98] : memref<16x256xf32, #tpu.memory_space<vmem>>, vector<1x256xf32>
    %173 = vector.broadcast %172 : vector<1x256xf32> to vector<8x256xf32>
    %174 = arith.mulf %171, %173 : vector<8x256xf32>
    %175 = arith.addf %83, %174 : vector<8x256xf32>
    %176 = arith.truncf %175 : vector<8x256xf32> to vector<8x256xbf16>
    %cst_99 = arith.constant dense<0.000000e+00> : vector<16x256xf32>
    %177 = tpu.matmul %7, %176, %cst_99 {dimension_numbers = #tpu.dot_dimension_numbers<[1], [0], [0], [1], [0, 0, 1, 1], [], []>} : vector<16x8xbf16>, vector<8x256xbf16>, vector<16x256xf32> -> vector<16x256xf32>
    %178 = vector.broadcast %43 : vector<16x1xf32> to vector<16x256xf32>
    %179 = arith.addf %177, %178 : vector<16x256xf32>
    %cst_100 = arith.constant 0.000000e+00 : f32
    %180 = vector.broadcast %cst_100 : f32 to vector<16x256xf32>
    %181 = arith.cmpf oge, %179, %180 : vector<16x256xf32>
    %cst_101 = arith.constant 0.00999999977 : f32
    %182 = vector.broadcast %cst_101 : f32 to vector<16x256xf32>
    %183 = arith.mulf %182, %179 : vector<16x256xf32>
    %184 = arith.select %181, %179, %183 : vector<16x256xi1>, vector<16x256xf32>
    %185 = arith.truncf %184 : vector<16x256xf32> to vector<16x256xbf16>
    %cst_102 = arith.constant dense<0.000000e+00> : vector<8x256xf32>
    %186 = tpu.matmul %9, %185, %cst_102 {dimension_numbers = #tpu.dot_dimension_numbers<[1], [0], [0], [1], [0, 0, 1, 1], [], []>} : vector<8x16xbf16>, vector<16x256xbf16>, vector<8x256xf32> -> vector<8x256xf32>
    %187 = vector.broadcast %44 : vector<8x1xf32> to vector<8x256xf32>
    %188 = arith.addf %186, %187 : vector<8x256xf32>
    %cst_103 = arith.constant 0.000000e+00 : f32
    %189 = vector.broadcast %cst_103 : f32 to vector<8x256xf32>
    %190 = arith.cmpf oge, %188, %189 : vector<8x256xf32>
    %cst_104 = arith.constant 0.00999999977 : f32
    %191 = vector.broadcast %cst_104 : f32 to vector<8x256xf32>
    %192 = arith.mulf %191, %188 : vector<8x256xf32>
    %193 = arith.select %190, %188, %192 : vector<8x256xi1>, vector<8x256xf32>
    %194 = arith.truncf %193 : vector<8x256xf32> to vector<8x256xbf16>
    %cst_105 = arith.constant dense<0.000000e+00> : vector<8x256xf32>
    %195 = tpu.matmul %11, %194, %cst_105 {dimension_numbers = #tpu.dot_dimension_numbers<[1], [0], [0], [1], [0, 0, 1, 1], [], []>} : vector<8x8xbf16>, vector<8x256xbf16>, vector<8x256xf32> -> vector<8x256xf32>
    %196 = vector.broadcast %45 : vector<8x1xf32> to vector<8x256xf32>
    %197 = arith.addf %195, %196 : vector<8x256xf32>
    %cst_106 = arith.constant 0.000000e+00 : f32
    %198 = vector.broadcast %cst_106 : f32 to vector<8x256xf32>
    %199 = arith.cmpf oge, %197, %198 : vector<8x256xf32>
    %cst_107 = arith.constant 0.00999999977 : f32
    %200 = vector.broadcast %cst_107 : f32 to vector<8x256xf32>
    %201 = arith.mulf %200, %197 : vector<8x256xf32>
    %202 = arith.select %199, %197, %201 : vector<8x256xi1>, vector<8x256xf32>
    %203 = arith.truncf %202 : vector<8x256xf32> to vector<8x256xbf16>
    %204 = vector.extract_strided_slice %203 {offsets = [0, 0], sizes = [8, 32], strides = [1, 1]} : vector<8x256xbf16> to vector<8x32xbf16>
    %c1_108 = arith.constant 1 : index
    %c0_109 = arith.constant 0 : index
    %c0_110 = arith.constant 0 : index
    %c0_111 = arith.constant 0 : index
    %205 = vector.load %arg3[%c1_108, %c0_109, %c0_110, %c0_111] : memref<8x8x32x32xbf16, #tpu.memory_space<vmem>>, vector<1x1x32x32xbf16>
    %206 = vector.shape_cast %205 : vector<1x1x32x32xbf16> to vector<32x32xbf16>
    %cst_112 = arith.constant dense<0.000000e+00> : vector<8x32xf32>
    %207 = tpu.matmul %204, %206, %cst_112 {dimension_numbers = #tpu.dot_dimension_numbers<[1], [0], [0], [1], [0, 0, 1, 1], [], []>} : vector<8x32xbf16>, vector<32x32xbf16>, vector<8x32xf32> -> vector<8x32xf32>
    %208 = vector.extract_strided_slice %203 {offsets = [0, 32], sizes = [8, 32], strides = [1, 1]} : vector<8x256xbf16> to vector<8x32xbf16>
    %c1_113 = arith.constant 1 : index
    %c1_114 = arith.constant 1 : index
    %c0_115 = arith.constant 0 : index
    %c0_116 = arith.constant 0 : index
    %209 = vector.load %arg3[%c1_113, %c1_114, %c0_115, %c0_116] : memref<8x8x32x32xbf16, #tpu.memory_space<vmem>>, vector<1x1x32x32xbf16>
    %210 = vector.shape_cast %209 : vector<1x1x32x32xbf16> to vector<32x32xbf16>
    %cst_117 = arith.constant dense<0.000000e+00> : vector<8x32xf32>
    %211 = tpu.matmul %208, %210, %cst_117 {dimension_numbers = #tpu.dot_dimension_numbers<[1], [0], [0], [1], [0, 0, 1, 1], [], []>} : vector<8x32xbf16>, vector<32x32xbf16>, vector<8x32xf32> -> vector<8x32xf32>
    %212 = vector.extract_strided_slice %203 {offsets = [0, 64], sizes = [8, 32], strides = [1, 1]} : vector<8x256xbf16> to vector<8x32xbf16>
    %c1_118 = arith.constant 1 : index
    %c2_119 = arith.constant 2 : index
    %c0_120 = arith.constant 0 : index
    %c0_121 = arith.constant 0 : index
    %213 = vector.load %arg3[%c1_118, %c2_119, %c0_120, %c0_121] : memref<8x8x32x32xbf16, #tpu.memory_space<vmem>>, vector<1x1x32x32xbf16>
    %214 = vector.shape_cast %213 : vector<1x1x32x32xbf16> to vector<32x32xbf16>
    %cst_122 = arith.constant dense<0.000000e+00> : vector<8x32xf32>
    %215 = tpu.matmul %212, %214, %cst_122 {dimension_numbers = #tpu.dot_dimension_numbers<[1], [0], [0], [1], [0, 0, 1, 1], [], []>} : vector<8x32xbf16>, vector<32x32xbf16>, vector<8x32xf32> -> vector<8x32xf32>
    %216 = vector.extract_strided_slice %203 {offsets = [0, 96], sizes = [8, 32], strides = [1, 1]} : vector<8x256xbf16> to vector<8x32xbf16>
    %c1_123 = arith.constant 1 : index
    %c3_124 = arith.constant 3 : index
    %c0_125 = arith.constant 0 : index
    %c0_126 = arith.constant 0 : index
    %217 = vector.load %arg3[%c1_123, %c3_124, %c0_125, %c0_126] : memref<8x8x32x32xbf16, #tpu.memory_space<vmem>>, vector<1x1x32x32xbf16>
    %218 = vector.shape_cast %217 : vector<1x1x32x32xbf16> to vector<32x32xbf16>
    %cst_127 = arith.constant dense<0.000000e+00> : vector<8x32xf32>
    %219 = tpu.matmul %216, %218, %cst_127 {dimension_numbers = #tpu.dot_dimension_numbers<[1], [0], [0], [1], [0, 0, 1, 1], [], []>} : vector<8x32xbf16>, vector<32x32xbf16>, vector<8x32xf32> -> vector<8x32xf32>
    %220 = vector.extract_strided_slice %203 {offsets = [0, 128], sizes = [8, 32], strides = [1, 1]} : vector<8x256xbf16> to vector<8x32xbf16>
    %c1_128 = arith.constant 1 : index
    %c4_129 = arith.constant 4 : index
    %c0_130 = arith.constant 0 : index
    %c0_131 = arith.constant 0 : index
    %221 = vector.load %arg3[%c1_128, %c4_129, %c0_130, %c0_131] : memref<8x8x32x32xbf16, #tpu.memory_space<vmem>>, vector<1x1x32x32xbf16>
    %222 = vector.shape_cast %221 : vector<1x1x32x32xbf16> to vector<32x32xbf16>
    %cst_132 = arith.constant dense<0.000000e+00> : vector<8x32xf32>
    %223 = tpu.matmul %220, %222, %cst_132 {dimension_numbers = #tpu.dot_dimension_numbers<[1], [0], [0], [1], [0, 0, 1, 1], [], []>} : vector<8x32xbf16>, vector<32x32xbf16>, vector<8x32xf32> -> vector<8x32xf32>
    %224 = vector.extract_strided_slice %203 {offsets = [0, 160], sizes = [8, 32], strides = [1, 1]} : vector<8x256xbf16> to vector<8x32xbf16>
    %c1_133 = arith.constant 1 : index
    %c5_134 = arith.constant 5 : index
    %c0_135 = arith.constant 0 : index
    %c0_136 = arith.constant 0 : index
    %225 = vector.load %arg3[%c1_133, %c5_134, %c0_135, %c0_136] : memref<8x8x32x32xbf16, #tpu.memory_space<vmem>>, vector<1x1x32x32xbf16>
    %226 = vector.shape_cast %225 : vector<1x1x32x32xbf16> to vector<32x32xbf16>
    %cst_137 = arith.constant dense<0.000000e+00> : vector<8x32xf32>
    %227 = tpu.matmul %224, %226, %cst_137 {dimension_numbers = #tpu.dot_dimension_numbers<[1], [0], [0], [1], [0, 0, 1, 1], [], []>} : vector<8x32xbf16>, vector<32x32xbf16>, vector<8x32xf32> -> vector<8x32xf32>
    %228 = vector.extract_strided_slice %203 {offsets = [0, 192], sizes = [8, 32], strides = [1, 1]} : vector<8x256xbf16> to vector<8x32xbf16>
    %c1_138 = arith.constant 1 : index
    %c6_139 = arith.constant 6 : index
    %c0_140 = arith.constant 0 : index
    %c0_141 = arith.constant 0 : index
    %229 = vector.load %arg3[%c1_138, %c6_139, %c0_140, %c0_141] : memref<8x8x32x32xbf16, #tpu.memory_space<vmem>>, vector<1x1x32x32xbf16>
    %230 = vector.shape_cast %229 : vector<1x1x32x32xbf16> to vector<32x32xbf16>
    %cst_142 = arith.constant dense<0.000000e+00> : vector<8x32xf32>
    %231 = tpu.matmul %228, %230, %cst_142 {dimension_numbers = #tpu.dot_dimension_numbers<[1], [0], [0], [1], [0, 0, 1, 1], [], []>} : vector<8x32xbf16>, vector<32x32xbf16>, vector<8x32xf32> -> vector<8x32xf32>
    %232 = vector.extract_strided_slice %203 {offsets = [0, 224], sizes = [8, 32], strides = [1, 1]} : vector<8x256xbf16> to vector<8x32xbf16>
    %c1_143 = arith.constant 1 : index
    %c7_144 = arith.constant 7 : index
    %c0_145 = arith.constant 0 : index
    %c0_146 = arith.constant 0 : index
    %233 = vector.load %arg3[%c1_143, %c7_144, %c0_145, %c0_146] : memref<8x8x32x32xbf16, #tpu.memory_space<vmem>>, vector<1x1x32x32xbf16>
    %234 = vector.shape_cast %233 : vector<1x1x32x32xbf16> to vector<32x32xbf16>
    %cst_147 = arith.constant dense<0.000000e+00> : vector<8x32xf32>
    %235 = tpu.matmul %232, %234, %cst_147 {dimension_numbers = #tpu.dot_dimension_numbers<[1], [0], [0], [1], [0, 0, 1, 1], [], []>} : vector<8x32xbf16>, vector<32x32xbf16>, vector<8x32xf32> -> vector<8x32xf32>
    %236 = tpu.concatenate %207, %211, %215, %219, %223, %227, %231, %235 in 1 : vector<8x32xf32>, vector<8x32xf32>, vector<8x32xf32>, vector<8x32xf32>, vector<8x32xf32>, vector<8x32xf32>, vector<8x32xf32>, vector<8x32xf32> -> vector<8x256xf32>
    %237 = arith.truncf %236 : vector<8x256xf32> to vector<8x256xbf16>
    %cst_148 = arith.constant dense<0.000000e+00> : vector<16x256xf32>
    %238 = tpu.matmul %7, %237, %cst_148 {dimension_numbers = #tpu.dot_dimension_numbers<[1], [0], [0], [1], [0, 0, 1, 1], [], []>} : vector<16x8xbf16>, vector<8x256xbf16>, vector<16x256xf32> -> vector<16x256xf32>
    %239 = vector.broadcast %43 : vector<16x1xf32> to vector<16x256xf32>
    %240 = arith.addf %238, %239 : vector<16x256xf32>
    %cst_149 = arith.constant 0.000000e+00 : f32
    %241 = vector.broadcast %cst_149 : f32 to vector<16x256xf32>
    %242 = arith.cmpf oge, %240, %241 : vector<16x256xf32>
    %cst_150 = arith.constant 0.00999999977 : f32
    %243 = vector.broadcast %cst_150 : f32 to vector<16x256xf32>
    %244 = arith.mulf %243, %240 : vector<16x256xf32>
    %245 = arith.select %242, %240, %244 : vector<16x256xi1>, vector<16x256xf32>
    %246 = arith.truncf %245 : vector<16x256xf32> to vector<16x256xbf16>
    %cst_151 = arith.constant dense<0.000000e+00> : vector<8x256xf32>
    %247 = tpu.matmul %9, %246, %cst_151 {dimension_numbers = #tpu.dot_dimension_numbers<[1], [0], [0], [1], [0, 0, 1, 1], [], []>} : vector<8x16xbf16>, vector<16x256xbf16>, vector<8x256xf32> -> vector<8x256xf32>
    %248 = vector.broadcast %44 : vector<8x1xf32> to vector<8x256xf32>
    %249 = arith.addf %247, %248 : vector<8x256xf32>
    %cst_152 = arith.constant 0.000000e+00 : f32
    %250 = vector.broadcast %cst_152 : f32 to vector<8x256xf32>
    %251 = arith.cmpf oge, %249, %250 : vector<8x256xf32>
    %cst_153 = arith.constant 0.00999999977 : f32
    %252 = vector.broadcast %cst_153 : f32 to vector<8x256xf32>
    %253 = arith.mulf %252, %249 : vector<8x256xf32>
    %254 = arith.select %251, %249, %253 : vector<8x256xi1>, vector<8x256xf32>
    %255 = arith.truncf %254 : vector<8x256xf32> to vector<8x256xbf16>
    %cst_154 = arith.constant dense<0.000000e+00> : vector<8x256xf32>
    %256 = tpu.matmul %11, %255, %cst_154 {dimension_numbers = #tpu.dot_dimension_numbers<[1], [0], [0], [1], [0, 0, 1, 1], [], []>} : vector<8x8xbf16>, vector<8x256xbf16>, vector<8x256xf32> -> vector<8x256xf32>
    %257 = vector.broadcast %45 : vector<8x1xf32> to vector<8x256xf32>
    %258 = arith.addf %256, %257 : vector<8x256xf32>
    %cst_155 = arith.constant 0.000000e+00 : f32
    %259 = vector.broadcast %cst_155 : f32 to vector<8x256xf32>
    %260 = arith.cmpf oge, %258, %259 : vector<8x256xf32>
    %cst_156 = arith.constant 0.00999999977 : f32
    %261 = vector.broadcast %cst_156 : f32 to vector<8x256xf32>
    %262 = arith.mulf %261, %258 : vector<8x256xf32>
    %263 = arith.select %260, %258, %262 : vector<8x256xi1>, vector<8x256xf32>
    %c1_157 = arith.constant 1 : index
    %c0_158 = arith.constant 0 : index
    %264 = vector.load %arg2[%c1_157, %c0_158] : memref<16x256xf32, #tpu.memory_space<vmem>>, vector<1x256xf32>
    %265 = vector.broadcast %264 : vector<1x256xf32> to vector<8x256xf32>
    %266 = arith.mulf %263, %265 : vector<8x256xf32>
    %267 = arith.addf %175, %266 : vector<8x256xf32>
    %268 = arith.truncf %267 : vector<8x256xf32> to vector<8x256xbf16>
    %cst_159 = arith.constant dense<0.000000e+00> : vector<16x256xf32>
    %269 = tpu.matmul %7, %268, %cst_159 {dimension_numbers = #tpu.dot_dimension_numbers<[1], [0], [0], [1], [0, 0, 1, 1], [], []>} : vector<16x8xbf16>, vector<8x256xbf16>, vector<16x256xf32> -> vector<16x256xf32>
    %270 = vector.broadcast %43 : vector<16x1xf32> to vector<16x256xf32>
    %271 = arith.addf %269, %270 : vector<16x256xf32>
    %cst_160 = arith.constant 0.000000e+00 : f32
    %272 = vector.broadcast %cst_160 : f32 to vector<16x256xf32>
    %273 = arith.cmpf oge, %271, %272 : vector<16x256xf32>
    %cst_161 = arith.constant 0.00999999977 : f32
    %274 = vector.broadcast %cst_161 : f32 to vector<16x256xf32>
    %275 = arith.mulf %274, %271 : vector<16x256xf32>
    %276 = arith.select %273, %271, %275 : vector<16x256xi1>, vector<16x256xf32>
    %277 = arith.truncf %276 : vector<16x256xf32> to vector<16x256xbf16>
    %cst_162 = arith.constant dense<0.000000e+00> : vector<8x256xf32>
    %278 = tpu.matmul %9, %277, %cst_162 {dimension_numbers = #tpu.dot_dimension_numbers<[1], [0], [0], [1], [0, 0, 1, 1], [], []>} : vector<8x16xbf16>, vector<16x256xbf16>, vector<8x256xf32> -> vector<8x256xf32>
    %279 = vector.broadcast %44 : vector<8x1xf32> to vector<8x256xf32>
    %280 = arith.addf %278, %279 : vector<8x256xf32>
    %cst_163 = arith.constant 0.000000e+00 : f32
    %281 = vector.broadcast %cst_163 : f32 to vector<8x256xf32>
    %282 = arith.cmpf oge, %280, %281 : vector<8x256xf32>
    %cst_164 = arith.constant 0.00999999977 : f32
    %283 = vector.broadcast %cst_164 : f32 to vector<8x256xf32>
    %284 = arith.mulf %283, %280 : vector<8x256xf32>
    %285 = arith.select %282, %280, %284 : vector<8x256xi1>, vector<8x256xf32>
    %286 = arith.truncf %285 : vector<8x256xf32> to vector<8x256xbf16>
    %cst_165 = arith.constant dense<0.000000e+00> : vector<8x256xf32>
    %287 = tpu.matmul %11, %286, %cst_165 {dimension_numbers = #tpu.dot_dimension_numbers<[1], [0], [0], [1], [0, 0, 1, 1], [], []>} : vector<8x8xbf16>, vector<8x256xbf16>, vector<8x256xf32> -> vector<8x256xf32>
    %288 = vector.broadcast %45 : vector<8x1xf32> to vector<8x256xf32>
    %289 = arith.addf %287, %288 : vector<8x256xf32>
    %cst_166 = arith.constant 0.000000e+00 : f32
    %290 = vector.broadcast %cst_166 : f32 to vector<8x256xf32>
    %291 = arith.cmpf oge, %289, %290 : vector<8x256xf32>
    %cst_167 = arith.constant 0.00999999977 : f32
    %292 = vector.broadcast %cst_167 : f32 to vector<8x256xf32>
    %293 = arith.mulf %292, %289 : vector<8x256xf32>
    %294 = arith.select %291, %289, %293 : vector<8x256xi1>, vector<8x256xf32>
    %295 = arith.truncf %294 : vector<8x256xf32> to vector<8x256xbf16>
    %296 = vector.extract_strided_slice %295 {offsets = [0, 0], sizes = [8, 32], strides = [1, 1]} : vector<8x256xbf16> to vector<8x32xbf16>
    %c2_168 = arith.constant 2 : index
    %c0_169 = arith.constant 0 : index
    %c0_170 = arith.constant 0 : index
    %c0_171 = arith.constant 0 : index
    %297 = vector.load %arg3[%c2_168, %c0_169, %c0_170, %c0_171] : memref<8x8x32x32xbf16, #tpu.memory_space<vmem>>, vector<1x1x32x32xbf16>
    %298 = vector.shape_cast %297 : vector<1x1x32x32xbf16> to vector<32x32xbf16>
    %cst_172 = arith.constant dense<0.000000e+00> : vector<8x32xf32>
    %299 = tpu.matmul %296, %298, %cst_172 {dimension_numbers = #tpu.dot_dimension_numbers<[1], [0], [0], [1], [0, 0, 1, 1], [], []>} : vector<8x32xbf16>, vector<32x32xbf16>, vector<8x32xf32> -> vector<8x32xf32>
    %300 = vector.extract_strided_slice %295 {offsets = [0, 32], sizes = [8, 32], strides = [1, 1]} : vector<8x256xbf16> to vector<8x32xbf16>
    %c2_173 = arith.constant 2 : index
    %c1_174 = arith.constant 1 : index
    %c0_175 = arith.constant 0 : index
    %c0_176 = arith.constant 0 : index
    %301 = vector.load %arg3[%c2_173, %c1_174, %c0_175, %c0_176] : memref<8x8x32x32xbf16, #tpu.memory_space<vmem>>, vector<1x1x32x32xbf16>
    %302 = vector.shape_cast %301 : vector<1x1x32x32xbf16> to vector<32x32xbf16>
    %cst_177 = arith.constant dense<0.000000e+00> : vector<8x32xf32>
    %303 = tpu.matmul %300, %302, %cst_177 {dimension_numbers = #tpu.dot_dimension_numbers<[1], [0], [0], [1], [0, 0, 1, 1], [], []>} : vector<8x32xbf16>, vector<32x32xbf16>, vector<8x32xf32> -> vector<8x32xf32>
    %304 = vector.extract_strided_slice %295 {offsets = [0, 64], sizes = [8, 32], strides = [1, 1]} : vector<8x256xbf16> to vector<8x32xbf16>
    %c2_178 = arith.constant 2 : index
    %c2_179 = arith.constant 2 : index
    %c0_180 = arith.constant 0 : index
    %c0_181 = arith.constant 0 : index
    %305 = vector.load %arg3[%c2_178, %c2_179, %c0_180, %c0_181] : memref<8x8x32x32xbf16, #tpu.memory_space<vmem>>, vector<1x1x32x32xbf16>
    %306 = vector.shape_cast %305 : vector<1x1x32x32xbf16> to vector<32x32xbf16>
    %cst_182 = arith.constant dense<0.000000e+00> : vector<8x32xf32>
    %307 = tpu.matmul %304, %306, %cst_182 {dimension_numbers = #tpu.dot_dimension_numbers<[1], [0], [0], [1], [0, 0, 1, 1], [], []>} : vector<8x32xbf16>, vector<32x32xbf16>, vector<8x32xf32> -> vector<8x32xf32>
    %308 = vector.extract_strided_slice %295 {offsets = [0, 96], sizes = [8, 32], strides = [1, 1]} : vector<8x256xbf16> to vector<8x32xbf16>
    %c2_183 = arith.constant 2 : index
    %c3_184 = arith.constant 3 : index
    %c0_185 = arith.constant 0 : index
    %c0_186 = arith.constant 0 : index
    %309 = vector.load %arg3[%c2_183, %c3_184, %c0_185, %c0_186] : memref<8x8x32x32xbf16, #tpu.memory_space<vmem>>, vector<1x1x32x32xbf16>
    %310 = vector.shape_cast %309 : vector<1x1x32x32xbf16> to vector<32x32xbf16>
    %cst_187 = arith.constant dense<0.000000e+00> : vector<8x32xf32>
    %311 = tpu.matmul %308, %310, %cst_187 {dimension_numbers = #tpu.dot_dimension_numbers<[1], [0], [0], [1], [0, 0, 1, 1], [], []>} : vector<8x32xbf16>, vector<32x32xbf16>, vector<8x32xf32> -> vector<8x32xf32>
    %312 = vector.extract_strided_slice %295 {offsets = [0, 128], sizes = [8, 32], strides = [1, 1]} : vector<8x256xbf16> to vector<8x32xbf16>
    %c2_188 = arith.constant 2 : index
    %c4_189 = arith.constant 4 : index
    %c0_190 = arith.constant 0 : index
    %c0_191 = arith.constant 0 : index
    %313 = vector.load %arg3[%c2_188, %c4_189, %c0_190, %c0_191] : memref<8x8x32x32xbf16, #tpu.memory_space<vmem>>, vector<1x1x32x32xbf16>
    %314 = vector.shape_cast %313 : vector<1x1x32x32xbf16> to vector<32x32xbf16>
    %cst_192 = arith.constant dense<0.000000e+00> : vector<8x32xf32>
    %315 = tpu.matmul %312, %314, %cst_192 {dimension_numbers = #tpu.dot_dimension_numbers<[1], [0], [0], [1], [0, 0, 1, 1], [], []>} : vector<8x32xbf16>, vector<32x32xbf16>, vector<8x32xf32> -> vector<8x32xf32>
    %316 = vector.extract_strided_slice %295 {offsets = [0, 160], sizes = [8, 32], strides = [1, 1]} : vector<8x256xbf16> to vector<8x32xbf16>
    %c2_193 = arith.constant 2 : index
    %c5_194 = arith.constant 5 : index
    %c0_195 = arith.constant 0 : index
    %c0_196 = arith.constant 0 : index
    %317 = vector.load %arg3[%c2_193, %c5_194, %c0_195, %c0_196] : memref<8x8x32x32xbf16, #tpu.memory_space<vmem>>, vector<1x1x32x32xbf16>
    %318 = vector.shape_cast %317 : vector<1x1x32x32xbf16> to vector<32x32xbf16>
    %cst_197 = arith.constant dense<0.000000e+00> : vector<8x32xf32>
    %319 = tpu.matmul %316, %318, %cst_197 {dimension_numbers = #tpu.dot_dimension_numbers<[1], [0], [0], [1], [0, 0, 1, 1], [], []>} : vector<8x32xbf16>, vector<32x32xbf16>, vector<8x32xf32> -> vector<8x32xf32>
    %320 = vector.extract_strided_slice %295 {offsets = [0, 192], sizes = [8, 32], strides = [1, 1]} : vector<8x256xbf16> to vector<8x32xbf16>
    %c2_198 = arith.constant 2 : index
    %c6_199 = arith.constant 6 : index
    %c0_200 = arith.constant 0 : index
    %c0_201 = arith.constant 0 : index
    %321 = vector.load %arg3[%c2_198, %c6_199, %c0_200, %c0_201] : memref<8x8x32x32xbf16, #tpu.memory_space<vmem>>, vector<1x1x32x32xbf16>
    %322 = vector.shape_cast %321 : vector<1x1x32x32xbf16> to vector<32x32xbf16>
    %cst_202 = arith.constant dense<0.000000e+00> : vector<8x32xf32>
    %323 = tpu.matmul %320, %322, %cst_202 {dimension_numbers = #tpu.dot_dimension_numbers<[1], [0], [0], [1], [0, 0, 1, 1], [], []>} : vector<8x32xbf16>, vector<32x32xbf16>, vector<8x32xf32> -> vector<8x32xf32>
    %324 = vector.extract_strided_slice %295 {offsets = [0, 224], sizes = [8, 32], strides = [1, 1]} : vector<8x256xbf16> to vector<8x32xbf16>
    %c2_203 = arith.constant 2 : index
    %c7_204 = arith.constant 7 : index
    %c0_205 = arith.constant 0 : index
    %c0_206 = arith.constant 0 : index
    %325 = vector.load %arg3[%c2_203, %c7_204, %c0_205, %c0_206] : memref<8x8x32x32xbf16, #tpu.memory_space<vmem>>, vector<1x1x32x32xbf16>
    %326 = vector.shape_cast %325 : vector<1x1x32x32xbf16> to vector<32x32xbf16>
    %cst_207 = arith.constant dense<0.000000e+00> : vector<8x32xf32>
    %327 = tpu.matmul %324, %326, %cst_207 {dimension_numbers = #tpu.dot_dimension_numbers<[1], [0], [0], [1], [0, 0, 1, 1], [], []>} : vector<8x32xbf16>, vector<32x32xbf16>, vector<8x32xf32> -> vector<8x32xf32>
    %328 = tpu.concatenate %299, %303, %307, %311, %315, %319, %323, %327 in 1 : vector<8x32xf32>, vector<8x32xf32>, vector<8x32xf32>, vector<8x32xf32>, vector<8x32xf32>, vector<8x32xf32>, vector<8x32xf32>, vector<8x32xf32> -> vector<8x256xf32>
    %329 = arith.truncf %328 : vector<8x256xf32> to vector<8x256xbf16>
    %cst_208 = arith.constant dense<0.000000e+00> : vector<16x256xf32>
    %330 = tpu.matmul %7, %329, %cst_208 {dimension_numbers = #tpu.dot_dimension_numbers<[1], [0], [0], [1], [0, 0, 1, 1], [], []>} : vector<16x8xbf16>, vector<8x256xbf16>, vector<16x256xf32> -> vector<16x256xf32>
    %331 = vector.broadcast %43 : vector<16x1xf32> to vector<16x256xf32>
    %332 = arith.addf %330, %331 : vector<16x256xf32>
    %cst_209 = arith.constant 0.000000e+00 : f32
    %333 = vector.broadcast %cst_209 : f32 to vector<16x256xf32>
    %334 = arith.cmpf oge, %332, %333 : vector<16x256xf32>
    %cst_210 = arith.constant 0.00999999977 : f32
    %335 = vector.broadcast %cst_210 : f32 to vector<16x256xf32>
    %336 = arith.mulf %335, %332 : vector<16x256xf32>
    %337 = arith.select %334, %332, %336 : vector<16x256xi1>, vector<16x256xf32>
    %338 = arith.truncf %337 : vector<16x256xf32> to vector<16x256xbf16>
    %cst_211 = arith.constant dense<0.000000e+00> : vector<8x256xf32>
    %339 = tpu.matmul %9, %338, %cst_211 {dimension_numbers = #tpu.dot_dimension_numbers<[1], [0], [0], [1], [0, 0, 1, 1], [], []>} : vector<8x16xbf16>, vector<16x256xbf16>, vector<8x256xf32> -> vector<8x256xf32>
    %340 = vector.broadcast %44 : vector<8x1xf32> to vector<8x256xf32>
    %341 = arith.addf %339, %340 : vector<8x256xf32>
    %cst_212 = arith.constant 0.000000e+00 : f32
    %342 = vector.broadcast %cst_212 : f32 to vector<8x256xf32>
    %343 = arith.cmpf oge, %341, %342 : vector<8x256xf32>
    %cst_213 = arith.constant 0.00999999977 : f32
    %344 = vector.broadcast %cst_213 : f32 to vector<8x256xf32>
    %345 = arith.mulf %344, %341 : vector<8x256xf32>
    %346 = arith.select %343, %341, %345 : vector<8x256xi1>, vector<8x256xf32>
    %347 = arith.truncf %346 : vector<8x256xf32> to vector<8x256xbf16>
    %cst_214 = arith.constant dense<0.000000e+00> : vector<8x256xf32>
    %348 = tpu.matmul %11, %347, %cst_214 {dimension_numbers = #tpu.dot_dimension_numbers<[1], [0], [0], [1], [0, 0, 1, 1], [], []>} : vector<8x8xbf16>, vector<8x256xbf16>, vector<8x256xf32> -> vector<8x256xf32>
    %349 = vector.broadcast %45 : vector<8x1xf32> to vector<8x256xf32>
    %350 = arith.addf %348, %349 : vector<8x256xf32>
    %cst_215 = arith.constant 0.000000e+00 : f32
    %351 = vector.broadcast %cst_215 : f32 to vector<8x256xf32>
    %352 = arith.cmpf oge, %350, %351 : vector<8x256xf32>
    %cst_216 = arith.constant 0.00999999977 : f32
    %353 = vector.broadcast %cst_216 : f32 to vector<8x256xf32>
    %354 = arith.mulf %353, %350 : vector<8x256xf32>
    %355 = arith.select %352, %350, %354 : vector<8x256xi1>, vector<8x256xf32>
    %c2_217 = arith.constant 2 : index
    %c0_218 = arith.constant 0 : index
    %356 = vector.load %arg2[%c2_217, %c0_218] : memref<16x256xf32, #tpu.memory_space<vmem>>, vector<1x256xf32>
    %357 = vector.broadcast %356 : vector<1x256xf32> to vector<8x256xf32>
    %358 = arith.mulf %355, %357 : vector<8x256xf32>
    %359 = arith.addf %267, %358 : vector<8x256xf32>
    %360 = arith.truncf %359 : vector<8x256xf32> to vector<8x256xbf16>
    %cst_219 = arith.constant dense<0.000000e+00> : vector<16x256xf32>
    %361 = tpu.matmul %7, %360, %cst_219 {dimension_numbers = #tpu.dot_dimension_numbers<[1], [0], [0], [1], [0, 0, 1, 1], [], []>} : vector<16x8xbf16>, vector<8x256xbf16>, vector<16x256xf32> -> vector<16x256xf32>
    %362 = vector.broadcast %43 : vector<16x1xf32> to vector<16x256xf32>
    %363 = arith.addf %361, %362 : vector<16x256xf32>
    %cst_220 = arith.constant 0.000000e+00 : f32
    %364 = vector.broadcast %cst_220 : f32 to vector<16x256xf32>
    %365 = arith.cmpf oge, %363, %364 : vector<16x256xf32>
    %cst_221 = arith.constant 0.00999999977 : f32
    %366 = vector.broadcast %cst_221 : f32 to vector<16x256xf32>
    %367 = arith.mulf %366, %363 : vector<16x256xf32>
    %368 = arith.select %365, %363, %367 : vector<16x256xi1>, vector<16x256xf32>
    %369 = arith.truncf %368 : vector<16x256xf32> to vector<16x256xbf16>
    %cst_222 = arith.constant dense<0.000000e+00> : vector<8x256xf32>
    %370 = tpu.matmul %9, %369, %cst_222 {dimension_numbers = #tpu.dot_dimension_numbers<[1], [0], [0], [1], [0, 0, 1, 1], [], []>} : vector<8x16xbf16>, vector<16x256xbf16>, vector<8x256xf32> -> vector<8x256xf32>
    %371 = vector.broadcast %44 : vector<8x1xf32> to vector<8x256xf32>
    %372 = arith.addf %370, %371 : vector<8x256xf32>
    %cst_223 = arith.constant 0.000000e+00 : f32
    %373 = vector.broadcast %cst_223 : f32 to vector<8x256xf32>
    %374 = arith.cmpf oge, %372, %373 : vector<8x256xf32>
    %cst_224 = arith.constant 0.00999999977 : f32
    %375 = vector.broadcast %cst_224 : f32 to vector<8x256xf32>
    %376 = arith.mulf %375, %372 : vector<8x256xf32>
    %377 = arith.select %374, %372, %376 : vector<8x256xi1>, vector<8x256xf32>
    %378 = arith.truncf %377 : vector<8x256xf32> to vector<8x256xbf16>
    %cst_225 = arith.constant dense<0.000000e+00> : vector<8x256xf32>
    %379 = tpu.matmul %11, %378, %cst_225 {dimension_numbers = #tpu.dot_dimension_numbers<[1], [0], [0], [1], [0, 0, 1, 1], [], []>} : vector<8x8xbf16>, vector<8x256xbf16>, vector<8x256xf32> -> vector<8x256xf32>
    %380 = vector.broadcast %45 : vector<8x1xf32> to vector<8x256xf32>
    %381 = arith.addf %379, %380 : vector<8x256xf32>
    %cst_226 = arith.constant 0.000000e+00 : f32
    %382 = vector.broadcast %cst_226 : f32 to vector<8x256xf32>
    %383 = arith.cmpf oge, %381, %382 : vector<8x256xf32>
    %cst_227 = arith.constant 0.00999999977 : f32
    %384 = vector.broadcast %cst_227 : f32 to vector<8x256xf32>
    %385 = arith.mulf %384, %381 : vector<8x256xf32>
    %386 = arith.select %383, %381, %385 : vector<8x256xi1>, vector<8x256xf32>
    %387 = arith.truncf %386 : vector<8x256xf32> to vector<8x256xbf16>
    %388 = vector.extract_strided_slice %387 {offsets = [0, 0], sizes = [8, 32], strides = [1, 1]} : vector<8x256xbf16> to vector<8x32xbf16>
    %c3_228 = arith.constant 3 : index
    %c0_229 = arith.constant 0 : index
    %c0_230 = arith.constant 0 : index
    %c0_231 = arith.constant 0 : index
    %389 = vector.load %arg3[%c3_228, %c0_229, %c0_230, %c0_231] : memref<8x8x32x32xbf16, #tpu.memory_space<vmem>>, vector<1x1x32x32xbf16>
    %390 = vector.shape_cast %389 : vector<1x1x32x32xbf16> to vector<32x32xbf16>
    %cst_232 = arith.constant dense<0.000000e+00> : vector<8x32xf32>
    %391 = tpu.matmul %388, %390, %cst_232 {dimension_numbers = #tpu.dot_dimension_numbers<[1], [0], [0], [1], [0, 0, 1, 1], [], []>} : vector<8x32xbf16>, vector<32x32xbf16>, vector<8x32xf32> -> vector<8x32xf32>
    %392 = vector.extract_strided_slice %387 {offsets = [0, 32], sizes = [8, 32], strides = [1, 1]} : vector<8x256xbf16> to vector<8x32xbf16>
    %c3_233 = arith.constant 3 : index
    %c1_234 = arith.constant 1 : index
    %c0_235 = arith.constant 0 : index
    %c0_236 = arith.constant 0 : index
    %393 = vector.load %arg3[%c3_233, %c1_234, %c0_235, %c0_236] : memref<8x8x32x32xbf16, #tpu.memory_space<vmem>>, vector<1x1x32x32xbf16>
    %394 = vector.shape_cast %393 : vector<1x1x32x32xbf16> to vector<32x32xbf16>
    %cst_237 = arith.constant dense<0.000000e+00> : vector<8x32xf32>
    %395 = tpu.matmul %392, %394, %cst_237 {dimension_numbers = #tpu.dot_dimension_numbers<[1], [0], [0], [1], [0, 0, 1, 1], [], []>} : vector<8x32xbf16>, vector<32x32xbf16>, vector<8x32xf32> -> vector<8x32xf32>
    %396 = vector.extract_strided_slice %387 {offsets = [0, 64], sizes = [8, 32], strides = [1, 1]} : vector<8x256xbf16> to vector<8x32xbf16>
    %c3_238 = arith.constant 3 : index
    %c2_239 = arith.constant 2 : index
    %c0_240 = arith.constant 0 : index
    %c0_241 = arith.constant 0 : index
    %397 = vector.load %arg3[%c3_238, %c2_239, %c0_240, %c0_241] : memref<8x8x32x32xbf16, #tpu.memory_space<vmem>>, vector<1x1x32x32xbf16>
    %398 = vector.shape_cast %397 : vector<1x1x32x32xbf16> to vector<32x32xbf16>
    %cst_242 = arith.constant dense<0.000000e+00> : vector<8x32xf32>
    %399 = tpu.matmul %396, %398, %cst_242 {dimension_numbers = #tpu.dot_dimension_numbers<[1], [0], [0], [1], [0, 0, 1, 1], [], []>} : vector<8x32xbf16>, vector<32x32xbf16>, vector<8x32xf32> -> vector<8x32xf32>
    %400 = vector.extract_strided_slice %387 {offsets = [0, 96], sizes = [8, 32], strides = [1, 1]} : vector<8x256xbf16> to vector<8x32xbf16>
    %c3_243 = arith.constant 3 : index
    %c3_244 = arith.constant 3 : index
    %c0_245 = arith.constant 0 : index
    %c0_246 = arith.constant 0 : index
    %401 = vector.load %arg3[%c3_243, %c3_244, %c0_245, %c0_246] : memref<8x8x32x32xbf16, #tpu.memory_space<vmem>>, vector<1x1x32x32xbf16>
    %402 = vector.shape_cast %401 : vector<1x1x32x32xbf16> to vector<32x32xbf16>
    %cst_247 = arith.constant dense<0.000000e+00> : vector<8x32xf32>
    %403 = tpu.matmul %400, %402, %cst_247 {dimension_numbers = #tpu.dot_dimension_numbers<[1], [0], [0], [1], [0, 0, 1, 1], [], []>} : vector<8x32xbf16>, vector<32x32xbf16>, vector<8x32xf32> -> vector<8x32xf32>
    %404 = vector.extract_strided_slice %387 {offsets = [0, 128], sizes = [8, 32], strides = [1, 1]} : vector<8x256xbf16> to vector<8x32xbf16>
    %c3_248 = arith.constant 3 : index
    %c4_249 = arith.constant 4 : index
    %c0_250 = arith.constant 0 : index
    %c0_251 = arith.constant 0 : index
    %405 = vector.load %arg3[%c3_248, %c4_249, %c0_250, %c0_251] : memref<8x8x32x32xbf16, #tpu.memory_space<vmem>>, vector<1x1x32x32xbf16>
    %406 = vector.shape_cast %405 : vector<1x1x32x32xbf16> to vector<32x32xbf16>
    %cst_252 = arith.constant dense<0.000000e+00> : vector<8x32xf32>
    %407 = tpu.matmul %404, %406, %cst_252 {dimension_numbers = #tpu.dot_dimension_numbers<[1], [0], [0], [1], [0, 0, 1, 1], [], []>} : vector<8x32xbf16>, vector<32x32xbf16>, vector<8x32xf32> -> vector<8x32xf32>
    %408 = vector.extract_strided_slice %387 {offsets = [0, 160], sizes = [8, 32], strides = [1, 1]} : vector<8x256xbf16> to vector<8x32xbf16>
    %c3_253 = arith.constant 3 : index
    %c5_254 = arith.constant 5 : index
    %c0_255 = arith.constant 0 : index
    %c0_256 = arith.constant 0 : index
    %409 = vector.load %arg3[%c3_253, %c5_254, %c0_255, %c0_256] : memref<8x8x32x32xbf16, #tpu.memory_space<vmem>>, vector<1x1x32x32xbf16>
    %410 = vector.shape_cast %409 : vector<1x1x32x32xbf16> to vector<32x32xbf16>
    %cst_257 = arith.constant dense<0.000000e+00> : vector<8x32xf32>
    %411 = tpu.matmul %408, %410, %cst_257 {dimension_numbers = #tpu.dot_dimension_numbers<[1], [0], [0], [1], [0, 0, 1, 1], [], []>} : vector<8x32xbf16>, vector<32x32xbf16>, vector<8x32xf32> -> vector<8x32xf32>
    %412 = vector.extract_strided_slice %387 {offsets = [0, 192], sizes = [8, 32], strides = [1, 1]} : vector<8x256xbf16> to vector<8x32xbf16>
    %c3_258 = arith.constant 3 : index
    %c6_259 = arith.constant 6 : index
    %c0_260 = arith.constant 0 : index
    %c0_261 = arith.constant 0 : index
    %413 = vector.load %arg3[%c3_258, %c6_259, %c0_260, %c0_261] : memref<8x8x32x32xbf16, #tpu.memory_space<vmem>>, vector<1x1x32x32xbf16>
    %414 = vector.shape_cast %413 : vector<1x1x32x32xbf16> to vector<32x32xbf16>
    %cst_262 = arith.constant dense<0.000000e+00> : vector<8x32xf32>
    %415 = tpu.matmul %412, %414, %cst_262 {dimension_numbers = #tpu.dot_dimension_numbers<[1], [0], [0], [1], [0, 0, 1, 1], [], []>} : vector<8x32xbf16>, vector<32x32xbf16>, vector<8x32xf32> -> vector<8x32xf32>
    %416 = vector.extract_strided_slice %387 {offsets = [0, 224], sizes = [8, 32], strides = [1, 1]} : vector<8x256xbf16> to vector<8x32xbf16>
    %c3_263 = arith.constant 3 : index
    %c7_264 = arith.constant 7 : index
    %c0_265 = arith.constant 0 : index
    %c0_266 = arith.constant 0 : index
    %417 = vector.load %arg3[%c3_263, %c7_264, %c0_265, %c0_266] : memref<8x8x32x32xbf16, #tpu.memory_space<vmem>>, vector<1x1x32x32xbf16>
    %418 = vector.shape_cast %417 : vector<1x1x32x32xbf16> to vector<32x32xbf16>
    %cst_267 = arith.constant dense<0.000000e+00> : vector<8x32xf32>
    %419 = tpu.matmul %416, %418, %cst_267 {dimension_numbers = #tpu.dot_dimension_numbers<[1], [0], [0], [1], [0, 0, 1, 1], [], []>} : vector<8x32xbf16>, vector<32x32xbf16>, vector<8x32xf32> -> vector<8x32xf32>
    %420 = tpu.concatenate %391, %395, %399, %403, %407, %411, %415, %419 in 1 : vector<8x32xf32>, vector<8x32xf32>, vector<8x32xf32>, vector<8x32xf32>, vector<8x32xf32>, vector<8x32xf32>, vector<8x32xf32>, vector<8x32xf32> -> vector<8x256xf32>
    %421 = arith.truncf %420 : vector<8x256xf32> to vector<8x256xbf16>
    %cst_268 = arith.constant dense<0.000000e+00> : vector<16x256xf32>
    %422 = tpu.matmul %7, %421, %cst_268 {dimension_numbers = #tpu.dot_dimension_numbers<[1], [0], [0], [1], [0, 0, 1, 1], [], []>} : vector<16x8xbf16>, vector<8x256xbf16>, vector<16x256xf32> -> vector<16x256xf32>
    %423 = vector.broadcast %43 : vector<16x1xf32> to vector<16x256xf32>
    %424 = arith.addf %422, %423 : vector<16x256xf32>
    %cst_269 = arith.constant 0.000000e+00 : f32
    %425 = vector.broadcast %cst_269 : f32 to vector<16x256xf32>
    %426 = arith.cmpf oge, %424, %425 : vector<16x256xf32>
    %cst_270 = arith.constant 0.00999999977 : f32
    %427 = vector.broadcast %cst_270 : f32 to vector<16x256xf32>
    %428 = arith.mulf %427, %424 : vector<16x256xf32>
    %429 = arith.select %426, %424, %428 : vector<16x256xi1>, vector<16x256xf32>
    %430 = arith.truncf %429 : vector<16x256xf32> to vector<16x256xbf16>
    %cst_271 = arith.constant dense<0.000000e+00> : vector<8x256xf32>
    %431 = tpu.matmul %9, %430, %cst_271 {dimension_numbers = #tpu.dot_dimension_numbers<[1], [0], [0], [1], [0, 0, 1, 1], [], []>} : vector<8x16xbf16>, vector<16x256xbf16>, vector<8x256xf32> -> vector<8x256xf32>
    %432 = vector.broadcast %44 : vector<8x1xf32> to vector<8x256xf32>
    %433 = arith.addf %431, %432 : vector<8x256xf32>
    %cst_272 = arith.constant 0.000000e+00 : f32
    %434 = vector.broadcast %cst_272 : f32 to vector<8x256xf32>
    %435 = arith.cmpf oge, %433, %434 : vector<8x256xf32>
    %cst_273 = arith.constant 0.00999999977 : f32
    %436 = vector.broadcast %cst_273 : f32 to vector<8x256xf32>
    %437 = arith.mulf %436, %433 : vector<8x256xf32>
    %438 = arith.select %435, %433, %437 : vector<8x256xi1>, vector<8x256xf32>
    %439 = arith.truncf %438 : vector<8x256xf32> to vector<8x256xbf16>
    %cst_274 = arith.constant dense<0.000000e+00> : vector<8x256xf32>
    %440 = tpu.matmul %11, %439, %cst_274 {dimension_numbers = #tpu.dot_dimension_numbers<[1], [0], [0], [1], [0, 0, 1, 1], [], []>} : vector<8x8xbf16>, vector<8x256xbf16>, vector<8x256xf32> -> vector<8x256xf32>
    %441 = vector.broadcast %45 : vector<8x1xf32> to vector<8x256xf32>
    %442 = arith.addf %440, %441 : vector<8x256xf32>
    %cst_275 = arith.constant 0.000000e+00 : f32
    %443 = vector.broadcast %cst_275 : f32 to vector<8x256xf32>
    %444 = arith.cmpf oge, %442, %443 : vector<8x256xf32>
    %cst_276 = arith.constant 0.00999999977 : f32
    %445 = vector.broadcast %cst_276 : f32 to vector<8x256xf32>
    %446 = arith.mulf %445, %442 : vector<8x256xf32>
    %447 = arith.select %444, %442, %446 : vector<8x256xi1>, vector<8x256xf32>
    %c3_277 = arith.constant 3 : index
    %c0_278 = arith.constant 0 : index
    %448 = vector.load %arg2[%c3_277, %c0_278] : memref<16x256xf32, #tpu.memory_space<vmem>>, vector<1x256xf32>
    %449 = vector.broadcast %448 : vector<1x256xf32> to vector<8x256xf32>
    %450 = arith.mulf %447, %449 : vector<8x256xf32>
    %451 = arith.addf %359, %450 : vector<8x256xf32>
    %452 = arith.truncf %451 : vector<8x256xf32> to vector<8x256xbf16>
    %cst_279 = arith.constant dense<0.000000e+00> : vector<16x256xf32>
    %453 = tpu.matmul %7, %452, %cst_279 {dimension_numbers = #tpu.dot_dimension_numbers<[1], [0], [0], [1], [0, 0, 1, 1], [], []>} : vector<16x8xbf16>, vector<8x256xbf16>, vector<16x256xf32> -> vector<16x256xf32>
    %454 = vector.broadcast %43 : vector<16x1xf32> to vector<16x256xf32>
    %455 = arith.addf %453, %454 : vector<16x256xf32>
    %cst_280 = arith.constant 0.000000e+00 : f32
    %456 = vector.broadcast %cst_280 : f32 to vector<16x256xf32>
    %457 = arith.cmpf oge, %455, %456 : vector<16x256xf32>
    %cst_281 = arith.constant 0.00999999977 : f32
    %458 = vector.broadcast %cst_281 : f32 to vector<16x256xf32>
    %459 = arith.mulf %458, %455 : vector<16x256xf32>
    %460 = arith.select %457, %455, %459 : vector<16x256xi1>, vector<16x256xf32>
    %461 = arith.truncf %460 : vector<16x256xf32> to vector<16x256xbf16>
    %cst_282 = arith.constant dense<0.000000e+00> : vector<8x256xf32>
    %462 = tpu.matmul %9, %461, %cst_282 {dimension_numbers = #tpu.dot_dimension_numbers<[1], [0], [0], [1], [0, 0, 1, 1], [], []>} : vector<8x16xbf16>, vector<16x256xbf16>, vector<8x256xf32> -> vector<8x256xf32>
    %463 = vector.broadcast %44 : vector<8x1xf32> to vector<8x256xf32>
    %464 = arith.addf %462, %463 : vector<8x256xf32>
    %cst_283 = arith.constant 0.000000e+00 : f32
    %465 = vector.broadcast %cst_283 : f32 to vector<8x256xf32>
    %466 = arith.cmpf oge, %464, %465 : vector<8x256xf32>
    %cst_284 = arith.constant 0.00999999977 : f32
    %467 = vector.broadcast %cst_284 : f32 to vector<8x256xf32>
    %468 = arith.mulf %467, %464 : vector<8x256xf32>
    %469 = arith.select %466, %464, %468 : vector<8x256xi1>, vector<8x256xf32>
    %470 = arith.truncf %469 : vector<8x256xf32> to vector<8x256xbf16>
    %cst_285 = arith.constant dense<0.000000e+00> : vector<8x256xf32>
    %471 = tpu.matmul %11, %470, %cst_285 {dimension_numbers = #tpu.dot_dimension_numbers<[1], [0], [0], [1], [0, 0, 1, 1], [], []>} : vector<8x8xbf16>, vector<8x256xbf16>, vector<8x256xf32> -> vector<8x256xf32>
    %472 = vector.broadcast %45 : vector<8x1xf32> to vector<8x256xf32>
    %473 = arith.addf %471, %472 : vector<8x256xf32>
    %cst_286 = arith.constant 0.000000e+00 : f32
    %474 = vector.broadcast %cst_286 : f32 to vector<8x256xf32>
    %475 = arith.cmpf oge, %473, %474 : vector<8x256xf32>
    %cst_287 = arith.constant 0.00999999977 : f32
    %476 = vector.broadcast %cst_287 : f32 to vector<8x256xf32>
    %477 = arith.mulf %476, %473 : vector<8x256xf32>
    %478 = arith.select %475, %473, %477 : vector<8x256xi1>, vector<8x256xf32>
    %479 = arith.truncf %478 : vector<8x256xf32> to vector<8x256xbf16>
    %480 = vector.extract_strided_slice %479 {offsets = [0, 0], sizes = [8, 32], strides = [1, 1]} : vector<8x256xbf16> to vector<8x32xbf16>
    %c4_288 = arith.constant 4 : index
    %c0_289 = arith.constant 0 : index
    %c0_290 = arith.constant 0 : index
    %c0_291 = arith.constant 0 : index
    %481 = vector.load %arg3[%c4_288, %c0_289, %c0_290, %c0_291] : memref<8x8x32x32xbf16, #tpu.memory_space<vmem>>, vector<1x1x32x32xbf16>
    %482 = vector.shape_cast %481 : vector<1x1x32x32xbf16> to vector<32x32xbf16>
    %cst_292 = arith.constant dense<0.000000e+00> : vector<8x32xf32>
    %483 = tpu.matmul %480, %482, %cst_292 {dimension_numbers = #tpu.dot_dimension_numbers<[1], [0], [0], [1], [0, 0, 1, 1], [], []>} : vector<8x32xbf16>, vector<32x32xbf16>, vector<8x32xf32> -> vector<8x32xf32>
    %484 = vector.extract_strided_slice %479 {offsets = [0, 32], sizes = [8, 32], strides = [1, 1]} : vector<8x256xbf16> to vector<8x32xbf16>
    %c4_293 = arith.constant 4 : index
    %c1_294 = arith.constant 1 : index
    %c0_295 = arith.constant 0 : index
    %c0_296 = arith.constant 0 : index
    %485 = vector.load %arg3[%c4_293, %c1_294, %c0_295, %c0_296] : memref<8x8x32x32xbf16, #tpu.memory_space<vmem>>, vector<1x1x32x32xbf16>
    %486 = vector.shape_cast %485 : vector<1x1x32x32xbf16> to vector<32x32xbf16>
    %cst_297 = arith.constant dense<0.000000e+00> : vector<8x32xf32>
    %487 = tpu.matmul %484, %486, %cst_297 {dimension_numbers = #tpu.dot_dimension_numbers<[1], [0], [0], [1], [0, 0, 1, 1], [], []>} : vector<8x32xbf16>, vector<32x32xbf16>, vector<8x32xf32> -> vector<8x32xf32>
    %488 = vector.extract_strided_slice %479 {offsets = [0, 64], sizes = [8, 32], strides = [1, 1]} : vector<8x256xbf16> to vector<8x32xbf16>
    %c4_298 = arith.constant 4 : index
    %c2_299 = arith.constant 2 : index
    %c0_300 = arith.constant 0 : index
    %c0_301 = arith.constant 0 : index
    %489 = vector.load %arg3[%c4_298, %c2_299, %c0_300, %c0_301] : memref<8x8x32x32xbf16, #tpu.memory_space<vmem>>, vector<1x1x32x32xbf16>
    %490 = vector.shape_cast %489 : vector<1x1x32x32xbf16> to vector<32x32xbf16>
    %cst_302 = arith.constant dense<0.000000e+00> : vector<8x32xf32>
    %491 = tpu.matmul %488, %490, %cst_302 {dimension_numbers = #tpu.dot_dimension_numbers<[1], [0], [0], [1], [0, 0, 1, 1], [], []>} : vector<8x32xbf16>, vector<32x32xbf16>, vector<8x32xf32> -> vector<8x32xf32>
    %492 = vector.extract_strided_slice %479 {offsets = [0, 96], sizes = [8, 32], strides = [1, 1]} : vector<8x256xbf16> to vector<8x32xbf16>
    %c4_303 = arith.constant 4 : index
    %c3_304 = arith.constant 3 : index
    %c0_305 = arith.constant 0 : index
    %c0_306 = arith.constant 0 : index
    %493 = vector.load %arg3[%c4_303, %c3_304, %c0_305, %c0_306] : memref<8x8x32x32xbf16, #tpu.memory_space<vmem>>, vector<1x1x32x32xbf16>
    %494 = vector.shape_cast %493 : vector<1x1x32x32xbf16> to vector<32x32xbf16>
    %cst_307 = arith.constant dense<0.000000e+00> : vector<8x32xf32>
    %495 = tpu.matmul %492, %494, %cst_307 {dimension_numbers = #tpu.dot_dimension_numbers<[1], [0], [0], [1], [0, 0, 1, 1], [], []>} : vector<8x32xbf16>, vector<32x32xbf16>, vector<8x32xf32> -> vector<8x32xf32>
    %496 = vector.extract_strided_slice %479 {offsets = [0, 128], sizes = [8, 32], strides = [1, 1]} : vector<8x256xbf16> to vector<8x32xbf16>
    %c4_308 = arith.constant 4 : index
    %c4_309 = arith.constant 4 : index
    %c0_310 = arith.constant 0 : index
    %c0_311 = arith.constant 0 : index
    %497 = vector.load %arg3[%c4_308, %c4_309, %c0_310, %c0_311] : memref<8x8x32x32xbf16, #tpu.memory_space<vmem>>, vector<1x1x32x32xbf16>
    %498 = vector.shape_cast %497 : vector<1x1x32x32xbf16> to vector<32x32xbf16>
    %cst_312 = arith.constant dense<0.000000e+00> : vector<8x32xf32>
    %499 = tpu.matmul %496, %498, %cst_312 {dimension_numbers = #tpu.dot_dimension_numbers<[1], [0], [0], [1], [0, 0, 1, 1], [], []>} : vector<8x32xbf16>, vector<32x32xbf16>, vector<8x32xf32> -> vector<8x32xf32>
    %500 = vector.extract_strided_slice %479 {offsets = [0, 160], sizes = [8, 32], strides = [1, 1]} : vector<8x256xbf16> to vector<8x32xbf16>
    %c4_313 = arith.constant 4 : index
    %c5_314 = arith.constant 5 : index
    %c0_315 = arith.constant 0 : index
    %c0_316 = arith.constant 0 : index
    %501 = vector.load %arg3[%c4_313, %c5_314, %c0_315, %c0_316] : memref<8x8x32x32xbf16, #tpu.memory_space<vmem>>, vector<1x1x32x32xbf16>
    %502 = vector.shape_cast %501 : vector<1x1x32x32xbf16> to vector<32x32xbf16>
    %cst_317 = arith.constant dense<0.000000e+00> : vector<8x32xf32>
    %503 = tpu.matmul %500, %502, %cst_317 {dimension_numbers = #tpu.dot_dimension_numbers<[1], [0], [0], [1], [0, 0, 1, 1], [], []>} : vector<8x32xbf16>, vector<32x32xbf16>, vector<8x32xf32> -> vector<8x32xf32>
    %504 = vector.extract_strided_slice %479 {offsets = [0, 192], sizes = [8, 32], strides = [1, 1]} : vector<8x256xbf16> to vector<8x32xbf16>
    %c4_318 = arith.constant 4 : index
    %c6_319 = arith.constant 6 : index
    %c0_320 = arith.constant 0 : index
    %c0_321 = arith.constant 0 : index
    %505 = vector.load %arg3[%c4_318, %c6_319, %c0_320, %c0_321] : memref<8x8x32x32xbf16, #tpu.memory_space<vmem>>, vector<1x1x32x32xbf16>
    %506 = vector.shape_cast %505 : vector<1x1x32x32xbf16> to vector<32x32xbf16>
    %cst_322 = arith.constant dense<0.000000e+00> : vector<8x32xf32>
    %507 = tpu.matmul %504, %506, %cst_322 {dimension_numbers = #tpu.dot_dimension_numbers<[1], [0], [0], [1], [0, 0, 1, 1], [], []>} : vector<8x32xbf16>, vector<32x32xbf16>, vector<8x32xf32> -> vector<8x32xf32>
    %508 = vector.extract_strided_slice %479 {offsets = [0, 224], sizes = [8, 32], strides = [1, 1]} : vector<8x256xbf16> to vector<8x32xbf16>
    %c4_323 = arith.constant 4 : index
    %c7_324 = arith.constant 7 : index
    %c0_325 = arith.constant 0 : index
    %c0_326 = arith.constant 0 : index
    %509 = vector.load %arg3[%c4_323, %c7_324, %c0_325, %c0_326] : memref<8x8x32x32xbf16, #tpu.memory_space<vmem>>, vector<1x1x32x32xbf16>
    %510 = vector.shape_cast %509 : vector<1x1x32x32xbf16> to vector<32x32xbf16>
    %cst_327 = arith.constant dense<0.000000e+00> : vector<8x32xf32>
    %511 = tpu.matmul %508, %510, %cst_327 {dimension_numbers = #tpu.dot_dimension_numbers<[1], [0], [0], [1], [0, 0, 1, 1], [], []>} : vector<8x32xbf16>, vector<32x32xbf16>, vector<8x32xf32> -> vector<8x32xf32>
    %512 = tpu.concatenate %483, %487, %491, %495, %499, %503, %507, %511 in 1 : vector<8x32xf32>, vector<8x32xf32>, vector<8x32xf32>, vector<8x32xf32>, vector<8x32xf32>, vector<8x32xf32>, vector<8x32xf32>, vector<8x32xf32> -> vector<8x256xf32>
    %513 = arith.truncf %512 : vector<8x256xf32> to vector<8x256xbf16>
    %cst_328 = arith.constant dense<0.000000e+00> : vector<16x256xf32>
    %514 = tpu.matmul %7, %513, %cst_328 {dimension_numbers = #tpu.dot_dimension_numbers<[1], [0], [0], [1], [0, 0, 1, 1], [], []>} : vector<16x8xbf16>, vector<8x256xbf16>, vector<16x256xf32> -> vector<16x256xf32>
    %515 = vector.broadcast %43 : vector<16x1xf32> to vector<16x256xf32>
    %516 = arith.addf %514, %515 : vector<16x256xf32>
    %cst_329 = arith.constant 0.000000e+00 : f32
    %517 = vector.broadcast %cst_329 : f32 to vector<16x256xf32>
    %518 = arith.cmpf oge, %516, %517 : vector<16x256xf32>
    %cst_330 = arith.constant 0.00999999977 : f32
    %519 = vector.broadcast %cst_330 : f32 to vector<16x256xf32>
    %520 = arith.mulf %519, %516 : vector<16x256xf32>
    %521 = arith.select %518, %516, %520 : vector<16x256xi1>, vector<16x256xf32>
    %522 = arith.truncf %521 : vector<16x256xf32> to vector<16x256xbf16>
    %cst_331 = arith.constant dense<0.000000e+00> : vector<8x256xf32>
    %523 = tpu.matmul %9, %522, %cst_331 {dimension_numbers = #tpu.dot_dimension_numbers<[1], [0], [0], [1], [0, 0, 1, 1], [], []>} : vector<8x16xbf16>, vector<16x256xbf16>, vector<8x256xf32> -> vector<8x256xf32>
    %524 = vector.broadcast %44 : vector<8x1xf32> to vector<8x256xf32>
    %525 = arith.addf %523, %524 : vector<8x256xf32>
    %cst_332 = arith.constant 0.000000e+00 : f32
    %526 = vector.broadcast %cst_332 : f32 to vector<8x256xf32>
    %527 = arith.cmpf oge, %525, %526 : vector<8x256xf32>
    %cst_333 = arith.constant 0.00999999977 : f32
    %528 = vector.broadcast %cst_333 : f32 to vector<8x256xf32>
    %529 = arith.mulf %528, %525 : vector<8x256xf32>
    %530 = arith.select %527, %525, %529 : vector<8x256xi1>, vector<8x256xf32>
    %531 = arith.truncf %530 : vector<8x256xf32> to vector<8x256xbf16>
    %cst_334 = arith.constant dense<0.000000e+00> : vector<8x256xf32>
    %532 = tpu.matmul %11, %531, %cst_334 {dimension_numbers = #tpu.dot_dimension_numbers<[1], [0], [0], [1], [0, 0, 1, 1], [], []>} : vector<8x8xbf16>, vector<8x256xbf16>, vector<8x256xf32> -> vector<8x256xf32>
    %533 = vector.broadcast %45 : vector<8x1xf32> to vector<8x256xf32>
    %534 = arith.addf %532, %533 : vector<8x256xf32>
    %cst_335 = arith.constant 0.000000e+00 : f32
    %535 = vector.broadcast %cst_335 : f32 to vector<8x256xf32>
    %536 = arith.cmpf oge, %534, %535 : vector<8x256xf32>
    %cst_336 = arith.constant 0.00999999977 : f32
    %537 = vector.broadcast %cst_336 : f32 to vector<8x256xf32>
    %538 = arith.mulf %537, %534 : vector<8x256xf32>
    %539 = arith.select %536, %534, %538 : vector<8x256xi1>, vector<8x256xf32>
    %c4_337 = arith.constant 4 : index
    %c0_338 = arith.constant 0 : index
    %540 = vector.load %arg2[%c4_337, %c0_338] : memref<16x256xf32, #tpu.memory_space<vmem>>, vector<1x256xf32>
    %541 = vector.broadcast %540 : vector<1x256xf32> to vector<8x256xf32>
    %542 = arith.mulf %539, %541 : vector<8x256xf32>
    %543 = arith.addf %451, %542 : vector<8x256xf32>
    %544 = arith.truncf %543 : vector<8x256xf32> to vector<8x256xbf16>
    %cst_339 = arith.constant dense<0.000000e+00> : vector<16x256xf32>
    %545 = tpu.matmul %7, %544, %cst_339 {dimension_numbers = #tpu.dot_dimension_numbers<[1], [0], [0], [1], [0, 0, 1, 1], [], []>} : vector<16x8xbf16>, vector<8x256xbf16>, vector<16x256xf32> -> vector<16x256xf32>
    %546 = vector.broadcast %43 : vector<16x1xf32> to vector<16x256xf32>
    %547 = arith.addf %545, %546 : vector<16x256xf32>
    %cst_340 = arith.constant 0.000000e+00 : f32
    %548 = vector.broadcast %cst_340 : f32 to vector<16x256xf32>
    %549 = arith.cmpf oge, %547, %548 : vector<16x256xf32>
    %cst_341 = arith.constant 0.00999999977 : f32
    %550 = vector.broadcast %cst_341 : f32 to vector<16x256xf32>
    %551 = arith.mulf %550, %547 : vector<16x256xf32>
    %552 = arith.select %549, %547, %551 : vector<16x256xi1>, vector<16x256xf32>
    %553 = arith.truncf %552 : vector<16x256xf32> to vector<16x256xbf16>
    %cst_342 = arith.constant dense<0.000000e+00> : vector<8x256xf32>
    %554 = tpu.matmul %9, %553, %cst_342 {dimension_numbers = #tpu.dot_dimension_numbers<[1], [0], [0], [1], [0, 0, 1, 1], [], []>} : vector<8x16xbf16>, vector<16x256xbf16>, vector<8x256xf32> -> vector<8x256xf32>
    %555 = vector.broadcast %44 : vector<8x1xf32> to vector<8x256xf32>
    %556 = arith.addf %554, %555 : vector<8x256xf32>
    %cst_343 = arith.constant 0.000000e+00 : f32
    %557 = vector.broadcast %cst_343 : f32 to vector<8x256xf32>
    %558 = arith.cmpf oge, %556, %557 : vector<8x256xf32>
    %cst_344 = arith.constant 0.00999999977 : f32
    %559 = vector.broadcast %cst_344 : f32 to vector<8x256xf32>
    %560 = arith.mulf %559, %556 : vector<8x256xf32>
    %561 = arith.select %558, %556, %560 : vector<8x256xi1>, vector<8x256xf32>
    %562 = arith.truncf %561 : vector<8x256xf32> to vector<8x256xbf16>
    %cst_345 = arith.constant dense<0.000000e+00> : vector<8x256xf32>
    %563 = tpu.matmul %11, %562, %cst_345 {dimension_numbers = #tpu.dot_dimension_numbers<[1], [0], [0], [1], [0, 0, 1, 1], [], []>} : vector<8x8xbf16>, vector<8x256xbf16>, vector<8x256xf32> -> vector<8x256xf32>
    %564 = vector.broadcast %45 : vector<8x1xf32> to vector<8x256xf32>
    %565 = arith.addf %563, %564 : vector<8x256xf32>
    %cst_346 = arith.constant 0.000000e+00 : f32
    %566 = vector.broadcast %cst_346 : f32 to vector<8x256xf32>
    %567 = arith.cmpf oge, %565, %566 : vector<8x256xf32>
    %cst_347 = arith.constant 0.00999999977 : f32
    %568 = vector.broadcast %cst_347 : f32 to vector<8x256xf32>
    %569 = arith.mulf %568, %565 : vector<8x256xf32>
    %570 = arith.select %567, %565, %569 : vector<8x256xi1>, vector<8x256xf32>
    %571 = arith.truncf %570 : vector<8x256xf32> to vector<8x256xbf16>
    %572 = vector.extract_strided_slice %571 {offsets = [0, 0], sizes = [8, 32], strides = [1, 1]} : vector<8x256xbf16> to vector<8x32xbf16>
    %c5_348 = arith.constant 5 : index
    %c0_349 = arith.constant 0 : index
    %c0_350 = arith.constant 0 : index
    %c0_351 = arith.constant 0 : index
    %573 = vector.load %arg3[%c5_348, %c0_349, %c0_350, %c0_351] : memref<8x8x32x32xbf16, #tpu.memory_space<vmem>>, vector<1x1x32x32xbf16>
    %574 = vector.shape_cast %573 : vector<1x1x32x32xbf16> to vector<32x32xbf16>
    %cst_352 = arith.constant dense<0.000000e+00> : vector<8x32xf32>
    %575 = tpu.matmul %572, %574, %cst_352 {dimension_numbers = #tpu.dot_dimension_numbers<[1], [0], [0], [1], [0, 0, 1, 1], [], []>} : vector<8x32xbf16>, vector<32x32xbf16>, vector<8x32xf32> -> vector<8x32xf32>
    %576 = vector.extract_strided_slice %571 {offsets = [0, 32], sizes = [8, 32], strides = [1, 1]} : vector<8x256xbf16> to vector<8x32xbf16>
    %c5_353 = arith.constant 5 : index
    %c1_354 = arith.constant 1 : index
    %c0_355 = arith.constant 0 : index
    %c0_356 = arith.constant 0 : index
    %577 = vector.load %arg3[%c5_353, %c1_354, %c0_355, %c0_356] : memref<8x8x32x32xbf16, #tpu.memory_space<vmem>>, vector<1x1x32x32xbf16>
    %578 = vector.shape_cast %577 : vector<1x1x32x32xbf16> to vector<32x32xbf16>
    %cst_357 = arith.constant dense<0.000000e+00> : vector<8x32xf32>
    %579 = tpu.matmul %576, %578, %cst_357 {dimension_numbers = #tpu.dot_dimension_numbers<[1], [0], [0], [1], [0, 0, 1, 1], [], []>} : vector<8x32xbf16>, vector<32x32xbf16>, vector<8x32xf32> -> vector<8x32xf32>
    %580 = vector.extract_strided_slice %571 {offsets = [0, 64], sizes = [8, 32], strides = [1, 1]} : vector<8x256xbf16> to vector<8x32xbf16>
    %c5_358 = arith.constant 5 : index
    %c2_359 = arith.constant 2 : index
    %c0_360 = arith.constant 0 : index
    %c0_361 = arith.constant 0 : index
    %581 = vector.load %arg3[%c5_358, %c2_359, %c0_360, %c0_361] : memref<8x8x32x32xbf16, #tpu.memory_space<vmem>>, vector<1x1x32x32xbf16>
    %582 = vector.shape_cast %581 : vector<1x1x32x32xbf16> to vector<32x32xbf16>
    %cst_362 = arith.constant dense<0.000000e+00> : vector<8x32xf32>
    %583 = tpu.matmul %580, %582, %cst_362 {dimension_numbers = #tpu.dot_dimension_numbers<[1], [0], [0], [1], [0, 0, 1, 1], [], []>} : vector<8x32xbf16>, vector<32x32xbf16>, vector<8x32xf32> -> vector<8x32xf32>
    %584 = vector.extract_strided_slice %571 {offsets = [0, 96], sizes = [8, 32], strides = [1, 1]} : vector<8x256xbf16> to vector<8x32xbf16>
    %c5_363 = arith.constant 5 : index
    %c3_364 = arith.constant 3 : index
    %c0_365 = arith.constant 0 : index
    %c0_366 = arith.constant 0 : index
    %585 = vector.load %arg3[%c5_363, %c3_364, %c0_365, %c0_366] : memref<8x8x32x32xbf16, #tpu.memory_space<vmem>>, vector<1x1x32x32xbf16>
    %586 = vector.shape_cast %585 : vector<1x1x32x32xbf16> to vector<32x32xbf16>
    %cst_367 = arith.constant dense<0.000000e+00> : vector<8x32xf32>
    %587 = tpu.matmul %584, %586, %cst_367 {dimension_numbers = #tpu.dot_dimension_numbers<[1], [0], [0], [1], [0, 0, 1, 1], [], []>} : vector<8x32xbf16>, vector<32x32xbf16>, vector<8x32xf32> -> vector<8x32xf32>
    %588 = vector.extract_strided_slice %571 {offsets = [0, 128], sizes = [8, 32], strides = [1, 1]} : vector<8x256xbf16> to vector<8x32xbf16>
    %c5_368 = arith.constant 5 : index
    %c4_369 = arith.constant 4 : index
    %c0_370 = arith.constant 0 : index
    %c0_371 = arith.constant 0 : index
    %589 = vector.load %arg3[%c5_368, %c4_369, %c0_370, %c0_371] : memref<8x8x32x32xbf16, #tpu.memory_space<vmem>>, vector<1x1x32x32xbf16>
    %590 = vector.shape_cast %589 : vector<1x1x32x32xbf16> to vector<32x32xbf16>
    %cst_372 = arith.constant dense<0.000000e+00> : vector<8x32xf32>
    %591 = tpu.matmul %588, %590, %cst_372 {dimension_numbers = #tpu.dot_dimension_numbers<[1], [0], [0], [1], [0, 0, 1, 1], [], []>} : vector<8x32xbf16>, vector<32x32xbf16>, vector<8x32xf32> -> vector<8x32xf32>
    %592 = vector.extract_strided_slice %571 {offsets = [0, 160], sizes = [8, 32], strides = [1, 1]} : vector<8x256xbf16> to vector<8x32xbf16>
    %c5_373 = arith.constant 5 : index
    %c5_374 = arith.constant 5 : index
    %c0_375 = arith.constant 0 : index
    %c0_376 = arith.constant 0 : index
    %593 = vector.load %arg3[%c5_373, %c5_374, %c0_375, %c0_376] : memref<8x8x32x32xbf16, #tpu.memory_space<vmem>>, vector<1x1x32x32xbf16>
    %594 = vector.shape_cast %593 : vector<1x1x32x32xbf16> to vector<32x32xbf16>
    %cst_377 = arith.constant dense<0.000000e+00> : vector<8x32xf32>
    %595 = tpu.matmul %592, %594, %cst_377 {dimension_numbers = #tpu.dot_dimension_numbers<[1], [0], [0], [1], [0, 0, 1, 1], [], []>} : vector<8x32xbf16>, vector<32x32xbf16>, vector<8x32xf32> -> vector<8x32xf32>
    %596 = vector.extract_strided_slice %571 {offsets = [0, 192], sizes = [8, 32], strides = [1, 1]} : vector<8x256xbf16> to vector<8x32xbf16>
    %c5_378 = arith.constant 5 : index
    %c6_379 = arith.constant 6 : index
    %c0_380 = arith.constant 0 : index
    %c0_381 = arith.constant 0 : index
    %597 = vector.load %arg3[%c5_378, %c6_379, %c0_380, %c0_381] : memref<8x8x32x32xbf16, #tpu.memory_space<vmem>>, vector<1x1x32x32xbf16>
    %598 = vector.shape_cast %597 : vector<1x1x32x32xbf16> to vector<32x32xbf16>
    %cst_382 = arith.constant dense<0.000000e+00> : vector<8x32xf32>
    %599 = tpu.matmul %596, %598, %cst_382 {dimension_numbers = #tpu.dot_dimension_numbers<[1], [0], [0], [1], [0, 0, 1, 1], [], []>} : vector<8x32xbf16>, vector<32x32xbf16>, vector<8x32xf32> -> vector<8x32xf32>
    %600 = vector.extract_strided_slice %571 {offsets = [0, 224], sizes = [8, 32], strides = [1, 1]} : vector<8x256xbf16> to vector<8x32xbf16>
    %c5_383 = arith.constant 5 : index
    %c7_384 = arith.constant 7 : index
    %c0_385 = arith.constant 0 : index
    %c0_386 = arith.constant 0 : index
    %601 = vector.load %arg3[%c5_383, %c7_384, %c0_385, %c0_386] : memref<8x8x32x32xbf16, #tpu.memory_space<vmem>>, vector<1x1x32x32xbf16>
    %602 = vector.shape_cast %601 : vector<1x1x32x32xbf16> to vector<32x32xbf16>
    %cst_387 = arith.constant dense<0.000000e+00> : vector<8x32xf32>
    %603 = tpu.matmul %600, %602, %cst_387 {dimension_numbers = #tpu.dot_dimension_numbers<[1], [0], [0], [1], [0, 0, 1, 1], [], []>} : vector<8x32xbf16>, vector<32x32xbf16>, vector<8x32xf32> -> vector<8x32xf32>
    %604 = tpu.concatenate %575, %579, %583, %587, %591, %595, %599, %603 in 1 : vector<8x32xf32>, vector<8x32xf32>, vector<8x32xf32>, vector<8x32xf32>, vector<8x32xf32>, vector<8x32xf32>, vector<8x32xf32>, vector<8x32xf32> -> vector<8x256xf32>
    %605 = arith.truncf %604 : vector<8x256xf32> to vector<8x256xbf16>
    %cst_388 = arith.constant dense<0.000000e+00> : vector<16x256xf32>
    %606 = tpu.matmul %7, %605, %cst_388 {dimension_numbers = #tpu.dot_dimension_numbers<[1], [0], [0], [1], [0, 0, 1, 1], [], []>} : vector<16x8xbf16>, vector<8x256xbf16>, vector<16x256xf32> -> vector<16x256xf32>
    %607 = vector.broadcast %43 : vector<16x1xf32> to vector<16x256xf32>
    %608 = arith.addf %606, %607 : vector<16x256xf32>
    %cst_389 = arith.constant 0.000000e+00 : f32
    %609 = vector.broadcast %cst_389 : f32 to vector<16x256xf32>
    %610 = arith.cmpf oge, %608, %609 : vector<16x256xf32>
    %cst_390 = arith.constant 0.00999999977 : f32
    %611 = vector.broadcast %cst_390 : f32 to vector<16x256xf32>
    %612 = arith.mulf %611, %608 : vector<16x256xf32>
    %613 = arith.select %610, %608, %612 : vector<16x256xi1>, vector<16x256xf32>
    %614 = arith.truncf %613 : vector<16x256xf32> to vector<16x256xbf16>
    %cst_391 = arith.constant dense<0.000000e+00> : vector<8x256xf32>
    %615 = tpu.matmul %9, %614, %cst_391 {dimension_numbers = #tpu.dot_dimension_numbers<[1], [0], [0], [1], [0, 0, 1, 1], [], []>} : vector<8x16xbf16>, vector<16x256xbf16>, vector<8x256xf32> -> vector<8x256xf32>
    %616 = vector.broadcast %44 : vector<8x1xf32> to vector<8x256xf32>
    %617 = arith.addf %615, %616 : vector<8x256xf32>
    %cst_392 = arith.constant 0.000000e+00 : f32
    %618 = vector.broadcast %cst_392 : f32 to vector<8x256xf32>
    %619 = arith.cmpf oge, %617, %618 : vector<8x256xf32>
    %cst_393 = arith.constant 0.00999999977 : f32
    %620 = vector.broadcast %cst_393 : f32 to vector<8x256xf32>
    %621 = arith.mulf %620, %617 : vector<8x256xf32>
    %622 = arith.select %619, %617, %621 : vector<8x256xi1>, vector<8x256xf32>
    %623 = arith.truncf %622 : vector<8x256xf32> to vector<8x256xbf16>
    %cst_394 = arith.constant dense<0.000000e+00> : vector<8x256xf32>
    %624 = tpu.matmul %11, %623, %cst_394 {dimension_numbers = #tpu.dot_dimension_numbers<[1], [0], [0], [1], [0, 0, 1, 1], [], []>} : vector<8x8xbf16>, vector<8x256xbf16>, vector<8x256xf32> -> vector<8x256xf32>
    %625 = vector.broadcast %45 : vector<8x1xf32> to vector<8x256xf32>
    %626 = arith.addf %624, %625 : vector<8x256xf32>
    %cst_395 = arith.constant 0.000000e+00 : f32
    %627 = vector.broadcast %cst_395 : f32 to vector<8x256xf32>
    %628 = arith.cmpf oge, %626, %627 : vector<8x256xf32>
    %cst_396 = arith.constant 0.00999999977 : f32
    %629 = vector.broadcast %cst_396 : f32 to vector<8x256xf32>
    %630 = arith.mulf %629, %626 : vector<8x256xf32>
    %631 = arith.select %628, %626, %630 : vector<8x256xi1>, vector<8x256xf32>
    %c5_397 = arith.constant 5 : index
    %c0_398 = arith.constant 0 : index
    %632 = vector.load %arg2[%c5_397, %c0_398] : memref<16x256xf32, #tpu.memory_space<vmem>>, vector<1x256xf32>
    %633 = vector.broadcast %632 : vector<1x256xf32> to vector<8x256xf32>
    %634 = arith.mulf %631, %633 : vector<8x256xf32>
    %635 = arith.addf %543, %634 : vector<8x256xf32>
    %636 = arith.truncf %635 : vector<8x256xf32> to vector<8x256xbf16>
    %cst_399 = arith.constant dense<0.000000e+00> : vector<16x256xf32>
    %637 = tpu.matmul %7, %636, %cst_399 {dimension_numbers = #tpu.dot_dimension_numbers<[1], [0], [0], [1], [0, 0, 1, 1], [], []>} : vector<16x8xbf16>, vector<8x256xbf16>, vector<16x256xf32> -> vector<16x256xf32>
    %638 = vector.broadcast %43 : vector<16x1xf32> to vector<16x256xf32>
    %639 = arith.addf %637, %638 : vector<16x256xf32>
    %cst_400 = arith.constant 0.000000e+00 : f32
    %640 = vector.broadcast %cst_400 : f32 to vector<16x256xf32>
    %641 = arith.cmpf oge, %639, %640 : vector<16x256xf32>
    %cst_401 = arith.constant 0.00999999977 : f32
    %642 = vector.broadcast %cst_401 : f32 to vector<16x256xf32>
    %643 = arith.mulf %642, %639 : vector<16x256xf32>
    %644 = arith.select %641, %639, %643 : vector<16x256xi1>, vector<16x256xf32>
    %645 = arith.truncf %644 : vector<16x256xf32> to vector<16x256xbf16>
    %cst_402 = arith.constant dense<0.000000e+00> : vector<8x256xf32>
    %646 = tpu.matmul %9, %645, %cst_402 {dimension_numbers = #tpu.dot_dimension_numbers<[1], [0], [0], [1], [0, 0, 1, 1], [], []>} : vector<8x16xbf16>, vector<16x256xbf16>, vector<8x256xf32> -> vector<8x256xf32>
    %647 = vector.broadcast %44 : vector<8x1xf32> to vector<8x256xf32>
    %648 = arith.addf %646, %647 : vector<8x256xf32>
    %cst_403 = arith.constant 0.000000e+00 : f32
    %649 = vector.broadcast %cst_403 : f32 to vector<8x256xf32>
    %650 = arith.cmpf oge, %648, %649 : vector<8x256xf32>
    %cst_404 = arith.constant 0.00999999977 : f32
    %651 = vector.broadcast %cst_404 : f32 to vector<8x256xf32>
    %652 = arith.mulf %651, %648 : vector<8x256xf32>
    %653 = arith.select %650, %648, %652 : vector<8x256xi1>, vector<8x256xf32>
    %654 = arith.truncf %653 : vector<8x256xf32> to vector<8x256xbf16>
    %cst_405 = arith.constant dense<0.000000e+00> : vector<8x256xf32>
    %655 = tpu.matmul %11, %654, %cst_405 {dimension_numbers = #tpu.dot_dimension_numbers<[1], [0], [0], [1], [0, 0, 1, 1], [], []>} : vector<8x8xbf16>, vector<8x256xbf16>, vector<8x256xf32> -> vector<8x256xf32>
    %656 = vector.broadcast %45 : vector<8x1xf32> to vector<8x256xf32>
    %657 = arith.addf %655, %656 : vector<8x256xf32>
    %cst_406 = arith.constant 0.000000e+00 : f32
    %658 = vector.broadcast %cst_406 : f32 to vector<8x256xf32>
    %659 = arith.cmpf oge, %657, %658 : vector<8x256xf32>
    %cst_407 = arith.constant 0.00999999977 : f32
    %660 = vector.broadcast %cst_407 : f32 to vector<8x256xf32>
    %661 = arith.mulf %660, %657 : vector<8x256xf32>
    %662 = arith.select %659, %657, %661 : vector<8x256xi1>, vector<8x256xf32>
    %663 = arith.truncf %662 : vector<8x256xf32> to vector<8x256xbf16>
    %664 = vector.extract_strided_slice %663 {offsets = [0, 0], sizes = [8, 32], strides = [1, 1]} : vector<8x256xbf16> to vector<8x32xbf16>
    %c6_408 = arith.constant 6 : index
    %c0_409 = arith.constant 0 : index
    %c0_410 = arith.constant 0 : index
    %c0_411 = arith.constant 0 : index
    %665 = vector.load %arg3[%c6_408, %c0_409, %c0_410, %c0_411] : memref<8x8x32x32xbf16, #tpu.memory_space<vmem>>, vector<1x1x32x32xbf16>
    %666 = vector.shape_cast %665 : vector<1x1x32x32xbf16> to vector<32x32xbf16>
    %cst_412 = arith.constant dense<0.000000e+00> : vector<8x32xf32>
    %667 = tpu.matmul %664, %666, %cst_412 {dimension_numbers = #tpu.dot_dimension_numbers<[1], [0], [0], [1], [0, 0, 1, 1], [], []>} : vector<8x32xbf16>, vector<32x32xbf16>, vector<8x32xf32> -> vector<8x32xf32>
    %668 = vector.extract_strided_slice %663 {offsets = [0, 32], sizes = [8, 32], strides = [1, 1]} : vector<8x256xbf16> to vector<8x32xbf16>
    %c6_413 = arith.constant 6 : index
    %c1_414 = arith.constant 1 : index
    %c0_415 = arith.constant 0 : index
    %c0_416 = arith.constant 0 : index
    %669 = vector.load %arg3[%c6_413, %c1_414, %c0_415, %c0_416] : memref<8x8x32x32xbf16, #tpu.memory_space<vmem>>, vector<1x1x32x32xbf16>
    %670 = vector.shape_cast %669 : vector<1x1x32x32xbf16> to vector<32x32xbf16>
    %cst_417 = arith.constant dense<0.000000e+00> : vector<8x32xf32>
    %671 = tpu.matmul %668, %670, %cst_417 {dimension_numbers = #tpu.dot_dimension_numbers<[1], [0], [0], [1], [0, 0, 1, 1], [], []>} : vector<8x32xbf16>, vector<32x32xbf16>, vector<8x32xf32> -> vector<8x32xf32>
    %672 = vector.extract_strided_slice %663 {offsets = [0, 64], sizes = [8, 32], strides = [1, 1]} : vector<8x256xbf16> to vector<8x32xbf16>
    %c6_418 = arith.constant 6 : index
    %c2_419 = arith.constant 2 : index
    %c0_420 = arith.constant 0 : index
    %c0_421 = arith.constant 0 : index
    %673 = vector.load %arg3[%c6_418, %c2_419, %c0_420, %c0_421] : memref<8x8x32x32xbf16, #tpu.memory_space<vmem>>, vector<1x1x32x32xbf16>
    %674 = vector.shape_cast %673 : vector<1x1x32x32xbf16> to vector<32x32xbf16>
    %cst_422 = arith.constant dense<0.000000e+00> : vector<8x32xf32>
    %675 = tpu.matmul %672, %674, %cst_422 {dimension_numbers = #tpu.dot_dimension_numbers<[1], [0], [0], [1], [0, 0, 1, 1], [], []>} : vector<8x32xbf16>, vector<32x32xbf16>, vector<8x32xf32> -> vector<8x32xf32>
    %676 = vector.extract_strided_slice %663 {offsets = [0, 96], sizes = [8, 32], strides = [1, 1]} : vector<8x256xbf16> to vector<8x32xbf16>
    %c6_423 = arith.constant 6 : index
    %c3_424 = arith.constant 3 : index
    %c0_425 = arith.constant 0 : index
    %c0_426 = arith.constant 0 : index
    %677 = vector.load %arg3[%c6_423, %c3_424, %c0_425, %c0_426] : memref<8x8x32x32xbf16, #tpu.memory_space<vmem>>, vector<1x1x32x32xbf16>
    %678 = vector.shape_cast %677 : vector<1x1x32x32xbf16> to vector<32x32xbf16>
    %cst_427 = arith.constant dense<0.000000e+00> : vector<8x32xf32>
    %679 = tpu.matmul %676, %678, %cst_427 {dimension_numbers = #tpu.dot_dimension_numbers<[1], [0], [0], [1], [0, 0, 1, 1], [], []>} : vector<8x32xbf16>, vector<32x32xbf16>, vector<8x32xf32> -> vector<8x32xf32>
    %680 = vector.extract_strided_slice %663 {offsets = [0, 128], sizes = [8, 32], strides = [1, 1]} : vector<8x256xbf16> to vector<8x32xbf16>
    %c6_428 = arith.constant 6 : index
    %c4_429 = arith.constant 4 : index
    %c0_430 = arith.constant 0 : index
    %c0_431 = arith.constant 0 : index
    %681 = vector.load %arg3[%c6_428, %c4_429, %c0_430, %c0_431] : memref<8x8x32x32xbf16, #tpu.memory_space<vmem>>, vector<1x1x32x32xbf16>
    %682 = vector.shape_cast %681 : vector<1x1x32x32xbf16> to vector<32x32xbf16>
    %cst_432 = arith.constant dense<0.000000e+00> : vector<8x32xf32>
    %683 = tpu.matmul %680, %682, %cst_432 {dimension_numbers = #tpu.dot_dimension_numbers<[1], [0], [0], [1], [0, 0, 1, 1], [], []>} : vector<8x32xbf16>, vector<32x32xbf16>, vector<8x32xf32> -> vector<8x32xf32>
    %684 = vector.extract_strided_slice %663 {offsets = [0, 160], sizes = [8, 32], strides = [1, 1]} : vector<8x256xbf16> to vector<8x32xbf16>
    %c6_433 = arith.constant 6 : index
    %c5_434 = arith.constant 5 : index
    %c0_435 = arith.constant 0 : index
    %c0_436 = arith.constant 0 : index
    %685 = vector.load %arg3[%c6_433, %c5_434, %c0_435, %c0_436] : memref<8x8x32x32xbf16, #tpu.memory_space<vmem>>, vector<1x1x32x32xbf16>
    %686 = vector.shape_cast %685 : vector<1x1x32x32xbf16> to vector<32x32xbf16>
    %cst_437 = arith.constant dense<0.000000e+00> : vector<8x32xf32>
    %687 = tpu.matmul %684, %686, %cst_437 {dimension_numbers = #tpu.dot_dimension_numbers<[1], [0], [0], [1], [0, 0, 1, 1], [], []>} : vector<8x32xbf16>, vector<32x32xbf16>, vector<8x32xf32> -> vector<8x32xf32>
    %688 = vector.extract_strided_slice %663 {offsets = [0, 192], sizes = [8, 32], strides = [1, 1]} : vector<8x256xbf16> to vector<8x32xbf16>
    %c6_438 = arith.constant 6 : index
    %c6_439 = arith.constant 6 : index
    %c0_440 = arith.constant 0 : index
    %c0_441 = arith.constant 0 : index
    %689 = vector.load %arg3[%c6_438, %c6_439, %c0_440, %c0_441] : memref<8x8x32x32xbf16, #tpu.memory_space<vmem>>, vector<1x1x32x32xbf16>
    %690 = vector.shape_cast %689 : vector<1x1x32x32xbf16> to vector<32x32xbf16>
    %cst_442 = arith.constant dense<0.000000e+00> : vector<8x32xf32>
    %691 = tpu.matmul %688, %690, %cst_442 {dimension_numbers = #tpu.dot_dimension_numbers<[1], [0], [0], [1], [0, 0, 1, 1], [], []>} : vector<8x32xbf16>, vector<32x32xbf16>, vector<8x32xf32> -> vector<8x32xf32>
    %692 = vector.extract_strided_slice %663 {offsets = [0, 224], sizes = [8, 32], strides = [1, 1]} : vector<8x256xbf16> to vector<8x32xbf16>
    %c6_443 = arith.constant 6 : index
    %c7_444 = arith.constant 7 : index
    %c0_445 = arith.constant 0 : index
    %c0_446 = arith.constant 0 : index
    %693 = vector.load %arg3[%c6_443, %c7_444, %c0_445, %c0_446] : memref<8x8x32x32xbf16, #tpu.memory_space<vmem>>, vector<1x1x32x32xbf16>
    %694 = vector.shape_cast %693 : vector<1x1x32x32xbf16> to vector<32x32xbf16>
    %cst_447 = arith.constant dense<0.000000e+00> : vector<8x32xf32>
    %695 = tpu.matmul %692, %694, %cst_447 {dimension_numbers = #tpu.dot_dimension_numbers<[1], [0], [0], [1], [0, 0, 1, 1], [], []>} : vector<8x32xbf16>, vector<32x32xbf16>, vector<8x32xf32> -> vector<8x32xf32>
    %696 = tpu.concatenate %667, %671, %675, %679, %683, %687, %691, %695 in 1 : vector<8x32xf32>, vector<8x32xf32>, vector<8x32xf32>, vector<8x32xf32>, vector<8x32xf32>, vector<8x32xf32>, vector<8x32xf32>, vector<8x32xf32> -> vector<8x256xf32>
    %697 = arith.truncf %696 : vector<8x256xf32> to vector<8x256xbf16>
    %cst_448 = arith.constant dense<0.000000e+00> : vector<16x256xf32>
    %698 = tpu.matmul %7, %697, %cst_448 {dimension_numbers = #tpu.dot_dimension_numbers<[1], [0], [0], [1], [0, 0, 1, 1], [], []>} : vector<16x8xbf16>, vector<8x256xbf16>, vector<16x256xf32> -> vector<16x256xf32>
    %699 = vector.broadcast %43 : vector<16x1xf32> to vector<16x256xf32>
    %700 = arith.addf %698, %699 : vector<16x256xf32>
    %cst_449 = arith.constant 0.000000e+00 : f32
    %701 = vector.broadcast %cst_449 : f32 to vector<16x256xf32>
    %702 = arith.cmpf oge, %700, %701 : vector<16x256xf32>
    %cst_450 = arith.constant 0.00999999977 : f32
    %703 = vector.broadcast %cst_450 : f32 to vector<16x256xf32>
    %704 = arith.mulf %703, %700 : vector<16x256xf32>
    %705 = arith.select %702, %700, %704 : vector<16x256xi1>, vector<16x256xf32>
    %706 = arith.truncf %705 : vector<16x256xf32> to vector<16x256xbf16>
    %cst_451 = arith.constant dense<0.000000e+00> : vector<8x256xf32>
    %707 = tpu.matmul %9, %706, %cst_451 {dimension_numbers = #tpu.dot_dimension_numbers<[1], [0], [0], [1], [0, 0, 1, 1], [], []>} : vector<8x16xbf16>, vector<16x256xbf16>, vector<8x256xf32> -> vector<8x256xf32>
    %708 = vector.broadcast %44 : vector<8x1xf32> to vector<8x256xf32>
    %709 = arith.addf %707, %708 : vector<8x256xf32>
    %cst_452 = arith.constant 0.000000e+00 : f32
    %710 = vector.broadcast %cst_452 : f32 to vector<8x256xf32>
    %711 = arith.cmpf oge, %709, %710 : vector<8x256xf32>
    %cst_453 = arith.constant 0.00999999977 : f32
    %712 = vector.broadcast %cst_453 : f32 to vector<8x256xf32>
    %713 = arith.mulf %712, %709 : vector<8x256xf32>
    %714 = arith.select %711, %709, %713 : vector<8x256xi1>, vector<8x256xf32>
    %715 = arith.truncf %714 : vector<8x256xf32> to vector<8x256xbf16>
    %cst_454 = arith.constant dense<0.000000e+00> : vector<8x256xf32>
    %716 = tpu.matmul %11, %715, %cst_454 {dimension_numbers = #tpu.dot_dimension_numbers<[1], [0], [0], [1], [0, 0, 1, 1], [], []>} : vector<8x8xbf16>, vector<8x256xbf16>, vector<8x256xf32> -> vector<8x256xf32>
    %717 = vector.broadcast %45 : vector<8x1xf32> to vector<8x256xf32>
    %718 = arith.addf %716, %717 : vector<8x256xf32>
    %cst_455 = arith.constant 0.000000e+00 : f32
    %719 = vector.broadcast %cst_455 : f32 to vector<8x256xf32>
    %720 = arith.cmpf oge, %718, %719 : vector<8x256xf32>
    %cst_456 = arith.constant 0.00999999977 : f32
    %721 = vector.broadcast %cst_456 : f32 to vector<8x256xf32>
    %722 = arith.mulf %721, %718 : vector<8x256xf32>
    %723 = arith.select %720, %718, %722 : vector<8x256xi1>, vector<8x256xf32>
    %c6_457 = arith.constant 6 : index
    %c0_458 = arith.constant 0 : index
    %724 = vector.load %arg2[%c6_457, %c0_458] : memref<16x256xf32, #tpu.memory_space<vmem>>, vector<1x256xf32>
    %725 = vector.broadcast %724 : vector<1x256xf32> to vector<8x256xf32>
    %726 = arith.mulf %723, %725 : vector<8x256xf32>
    %727 = arith.addf %635, %726 : vector<8x256xf32>
    %728 = arith.truncf %727 : vector<8x256xf32> to vector<8x256xbf16>
    %cst_459 = arith.constant dense<0.000000e+00> : vector<16x256xf32>
    %729 = tpu.matmul %7, %728, %cst_459 {dimension_numbers = #tpu.dot_dimension_numbers<[1], [0], [0], [1], [0, 0, 1, 1], [], []>} : vector<16x8xbf16>, vector<8x256xbf16>, vector<16x256xf32> -> vector<16x256xf32>
    %730 = vector.broadcast %43 : vector<16x1xf32> to vector<16x256xf32>
    %731 = arith.addf %729, %730 : vector<16x256xf32>
    %cst_460 = arith.constant 0.000000e+00 : f32
    %732 = vector.broadcast %cst_460 : f32 to vector<16x256xf32>
    %733 = arith.cmpf oge, %731, %732 : vector<16x256xf32>
    %cst_461 = arith.constant 0.00999999977 : f32
    %734 = vector.broadcast %cst_461 : f32 to vector<16x256xf32>
    %735 = arith.mulf %734, %731 : vector<16x256xf32>
    %736 = arith.select %733, %731, %735 : vector<16x256xi1>, vector<16x256xf32>
    %737 = arith.truncf %736 : vector<16x256xf32> to vector<16x256xbf16>
    %cst_462 = arith.constant dense<0.000000e+00> : vector<8x256xf32>
    %738 = tpu.matmul %9, %737, %cst_462 {dimension_numbers = #tpu.dot_dimension_numbers<[1], [0], [0], [1], [0, 0, 1, 1], [], []>} : vector<8x16xbf16>, vector<16x256xbf16>, vector<8x256xf32> -> vector<8x256xf32>
    %739 = vector.broadcast %44 : vector<8x1xf32> to vector<8x256xf32>
    %740 = arith.addf %738, %739 : vector<8x256xf32>
    %cst_463 = arith.constant 0.000000e+00 : f32
    %741 = vector.broadcast %cst_463 : f32 to vector<8x256xf32>
    %742 = arith.cmpf oge, %740, %741 : vector<8x256xf32>
    %cst_464 = arith.constant 0.00999999977 : f32
    %743 = vector.broadcast %cst_464 : f32 to vector<8x256xf32>
    %744 = arith.mulf %743, %740 : vector<8x256xf32>
    %745 = arith.select %742, %740, %744 : vector<8x256xi1>, vector<8x256xf32>
    %746 = arith.truncf %745 : vector<8x256xf32> to vector<8x256xbf16>
    %cst_465 = arith.constant dense<0.000000e+00> : vector<8x256xf32>
    %747 = tpu.matmul %11, %746, %cst_465 {dimension_numbers = #tpu.dot_dimension_numbers<[1], [0], [0], [1], [0, 0, 1, 1], [], []>} : vector<8x8xbf16>, vector<8x256xbf16>, vector<8x256xf32> -> vector<8x256xf32>
    %748 = vector.broadcast %45 : vector<8x1xf32> to vector<8x256xf32>
    %749 = arith.addf %747, %748 : vector<8x256xf32>
    %cst_466 = arith.constant 0.000000e+00 : f32
    %750 = vector.broadcast %cst_466 : f32 to vector<8x256xf32>
    %751 = arith.cmpf oge, %749, %750 : vector<8x256xf32>
    %cst_467 = arith.constant 0.00999999977 : f32
    %752 = vector.broadcast %cst_467 : f32 to vector<8x256xf32>
    %753 = arith.mulf %752, %749 : vector<8x256xf32>
    %754 = arith.select %751, %749, %753 : vector<8x256xi1>, vector<8x256xf32>
    %755 = arith.truncf %754 : vector<8x256xf32> to vector<8x256xbf16>
    %756 = vector.extract_strided_slice %755 {offsets = [0, 0], sizes = [8, 32], strides = [1, 1]} : vector<8x256xbf16> to vector<8x32xbf16>
    %c7_468 = arith.constant 7 : index
    %c0_469 = arith.constant 0 : index
    %c0_470 = arith.constant 0 : index
    %c0_471 = arith.constant 0 : index
    %757 = vector.load %arg3[%c7_468, %c0_469, %c0_470, %c0_471] : memref<8x8x32x32xbf16, #tpu.memory_space<vmem>>, vector<1x1x32x32xbf16>
    %758 = vector.shape_cast %757 : vector<1x1x32x32xbf16> to vector<32x32xbf16>
    %cst_472 = arith.constant dense<0.000000e+00> : vector<8x32xf32>
    %759 = tpu.matmul %756, %758, %cst_472 {dimension_numbers = #tpu.dot_dimension_numbers<[1], [0], [0], [1], [0, 0, 1, 1], [], []>} : vector<8x32xbf16>, vector<32x32xbf16>, vector<8x32xf32> -> vector<8x32xf32>
    %760 = vector.extract_strided_slice %755 {offsets = [0, 32], sizes = [8, 32], strides = [1, 1]} : vector<8x256xbf16> to vector<8x32xbf16>
    %c7_473 = arith.constant 7 : index
    %c1_474 = arith.constant 1 : index
    %c0_475 = arith.constant 0 : index
    %c0_476 = arith.constant 0 : index
    %761 = vector.load %arg3[%c7_473, %c1_474, %c0_475, %c0_476] : memref<8x8x32x32xbf16, #tpu.memory_space<vmem>>, vector<1x1x32x32xbf16>
    %762 = vector.shape_cast %761 : vector<1x1x32x32xbf16> to vector<32x32xbf16>
    %cst_477 = arith.constant dense<0.000000e+00> : vector<8x32xf32>
    %763 = tpu.matmul %760, %762, %cst_477 {dimension_numbers = #tpu.dot_dimension_numbers<[1], [0], [0], [1], [0, 0, 1, 1], [], []>} : vector<8x32xbf16>, vector<32x32xbf16>, vector<8x32xf32> -> vector<8x32xf32>
    %764 = vector.extract_strided_slice %755 {offsets = [0, 64], sizes = [8, 32], strides = [1, 1]} : vector<8x256xbf16> to vector<8x32xbf16>
    %c7_478 = arith.constant 7 : index
    %c2_479 = arith.constant 2 : index
    %c0_480 = arith.constant 0 : index
    %c0_481 = arith.constant 0 : index
    %765 = vector.load %arg3[%c7_478, %c2_479, %c0_480, %c0_481] : memref<8x8x32x32xbf16, #tpu.memory_space<vmem>>, vector<1x1x32x32xbf16>
    %766 = vector.shape_cast %765 : vector<1x1x32x32xbf16> to vector<32x32xbf16>
    %cst_482 = arith.constant dense<0.000000e+00> : vector<8x32xf32>
    %767 = tpu.matmul %764, %766, %cst_482 {dimension_numbers = #tpu.dot_dimension_numbers<[1], [0], [0], [1], [0, 0, 1, 1], [], []>} : vector<8x32xbf16>, vector<32x32xbf16>, vector<8x32xf32> -> vector<8x32xf32>
    %768 = vector.extract_strided_slice %755 {offsets = [0, 96], sizes = [8, 32], strides = [1, 1]} : vector<8x256xbf16> to vector<8x32xbf16>
    %c7_483 = arith.constant 7 : index
    %c3_484 = arith.constant 3 : index
    %c0_485 = arith.constant 0 : index
    %c0_486 = arith.constant 0 : index
    %769 = vector.load %arg3[%c7_483, %c3_484, %c0_485, %c0_486] : memref<8x8x32x32xbf16, #tpu.memory_space<vmem>>, vector<1x1x32x32xbf16>
    %770 = vector.shape_cast %769 : vector<1x1x32x32xbf16> to vector<32x32xbf16>
    %cst_487 = arith.constant dense<0.000000e+00> : vector<8x32xf32>
    %771 = tpu.matmul %768, %770, %cst_487 {dimension_numbers = #tpu.dot_dimension_numbers<[1], [0], [0], [1], [0, 0, 1, 1], [], []>} : vector<8x32xbf16>, vector<32x32xbf16>, vector<8x32xf32> -> vector<8x32xf32>
    %772 = vector.extract_strided_slice %755 {offsets = [0, 128], sizes = [8, 32], strides = [1, 1]} : vector<8x256xbf16> to vector<8x32xbf16>
    %c7_488 = arith.constant 7 : index
    %c4_489 = arith.constant 4 : index
    %c0_490 = arith.constant 0 : index
    %c0_491 = arith.constant 0 : index
    %773 = vector.load %arg3[%c7_488, %c4_489, %c0_490, %c0_491] : memref<8x8x32x32xbf16, #tpu.memory_space<vmem>>, vector<1x1x32x32xbf16>
    %774 = vector.shape_cast %773 : vector<1x1x32x32xbf16> to vector<32x32xbf16>
    %cst_492 = arith.constant dense<0.000000e+00> : vector<8x32xf32>
    %775 = tpu.matmul %772, %774, %cst_492 {dimension_numbers = #tpu.dot_dimension_numbers<[1], [0], [0], [1], [0, 0, 1, 1], [], []>} : vector<8x32xbf16>, vector<32x32xbf16>, vector<8x32xf32> -> vector<8x32xf32>
    %776 = vector.extract_strided_slice %755 {offsets = [0, 160], sizes = [8, 32], strides = [1, 1]} : vector<8x256xbf16> to vector<8x32xbf16>
    %c7_493 = arith.constant 7 : index
    %c5_494 = arith.constant 5 : index
    %c0_495 = arith.constant 0 : index
    %c0_496 = arith.constant 0 : index
    %777 = vector.load %arg3[%c7_493, %c5_494, %c0_495, %c0_496] : memref<8x8x32x32xbf16, #tpu.memory_space<vmem>>, vector<1x1x32x32xbf16>
    %778 = vector.shape_cast %777 : vector<1x1x32x32xbf16> to vector<32x32xbf16>
    %cst_497 = arith.constant dense<0.000000e+00> : vector<8x32xf32>
    %779 = tpu.matmul %776, %778, %cst_497 {dimension_numbers = #tpu.dot_dimension_numbers<[1], [0], [0], [1], [0, 0, 1, 1], [], []>} : vector<8x32xbf16>, vector<32x32xbf16>, vector<8x32xf32> -> vector<8x32xf32>
    %780 = vector.extract_strided_slice %755 {offsets = [0, 192], sizes = [8, 32], strides = [1, 1]} : vector<8x256xbf16> to vector<8x32xbf16>
    %c7_498 = arith.constant 7 : index
    %c6_499 = arith.constant 6 : index
    %c0_500 = arith.constant 0 : index
    %c0_501 = arith.constant 0 : index
    %781 = vector.load %arg3[%c7_498, %c6_499, %c0_500, %c0_501] : memref<8x8x32x32xbf16, #tpu.memory_space<vmem>>, vector<1x1x32x32xbf16>
    %782 = vector.shape_cast %781 : vector<1x1x32x32xbf16> to vector<32x32xbf16>
    %cst_502 = arith.constant dense<0.000000e+00> : vector<8x32xf32>
    %783 = tpu.matmul %780, %782, %cst_502 {dimension_numbers = #tpu.dot_dimension_numbers<[1], [0], [0], [1], [0, 0, 1, 1], [], []>} : vector<8x32xbf16>, vector<32x32xbf16>, vector<8x32xf32> -> vector<8x32xf32>
    %784 = vector.extract_strided_slice %755 {offsets = [0, 224], sizes = [8, 32], strides = [1, 1]} : vector<8x256xbf16> to vector<8x32xbf16>
    %c7_503 = arith.constant 7 : index
    %c7_504 = arith.constant 7 : index
    %c0_505 = arith.constant 0 : index
    %c0_506 = arith.constant 0 : index
    %785 = vector.load %arg3[%c7_503, %c7_504, %c0_505, %c0_506] : memref<8x8x32x32xbf16, #tpu.memory_space<vmem>>, vector<1x1x32x32xbf16>
    %786 = vector.shape_cast %785 : vector<1x1x32x32xbf16> to vector<32x32xbf16>
    %cst_507 = arith.constant dense<0.000000e+00> : vector<8x32xf32>
    %787 = tpu.matmul %784, %786, %cst_507 {dimension_numbers = #tpu.dot_dimension_numbers<[1], [0], [0], [1], [0, 0, 1, 1], [], []>} : vector<8x32xbf16>, vector<32x32xbf16>, vector<8x32xf32> -> vector<8x32xf32>
    %788 = tpu.concatenate %759, %763, %767, %771, %775, %779, %783, %787 in 1 : vector<8x32xf32>, vector<8x32xf32>, vector<8x32xf32>, vector<8x32xf32>, vector<8x32xf32>, vector<8x32xf32>, vector<8x32xf32>, vector<8x32xf32> -> vector<8x256xf32>
    %789 = arith.truncf %788 : vector<8x256xf32> to vector<8x256xbf16>
    %cst_508 = arith.constant dense<0.000000e+00> : vector<16x256xf32>
    %790 = tpu.matmul %7, %789, %cst_508 {dimension_numbers = #tpu.dot_dimension_numbers<[1], [0], [0], [1], [0, 0, 1, 1], [], []>} : vector<16x8xbf16>, vector<8x256xbf16>, vector<16x256xf32> -> vector<16x256xf32>
    %791 = vector.broadcast %43 : vector<16x1xf32> to vector<16x256xf32>
    %792 = arith.addf %790, %791 : vector<16x256xf32>
    %cst_509 = arith.constant 0.000000e+00 : f32
    %793 = vector.broadcast %cst_509 : f32 to vector<16x256xf32>
    %794 = arith.cmpf oge, %792, %793 : vector<16x256xf32>
    %cst_510 = arith.constant 0.00999999977 : f32
    %795 = vector.broadcast %cst_510 : f32 to vector<16x256xf32>
    %796 = arith.mulf %795, %792 : vector<16x256xf32>
    %797 = arith.select %794, %792, %796 : vector<16x256xi1>, vector<16x256xf32>
    %798 = arith.truncf %797 : vector<16x256xf32> to vector<16x256xbf16>
    %cst_511 = arith.constant dense<0.000000e+00> : vector<8x256xf32>
    %799 = tpu.matmul %9, %798, %cst_511 {dimension_numbers = #tpu.dot_dimension_numbers<[1], [0], [0], [1], [0, 0, 1, 1], [], []>} : vector<8x16xbf16>, vector<16x256xbf16>, vector<8x256xf32> -> vector<8x256xf32>
    %800 = vector.broadcast %44 : vector<8x1xf32> to vector<8x256xf32>
    %801 = arith.addf %799, %800 : vector<8x256xf32>
    %cst_512 = arith.constant 0.000000e+00 : f32
    %802 = vector.broadcast %cst_512 : f32 to vector<8x256xf32>
    %803 = arith.cmpf oge, %801, %802 : vector<8x256xf32>
    %cst_513 = arith.constant 0.00999999977 : f32
    %804 = vector.broadcast %cst_513 : f32 to vector<8x256xf32>
    %805 = arith.mulf %804, %801 : vector<8x256xf32>
    %806 = arith.select %803, %801, %805 : vector<8x256xi1>, vector<8x256xf32>
    %807 = arith.truncf %806 : vector<8x256xf32> to vector<8x256xbf16>
    %cst_514 = arith.constant dense<0.000000e+00> : vector<8x256xf32>
    %808 = tpu.matmul %11, %807, %cst_514 {dimension_numbers = #tpu.dot_dimension_numbers<[1], [0], [0], [1], [0, 0, 1, 1], [], []>} : vector<8x8xbf16>, vector<8x256xbf16>, vector<8x256xf32> -> vector<8x256xf32>
    %809 = vector.broadcast %45 : vector<8x1xf32> to vector<8x256xf32>
    %810 = arith.addf %808, %809 : vector<8x256xf32>
    %cst_515 = arith.constant 0.000000e+00 : f32
    %811 = vector.broadcast %cst_515 : f32 to vector<8x256xf32>
    %812 = arith.cmpf oge, %810, %811 : vector<8x256xf32>
    %cst_516 = arith.constant 0.00999999977 : f32
    %813 = vector.broadcast %cst_516 : f32 to vector<8x256xf32>
    %814 = arith.mulf %813, %810 : vector<8x256xf32>
    %815 = arith.select %812, %810, %814 : vector<8x256xi1>, vector<8x256xf32>
    %c7_517 = arith.constant 7 : index
    %c0_518 = arith.constant 0 : index
    %816 = vector.load %arg2[%c7_517, %c0_518] : memref<16x256xf32, #tpu.memory_space<vmem>>, vector<1x256xf32>
    %817 = vector.broadcast %816 : vector<1x256xf32> to vector<8x256xf32>
    %818 = arith.mulf %815, %817 : vector<8x256xf32>
    %819 = arith.addf %727, %818 : vector<8x256xf32>
    %820 = arith.truncf %819 : vector<8x256xf32> to vector<8x256xbf16>
    %cst_519 = arith.constant dense<0.000000e+00> : vector<16x256xf32>
    %821 = tpu.matmul %13, %57, %cst_519 {dimension_numbers = #tpu.dot_dimension_numbers<[1], [0], [0], [1], [0, 0, 1, 1], [], []>} : vector<16x8xbf16>, vector<8x256xbf16>, vector<16x256xf32> -> vector<16x256xf32>
    %cst_520 = arith.constant dense<0.000000e+00> : vector<16x256xf32>
    %822 = tpu.matmul %15, %820, %cst_520 {dimension_numbers = #tpu.dot_dimension_numbers<[1], [0], [0], [1], [0, 0, 1, 1], [], []>} : vector<16x8xbf16>, vector<8x256xbf16>, vector<16x256xf32> -> vector<16x256xf32>
    %823 = arith.addf %821, %822 : vector<16x256xf32>
    %824 = vector.broadcast %46 : vector<16x1xf32> to vector<16x256xf32>
    %825 = arith.addf %823, %824 : vector<16x256xf32>
    %cst_521 = arith.constant 0.000000e+00 : f32
    %826 = vector.broadcast %cst_521 : f32 to vector<16x256xf32>
    %827 = arith.cmpf oge, %825, %826 : vector<16x256xf32>
    %cst_522 = arith.constant 0.00999999977 : f32
    %828 = vector.broadcast %cst_522 : f32 to vector<16x256xf32>
    %829 = arith.mulf %828, %825 : vector<16x256xf32>
    %830 = arith.select %827, %825, %829 : vector<16x256xi1>, vector<16x256xf32>
    %831 = arith.truncf %830 : vector<16x256xf32> to vector<16x256xbf16>
    %cst_523 = arith.constant dense<0.000000e+00> : vector<8x256xf32>
    %832 = tpu.matmul %17, %831, %cst_523 {dimension_numbers = #tpu.dot_dimension_numbers<[1], [0], [0], [1], [0, 0, 1, 1], [], []>} : vector<8x16xbf16>, vector<16x256xbf16>, vector<8x256xf32> -> vector<8x256xf32>
    %833 = vector.broadcast %47 : vector<8x1xf32> to vector<8x256xf32>
    %834 = arith.addf %832, %833 : vector<8x256xf32>
    %cst_524 = arith.constant 0.000000e+00 : f32
    %835 = vector.broadcast %cst_524 : f32 to vector<8x256xf32>
    %836 = arith.cmpf oge, %834, %835 : vector<8x256xf32>
    %cst_525 = arith.constant 0.00999999977 : f32
    %837 = vector.broadcast %cst_525 : f32 to vector<8x256xf32>
    %838 = arith.mulf %837, %834 : vector<8x256xf32>
    %839 = arith.select %836, %834, %838 : vector<8x256xi1>, vector<8x256xf32>
    %840 = arith.truncf %839 : vector<8x256xf32> to vector<8x256xbf16>
    %cst_526 = arith.constant dense<0.000000e+00> : vector<8x256xf32>
    %841 = tpu.matmul %19, %840, %cst_526 {dimension_numbers = #tpu.dot_dimension_numbers<[1], [0], [0], [1], [0, 0, 1, 1], [], []>} : vector<8x8xbf16>, vector<8x256xbf16>, vector<8x256xf32> -> vector<8x256xf32>
    %842 = vector.broadcast %48 : vector<8x1xf32> to vector<8x256xf32>
    %843 = arith.addf %841, %842 : vector<8x256xf32>
    %cst_527 = arith.constant 0.000000e+00 : f32
    %844 = vector.broadcast %cst_527 : f32 to vector<8x256xf32>
    %845 = arith.cmpf oge, %843, %844 : vector<8x256xf32>
    %cst_528 = arith.constant 0.00999999977 : f32
    %846 = vector.broadcast %cst_528 : f32 to vector<8x256xf32>
    %847 = arith.mulf %846, %843 : vector<8x256xf32>
    %848 = arith.select %845, %843, %847 : vector<8x256xi1>, vector<8x256xf32>
    %849 = arith.truncf %848 : vector<8x256xf32> to vector<8x256xbf16>
    %850 = vector.extract_strided_slice %849 {offsets = [0, 0], sizes = [8, 32], strides = [1, 1]} : vector<8x256xbf16> to vector<8x32xbf16>
    %c0_529 = arith.constant 0 : index
    %c0_530 = arith.constant 0 : index
    %c0_531 = arith.constant 0 : index
    %851 = vector.load %arg4[%c0_529, %c0_530, %c0_531] : memref<8x32x32xbf16, #tpu.memory_space<vmem>>, vector<1x32x32xbf16>
    %852 = vector.shape_cast %851 : vector<1x32x32xbf16> to vector<32x32xbf16>
    %cst_532 = arith.constant dense<0.000000e+00> : vector<8x32xf32>
    %853 = tpu.matmul %850, %852, %cst_532 {dimension_numbers = #tpu.dot_dimension_numbers<[1], [0], [0], [1], [0, 0, 1, 1], [], []>} : vector<8x32xbf16>, vector<32x32xbf16>, vector<8x32xf32> -> vector<8x32xf32>
    %854 = vector.extract_strided_slice %849 {offsets = [0, 32], sizes = [8, 32], strides = [1, 1]} : vector<8x256xbf16> to vector<8x32xbf16>
    %c1_533 = arith.constant 1 : index
    %c0_534 = arith.constant 0 : index
    %c0_535 = arith.constant 0 : index
    %855 = vector.load %arg4[%c1_533, %c0_534, %c0_535] : memref<8x32x32xbf16, #tpu.memory_space<vmem>>, vector<1x32x32xbf16>
    %856 = vector.shape_cast %855 : vector<1x32x32xbf16> to vector<32x32xbf16>
    %cst_536 = arith.constant dense<0.000000e+00> : vector<8x32xf32>
    %857 = tpu.matmul %854, %856, %cst_536 {dimension_numbers = #tpu.dot_dimension_numbers<[1], [0], [0], [1], [0, 0, 1, 1], [], []>} : vector<8x32xbf16>, vector<32x32xbf16>, vector<8x32xf32> -> vector<8x32xf32>
    %858 = vector.extract_strided_slice %849 {offsets = [0, 64], sizes = [8, 32], strides = [1, 1]} : vector<8x256xbf16> to vector<8x32xbf16>
    %c2_537 = arith.constant 2 : index
    %c0_538 = arith.constant 0 : index
    %c0_539 = arith.constant 0 : index
    %859 = vector.load %arg4[%c2_537, %c0_538, %c0_539] : memref<8x32x32xbf16, #tpu.memory_space<vmem>>, vector<1x32x32xbf16>
    %860 = vector.shape_cast %859 : vector<1x32x32xbf16> to vector<32x32xbf16>
    %cst_540 = arith.constant dense<0.000000e+00> : vector<8x32xf32>
    %861 = tpu.matmul %858, %860, %cst_540 {dimension_numbers = #tpu.dot_dimension_numbers<[1], [0], [0], [1], [0, 0, 1, 1], [], []>} : vector<8x32xbf16>, vector<32x32xbf16>, vector<8x32xf32> -> vector<8x32xf32>
    %862 = vector.extract_strided_slice %849 {offsets = [0, 96], sizes = [8, 32], strides = [1, 1]} : vector<8x256xbf16> to vector<8x32xbf16>
    %c3_541 = arith.constant 3 : index
    %c0_542 = arith.constant 0 : index
    %c0_543 = arith.constant 0 : index
    %863 = vector.load %arg4[%c3_541, %c0_542, %c0_543] : memref<8x32x32xbf16, #tpu.memory_space<vmem>>, vector<1x32x32xbf16>
    %864 = vector.shape_cast %863 : vector<1x32x32xbf16> to vector<32x32xbf16>
    %cst_544 = arith.constant dense<0.000000e+00> : vector<8x32xf32>
    %865 = tpu.matmul %862, %864, %cst_544 {dimension_numbers = #tpu.dot_dimension_numbers<[1], [0], [0], [1], [0, 0, 1, 1], [], []>} : vector<8x32xbf16>, vector<32x32xbf16>, vector<8x32xf32> -> vector<8x32xf32>
    %866 = vector.extract_strided_slice %849 {offsets = [0, 128], sizes = [8, 32], strides = [1, 1]} : vector<8x256xbf16> to vector<8x32xbf16>
    %c4_545 = arith.constant 4 : index
    %c0_546 = arith.constant 0 : index
    %c0_547 = arith.constant 0 : index
    %867 = vector.load %arg4[%c4_545, %c0_546, %c0_547] : memref<8x32x32xbf16, #tpu.memory_space<vmem>>, vector<1x32x32xbf16>
    %868 = vector.shape_cast %867 : vector<1x32x32xbf16> to vector<32x32xbf16>
    %cst_548 = arith.constant dense<0.000000e+00> : vector<8x32xf32>
    %869 = tpu.matmul %866, %868, %cst_548 {dimension_numbers = #tpu.dot_dimension_numbers<[1], [0], [0], [1], [0, 0, 1, 1], [], []>} : vector<8x32xbf16>, vector<32x32xbf16>, vector<8x32xf32> -> vector<8x32xf32>
    %870 = vector.extract_strided_slice %849 {offsets = [0, 160], sizes = [8, 32], strides = [1, 1]} : vector<8x256xbf16> to vector<8x32xbf16>
    %c5_549 = arith.constant 5 : index
    %c0_550 = arith.constant 0 : index
    %c0_551 = arith.constant 0 : index
    %871 = vector.load %arg4[%c5_549, %c0_550, %c0_551] : memref<8x32x32xbf16, #tpu.memory_space<vmem>>, vector<1x32x32xbf16>
    %872 = vector.shape_cast %871 : vector<1x32x32xbf16> to vector<32x32xbf16>
    %cst_552 = arith.constant dense<0.000000e+00> : vector<8x32xf32>
    %873 = tpu.matmul %870, %872, %cst_552 {dimension_numbers = #tpu.dot_dimension_numbers<[1], [0], [0], [1], [0, 0, 1, 1], [], []>} : vector<8x32xbf16>, vector<32x32xbf16>, vector<8x32xf32> -> vector<8x32xf32>
    %874 = vector.extract_strided_slice %849 {offsets = [0, 192], sizes = [8, 32], strides = [1, 1]} : vector<8x256xbf16> to vector<8x32xbf16>
    %c6_553 = arith.constant 6 : index
    %c0_554 = arith.constant 0 : index
    %c0_555 = arith.constant 0 : index
    %875 = vector.load %arg4[%c6_553, %c0_554, %c0_555] : memref<8x32x32xbf16, #tpu.memory_space<vmem>>, vector<1x32x32xbf16>
    %876 = vector.shape_cast %875 : vector<1x32x32xbf16> to vector<32x32xbf16>
    %cst_556 = arith.constant dense<0.000000e+00> : vector<8x32xf32>
    %877 = tpu.matmul %874, %876, %cst_556 {dimension_numbers = #tpu.dot_dimension_numbers<[1], [0], [0], [1], [0, 0, 1, 1], [], []>} : vector<8x32xbf16>, vector<32x32xbf16>, vector<8x32xf32> -> vector<8x32xf32>
    %878 = vector.extract_strided_slice %849 {offsets = [0, 224], sizes = [8, 32], strides = [1, 1]} : vector<8x256xbf16> to vector<8x32xbf16>
    %c7_557 = arith.constant 7 : index
    %c0_558 = arith.constant 0 : index
    %c0_559 = arith.constant 0 : index
    %879 = vector.load %arg4[%c7_557, %c0_558, %c0_559] : memref<8x32x32xbf16, #tpu.memory_space<vmem>>, vector<1x32x32xbf16>
    %880 = vector.shape_cast %879 : vector<1x32x32xbf16> to vector<32x32xbf16>
    %cst_560 = arith.constant dense<0.000000e+00> : vector<8x32xf32>
    %881 = tpu.matmul %878, %880, %cst_560 {dimension_numbers = #tpu.dot_dimension_numbers<[1], [0], [0], [1], [0, 0, 1, 1], [], []>} : vector<8x32xbf16>, vector<32x32xbf16>, vector<8x32xf32> -> vector<8x32xf32>
    %882 = tpu.concatenate %853, %857, %861, %865, %869, %873, %877, %881 in 1 : vector<8x32xf32>, vector<8x32xf32>, vector<8x32xf32>, vector<8x32xf32>, vector<8x32xf32>, vector<8x32xf32>, vector<8x32xf32>, vector<8x32xf32> -> vector<8x256xf32>
    %883 = arith.truncf %882 : vector<8x256xf32> to vector<8x256xbf16>
    %cst_561 = arith.constant dense<0.000000e+00> : vector<16x256xf32>
    %884 = tpu.matmul %21, %883, %cst_561 {dimension_numbers = #tpu.dot_dimension_numbers<[1], [0], [0], [1], [0, 0, 1, 1], [], []>} : vector<16x8xbf16>, vector<8x256xbf16>, vector<16x256xf32> -> vector<16x256xf32>
    %885 = vector.broadcast %49 : vector<16x1xf32> to vector<16x256xf32>
    %886 = arith.addf %884, %885 : vector<16x256xf32>
    %cst_562 = arith.constant 0.000000e+00 : f32
    %887 = vector.broadcast %cst_562 : f32 to vector<16x256xf32>
    %888 = arith.cmpf oge, %886, %887 : vector<16x256xf32>
    %cst_563 = arith.constant 0.00999999977 : f32
    %889 = vector.broadcast %cst_563 : f32 to vector<16x256xf32>
    %890 = arith.mulf %889, %886 : vector<16x256xf32>
    %891 = arith.select %888, %886, %890 : vector<16x256xi1>, vector<16x256xf32>
    %892 = arith.truncf %891 : vector<16x256xf32> to vector<16x256xbf16>
    %cst_564 = arith.constant dense<0.000000e+00> : vector<8x256xf32>
    %893 = tpu.matmul %23, %892, %cst_564 {dimension_numbers = #tpu.dot_dimension_numbers<[1], [0], [0], [1], [0, 0, 1, 1], [], []>} : vector<8x16xbf16>, vector<16x256xbf16>, vector<8x256xf32> -> vector<8x256xf32>
    %894 = vector.broadcast %50 : vector<8x1xf32> to vector<8x256xf32>
    %895 = arith.addf %893, %894 : vector<8x256xf32>
    %cst_565 = arith.constant 0.000000e+00 : f32
    %896 = vector.broadcast %cst_565 : f32 to vector<8x256xf32>
    %897 = arith.cmpf oge, %895, %896 : vector<8x256xf32>
    %cst_566 = arith.constant 0.00999999977 : f32
    %898 = vector.broadcast %cst_566 : f32 to vector<8x256xf32>
    %899 = arith.mulf %898, %895 : vector<8x256xf32>
    %900 = arith.select %897, %895, %899 : vector<8x256xi1>, vector<8x256xf32>
    %901 = arith.truncf %900 : vector<8x256xf32> to vector<8x256xbf16>
    %cst_567 = arith.constant dense<0.000000e+00> : vector<8x256xf32>
    %902 = tpu.matmul %25, %901, %cst_567 {dimension_numbers = #tpu.dot_dimension_numbers<[1], [0], [0], [1], [0, 0, 1, 1], [], []>} : vector<8x8xbf16>, vector<8x256xbf16>, vector<8x256xf32> -> vector<8x256xf32>
    %903 = vector.broadcast %51 : vector<8x1xf32> to vector<8x256xf32>
    %904 = arith.addf %902, %903 : vector<8x256xf32>
    %cst_568 = arith.constant 0.000000e+00 : f32
    %905 = vector.broadcast %cst_568 : f32 to vector<8x256xf32>
    %906 = arith.cmpf oge, %904, %905 : vector<8x256xf32>
    %cst_569 = arith.constant 0.00999999977 : f32
    %907 = vector.broadcast %cst_569 : f32 to vector<8x256xf32>
    %908 = arith.mulf %907, %904 : vector<8x256xf32>
    %909 = arith.select %906, %904, %908 : vector<8x256xi1>, vector<8x256xf32>
    %c9 = arith.constant 9 : index
    %c0_570 = arith.constant 0 : index
    %910 = vector.load %arg2[%c9, %c0_570] : memref<16x256xf32, #tpu.memory_space<vmem>>, vector<1x256xf32>
    %911 = vector.broadcast %910 : vector<1x256xf32> to vector<8x256xf32>
    %912 = arith.mulf %909, %911 : vector<8x256xf32>
    %913 = arith.truncf %882 : vector<8x256xf32> to vector<8x256xbf16>
    %914 = vector.extract_strided_slice %912 {offsets = [0, 0], sizes = [8, 32], strides = [1, 1]} : vector<8x256xf32> to vector<8x32xf32>
    %cst_571 = arith.constant dense<0.000000e+00> : vector<8xf32>
    %915 = vector.multi_reduction <add>, %914, %cst_571 [1] : vector<8x32xf32> to vector<8xf32>
    %916 = vector.shape_cast %915 : vector<8xf32> to vector<8x1xf32>
    %917 = vector.shape_cast %916 : vector<8x1xf32> to vector<8x1xf32>
    %918 = vector.broadcast %917 : vector<8x1xf32> to vector<8x32xf32>
    %919 = vector.extract_strided_slice %913 {offsets = [0, 0], sizes = [8, 32], strides = [1, 1]} : vector<8x256xbf16> to vector<8x32xbf16>
    %c0_572 = arith.constant 0 : index
    %c0_573 = arith.constant 0 : index
    %c0_574 = arith.constant 0 : index
    %920 = vector.load %arg5[%c0_572, %c0_573, %c0_574] : memref<8x32x32xbf16, #tpu.memory_space<vmem>>, vector<1x32x32xbf16>
    %921 = vector.shape_cast %920 : vector<1x32x32xbf16> to vector<32x32xbf16>
    %cst_575 = arith.constant dense<0.000000e+00> : vector<8x32xf32>
    %922 = tpu.matmul %919, %921, %cst_575 {dimension_numbers = #tpu.dot_dimension_numbers<[1], [0], [0], [1], [0, 0, 1, 1], [], []>} : vector<8x32xbf16>, vector<32x32xbf16>, vector<8x32xf32> -> vector<8x32xf32>
    %923 = vector.extract_strided_slice %912 {offsets = [0, 32], sizes = [8, 32], strides = [1, 1]} : vector<8x256xf32> to vector<8x32xf32>
    %cst_576 = arith.constant dense<0.000000e+00> : vector<8xf32>
    %924 = vector.multi_reduction <add>, %923, %cst_576 [1] : vector<8x32xf32> to vector<8xf32>
    %925 = vector.shape_cast %924 : vector<8xf32> to vector<8x1xf32>
    %926 = vector.shape_cast %925 : vector<8x1xf32> to vector<8x1xf32>
    %927 = vector.broadcast %926 : vector<8x1xf32> to vector<8x32xf32>
    %928 = vector.extract_strided_slice %913 {offsets = [0, 32], sizes = [8, 32], strides = [1, 1]} : vector<8x256xbf16> to vector<8x32xbf16>
    %c1_577 = arith.constant 1 : index
    %c0_578 = arith.constant 0 : index
    %c0_579 = arith.constant 0 : index
    %929 = vector.load %arg5[%c1_577, %c0_578, %c0_579] : memref<8x32x32xbf16, #tpu.memory_space<vmem>>, vector<1x32x32xbf16>
    %930 = vector.shape_cast %929 : vector<1x32x32xbf16> to vector<32x32xbf16>
    %cst_580 = arith.constant dense<0.000000e+00> : vector<8x32xf32>
    %931 = tpu.matmul %928, %930, %cst_580 {dimension_numbers = #tpu.dot_dimension_numbers<[1], [0], [0], [1], [0, 0, 1, 1], [], []>} : vector<8x32xbf16>, vector<32x32xbf16>, vector<8x32xf32> -> vector<8x32xf32>
    %932 = vector.extract_strided_slice %912 {offsets = [0, 64], sizes = [8, 32], strides = [1, 1]} : vector<8x256xf32> to vector<8x32xf32>
    %cst_581 = arith.constant dense<0.000000e+00> : vector<8xf32>
    %933 = vector.multi_reduction <add>, %932, %cst_581 [1] : vector<8x32xf32> to vector<8xf32>
    %934 = vector.shape_cast %933 : vector<8xf32> to vector<8x1xf32>
    %935 = vector.shape_cast %934 : vector<8x1xf32> to vector<8x1xf32>
    %936 = vector.broadcast %935 : vector<8x1xf32> to vector<8x32xf32>
    %937 = vector.extract_strided_slice %913 {offsets = [0, 64], sizes = [8, 32], strides = [1, 1]} : vector<8x256xbf16> to vector<8x32xbf16>
    %c2_582 = arith.constant 2 : index
    %c0_583 = arith.constant 0 : index
    %c0_584 = arith.constant 0 : index
    %938 = vector.load %arg5[%c2_582, %c0_583, %c0_584] : memref<8x32x32xbf16, #tpu.memory_space<vmem>>, vector<1x32x32xbf16>
    %939 = vector.shape_cast %938 : vector<1x32x32xbf16> to vector<32x32xbf16>
    %cst_585 = arith.constant dense<0.000000e+00> : vector<8x32xf32>
    %940 = tpu.matmul %937, %939, %cst_585 {dimension_numbers = #tpu.dot_dimension_numbers<[1], [0], [0], [1], [0, 0, 1, 1], [], []>} : vector<8x32xbf16>, vector<32x32xbf16>, vector<8x32xf32> -> vector<8x32xf32>
    %941 = vector.extract_strided_slice %912 {offsets = [0, 96], sizes = [8, 32], strides = [1, 1]} : vector<8x256xf32> to vector<8x32xf32>
    %cst_586 = arith.constant dense<0.000000e+00> : vector<8xf32>
    %942 = vector.multi_reduction <add>, %941, %cst_586 [1] : vector<8x32xf32> to vector<8xf32>
    %943 = vector.shape_cast %942 : vector<8xf32> to vector<8x1xf32>
    %944 = vector.shape_cast %943 : vector<8x1xf32> to vector<8x1xf32>
    %945 = vector.broadcast %944 : vector<8x1xf32> to vector<8x32xf32>
    %946 = vector.extract_strided_slice %913 {offsets = [0, 96], sizes = [8, 32], strides = [1, 1]} : vector<8x256xbf16> to vector<8x32xbf16>
    %c3_587 = arith.constant 3 : index
    %c0_588 = arith.constant 0 : index
    %c0_589 = arith.constant 0 : index
    %947 = vector.load %arg5[%c3_587, %c0_588, %c0_589] : memref<8x32x32xbf16, #tpu.memory_space<vmem>>, vector<1x32x32xbf16>
    %948 = vector.shape_cast %947 : vector<1x32x32xbf16> to vector<32x32xbf16>
    %cst_590 = arith.constant dense<0.000000e+00> : vector<8x32xf32>
    %949 = tpu.matmul %946, %948, %cst_590 {dimension_numbers = #tpu.dot_dimension_numbers<[1], [0], [0], [1], [0, 0, 1, 1], [], []>} : vector<8x32xbf16>, vector<32x32xbf16>, vector<8x32xf32> -> vector<8x32xf32>
    %950 = vector.extract_strided_slice %912 {offsets = [0, 128], sizes = [8, 32], strides = [1, 1]} : vector<8x256xf32> to vector<8x32xf32>
    %cst_591 = arith.constant dense<0.000000e+00> : vector<8xf32>
    %951 = vector.multi_reduction <add>, %950, %cst_591 [1] : vector<8x32xf32> to vector<8xf32>
    %952 = vector.shape_cast %951 : vector<8xf32> to vector<8x1xf32>
    %953 = vector.shape_cast %952 : vector<8x1xf32> to vector<8x1xf32>
    %954 = vector.broadcast %953 : vector<8x1xf32> to vector<8x32xf32>
    %955 = vector.extract_strided_slice %913 {offsets = [0, 128], sizes = [8, 32], strides = [1, 1]} : vector<8x256xbf16> to vector<8x32xbf16>
    %c4_592 = arith.constant 4 : index
    %c0_593 = arith.constant 0 : index
    %c0_594 = arith.constant 0 : index
    %956 = vector.load %arg5[%c4_592, %c0_593, %c0_594] : memref<8x32x32xbf16, #tpu.memory_space<vmem>>, vector<1x32x32xbf16>
    %957 = vector.shape_cast %956 : vector<1x32x32xbf16> to vector<32x32xbf16>
    %cst_595 = arith.constant dense<0.000000e+00> : vector<8x32xf32>
    %958 = tpu.matmul %955, %957, %cst_595 {dimension_numbers = #tpu.dot_dimension_numbers<[1], [0], [0], [1], [0, 0, 1, 1], [], []>} : vector<8x32xbf16>, vector<32x32xbf16>, vector<8x32xf32> -> vector<8x32xf32>
    %959 = vector.extract_strided_slice %912 {offsets = [0, 160], sizes = [8, 32], strides = [1, 1]} : vector<8x256xf32> to vector<8x32xf32>
    %cst_596 = arith.constant dense<0.000000e+00> : vector<8xf32>
    %960 = vector.multi_reduction <add>, %959, %cst_596 [1] : vector<8x32xf32> to vector<8xf32>
    %961 = vector.shape_cast %960 : vector<8xf32> to vector<8x1xf32>
    %962 = vector.shape_cast %961 : vector<8x1xf32> to vector<8x1xf32>
    %963 = vector.broadcast %962 : vector<8x1xf32> to vector<8x32xf32>
    %964 = vector.extract_strided_slice %913 {offsets = [0, 160], sizes = [8, 32], strides = [1, 1]} : vector<8x256xbf16> to vector<8x32xbf16>
    %c5_597 = arith.constant 5 : index
    %c0_598 = arith.constant 0 : index
    %c0_599 = arith.constant 0 : index
    %965 = vector.load %arg5[%c5_597, %c0_598, %c0_599] : memref<8x32x32xbf16, #tpu.memory_space<vmem>>, vector<1x32x32xbf16>
    %966 = vector.shape_cast %965 : vector<1x32x32xbf16> to vector<32x32xbf16>
    %cst_600 = arith.constant dense<0.000000e+00> : vector<8x32xf32>
    %967 = tpu.matmul %964, %966, %cst_600 {dimension_numbers = #tpu.dot_dimension_numbers<[1], [0], [0], [1], [0, 0, 1, 1], [], []>} : vector<8x32xbf16>, vector<32x32xbf16>, vector<8x32xf32> -> vector<8x32xf32>
    %968 = vector.extract_strided_slice %912 {offsets = [0, 192], sizes = [8, 32], strides = [1, 1]} : vector<8x256xf32> to vector<8x32xf32>
    %cst_601 = arith.constant dense<0.000000e+00> : vector<8xf32>
    %969 = vector.multi_reduction <add>, %968, %cst_601 [1] : vector<8x32xf32> to vector<8xf32>
    %970 = vector.shape_cast %969 : vector<8xf32> to vector<8x1xf32>
    %971 = vector.shape_cast %970 : vector<8x1xf32> to vector<8x1xf32>
    %972 = vector.broadcast %971 : vector<8x1xf32> to vector<8x32xf32>
    %973 = vector.extract_strided_slice %913 {offsets = [0, 192], sizes = [8, 32], strides = [1, 1]} : vector<8x256xbf16> to vector<8x32xbf16>
    %c6_602 = arith.constant 6 : index
    %c0_603 = arith.constant 0 : index
    %c0_604 = arith.constant 0 : index
    %974 = vector.load %arg5[%c6_602, %c0_603, %c0_604] : memref<8x32x32xbf16, #tpu.memory_space<vmem>>, vector<1x32x32xbf16>
    %975 = vector.shape_cast %974 : vector<1x32x32xbf16> to vector<32x32xbf16>
    %cst_605 = arith.constant dense<0.000000e+00> : vector<8x32xf32>
    %976 = tpu.matmul %973, %975, %cst_605 {dimension_numbers = #tpu.dot_dimension_numbers<[1], [0], [0], [1], [0, 0, 1, 1], [], []>} : vector<8x32xbf16>, vector<32x32xbf16>, vector<8x32xf32> -> vector<8x32xf32>
    %977 = vector.extract_strided_slice %912 {offsets = [0, 224], sizes = [8, 32], strides = [1, 1]} : vector<8x256xf32> to vector<8x32xf32>
    %cst_606 = arith.constant dense<0.000000e+00> : vector<8xf32>
    %978 = vector.multi_reduction <add>, %977, %cst_606 [1] : vector<8x32xf32> to vector<8xf32>
    %979 = vector.shape_cast %978 : vector<8xf32> to vector<8x1xf32>
    %980 = vector.shape_cast %979 : vector<8x1xf32> to vector<8x1xf32>
    %981 = vector.broadcast %980 : vector<8x1xf32> to vector<8x32xf32>
    %982 = vector.extract_strided_slice %913 {offsets = [0, 224], sizes = [8, 32], strides = [1, 1]} : vector<8x256xbf16> to vector<8x32xbf16>
    %c7_607 = arith.constant 7 : index
    %c0_608 = arith.constant 0 : index
    %c0_609 = arith.constant 0 : index
    %983 = vector.load %arg5[%c7_607, %c0_608, %c0_609] : memref<8x32x32xbf16, #tpu.memory_space<vmem>>, vector<1x32x32xbf16>
    %984 = vector.shape_cast %983 : vector<1x32x32xbf16> to vector<32x32xbf16>
    %cst_610 = arith.constant dense<0.000000e+00> : vector<8x32xf32>
    %985 = tpu.matmul %982, %984, %cst_610 {dimension_numbers = #tpu.dot_dimension_numbers<[1], [0], [0], [1], [0, 0, 1, 1], [], []>} : vector<8x32xbf16>, vector<32x32xbf16>, vector<8x32xf32> -> vector<8x32xf32>
    %986 = tpu.concatenate %918, %927, %936, %945, %954, %963, %972, %981 in 1 : vector<8x32xf32>, vector<8x32xf32>, vector<8x32xf32>, vector<8x32xf32>, vector<8x32xf32>, vector<8x32xf32>, vector<8x32xf32>, vector<8x32xf32> -> vector<8x256xf32>
    %987 = tpu.concatenate %922, %931, %940, %949, %958, %967, %976, %985 in 1 : vector<8x32xf32>, vector<8x32xf32>, vector<8x32xf32>, vector<8x32xf32>, vector<8x32xf32>, vector<8x32xf32>, vector<8x32xf32>, vector<8x32xf32> -> vector<8x256xf32>
    %cst_611 = arith.constant dense<0.000000e+00> : vector<32x256xf32>
    %988 = tpu.matmul %27, %57, %cst_611 {dimension_numbers = #tpu.dot_dimension_numbers<[1], [0], [0], [1], [0, 0, 1, 1], [], []>} : vector<32x8xbf16>, vector<8x256xbf16>, vector<32x256xf32> -> vector<32x256xf32>
    %cst_612 = arith.constant dense<0.000000e+00> : vector<32x256xf32>
    %989 = tpu.matmul %29, %820, %cst_612 {dimension_numbers = #tpu.dot_dimension_numbers<[1], [0], [0], [1], [0, 0, 1, 1], [], []>} : vector<32x8xbf16>, vector<8x256xbf16>, vector<32x256xf32> -> vector<32x256xf32>
    %990 = arith.addf %988, %989 : vector<32x256xf32>
    %991 = arith.truncf %987 : vector<8x256xf32> to vector<8x256xbf16>
    %cst_613 = arith.constant dense<0.000000e+00> : vector<32x256xf32>
    %992 = tpu.matmul %31, %991, %cst_613 {dimension_numbers = #tpu.dot_dimension_numbers<[1], [0], [0], [1], [0, 0, 1, 1], [], []>} : vector<32x8xbf16>, vector<8x256xbf16>, vector<32x256xf32> -> vector<32x256xf32>
    %993 = arith.addf %990, %992 : vector<32x256xf32>
    %994 = arith.truncf %986 : vector<8x256xf32> to vector<8x256xbf16>
    %cst_614 = arith.constant dense<0.000000e+00> : vector<32x256xf32>
    %995 = tpu.matmul %33, %994, %cst_614 {dimension_numbers = #tpu.dot_dimension_numbers<[1], [0], [0], [1], [0, 0, 1, 1], [], []>} : vector<32x8xbf16>, vector<8x256xbf16>, vector<32x256xf32> -> vector<32x256xf32>
    %996 = arith.addf %993, %995 : vector<32x256xf32>
    %997 = vector.broadcast %52 : vector<32x1xf32> to vector<32x256xf32>
    %998 = arith.addf %996, %997 : vector<32x256xf32>
    %cst_615 = arith.constant 0.000000e+00 : f32
    %999 = vector.broadcast %cst_615 : f32 to vector<32x256xf32>
    %1000 = arith.cmpf oge, %998, %999 : vector<32x256xf32>
    %cst_616 = arith.constant 0.00999999977 : f32
    %1001 = vector.broadcast %cst_616 : f32 to vector<32x256xf32>
    %1002 = arith.mulf %1001, %998 : vector<32x256xf32>
    %1003 = arith.select %1000, %998, %1002 : vector<32x256xi1>, vector<32x256xf32>
    %1004 = arith.truncf %1003 : vector<32x256xf32> to vector<32x256xbf16>
    %cst_617 = arith.constant dense<0.000000e+00> : vector<16x256xf32>
    %1005 = tpu.matmul %35, %1004, %cst_617 {dimension_numbers = #tpu.dot_dimension_numbers<[1], [0], [0], [1], [0, 0, 1, 1], [], []>} : vector<16x32xbf16>, vector<32x256xbf16>, vector<16x256xf32> -> vector<16x256xf32>
    %1006 = vector.broadcast %53 : vector<16x1xf32> to vector<16x256xf32>
    %1007 = arith.addf %1005, %1006 : vector<16x256xf32>
    %cst_618 = arith.constant 0.000000e+00 : f32
    %1008 = vector.broadcast %cst_618 : f32 to vector<16x256xf32>
    %1009 = arith.cmpf oge, %1007, %1008 : vector<16x256xf32>
    %cst_619 = arith.constant 0.00999999977 : f32
    %1010 = vector.broadcast %cst_619 : f32 to vector<16x256xf32>
    %1011 = arith.mulf %1010, %1007 : vector<16x256xf32>
    %1012 = arith.select %1009, %1007, %1011 : vector<16x256xi1>, vector<16x256xf32>
    %1013 = arith.truncf %1012 : vector<16x256xf32> to vector<16x256xbf16>
    %cst_620 = arith.constant dense<0.000000e+00> : vector<8x256xf32>
    %1014 = tpu.matmul %37, %1013, %cst_620 {dimension_numbers = #tpu.dot_dimension_numbers<[1], [0], [0], [1], [0, 0, 1, 1], [], []>} : vector<8x16xbf16>, vector<16x256xbf16>, vector<8x256xf32> -> vector<8x256xf32>
    %1015 = vector.broadcast %54 : vector<8x1xf32> to vector<8x256xf32>
    %1016 = arith.addf %1014, %1015 : vector<8x256xf32>
    %cst_621 = arith.constant 0.000000e+00 : f32
    %1017 = vector.broadcast %cst_621 : f32 to vector<8x256xf32>
    %1018 = arith.cmpf oge, %1016, %1017 : vector<8x256xf32>
    %cst_622 = arith.constant 0.00999999977 : f32
    %1019 = vector.broadcast %cst_622 : f32 to vector<8x256xf32>
    %1020 = arith.mulf %1019, %1016 : vector<8x256xf32>
    %1021 = arith.select %1018, %1016, %1020 : vector<8x256xi1>, vector<8x256xf32>
    %1022 = arith.truncf %1021 : vector<8x256xf32> to vector<8x256xbf16>
    %cst_623 = arith.constant dense<0.000000e+00> : vector<1x256xf32>
    %1023 = tpu.matmul %39, %1022, %cst_623 {dimension_numbers = #tpu.dot_dimension_numbers<[1], [0], [0], [1], [0, 0, 1, 1], [], []>} : vector<1x8xbf16>, vector<8x256xbf16>, vector<1x256xf32> -> vector<1x256xf32>
    %1024 = vector.broadcast %55 : vector<1x1xf32> to vector<1x256xf32>
    %1025 = arith.addf %1023, %1024 : vector<1x256xf32>
    %c8 = arith.constant 8 : index
    %c0_624 = arith.constant 0 : index
    %1026 = vector.load %arg2[%c8, %c0_624] : memref<16x256xf32, #tpu.memory_space<vmem>>, vector<1x256xf32>
    %cst_625 = arith.constant 1.000000e+00 : f32
    %1027 = vector.broadcast %cst_625 : f32 to vector<1x256xf32>
    %1028 = arith.subf %1026, %1027 : vector<1x256xf32>
    %cst_626 = arith.constant 1.000000e+04 : f32
    %1029 = vector.broadcast %cst_626 : f32 to vector<1x256xf32>
    %1030 = arith.mulf %1028, %1029 : vector<1x256xf32>
    %1031 = arith.addf %1025, %1030 : vector<1x256xf32>
    %c0_627 = arith.constant 0 : index
    %c0_628 = arith.constant 0 : index
    %1032 = vector.load %arg7[%c0_627, %c0_628] : memref<8x256xf32, #tpu.memory_space<vmem>>, vector<1x256xf32>
    tpu.vector_store %arg7[%c0_627, %c0_628], %1031 {strides = array<i32>} : memref<8x256xf32, #tpu.memory_space<vmem>>, vector<1x256xf32>,
    return
  }
  func.func @transform_0(%arg0: i32) -> (i32, i32) {
    %c0_i32 = arith.constant 0 : i32
    %c0_i32_0 = arith.constant 0 : i32
    return %c0_i32, %arg0 : i32, i32
  }
  func.func @transform_1(%arg0: i32) -> (i32, i32) {
    %c0_i32 = arith.constant 0 : i32
    %c0_i32_0 = arith.constant 0 : i32
    return %c0_i32, %arg0 : i32, i32
  }
  func.func @transform_2(%arg0: i32) -> (i32, i32, i32, i32) {
    %c0_i32 = arith.constant 0 : i32
    %c0_i32_0 = arith.constant 0 : i32
    %c0_i32_1 = arith.constant 0 : i32
    %c0_i32_2 = arith.constant 0 : i32
    return %c0_i32, %arg0, %c0_i32_0, %c0_i32_1 : i32, i32, i32, i32
  }
  func.func @transform_3(%arg0: i32) -> (i32, i32, i32) {
    %c0_i32 = arith.constant 0 : i32
    %c0_i32_0 = arith.constant 0 : i32
    %c0_i32_1 = arith.constant 0 : i32
    return %arg0, %c0_i32, %c0_i32_0 : i32, i32, i32
  }
  func.func @transform_4(%arg0: i32) -> (i32, i32, i32) {
    %c0_i32 = arith.constant 0 : i32
    %c0_i32_0 = arith.constant 0 : i32
    %c0_i32_1 = arith.constant 0 : i32
    return %arg0, %c0_i32, %c0_i32_0 : i32, i32, i32
  }
  func.func @transform_5(%arg0: i32) -> (i32, i32) {
    %c0_i32 = arith.constant 0 : i32
    %c0_i32_0 = arith.constant 0 : i32
    %c0_i32_1 = arith.constant 0 : i32
    return %c0_i32, %c0_i32_0 : i32, i32
  }
  func.func @transform_6(%arg0: i32) -> (i32, i32) {
    %c0_i32 = arith.constant 0 : i32
    %c0_i32_0 = arith.constant 0 : i32
    return %c0_i32, %arg0 : i32, i32
  }
}

</mosaic_0001>

<bundles_post_ra>
// kernel: squeeze.1
= control target key start
LH: loop header
LB: loop body
LE: loop exit
PB: predicated region body
PF: predicated region fallthrough
CT: control target
= control target key end

     0   :  { %s90_s0 = inlined_call_operand.vmem [shape: f32[512], index: 0, kind: input, shape index: {}]   ;;  %s91_s1 = inlined_call_operand.hbm [shape: f32[16,32], index: 1, kind: output, shape index: {}]  }
   0x1   :  { %v5_v0 = vld [vmem:[%s90_s0] sm:$0xf] }
   0x2   :  { %6 = vst [vmem:[#allocation2] sm:$0xf] %v5_v0 }
   0x3   :  { %2 = vsyncpa [#allocation1], 0  ;;  %s70_s0 = smov 96   ;;  %s71_s8 = smov 32   ;;  %vm8_vm0 = vcmask 261120  }
   0x4   :  { %s72_s9 = smov 64   ;;  %s73_s10 = smov [#allocation0]  }
   0x5   :  { %s31_s11 = sshll.u32 %s73_s10, 4  ;;  %s33_s1 = sshll.u32 %s91_s1, 4  ;;  %s32_s11 = int_to_ptr.vmem [resolvable:$true] %s31_s11  ;;  %s34_s1 = int_to_ptr.hbm [resolvable:$true] %s33_s1 }
   0x9   :  { %v10_v1 = vld [vmem:[#allocation2] sm:$0xf]  }
   0xa   :  { %v22_v2 = vld [vmem:[#allocation2] sm:$0xf]   ;;  %11 = vrot.lane.b32.xlu0 %v10_v1, %s70_s0 }
   0xb   :  { %23 = vrot.lane.b32.xlu1 %v22_v2, %s71_s8  ;;  %v16_v3 = vld [vmem:[#allocation2] sm:$0xf]  }
   0xc   :  { %v7_v4 = vld [vmem:[#allocation2] sm:$0xf]  }
   0xd   :  { %9 = vst.msk [vmem:[#allocation0] ss:$4 sm:$0xf] %vm8_vm0, %v7_v4  }
  0x12   :  { %17 = vrot.lane.b32.xlu0 %v16_v3, %s72_s9 }
  0x7c   :  { %v12_v5 = vpop.permute.xlu0 %11  }
  0x7d   :  { %v24_v6 = vpop.permute.xlu1 %23   ;;  %15 = vst.msk [vmem:[#allocation0 + $0x1] ss:$4 sm:$0xf] %vm8_vm0, %v12_v5  }
  0x7e   :  { %27 = vst.msk [vmem:[#allocation0 + $0x3] ss:$4 sm:$0xf] %vm8_vm0, %v24_v6  }
  0x84   :  { %v18_v7 = vpop.permute.xlu0 %17  }
  0x85   :  { %21 = vst.msk [vmem:[#allocation0 + $0x2] ss:$4 sm:$0xf] %vm8_vm0, %v18_v7  }
  0x86   :  { %36 = dma.vmem_to_hbm [thread:$0]  %s32_s11, 256, %s34_s1, [#allocation1]  }
  0x87   :  { %68 = dma.done.wait [#allocation1], 256  }
  0x88   :  { %69 = vsyncadd [#allocation1], 4294967040 }
  0x89   :  { %39 = vsyncpa [#allocation1], 1 }

// kernel: model_benchmark_forward.1
= control target key start
LH: loop header
LB: loop body
LE: loop exit
PB: predicated region body
PF: predicated region fallthrough
CT: control target
= control target key end

     0   :  { %s10471_s21 = smov 0   ;;  %s10473_s22 = smov 0   ;;  %s12022_s0 = inlined_call_operand.vmem [shape: f32[8,512], index: 0, kind: input, shape index: {}]   ;;  %s12023_s1 = inlined_call_operand.vmem [shape: f32[16,512], index: 1, kind: input, shape index: {}]   ;;  %s12024_s2 = inlined_call_operand.vmem [shape: bf16[8,16,32,32], index: 2, kind: input, shape index: {}]   ;;  %s12025_s3 = inlined_call_operand.vmem [shape: bf16[16,32,32], index: 3, kind: input, shape index: {}]   ;;  %s12026_s4 = inlined_call_operand.vmem [shape: bf16[16,32,32], index: 4, kind: input, shape index: {}]   ;;  %s12027_s5 = inlined_call_operand.vmem [shape: f32[496,32], index: 5, kind: input, shape index: {}]   ;;  %s12028_s6 = inlined_call_operand.vmem [shape: f32[8,512], index: 6, kind: output, shape index: {}]  }
   0x1   :  { %s10475_s23 = smov 0  }
   0x2 LB: > { %s8860_s24 = sadd.s32 4294967295, %s10430_s23   ;;  %s10488_s25 = sadd.s32 1, %s10430_s23   ;;  %s10430_s23 = sphi %s10475_s23, %s12032_s23   ;;  %s10426_s22 = sphi %s10473_s22, %s12031_s22   ;;  %s10422_s21 = sphi %s10471_s21, %s12030_s21  }
   0x3   : > { %s46_s26 = ssub.s32 %s10430_s23, %s10488_s25  ;;  %s49_s27 = sadd.s32 1, %s10426_s22 }
   0x4   : > { %p47_p0 = scmp.eq.s32.totalorder %s46_s26, 0  ;;  %p56_p1 = scmp.ne.s32.totalorder %s10426_s22, %s10422_s21 }
   0x5   : > { %p57_p2 = scmp.eq.s32.totalorder %s10430_s23, 0  ;;  %p8863_p4 = scmp.ge.s32.totalorder %s10430_s23, 2 }
   0x6   : > { %s10497_s28 = scalar_select %p47_p0, %s10426_s22, %s49_s27  }
   0x7   : > { %p10499_p3 = por %p57_p2, %p56_p1  ;;  %210 = sbr.rel (%p8863_p4) target bundleno = 152 (0x98), region = 20 }
   0xc   : > { %222 = sbr.rel (!%p10499_p3) target bundleno = 20 (0x14), region = 28  ;;  %s224_s30 = sand.u32 (%p10499_p3), 1, %s10426_s22  }
   0xd   : > { %s10062_s7 = sshll.u32 (%p10499_p3), %s10430_s23, 4  ;;  %s8864_s8 = sshll.u32 (%p10499_p3), %s224_s30, 5 }
   0xe   : > { %s229_s11 = scalar_lea.vmem (%p10499_p3), %s12023_s1, %s10062_s7  ;;  %s226_s12 = scalar_lea.vmem (%p10499_p3), [#allocation2], %s8864_s8 }
   0xf   : > { %v242_v0 = vld [vmem:[%s229_s11] sm:$0xff] (%p10499_p3)  ;;  %v244_v1 = vld [vmem:[%s229_s11 + $0x8] sm:$0xff] (%p10499_p3) }
  0x10   : > { %v246_v2 = vld [vmem:[%s229_s11 + $0x20] sm:$0xff] (%p10499_p3)  ;;  %243 = vst [vmem:[%s226_s12] sm:$0xff] (%p10499_p3), %v242_v0  ;;  %v248_v3 = vld [vmem:[%s229_s11 + $0x28] sm:$0xff] (%p10499_p3) }
  0x11   : > { %245 = vst [vmem:[%s226_s12 + $0x8] sm:$0xff] %v244_v1 }
  0x12   : > { %247 = vst [vmem:[%s226_s12 + $0x10] sm:$0xff] %v246_v2 }
  0x13   : > { %249 = vst [vmem:[%s226_s12 + $0x18] sm:$0xff] %v248_v3 }
  0x14 PF: > { %255 = sbr.rel (!%p10499_p3) target bundleno = 152 (0x98), region = 51  ;;  %s257_s13 = sand.u32 (%p10499_p3), 1, %s10426_s22  }
  0x15   : > { %s10064_s14 = sshll.u32 (%p10499_p3), %s10430_s23, 7  ;;  %s8867_s15 = sshll.u32 (%p10499_p3), %s257_s13, 10 }
  0x16   : > { %s10518_s18 = scalar_lea.vmem (%p10499_p3), %s12024_s2, %s10064_s14  ;;  %s10523_s19 = scalar_lea.vmem (%p10499_p3), [#allocation3], %s8867_s15 }
  0x17   : > { %v280_v4 = vld [vmem:[%s10518_s18] sm:$0xff] (%p10499_p3)   ;;  %v284_v5 = vld [vmem:[%s10518_s18 + $0x8] sm:$0xff] (%p10499_p3)   ;;  %v288_v6 = vld [vmem:[%s10518_s18 + $0x10] sm:$0xff] (%p10499_p3)  }
  0x18   : > { %281 = vst [vmem:[%s10523_s19] sm:$0xff] (%p10499_p3), %v280_v4   ;;  %v292_v7 = vld [vmem:[%s10518_s18 + $0x18] sm:$0xff] (%p10499_p3)   ;;  %v296_v8 = vld [vmem:[%s10518_s18 + $0x20] sm:$0xff] (%p10499_p3)   ;;  %v300_v9 = vld [vmem:[%s10518_s18 + $0x28] sm:$0xff] (%p10499_p3)  }
  0x19   : > { %285 = vst [vmem:[%s10523_s19 + $0x8] sm:$0xff] %v284_v5   ;;  %v304_v10 = vld [vmem:[%s10518_s18 + $0x30] sm:$0xff]   ;;  %v308_v11 = vld [vmem:[%s10518_s18 + $0x38] sm:$0xff]   ;;  %v312_v12 = vld [vmem:[%s10518_s18 + $0x40] sm:$0xff]  }
  0x1a   : > { %289 = vst [vmem:[%s10523_s19 + $0x10] sm:$0xff] %v288_v6   ;;  %v316_v13 = vld [vmem:[%s10518_s18 + $0x48] sm:$0xff]   ;;  %v320_v14 = vld [vmem:[%s10518_s18 + $0x50] sm:$0xff]   ;;  %v324_v15 = vld [vmem:[%s10518_s18 + $0x58] sm:$0xff]  }
  0x1b   : > { %293 = vst [vmem:[%s10523_s19 + $0x18] sm:$0xff] %v292_v7   ;;  %v328_v16 = vld [vmem:[%s10518_s18 + $0x60] sm:$0xff]   ;;  %v332_v17 = vld [vmem:[%s10518_s18 + $0x68] sm:$0xff]   ;;  %v336_v18 = vld [vmem:[%s10518_s18 + $0x70] sm:$0xff]  }
  0x1c   : > { %297 = vst [vmem:[%s10523_s19 + $0x20] sm:$0xff] %v296_v8   ;;  %v340_v19 = vld [vmem:[%s10518_s18 + $0x78] sm:$0xff]   ;;  %v344_v20 = vld [vmem:[%s10518_s18 + $0x100] sm:$0xff]   ;;  %v348_v21 = vld [vmem:[%s10518_s18 + $0x108] sm:$0xff]  }
  0x1d   : > { %301 = vst [vmem:[%s10523_s19 + $0x28] sm:$0xff] %v300_v9   ;;  %v352_v22 = vld [vmem:[%s10518_s18 + $0x110] sm:$0xff]   ;;  %v356_v23 = vld [vmem:[%s10518_s18 + $0x118] sm:$0xff]   ;;  %v360_v24 = vld [vmem:[%s10518_s18 + $0x120] sm:$0xff]  }
  0x1e   : > { %305 = vst [vmem:[%s10523_s19 + $0x30] sm:$0xff] %v304_v10   ;;  %v364_v25 = vld [vmem:[%s10518_s18 + $0x128] sm:$0xff]   ;;  %v368_v26 = vld [vmem:[%s10518_s18 + $0x130] sm:$0xff]   ;;  %v372_v27 = vld [vmem:[%s10518_s18 + $0x138] sm:$0xff]  }
  0x1f   : > { %309 = vst [vmem:[%s10523_s19 + $0x38] sm:$0xff] %v308_v11   ;;  %v376_v28 = vld [vmem:[%s10518_s18 + $0x140] sm:$0xff]   ;;  %v380_v29 = vld [vmem:[%s10518_s18 + $0x148] sm:$0xff]   ;;  %v384_v30 = vld [vmem:[%s10518_s18 + $0x150] sm:$0xff]  }
  0x20   : > { %313 = vst [vmem:[%s10523_s19 + $0x40] sm:$0xff] %v312_v12   ;;  %v388_v31 = vld [vmem:[%s10518_s18 + $0x158] sm:$0xff]   ;;  %v392_v32 = vld [vmem:[%s10518_s18 + $0x160] sm:$0xff]   ;;  %v396_v33 = vld [vmem:[%s10518_s18 + $0x168] sm:$0xff]  }
  0x21   : > { %317 = vst [vmem:[%s10523_s19 + $0x48] sm:$0xff] %v316_v13   ;;  %v400_v34 = vld [vmem:[%s10518_s18 + $0x170] sm:$0xff]   ;;  %v404_v35 = vld [vmem:[%s10518_s18 + $0x178] sm:$0xff]   ;;  %v408_v36 = vld [vmem:[%s10518_s18 + $0x200] sm:$0xff]  }
  0x22   : > { %321 = vst [vmem:[%s10523_s19 + $0x50] sm:$0xff] %v320_v14   ;;  %v412_v37 = vld [vmem:[%s10518_s18 + $0x208] sm:$0xff]   ;;  %v416_v38 = vld [vmem:[%s10518_s18 + $0x210] sm:$0xff]   ;;  %v420_v39 = vld [vmem:[%s10518_s18 + $0x218] sm:$0xff]  }
  0x23   : > { %325 = vst [vmem:[%s10523_s19 + $0x58] sm:$0xff] %v324_v15   ;;  %v424_v40 = vld [vmem:[%s10518_s18 + $0x220] sm:$0xff]   ;;  %v428_v41 = vld [vmem:[%s10518_s18 + $0x228] sm:$0xff]   ;;  %v432_v42 = vld [vmem:[%s10518_s18 + $0x230] sm:$0xff]  }
  0x24   : > { %329 = vst [vmem:[%s10523_s19 + $0x60] sm:$0xff] %v328_v16   ;;  %v436_v43 = vld [vmem:[%s10518_s18 + $0x238] sm:$0xff]   ;;  %v440_v44 = vld [vmem:[%s10518_s18 + $0x240] sm:$0xff]   ;;  %v444_v45 = vld [vmem:[%s10518_s18 + $0x248] sm:$0xff]  }
  0x25   : > { %333 = vst [vmem:[%s10523_s19 + $0x68] sm:$0xff] %v332_v17   ;;  %v448_v46 = vld [vmem:[%s10518_s18 + $0x250] sm:$0xff]   ;;  %v452_v47 = vld [vmem:[%s10518_s18 + $0x258] sm:$0xff]   ;;  %v456_v48 = vld [vmem:[%s10518_s18 + $0x260] sm:$0xff]  }
  0x26   : > { %337 = vst [vmem:[%s10523_s19 + $0x70] sm:$0xff] %v336_v18   ;;  %v460_v49 = vld [vmem:[%s10518_s18 + $0x268] sm:$0xff]   ;;  %v464_v50 = vld [vmem:[%s10518_s18 + $0x270] sm:$0xff]   ;;  %v468_v51 = vld [vmem:[%s10518_s18 + $0x278] sm:$0xff]  }
  0x27   : > { %341 = vst [vmem:[%s10523_s19 + $0x78] sm:$0xff] %v340_v19   ;;  %v472_v52 = vld [vmem:[%s10518_s18 + $0x300] sm:$0xff]   ;;  %v476_v53 = vld [vmem:[%s10518_s18 + $0x308] sm:$0xff]   ;;  %v480_v54 = vld [vmem:[%s10518_s18 + $0x310] sm:$0xff]  }
  0x28   : > { %345 = vst [vmem:[%s10523_s19 + $0x80] sm:$0xff] %v344_v20   ;;  %v484_v55 = vld [vmem:[%s10518_s18 + $0x318] sm:$0xff]   ;;  %v488_v56 = vld [vmem:[%s10518_s18 + $0x320] sm:$0xff]   ;;  %v492_v57 = vld [vmem:[%s10518_s18 + $0x328] sm:$0xff]  }
  0x29   : > { %349 = vst [vmem:[%s10523_s19 + $0x88] sm:$0xff] %v348_v21   ;;  %v496_v58 = vld [vmem:[%s10518_s18 + $0x330] sm:$0xff]   ;;  %v500_v59 = vld [vmem:[%s10518_s18 + $0x338] sm:$0xff]   ;;  %v504_v60 = vld [vmem:[%s10518_s18 + $0x340] sm:$0xff]  }
  0x2a   : > { %353 = vst [vmem:[%s10523_s19 + $0x90] sm:$0xff] %v352_v22   ;;  %v508_v61 = vld [vmem:[%s10518_s18 + $0x348] sm:$0xff]   ;;  %v512_v62 = vld [vmem:[%s10518_s18 + $0x350] sm:$0xff]   ;;  %v516_v63 = vld [vmem:[%s10518_s18 + $0x358] sm:$0xff]  }
  0x2b   : > { %357 = vst [vmem:[%s10523_s19 + $0x98] sm:$0xff] %v356_v23   ;;  %v520_v0 = vld [vmem:[%s10518_s18 + $0x360] sm:$0xff]   ;;  %v524_v1 = vld [vmem:[%s10518_s18 + $0x368] sm:$0xff]   ;;  %v528_v2 = vld [vmem:[%s10518_s18 + $0x370] sm:$0xff]  }
  0x2c   : > { %361 = vst [vmem:[%s10523_s19 + $0xa0] sm:$0xff] %v360_v24   ;;  %v532_v3 = vld [vmem:[%s10518_s18 + $0x378] sm:$0xff]   ;;  %v536_v4 = vld [vmem:[%s10518_s18 + $0x400] sm:$0xff]   ;;  %v540_v5 = vld [vmem:[%s10518_s18 + $0x408] sm:$0xff]  }
  0x2d   : > { %365 = vst [vmem:[%s10523_s19 + $0xa8] sm:$0xff] %v364_v25   ;;  %v544_v6 = vld [vmem:[%s10518_s18 + $0x410] sm:$0xff]   ;;  %v548_v7 = vld [vmem:[%s10518_s18 + $0x418] sm:$0xff]   ;;  %v552_v8 = vld [vmem:[%s10518_s18 + $0x420] sm:$0xff]  }
  0x2e   : > { %369 = vst [vmem:[%s10523_s19 + $0xb0] sm:$0xff] %v368_v26   ;;  %v556_v9 = vld [vmem:[%s10518_s18 + $0x428] sm:$0xff]   ;;  %v560_v10 = vld [vmem:[%s10518_s18 + $0x430] sm:$0xff]   ;;  %v564_v11 = vld [vmem:[%s10518_s18 + $0x438] sm:$0xff]  }
  0x2f   : > { %373 = vst [vmem:[%s10523_s19 + $0xb8] sm:$0xff] %v372_v27   ;;  %v568_v12 = vld [vmem:[%s10518_s18 + $0x440] sm:$0xff]   ;;  %v572_v13 = vld [vmem:[%s10518_s18 + $0x448] sm:$0xff]   ;;  %v576_v14 = vld [vmem:[%s10518_s18 + $0x450] sm:$0xff]  }
  0x30   : > { %377 = vst [vmem:[%s10523_s19 + $0xc0] sm:$0xff] %v376_v28   ;;  %v580_v15 = vld [vmem:[%s10518_s18 + $0x458] sm:$0xff]   ;;  %v584_v16 = vld [vmem:[%s10518_s18 + $0x460] sm:$0xff]   ;;  %v588_v17 = vld [vmem:[%s10518_s18 + $0x468] sm:$0xff]  }
  0x31   : > { %381 = vst [vmem:[%s10523_s19 + $0xc8] sm:$0xff] %v380_v29   ;;  %v592_v18 = vld [vmem:[%s10518_s18 + $0x470] sm:$0xff]   ;;  %v596_v19 = vld [vmem:[%s10518_s18 + $0x478] sm:$0xff]   ;;  %v600_v20 = vld [vmem:[%s10518_s18 + $0x500] sm:$0xff]  }
  0x32   : > { %385 = vst [vmem:[%s10523_s19 + $0xd0] sm:$0xff] %v384_v30   ;;  %v604_v21 = vld [vmem:[%s10518_s18 + $0x508] sm:$0xff]   ;;  %v608_v22 = vld [vmem:[%s10518_s18 + $0x510] sm:$0xff]   ;;  %v612_v23 = vld [vmem:[%s10518_s18 + $0x518] sm:$0xff]  }
  0x33   : > { %389 = vst [vmem:[%s10523_s19 + $0xd8] sm:$0xff] %v388_v31   ;;  %v616_v24 = vld [vmem:[%s10518_s18 + $0x520] sm:$0xff]   ;;  %v620_v25 = vld [vmem:[%s10518_s18 + $0x528] sm:$0xff]   ;;  %v624_v26 = vld [vmem:[%s10518_s18 + $0x530] sm:$0xff]  }
  0x34   : > { %393 = vst [vmem:[%s10523_s19 + $0xe0] sm:$0xff] %v392_v32   ;;  %v628_v27 = vld [vmem:[%s10518_s18 + $0x538] sm:$0xff]   ;;  %v632_v28 = vld [vmem:[%s10518_s18 + $0x540] sm:$0xff]   ;;  %v636_v29 = vld [vmem:[%s10518_s18 + $0x548] sm:$0xff]  }
  0x35   : > { %397 = vst [vmem:[%s10523_s19 + $0xe8] sm:$0xff] %v396_v33   ;;  %v640_v30 = vld [vmem:[%s10518_s18 + $0x550] sm:$0xff]   ;;  %v644_v31 = vld [vmem:[%s10518_s18 + $0x558] sm:$0xff]   ;;  %v648_v32 = vld [vmem:[%s10518_s18 + $0x560] sm:$0xff]  }
  0x36   : > { %401 = vst [vmem:[%s10523_s19 + $0xf0] sm:$0xff] %v400_v34   ;;  %v652_v33 = vld [vmem:[%s10518_s18 + $0x568] sm:$0xff]   ;;  %v656_v34 = vld [vmem:[%s10518_s18 + $0x570] sm:$0xff]  }
  0x37   : > { %405 = vst [vmem:[%s10523_s19 + $0xf8] sm:$0xff] %v404_v35   ;;  %v660_v35 = vld [vmem:[%s10518_s18 + $0x578] sm:$0xff]  }
  0x38   : > { %409 = vst [vmem:[%s10523_s19 + $0x100] sm:$0xff] %v408_v36   ;;  %v664_v36 = vld [vmem:[%s10518_s18 + $0x600] sm:$0xff]  }
  0x39   : > { %413 = vst [vmem:[%s10523_s19 + $0x108] sm:$0xff] %v412_v37   ;;  %v668_v37 = vld [vmem:[%s10518_s18 + $0x608] sm:$0xff]  }
  0x3a   : > { %417 = vst [vmem:[%s10523_s19 + $0x110] sm:$0xff] %v416_v38   ;;  %v672_v38 = vld [vmem:[%s10518_s18 + $0x610] sm:$0xff]  }
  0x3b   : > { %421 = vst [vmem:[%s10523_s19 + $0x118] sm:$0xff] %v420_v39   ;;  %v676_v39 = vld [vmem:[%s10518_s18 + $0x618] sm:$0xff]  }
  0x3c   : > { %425 = vst [vmem:[%s10523_s19 + $0x120] sm:$0xff] %v424_v40   ;;  %v680_v40 = vld [vmem:[%s10518_s18 + $0x620] sm:$0xff]  }
  0x3d   : > { %429 = vst [vmem:[%s10523_s19 + $0x128] sm:$0xff] %v428_v41   ;;  %v684_v41 = vld [vmem:[%s10518_s18 + $0x628] sm:$0xff]  }
  0x3e   : > { %433 = vst [vmem:[%s10523_s19 + $0x130] sm:$0xff] %v432_v42   ;;  %v688_v42 = vld [vmem:[%s10518_s18 + $0x630] sm:$0xff]  }
  0x3f   : > { %437 = vst [vmem:[%s10523_s19 + $0x138] sm:$0xff] %v436_v43   ;;  %v692_v43 = vld [vmem:[%s10518_s18 + $0x638] sm:$0xff]  }
  0x40   : > { %441 = vst [vmem:[%s10523_s19 + $0x140] sm:$0xff] %v440_v44   ;;  %v696_v44 = vld [vmem:[%s10518_s18 + $0x640] sm:$0xff]  }
  0x41   : > { %445 = vst [vmem:[%s10523_s19 + $0x148] sm:$0xff] %v444_v45   ;;  %v700_v45 = vld [vmem:[%s10518_s18 + $0x648] sm:$0xff]  }
  0x42   : > { %449 = vst [vmem:[%s10523_s19 + $0x150] sm:$0xff] %v448_v46   ;;  %v704_v46 = vld [vmem:[%s10518_s18 + $0x650] sm:$0xff]  }
  0x43   : > { %453 = vst [vmem:[%s10523_s19 + $0x158] sm:$0xff] %v452_v47   ;;  %v708_v47 = vld [vmem:[%s10518_s18 + $0x658] sm:$0xff]  }
  0x44   : > { %457 = vst [vmem:[%s10523_s19 + $0x160] sm:$0xff] %v456_v48   ;;  %v712_v48 = vld [vmem:[%s10518_s18 + $0x660] sm:$0xff]  }
  0x45   : > { %461 = vst [vmem:[%s10523_s19 + $0x168] sm:$0xff] %v460_v49   ;;  %v716_v49 = vld [vmem:[%s10518_s18 + $0x668] sm:$0xff]  }
  0x46   : > { %465 = vst [vmem:[%s10523_s19 + $0x170] sm:$0xff] %v464_v50   ;;  %v720_v50 = vld [vmem:[%s10518_s18 + $0x670] sm:$0xff]  }
  0x47   : > { %469 = vst [vmem:[%s10523_s19 + $0x178] sm:$0xff] %v468_v51   ;;  %v724_v51 = vld [vmem:[%s10518_s18 + $0x678] sm:$0xff]  }
  0x48   : > { %473 = vst [vmem:[%s10523_s19 + $0x180] sm:$0xff] %v472_v52   ;;  %v728_v52 = vld [vmem:[%s10518_s18 + $0x700] sm:$0xff]  }
  0x49   : > { %477 = vst [vmem:[%s10523_s19 + $0x188] sm:$0xff] %v476_v53   ;;  %v732_v53 = vld [vmem:[%s10518_s18 + $0x708] sm:$0xff]  }
  0x4a   : > { %481 = vst [vmem:[%s10523_s19 + $0x190] sm:$0xff] %v480_v54   ;;  %v736_v54 = vld [vmem:[%s10518_s18 + $0x710] sm:$0xff]  }
  0x4b   : > { %485 = vst [vmem:[%s10523_s19 + $0x198] sm:$0xff] %v484_v55   ;;  %v740_v55 = vld [vmem:[%s10518_s18 + $0x718] sm:$0xff]  }
  0x4c   : > { %489 = vst [vmem:[%s10523_s19 + $0x1a0] sm:$0xff] %v488_v56   ;;  %v744_v56 = vld [vmem:[%s10518_s18 + $0x720] sm:$0xff]  }
  0x4d   : > { %493 = vst [vmem:[%s10523_s19 + $0x1a8] sm:$0xff] %v492_v57   ;;  %v748_v57 = vld [vmem:[%s10518_s18 + $0x728] sm:$0xff]  }
  0x4e   : > { %497 = vst [vmem:[%s10523_s19 + $0x1b0] sm:$0xff] %v496_v58   ;;  %v752_v58 = vld [vmem:[%s10518_s18 + $0x730] sm:$0xff]  }
  0x4f   : > { %501 = vst [vmem:[%s10523_s19 + $0x1b8] sm:$0xff] %v500_v59   ;;  %v756_v59 = vld [vmem:[%s10518_s18 + $0x738] sm:$0xff]  }
  0x50   : > { %505 = vst [vmem:[%s10523_s19 + $0x1c0] sm:$0xff] %v504_v60   ;;  %v760_v60 = vld [vmem:[%s10518_s18 + $0x740] sm:$0xff]  }
  0x51   : > { %509 = vst [vmem:[%s10523_s19 + $0x1c8] sm:$0xff] %v508_v61   ;;  %v764_v61 = vld [vmem:[%s10518_s18 + $0x748] sm:$0xff]  }
  0x52   : > { %513 = vst [vmem:[%s10523_s19 + $0x1d0] sm:$0xff] %v512_v62   ;;  %v768_v62 = vld [vmem:[%s10518_s18 + $0x750] sm:$0xff]  }
  0x53   : > { %517 = vst [vmem:[%s10523_s19 + $0x1d8] sm:$0xff] %v516_v63   ;;  %v772_v63 = vld [vmem:[%s10518_s18 + $0x758] sm:$0xff]  }
  0x54   : > { %521 = vst [vmem:[%s10523_s19 + $0x1e0] sm:$0xff] %v520_v0   ;;  %v776_v0 = vld [vmem:[%s10518_s18 + $0x760] sm:$0xff]  }
  0x55   : > { %525 = vst [vmem:[%s10523_s19 + $0x1e8] sm:$0xff] %v524_v1   ;;  %v780_v1 = vld [vmem:[%s10518_s18 + $0x768] sm:$0xff]  }
  0x56   : > { %529 = vst [vmem:[%s10523_s19 + $0x1f0] sm:$0xff] %v528_v2   ;;  %v784_v2 = vld [vmem:[%s10518_s18 + $0x770] sm:$0xff]  }
  0x57   : > { %533 = vst [vmem:[%s10523_s19 + $0x1f8] sm:$0xff] %v532_v3   ;;  %v788_v3 = vld [vmem:[%s10518_s18 + $0x778] sm:$0xff]  }
  0x58   : > { %537 = vst [vmem:[%s10523_s19 + $0x200] sm:$0xff] %v536_v4  }
  0x59   : > { %541 = vst [vmem:[%s10523_s19 + $0x208] sm:$0xff] %v540_v5  }
  0x5a   : > { %545 = vst [vmem:[%s10523_s19 + $0x210] sm:$0xff] %v544_v6  }
  0x5b   : > { %549 = vst [vmem:[%s10523_s19 + $0x218] sm:$0xff] %v548_v7  }
  0x5c   : > { %553 = vst [vmem:[%s10523_s19 + $0x220] sm:$0xff] %v552_v8  }
  0x5d   : > { %557 = vst [vmem:[%s10523_s19 + $0x228] sm:$0xff] %v556_v9  }
  0x5e   : > { %561 = vst [vmem:[%s10523_s19 + $0x230] sm:$0xff] %v560_v10  }
  0x5f   : > { %565 = vst [vmem:[%s10523_s19 + $0x238] sm:$0xff] %v564_v11  }
  0x60   : > { %569 = vst [vmem:[%s10523_s19 + $0x240] sm:$0xff] %v568_v12  }
  0x61   : > { %573 = vst [vmem:[%s10523_s19 + $0x248] sm:$0xff] %v572_v13  }
  0x62   : > { %577 = vst [vmem:[%s10523_s19 + $0x250] sm:$0xff] %v576_v14  }
  0x63   : > { %581 = vst [vmem:[%s10523_s19 + $0x258] sm:$0xff] %v580_v15  }
  0x64   : > { %585 = vst [vmem:[%s10523_s19 + $0x260] sm:$0xff] %v584_v16  }
  0x65   : > { %589 = vst [vmem:[%s10523_s19 + $0x268] sm:$0xff] %v588_v17  }
  0x66   : > { %593 = vst [vmem:[%s10523_s19 + $0x270] sm:$0xff] %v592_v18  }
  0x67   : > { %597 = vst [vmem:[%s10523_s19 + $0x278] sm:$0xff] %v596_v19  }
  0x68   : > { %601 = vst [vmem:[%s10523_s19 + $0x280] sm:$0xff] %v600_v20  }
  0x69   : > { %605 = vst [vmem:[%s10523_s19 + $0x288] sm:$0xff] %v604_v21  }
  0x6a   : > { %609 = vst [vmem:[%s10523_s19 + $0x290] sm:$0xff] %v608_v22  }
  0x6b   : > { %613 = vst [vmem:[%s10523_s19 + $0x298] sm:$0xff] %v612_v23  }
  0x6c   : > { %617 = vst [vmem:[%s10523_s19 + $0x2a0] sm:$0xff] %v616_v24  }
  0x6d   : > { %621 = vst [vmem:[%s10523_s19 + $0x2a8] sm:$0xff] %v620_v25  }
  0x6e   : > { %625 = vst [vmem:[%s10523_s19 + $0x2b0] sm:$0xff] %v624_v26  }
  0x6f   : > { %629 = vst [vmem:[%s10523_s19 + $0x2b8] sm:$0xff] %v628_v27  }
  0x70   : > { %633 = vst [vmem:[%s10523_s19 + $0x2c0] sm:$0xff] %v632_v28  }
  0x71   : > { %637 = vst [vmem:[%s10523_s19 + $0x2c8] sm:$0xff] %v636_v29  }
  0x72   : > { %641 = vst [vmem:[%s10523_s19 + $0x2d0] sm:$0xff] %v640_v30  }
  0x73   : > { %645 = vst [vmem:[%s10523_s19 + $0x2d8] sm:$0xff] %v644_v31  }
  0x74   : > { %649 = vst [vmem:[%s10523_s19 + $0x2e0] sm:$0xff] %v648_v32  }
  0x75   : > { %653 = vst [vmem:[%s10523_s19 + $0x2e8] sm:$0xff] %v652_v33  }
  0x76   : > { %657 = vst [vmem:[%s10523_s19 + $0x2f0] sm:$0xff] %v656_v34  }
  0x77   : > { %661 = vst [vmem:[%s10523_s19 + $0x2f8] sm:$0xff] %v660_v35  }
  0x78   : > { %665 = vst [vmem:[%s10523_s19 + $0x300] sm:$0xff] %v664_v36  }
  0x79   : > { %669 = vst [vmem:[%s10523_s19 + $0x308] sm:$0xff] %v668_v37  }
  0x7a   : > { %673 = vst [vmem:[%s10523_s19 + $0x310] sm:$0xff] %v672_v38  }
  0x7b   : > { %677 = vst [vmem:[%s10523_s19 + $0x318] sm:$0xff] %v676_v39  }
  0x7c   : > { %681 = vst [vmem:[%s10523_s19 + $0x320] sm:$0xff] %v680_v40  }
  0x7d   : > { %685 = vst [vmem:[%s10523_s19 + $0x328] sm:$0xff] %v684_v41  }
  0x7e   : > { %689 = vst [vmem:[%s10523_s19 + $0x330] sm:$0xff] %v688_v42  }
  0x7f   : > { %693 = vst [vmem:[%s10523_s19 + $0x338] sm:$0xff] %v692_v43  }
  0x80   : > { %697 = vst [vmem:[%s10523_s19 + $0x340] sm:$0xff] %v696_v44  }
  0x81   : > { %701 = vst [vmem:[%s10523_s19 + $0x348] sm:$0xff] %v700_v45  }
  0x82   : > { %705 = vst [vmem:[%s10523_s19 + $0x350] sm:$0xff] %v704_v46  }
  0x83   : > { %709 = vst [vmem:[%s10523_s19 + $0x358] sm:$0xff] %v708_v47  }
  0x84   : > { %713 = vst [vmem:[%s10523_s19 + $0x360] sm:$0xff] %v712_v48  }
  0x85   : > { %717 = vst [vmem:[%s10523_s19 + $0x368] sm:$0xff] %v716_v49  }
  0x86   : > { %721 = vst [vmem:[%s10523_s19 + $0x370] sm:$0xff] %v720_v50  }
  0x87   : > { %725 = vst [vmem:[%s10523_s19 + $0x378] sm:$0xff] %v724_v51  }
  0x88   : > { %729 = vst [vmem:[%s10523_s19 + $0x380] sm:$0xff] %v728_v52  }
  0x89   : > { %733 = vst [vmem:[%s10523_s19 + $0x388] sm:$0xff] %v732_v53  }
  0x8a   : > { %737 = vst [vmem:[%s10523_s19 + $0x390] sm:$0xff] %v736_v54  }
  0x8b   : > { %741 = vst [vmem:[%s10523_s19 + $0x398] sm:$0xff] %v740_v55  }
  0x8c   : > { %745 = vst [vmem:[%s10523_s19 + $0x3a0] sm:$0xff] %v744_v56  }
  0x8d   : > { %749 = vst [vmem:[%s10523_s19 + $0x3a8] sm:$0xff] %v748_v57  }
  0x8e   : > { %753 = vst [vmem:[%s10523_s19 + $0x3b0] sm:$0xff] %v752_v58  }
  0x8f   : > { %757 = vst [vmem:[%s10523_s19 + $0x3b8] sm:$0xff] %v756_v59  }
  0x90   : > { %761 = vst [vmem:[%s10523_s19 + $0x3c0] sm:$0xff] %v760_v60  }
  0x91   : > { %765 = vst [vmem:[%s10523_s19 + $0x3c8] sm:$0xff] %v764_v61  }
  0x92   : > { %769 = vst [vmem:[%s10523_s19 + $0x3d0] sm:$0xff] %v768_v62  }
  0x93   : > { %773 = vst [vmem:[%s10523_s19 + $0x3d8] sm:$0xff] %v772_v63  }
  0x94   : > { %777 = vst [vmem:[%s10523_s19 + $0x3e0] sm:$0xff] %v776_v0  }
  0x95   : > { %781 = vst [vmem:[%s10523_s19 + $0x3e8] sm:$0xff] %v780_v1  }
  0x96   : > { %785 = vst [vmem:[%s10523_s19 + $0x3f0] sm:$0xff] %v784_v2  }
  0x97   : > { %789 = vst [vmem:[%s10523_s19 + $0x3f8] sm:$0xff] %v788_v3  }
  0x98 PF: > { %p8871_p5 = scmp.ge.s32.totalorder %s10430_s23, 1  ;;  %p2396_p6 = scmp.lt.s32.totalorder %s10430_s23, 3 }
  0x9a   : > { %p2397_p7 = pnand %p8871_p5, %p2396_p6 }
  0x9b   : > { %s8874_s27 = sshll.u32 (!%p2397_p7), %s8860_s24, 1  ;;  %s2403_s7 = sand.u32 (!%p2397_p7), 1, %s10422_s21  }
  0x9c   : > { %2400 = sbr.rel (%p2397_p7) target bundleno = 12688 (0x3190), region = 111  ;;  %p2461_p8 = scmp.lt.s32.totalorder (!%p2397_p7), %s8874_s27, 3 }
  0x9d   : > { %s10433_s10 = smov (!%p2397_p7), 96   ;;  %s10434_s11 = smov (!%p2397_p7), 32  }
  0x9e   : > { %s10435_s12 = smov (!%p2397_p7), 64   ;;  %s8872_s13 = sshll.u32 (!%p2397_p7), %s2403_s7, 5 }
  0x9f   : > { %s10968_s14 = scalar_lea.vmem (!%p2397_p7), [#allocation2], %s8872_s13  ;;  %s8876_s26 = sshll.u32 (!%p2397_p7), %s8860_s24, 3 }
  0xa0   : > { %p2469_p9 = scmp.lt.s32.totalorder (!%p2397_p7), %s8876_s26, 15 }
  0xa1   : > { %v2551_v4 = vld [vmem:[%s12027_s5 + $0x130] sm:$0xff]  ;;  %v10432_v5 = vmov 0   ;;  %s12034_s27 = smov (!%p2461_p8, %s8874_s27), 3  ;;  %v2489_v6 = vld [vmem:[%s12027_s5] sm:$0xff]  ;;  %v2490_v7 = vld [vmem:[%s12027_s5 + $0x8] sm:$0xff]  ;;  %vm2593_vm0 = vcmask 1043456  }
  0xa2   : > { %10255 = vset.pattern.permute.xlu0 %v10432_v5  ;;  %10256 = vset.pattern.permute.xlu1 %v10432_v5  ;;  %s8875_s29 = sshll.u32 %s12034_s27, 3  ;;  %v2552_v10 = vld [vmem:[%s12027_s5 + $0x138] sm:$0xff]  ;;  %v2491_v15 = vpack.c.bf16 %v2490_v7, %v2489_v6  ;;  %vm2589_vm1 = vcmask 64512   ;;  %v2557_v16 = vld [vmem:[%s12027_s5 + $0x160] sm:$0xff]  ;;  %v2554_v18 = vld [vmem:[%s12027_s5 + $0x148] sm:$0xff]  ;;  %vm2647_vm6 = vcmask 130048  }
  0xa3   : > { %2581 = vperm.xlu0 %10255, %v2551_v4   ;;  %10257 = vset.pattern.permute.xlu2 %v10432_v5  ;;  %s2464_s8 = scalar_lea.vmem %s12022_s0, %s8875_s29  ;;  %v2553_v17 = vld [vmem:[%s12027_s5 + $0x140] sm:$0xff]  ;;  %v2558_v22 = vld [vmem:[%s12027_s5 + $0x168] sm:$0xff]  ;;  %v2492_v34 = vld [vmem:[%s12027_s5 + $0x10] sm:$0xff]  ;;  %s12036_s26 = smov (!%p2469_p9, %s8876_s26), 15 }
  0xa4   : > { %v2575_v8 = vld [vmem:[%s2464_s8] sm:$0xff]  ;;  %v2576_v9 = vld [vmem:[%s2464_s8 + $0x8] sm:$0xff]  ;;  %2644 = vperm.xlu1 %10256, %v2553_v17   ;;  %v2493_v41 = vpack.c.bf16 %v2492_v34, %v2492_v34  ;;  %v2494_v51 = vld [vmem:[%s12027_s5 + $0x18] sm:$0xff]  ;;  %s8873_s8 = sshll.u32 %s2403_s7, 10  ;;  %s10065_s30 = sshll.u32 %s12036_s26, 4 }
  0xa5   : > { %v2577_v11 = vpack.c.bf16 %v2575_v8, %v2575_v8  ;;  %v2578_v12 = vpack.c.bf16 %v2576_v9, %v2576_v9  ;;  %v2495_v58 = vpack.c.bf16 %v2494_v51, %v2494_v51  ;;  %v2555_v59 = vld [vmem:[%s12027_s5 + $0x150] sm:$0xff]  ;;  %v2556_v60 = vld [vmem:[%s12027_s5 + $0x158] sm:$0xff]  ;;  %v2496_v6 = vld [vmem:[%s12027_s5 + $0x20] sm:$0xff]  ;;  %s10899_s9 = scalar_lea.vmem [#allocation3], %s8873_s8  ;;  %s11805_s24 = scalar_lea.vmem %s12026_s4, %s10065_s30 }
  0xa6   : > { %2735 = vperm.xlu2 %10257, %v2555_v59   ;;  %v2497_v7 = vld [vmem:[%s12027_s5 + $0x28] sm:$0xff]  ;;  %v10075_v59 = vld [vmem:[%s10899_s9 + $0x40] sm:$0xff] }
  0xa7   : > { %v10803_v13 = vsel %vm2593_vm0, %v2577_v11, 0  ;;  %v10806_v14 = vsel %vm2593_vm0, %v2578_v12, 0 }
  0xa8   : > { %2607 = vmatpush.bf16.msra.mxu0 %v10803_v13  ;;  %2621 = vmatpush.bf16.msra.mxu1 %v10806_v14 }
  0xab   : > { %2586 = vperm.xlu0 %10255, %v2552_v10   ;;  %8884 = vmatmul.msk.bf16.vlgmr.msra.gmra.mxu0 %vm2589_vm1, %v2491_v15 }
  0xac   : > { %8885 = vmatmul.msk.bf16.vlgmr.msra.gmra.mxu1 %vm2589_vm1, %v2491_v15  ;;  %2687 = vperm.xlu1 %10256, %v2554_v18  }
  0xae   : > { %2740 = vperm.xlu2 %10257, %v2556_v60   ;;  %v10072_v60 = vld [vmem:[%s10899_s9 + $0x28] sm:$0xff] }
  0xb3   : > { %2796 = vperm.xlu0 %10255, %v2557_v16   ;;  %v10858_v16 = vpack.c.bf16 %v2497_v7, %v2496_v6 }
  0xb4   : > { %2838 = vperm.xlu1 %10256, %v2558_v22  }
 0x100   : > { %v10864_v17 = vpop.permute.xlu2 %2735 }
 0x108   : > { %v10868_v22 = vpop.permute.xlu2 %2740 }
 0x115   : > { %v2582_v19 = vpop.permute.xlu0 %2581 }
 0x116   : > { %v2645_v42 = vpop.permute.xlu1 %2644 }
 0x11d   : > { %v2587_v25 = vpop.permute.xlu0 %2586 }
 0x11e   : > { %v2688_v61 = vpop.permute.xlu1 %2687 }
 0x128   : > { %v2609_v20 = vpop.f32.mrf.mxu0 }
 0x129   : > { %v2623_v21 = vpop.f32.mrf.mxu1  ;;  %v2610_v23 = vadd.f32 %v2609_v20, %v2582_v19 }
 0x12a   : > { %v2624_v24 = vadd.f32 %v2623_v21, %v2582_v19 }
 0x12b   : > { %v2632_v28 = vmul.f32 0.01, %v2610_v23  ;;  %vm2628_vm2 = vcmp.ge.f32.partialorder %v2610_v23, 0.0 }
 0x12c   : > { %v2633_v29 = vmul.f32 0.01, %v2624_v24  ;;  %vm2629_vm3 = vcmp.ge.f32.partialorder %v2624_v24, 0.0 }
 0x12d   : > { %v2636_v35 = vsel %vm2628_vm2, %v2610_v23, %v2632_v28 }
 0x12e   : > { %v2637_v37 = vsel %vm2629_vm3, %v2624_v24, %v2633_v29 }
 0x130   : > { %v2611_v26 = vpop.f32.mrf.mxu0 }
 0x131   : > { %v2625_v27 = vpop.f32.mrf.mxu1  ;;  %v2612_v30 = vadd.f32 %v2611_v26, %v2587_v25 }
 0x132   : > { %v2626_v31 = vadd.f32 %v2625_v27, %v2587_v25 }
 0x133   : > { %vm2630_vm4 = vcmp.ge.f32.partialorder %v2612_v30, 0.0  ;;  %v2634_v32 = vmul.f32 0.01, %v2612_v30 }
 0x134   : > { %vm2631_vm5 = vcmp.ge.f32.partialorder %v2626_v31, 0.0  ;;  %v2635_v33 = vmul.f32 0.01, %v2626_v31 }
 0x135   : > { %v2638_v36 = vsel %vm2630_vm4, %v2612_v30, %v2634_v32 }
 0x136   : > { %v2639_v38 = vsel %vm2631_vm5, %v2626_v31, %v2635_v33  ;;  %v2640_v39 = vpack.c.bf16 %v2638_v36, %v2636_v35  ;;  %v2499_v31 = vld [vmem:[%s12027_s5 + $0x30] sm:$0xff]  ;;  %vm2899_vm5 = vcmask 261120  }
 0x137   : > { %v2641_v40 = vpack.c.bf16 %v2639_v38, %v2637_v37  ;;  %v10875_v38 = vpack.c.bf16 %v2499_v31, %v2499_v31  ;;  %v10081_v31 = vld [vmem:[%s10899_s9 + $0x70] sm:$0xff] }
 0x138   : > { %2658 = vmatpush.bf16.msra.mxu2 %v2640_v39  ;;  %v10881_v39 = vpop.permute.xlu0 %2796 }
 0x139   : > { %2671 = vmatpush.bf16.msra.mxu3 %v2641_v40 }
 0x13b   : > { %8886 = vmatmul.msk.bf16.vlgmr.msra.gmra.mxu2 %vm2647_vm6, %v2493_v41 }
 0x13c   : > { %8887 = vmatmul.msk.bf16.vlgmr.msra.gmra.mxu3 %vm2647_vm6, %v2493_v41 }
 0x1be   : > { %v2660_v43 = vpop.f32.mrf.mxu2 }
 0x1bf   : > { %v2673_v44 = vpop.f32.mrf.mxu3  ;;  %v2661_v45 = vadd.f32 %v2660_v43, %v2645_v42 }
 0x1c0   : > { %v2674_v46 = vadd.f32 %v2673_v44, %v2645_v42 }
 0x1c1   : > { %v2679_v47 = vmul.f32 0.01, %v2661_v45  ;;  %vm2677_vm7 = vcmp.ge.f32.partialorder %v2661_v45, 0.0 }
 0x1c2   : > { %v2680_v48 = vmul.f32 0.01, %v2674_v46  ;;  %vm2678_vm8 = vcmp.ge.f32.partialorder %v2674_v46, 0.0 }
 0x1c3   : > { %v2681_v49 = vsel %vm2677_vm7, %v2661_v45, %v2679_v47  ;;  %vm3189_vm7 = vcmask 523264  }
 0x1c4   : > { %v2682_v50 = vsel %vm2678_vm8, %v2674_v46, %v2680_v48  ;;  %v2683_v52 = vpack.c.bf16 %v2681_v49, %v2681_v49  ;;  %v2501_v48 = vld [vmem:[%s12027_s5 + $0x38] sm:$0xff]  ;;  %vm3191_vm8 = vcmask 785408  }
 0x1c5   : > { %v2684_v53 = vpack.c.bf16 %v2682_v50, %v2682_v50 }
 0x1c6   : > { %v2662_v54 = vpop.f32.mrf.mxu2  ;;  %v2694_v56 = vsel %vm2593_vm0, %v2683_v52, 0 }
 0x1c7   : > { %v2675_v55 = vpop.f32.mrf.mxu3  ;;  %v2697_v57 = vsel %vm2593_vm0, %v2684_v53, 0  ;;  %2706 = vmatpush.bf16.msrb.mxu0 %v2694_v56  ;;  %v10068_v56 = vld [vmem:[%s10899_s9 + $0x8] sm:$0xff] }
 0x1c8   : > { %2719 = vmatpush.bf16.msrb.mxu1 %v2697_v57  ;;  %v10890_v55 = vpack.c.bf16 %v2501_v48, %v2501_v48  ;;  %v10067_v57 = vld [vmem:[%s10899_s9] sm:$0xff] }
 0x1ca   : > { %8888 = vmatmul.msk.bf16.vlgmr.msrb.gmra.mxu0 %vm2589_vm1, %v2495_v58 }
 0x1cb   : > { %8889 = vmatmul.msk.bf16.vlgmr.msrb.gmra.mxu1 %vm2589_vm1, %v2495_v58  ;;  %v10076_v58 = vld [vmem:[%s10899_s9 + $0x48] sm:$0xff] }
 0x247   : > { %v2708_v62 = vpop.f32.mrf.mxu0 }
 0x248   : > { %v2721_v63 = vpop.f32.mrf.mxu1  ;;  %v2709_v0 = vadd.f32 %v2708_v62, %v2688_v61  ;;  %v10907_v62 = vpop.permute.xlu1 %2838 }
 0x249   : > { %v2722_v1 = vadd.f32 %v2721_v63, %v2688_v61  ;;  %v10071_v61 = vld [vmem:[%s10899_s9 + $0x20] sm:$0xff] }
 0x24a   : > { %vm2725_vm9 = vcmp.ge.f32.partialorder %v2709_v0, 0.0  ;;  %v2727_v2 = vmul.f32 0.01, %v2709_v0 }
 0x24b   : > { %vm2726_vm10 = vcmp.ge.f32.partialorder %v2722_v1, 0.0  ;;  %v2728_v3 = vmul.f32 0.01, %v2722_v1 }
 0x24c   : > { %v10842_v4 = vsel %vm2725_vm9, %v2709_v0, %v2727_v2 }
 0x24d   : > { %v10844_v5 = vsel %vm2726_vm10, %v2722_v1, %v2728_v3  ;;  %v2731_v8 = vpack.c.bf16 %v10842_v4, %v10842_v4 }
 0x24e   : > { %v2732_v9 = vpack.c.bf16 %v10844_v5, %v10844_v5 }
 0x24f   : > { %v2710_v10 = vpop.f32.mrf.mxu0  ;;  %v2747_v12 = vsel %vm2593_vm0, %v2731_v8, 0 }
 0x250   : > { %v2723_v11 = vpop.f32.mrf.mxu1  ;;  %v2750_v15 = vsel %vm2593_vm0, %v2732_v9, 0  ;;  %2759 = vmatpush.bf16.msrb.mxu2 %v2747_v12 }
 0x251   : > { %2773 = vmatpush.bf16.msrb.mxu3 %v2750_v15 }
 0x253   : > { %8890 = vmatmul.msk.bf16.vlgmr.msrb.gmra.mxu2 %vm2589_vm1, %v10858_v16 }
 0x254   : > { %8891 = vmatmul.msk.bf16.vlgmr.msrb.gmra.mxu3 %vm2589_vm1, %v10858_v16 }
 0x2d6   : > { %v2761_v18 = vpop.f32.mrf.mxu2 }
 0x2d7   : > { %v2775_v19 = vpop.f32.mrf.mxu3  ;;  %v2762_v20 = vadd.f32 %v2761_v18, %v10864_v17 }
 0x2d8   : > { %v2776_v21 = vadd.f32 %v2775_v19, %v10864_v17 }
 0x2d9   : > { %v2784_v25 = vmul.f32 0.01, %v2762_v20  ;;  %vm2780_vm11 = vcmp.ge.f32.partialorder %v2762_v20, 0.0 }
 0x2da   : > { %v2785_v26 = vmul.f32 0.01, %v2776_v21  ;;  %vm2781_vm12 = vcmp.ge.f32.partialorder %v2776_v21, 0.0 }
 0x2db   : > { %v2788_v32 = vsel %vm2780_vm11, %v2762_v20, %v2784_v25  ;;  %v10080_v20 = vld [vmem:[%s10899_s9 + $0x68] sm:$0xff]  ;;  %v10069_v25 = vld [vmem:[%s10899_s9 + $0x10] sm:$0xff] }
 0x2dc   : > { %v2789_v33 = vsel %vm2781_vm12, %v2776_v21, %v2785_v26  ;;  %v10079_v21 = vld [vmem:[%s10899_s9 + $0x60] sm:$0xff]  ;;  %v10073_v26 = vld [vmem:[%s10899_s9 + $0x30] sm:$0xff] }
 0x2de   : > { %v2763_v23 = vpop.f32.mrf.mxu2 }
 0x2df   : > { %v2777_v24 = vpop.f32.mrf.mxu3  ;;  %v2764_v27 = vadd.f32 %v2763_v23, %v10868_v22  ;;  %v10070_v23 = vld [vmem:[%s10899_s9 + $0x18] sm:$0xff] }
 0x2e0   : > { %v2778_v28 = vadd.f32 %v2777_v24, %v10868_v22  ;;  %v10074_v24 = vld [vmem:[%s10899_s9 + $0x38] sm:$0xff] }
 0x2e1   : > { %vm2782_vm13 = vcmp.ge.f32.partialorder %v2764_v27, 0.0  ;;  %v2786_v29 = vmul.f32 0.01, %v2764_v27 }
 0x2e2   : > { %vm2783_vm14 = vcmp.ge.f32.partialorder %v2778_v28, 0.0  ;;  %v2787_v30 = vmul.f32 0.01, %v2778_v28 }
 0x2e3   : > { %v2790_v34 = vsel %vm2782_vm13, %v2764_v27, %v2786_v29  ;;  %v10078_v27 = vld [vmem:[%s10899_s9 + $0x58] sm:$0xff] }
 0x2e4   : > { %v2791_v35 = vsel %vm2783_vm14, %v2778_v28, %v2787_v30  ;;  %v2792_v36 = vpack.c.bf16 %v2790_v34, %v2788_v32  ;;  %v10082_v28 = vld [vmem:[%s10899_s9 + $0x78] sm:$0xff]  ;;  %v10077_v30 = vld [vmem:[%s10899_s9 + $0x50] sm:$0xff] }
 0x2e5   : > { %v2793_v37 = vpack.c.bf16 %v2791_v35, %v2789_v33 }
 0x2e6   : > { %2809 = vmatpush.bf16.msra.mxu0 %v2792_v36 }
 0x2e7   : > { %2822 = vmatpush.bf16.msra.mxu1 %v2793_v37 }
 0x2e9   : > { %8892 = vmatmul.msk.bf16.vlgmr.msra.gmra.mxu0 %vm2647_vm6, %v10875_v38 }
 0x2ea   : > { %8893 = vmatmul.msk.bf16.vlgmr.msra.gmra.mxu1 %vm2647_vm6, %v10875_v38  ;;  %2909 = vmatpush.bf16.msrb.mxu0 %v10068_v56 }
 0x2eb   : > { %2947 = vmatpush.bf16.msrb.mxu1 %v10070_v23 }
 0x2ee   : > { %2910 = vmatpush.bf16.msrb.mxu0 %v10067_v57 }
 0x2ef   : > { %2948 = vmatpush.bf16.msrb.mxu1 %v10069_v25 }
 0x2f2   : > { %3052 = vmatpush.bf16.msra.mxu0 %v10076_v58 }
 0x2f3   : > { %3087 = vmatpush.bf16.msra.mxu1 %v10078_v27 }
 0x2f6   : > { %3053 = vmatpush.bf16.msra.mxu0 %v10075_v59 }
 0x2f7   : > { %3088 = vmatpush.bf16.msra.mxu1 %v10077_v30 }
 0x366   : > { %v2811_v40 = vpop.f32.mrf.mxu0 }
 0x367   : > { %v2824_v41 = vpop.f32.mrf.mxu1  ;;  %v2812_v42 = vadd.f32 %v2811_v40, %v10881_v39 }
 0x368   : > { %v2825_v43 = vadd.f32 %v2824_v41, %v10881_v39 }
 0x369   : > { %vm2828_vm15 = vcmp.ge.f32.partialorder %v2812_v42, 0.0  ;;  %v2830_v44 = vmul.f32 0.01, %v2812_v42 }
 0x36a   : > { %vm2829_vm2 = vcmp.ge.f32.partialorder %v2825_v43, 0.0  ;;  %v2831_v45 = vmul.f32 0.01, %v2825_v43 }
 0x36b   : > { %v2832_v46 = vsel %vm2828_vm15, %v2812_v42, %v2830_v44 }
 0x36c   : > { %v2833_v47 = vsel %vm2829_vm2, %v2825_v43, %v2831_v45  ;;  %v2834_v49 = vpack.c.bf16 %v2832_v46, %v2832_v46 }
 0x36d   : > { %v2835_v50 = vpack.c.bf16 %v2833_v47, %v2833_v47 }
 0x36e   : > { %v2813_v51 = vpop.f32.mrf.mxu0  ;;  %v2845_v53 = vsel %vm2593_vm0, %v2834_v49, 0 }
 0x36f   : > { %v2826_v52 = vpop.f32.mrf.mxu1  ;;  %v2848_v54 = vsel %vm2593_vm0, %v2835_v50, 0  ;;  %2857 = vmatpush.bf16.msra.mxu2 %v2845_v53 }
 0x370   : > { %2870 = vmatpush.bf16.msra.mxu3 %v2848_v54 }
 0x372   : > { %8894 = vmatmul.msk.bf16.vlgmr.msra.gmra.mxu2 %vm2589_vm1, %v10890_v55 }
 0x373   : > { %8895 = vmatmul.msk.bf16.vlgmr.msra.gmra.mxu3 %vm2589_vm1, %v10890_v55  ;;  %2982 = vmatpush.bf16.msrb.mxu2 %v10072_v60 }
 0x374   : > { %3017 = vmatpush.bf16.msrb.mxu3 %v10074_v24 }
 0x377   : > { %2983 = vmatpush.bf16.msrb.mxu2 %v10071_v61 }
 0x378   : > { %3018 = vmatpush.bf16.msrb.mxu3 %v10073_v26 }
 0x37b   : > { %3122 = vmatpush.bf16.msra.mxu2 %v10080_v20 }
 0x37c   : > { %3157 = vmatpush.bf16.msra.mxu3 %v10082_v28 }
 0x37f   : > { %3123 = vmatpush.bf16.msra.mxu2 %v10079_v21 }
 0x380   : > { %3158 = vmatpush.bf16.msra.mxu3 %v10081_v31 }
 0x3f5   : > { %v2859_v63 = vpop.f32.mrf.mxu2 }
 0x3f6   : > { %v2872_v0 = vpop.f32.mrf.mxu3  ;;  %v2860_v1 = vadd.f32 %v2859_v63, %v10907_v62 }
 0x3f7   : > { %v2873_v2 = vadd.f32 %v2872_v0, %v10907_v62 }
 0x3f8   : > { %vm2876_vm3 = vcmp.ge.f32.partialorder %v2860_v1, 0.0  ;;  %v2878_v3 = vmul.f32 0.01, %v2860_v1 }
 0x3f9   : > { %vm2877_vm4 = vcmp.ge.f32.partialorder %v2873_v2, 0.0  ;;  %v2879_v6 = vmul.f32 0.01, %v2873_v2 }
 0x3fa   : > { %v2880_v7 = vsel %vm2876_vm3, %v2860_v1, %v2878_v3 }
 0x3fb   : > { %v2881_v8 = vsel %vm2877_vm4, %v2873_v2, %v2879_v6 }
 0x3fc   : > { %v2882_v9 = vpack.c.bf16 %v2881_v8, %v2880_v7 }
 0x3fd   : > { %v2861_v10 = vpop.f32.mrf.mxu2 }
 0x3fe   : > { %v2874_v11 = vpop.f32.mrf.mxu3  ;;  %8904 = vmatmul.msk.bf16.vlgmr.msrb.gmra.mxu0 %vm2899_vm5, %v2882_v9  ;;  %v2922_v12 = vunpack.c.l.b16 %v2882_v9  ;;  %v3029_v18 = vunpack.c.h.b16 %v2882_v9 }
 0x400   : > { %v2923_v15 = vpack.c.b16 %v2922_v12, %v2922_v12  ;;  %v3030_v19 = vpack.c.b16 %v3029_v18, %v3029_v18 }
 0x402   : > { %2924 = vrot.lane.b32.xlu1 %v2923_v15, %s10433_s10  ;;  %2994 = vrot.lane.b32.xlu0 %v2923_v15, %s10434_s11 }
 0x403   : > { %2959 = vrot.lane.b32.xlu2 %v2923_v15, %s10435_s12 }
 0x40a   : > { %3064 = vrot.lane.b32.xlu1 %v3030_v19, %s10433_s10  ;;  %3134 = vrot.lane.b32.xlu0 %v3030_v19, %s10434_s11 }
 0x40b   : > { %3099 = vrot.lane.b32.xlu2 %v3030_v19, %s10435_s12 }
 0x40e   : > { %8956 = vmatmul.msk.bf16.vlgmr.msra.gmra.mxu0 %vm2899_vm5, %v3030_v19 }
 0x45d   : > { %v2960_v29 = vpop.permute.xlu2 %2959 }
 0x45e   : > { %8930 = vmatmul.msk.bf16.vlgmr.msrb.gmra.mxu2 %vm2899_vm5, %v2960_v29 }
 0x465   : > { %v3100_v32 = vpop.permute.xlu2 %3099 }
 0x46e   : > { %8982 = vmatmul.msk.bf16.vlgmr.msra.gmra.mxu2 %vm2899_vm5, %v3100_v32 }
 0x474   : > { %v2925_v33 = vpop.permute.xlu1 %2924  ;;  %v2995_v34 = vpop.permute.xlu0 %2994 }
 0x475   : > { %8917 = vmatmul.msk.bf16.vlgmr.msrb.gmra.mxu1 %vm2899_vm5, %v2925_v33  ;;  %8943 = vmatmul.msk.bf16.vlgmr.msrb.gmra.mxu3 %vm2899_vm5, %v2995_v34 }
 0x47b   : > { %v2912_v35 = vpop.f32.mrf.mxu0 }
 0x47c   : > { %v3065_v37 = vpop.permute.xlu1 %3064  ;;  %v3135_v40 = vpop.permute.xlu0 %3134 }
 0x483   : > { %v2914_v36 = vpop.f32.mrf.mxu0 }
 0x485   : > { %8969 = vmatmul.msk.bf16.vlgmr.msra.gmra.mxu1 %vm2899_vm5, %v3065_v37  ;;  %8995 = vmatmul.msk.bf16.vlgmr.msra.gmra.mxu3 %vm2899_vm5, %v3135_v40 }
 0x48b   : > { %v3055_v41 = vpop.f32.mrf.mxu0 }
 0x493   : > { %v3057_v42 = vpop.f32.mrf.mxu0 }
 0x4e1   : > { %v2985_v43 = vpop.f32.mrf.mxu2 }
 0x4e9   : > { %v2987_v44 = vpop.f32.mrf.mxu2 }
 0x4f1   : > { %v3125_v45 = vpop.f32.mrf.mxu2 }
 0x4f2   : > { %v10263_v46 = vpack.i.bf16 %v3125_v45, %v2985_v43  ;;  %v2950_v47 = vpop.f32.mrf.mxu1 }
 0x4f4   : > { %10264 = vrot.lane.b32.xlu0 %v10263_v46, %s10435_s12 }
 0x4f8   : > { %v3020_v48 = vpop.f32.mrf.mxu3 }
 0x4f9   : > { %v3127_v49 = vpop.f32.mrf.mxu2 }
 0x4fa   : > { %v2952_v50 = vpop.f32.mrf.mxu1 }
 0x500   : > { %v3022_v51 = vpop.f32.mrf.mxu3 }
 0x502   : > { %v3090_v52 = vpop.f32.mrf.mxu1 }
 0x503   : > { %v10258_v53 = vpack.i.bf16 %v3090_v52, %v2950_v47 }
 0x505   : > { %10259 = vrot.lane.b32.xlu2 %v10258_v53, %s10434_s11 }
 0x508   : > { %v3160_v54 = vpop.f32.mrf.mxu3 }
 0x509   : > { %v10268_v56 = vpack.i.bf16 %v3160_v54, %v3020_v48 }
 0x50a   : > { %v3092_v57 = vpop.f32.mrf.mxu1 }
 0x50b   : > { %10269 = vrot.lane.b32.xlu1 %v10268_v56, %s10433_s10  ;;  %v3318_v57 = vld [vmem:[%s10968_s14] ss:$8 sm:$0x3] }
 0x510   : > { %v3162_v58 = vpop.f32.mrf.mxu3 }
 0x55f   : > { %v10260_v59 = vpop.permute.xlu2 %10259 }
 0x560   : > { %v10262_v61 = vunpack.i.h.bf16 %v10260_v59  ;;  %v10261_v63 = vunpack.i.l.bf16 %v10260_v59 }
 0x562   : > { %v3188_v3 = vsel %vm2899_vm5, %v2912_v35, %v10261_v63  ;;  %v3193_v6 = vsel %vm2899_vm5, %v3055_v41, %v10262_v61  ;;  %v3320_v63 = vperm.slane %v3318_v57, 0 }
 0x566   : > { %v10265_v60 = vpop.permute.xlu0 %10264 }
 0x567   : > { %v10267_v0 = vunpack.i.h.bf16 %v10265_v60  ;;  %v10266_v1 = vunpack.i.l.bf16 %v10265_v60 }
 0x569   : > { %v3190_v9 = vsel %vm3189_vm7, %v3188_v3, %v10266_v1  ;;  %v3194_v10 = vsel %vm3189_vm7, %v3193_v6, %v10267_v0  ;;  %v3321_v0 = vperm.slane %v3318_v57, 1  ;;  %v10092_v57 = vld [vmem:[%s10899_s9 + $0xc8] sm:$0xff] }
 0x57d   : > { %v10270_v2 = vpop.permute.xlu1 %10269 }
 0x57e   : > { %v10272_v7 = vunpack.i.h.bf16 %v10270_v2  ;;  %v10271_v8 = vunpack.i.l.bf16 %v10270_v2 }
 0x580   : > { %v3192_v11 = vsel %vm3191_vm8, %v3190_v9, %v10271_v8  ;;  %v3195_v12 = vsel %vm3191_vm8, %v3194_v10, %v10272_v7 }
 0x581   : > { %v3196_v15 = vpack.c.bf16 %v3192_v11, %v3192_v11  ;;  %v3197_v18 = vpack.c.bf16 %v3195_v12, %v3195_v12 }
 0x583   : > { %v3199_v19 = vsel %vm2593_vm0, %v3196_v15, 0  ;;  %v3202_v20 = vsel %vm2593_vm0, %v3197_v18, 0 }
 0x584   : > { %3211 = vmatpush.bf16.msrb.mxu0 %v3199_v19  ;;  %3225 = vmatpush.bf16.msrb.mxu1 %v3202_v20 }
 0x587   : > { %8996 = vmatmul.msk.bf16.vlgmr.msrb.gmra.mxu0 %vm2589_vm1, %v10858_v16  ;;  %8997 = vmatmul.msk.bf16.vlgmr.msrb.gmra.mxu1 %vm2589_vm1, %v10858_v16 }
 0x604   : > { %v3213_v21 = vpop.f32.mrf.mxu0  ;;  %v3227_v23 = vpop.f32.mrf.mxu1 }
 0x605   : > { %v3214_v24 = vadd.f32 %v3213_v21, %v10864_v17  ;;  %v3228_v25 = vadd.f32 %v3227_v23, %v10864_v17 }
 0x607   : > { %v3236_v28 = vmul.f32 0.01, %v3214_v24  ;;  %v3237_v29 = vmul.f32 0.01, %v3228_v25  ;;  %vm3232_vm9 = vcmp.ge.f32.partialorder %v3214_v24, 0.0  ;;  %vm3233_vm10 = vcmp.ge.f32.partialorder %v3228_v25, 0.0 }
 0x609   : > { %v3240_v34 = vsel %vm3232_vm9, %v3214_v24, %v3236_v28  ;;  %v3241_v35 = vsel %vm3233_vm10, %v3228_v25, %v3237_v29 }
 0x60c   : > { %v3215_v26 = vpop.f32.mrf.mxu0  ;;  %v3229_v27 = vpop.f32.mrf.mxu1 }
 0x60d   : > { %v3216_v30 = vadd.f32 %v3215_v26, %v10868_v22  ;;  %v3230_v31 = vadd.f32 %v3229_v27, %v10868_v22 }
 0x60f   : > { %vm3234_vm11 = vcmp.ge.f32.partialorder %v3216_v30, 0.0  ;;  %v3238_v32 = vmul.f32 0.01, %v3216_v30  ;;  %vm3235_vm12 = vcmp.ge.f32.partialorder %v3230_v31, 0.0  ;;  %v3239_v33 = vmul.f32 0.01, %v3230_v31 }
 0x611   : > { %v3242_v36 = vsel %vm3234_vm11, %v3216_v30, %v3238_v32  ;;  %v3243_v37 = vsel %vm3235_vm12, %v3230_v31, %v3239_v33 }
 0x612   : > { %v3244_v40 = vpack.c.bf16 %v3242_v36, %v3240_v34  ;;  %v3245_v41 = vpack.c.bf16 %v3243_v37, %v3241_v35 }
 0x614   : > { %3253 = vmatpush.bf16.msrb.mxu2 %v3244_v40  ;;  %3266 = vmatpush.bf16.msrb.mxu3 %v3245_v41 }
 0x617   : > { %8998 = vmatmul.msk.bf16.vlgmr.msrb.gmra.mxu2 %vm2647_vm6, %v10875_v38  ;;  %8999 = vmatmul.msk.bf16.vlgmr.msrb.gmra.mxu3 %vm2647_vm6, %v10875_v38 }
 0x69a   : > { %v3255_v42 = vpop.f32.mrf.mxu2  ;;  %v3268_v43 = vpop.f32.mrf.mxu3 }
 0x69b   : > { %v3256_v44 = vadd.f32 %v3255_v42, %v10881_v39  ;;  %v3269_v45 = vadd.f32 %v3268_v43, %v10881_v39 }
 0x69d   : > { %vm3272_vm13 = vcmp.ge.f32.partialorder %v3256_v44, 0.0  ;;  %v3274_v46 = vmul.f32 0.01, %v3256_v44  ;;  %vm3273_vm14 = vcmp.ge.f32.partialorder %v3269_v45, 0.0  ;;  %v3275_v47 = vmul.f32 0.01, %v3269_v45 }
 0x69f   : > { %v3276_v48 = vsel %vm3272_vm13, %v3256_v44, %v3274_v46  ;;  %v3277_v49 = vsel %vm3273_vm14, %v3269_v45, %v3275_v47 }
 0x6a0   : > { %v3278_v50 = vpack.c.bf16 %v3276_v48, %v3276_v48  ;;  %v3279_v51 = vpack.c.bf16 %v3277_v49, %v3277_v49 }
 0x6a2   : > { %v3257_v52 = vpop.f32.mrf.mxu2  ;;  %v3270_v53 = vpop.f32.mrf.mxu3  ;;  %v3281_v54 = vsel %vm2593_vm0, %v3278_v50, 0  ;;  %v3284_v56 = vsel %vm2593_vm0, %v3279_v51, 0 }
 0x6a3   : > { %3293 = vmatpush.bf16.msra.mxu0 %v3281_v54  ;;  %3306 = vmatpush.bf16.msra.mxu1 %v3284_v56  ;;  %v10084_v54 = vld [vmem:[%s10899_s9 + $0x88] sm:$0xff]  ;;  %v10083_v56 = vld [vmem:[%s10899_s9 + $0x80] sm:$0xff] }
 0x6a6   : > { %9000 = vmatmul.msk.bf16.vlgmr.msra.gmra.mxu0 %vm2589_vm1, %v10890_v55  ;;  %9001 = vmatmul.msk.bf16.vlgmr.msra.gmra.mxu1 %vm2589_vm1, %v10890_v55 }
 0x723   : > { %v3295_v58 = vpop.f32.mrf.mxu0  ;;  %v3308_v59 = vpop.f32.mrf.mxu1 }
 0x724   : > { %v3296_v60 = vadd.f32 %v3295_v58, %v10907_v62  ;;  %v3309_v61 = vadd.f32 %v3308_v59, %v10907_v62  ;;  %v10091_v58 = vld [vmem:[%s10899_s9 + $0xc0] sm:$0xff]  ;;  %v10088_v59 = vld [vmem:[%s10899_s9 + $0xa8] sm:$0xff] }
 0x726   : > { %vm3312_vm15 = vcmp.ge.f32.partialorder %v3296_v60, 0.0  ;;  %v3314_v1 = vmul.f32 0.01, %v3296_v60  ;;  %vm3313_vm2 = vcmp.ge.f32.partialorder %v3309_v61, 0.0  ;;  %v3315_v2 = vmul.f32 0.01, %v3309_v61 }
 0x728   : > { %v3316_v3 = vsel %vm3312_vm15, %v3296_v60, %v3314_v1  ;;  %v3317_v6 = vsel %vm3313_vm2, %v3309_v61, %v3315_v2  ;;  %v10087_v60 = vld [vmem:[%s10899_s9 + $0xa0] sm:$0xff] }
 0x729   : > { %v3324_v7 = vmul.f32 %v3320_v63, %v3316_v3  ;;  %v3325_v8 = vmul.f32 %v3321_v0, %v3317_v6 }
 0x72b   : > { %v3297_v9 = vpop.f32.mrf.mxu0  ;;  %v3310_v10 = vpop.f32.mrf.mxu1  ;;  %v10974_v11 = vadd.f32 %v3324_v7, %v10842_v4  ;;  %v10977_v12 = vadd.f32 %v3325_v8, %v10844_v5 }
 0x72d   : > { %v3328_v15 = vpack.c.bf16 %v10974_v11, %v10974_v11  ;;  %v3329_v18 = vpack.c.bf16 %v10977_v12, %v10977_v12 }
 0x72f   : > { %v3331_v19 = vsel %vm2593_vm0, %v3328_v15, 0  ;;  %v3334_v20 = vsel %vm2593_vm0, %v3329_v18, 0 }
 0x730   : > { %3343 = vmatpush.bf16.msra.mxu2 %v3331_v19  ;;  %3357 = vmatpush.bf16.msra.mxu3 %v3334_v20 }
 0x733   : > { %9002 = vmatmul.msk.bf16.vlgmr.msra.gmra.mxu2 %vm2589_vm1, %v10858_v16  ;;  %9003 = vmatmul.msk.bf16.vlgmr.msra.gmra.mxu3 %vm2589_vm1, %v10858_v16 }
 0x7b6   : > { %v3345_v4 = vpop.f32.mrf.mxu2  ;;  %v3359_v5 = vpop.f32.mrf.mxu3 }
 0x7b7   : > { %v3346_v21 = vadd.f32 %v3345_v4, %v10864_v17  ;;  %v3360_v23 = vadd.f32 %v3359_v5, %v10864_v17  ;;  %v10096_v4 = vld [vmem:[%s10899_s9 + $0xe8] sm:$0xff]  ;;  %v10095_v5 = vld [vmem:[%s10899_s9 + $0xe0] sm:$0xff] }
 0x7b9   : > { %v3368_v26 = vmul.f32 0.01, %v3346_v21  ;;  %v3369_v27 = vmul.f32 0.01, %v3360_v23  ;;  %vm3364_vm3 = vcmp.ge.f32.partialorder %v3346_v21, 0.0  ;;  %vm3365_vm4 = vcmp.ge.f32.partialorder %v3360_v23, 0.0 }
 0x7bb   : > { %v3372_v32 = vsel %vm3364_vm3, %v3346_v21, %v3368_v26  ;;  %v3373_v33 = vsel %vm3365_vm4, %v3360_v23, %v3369_v27  ;;  %v10086_v21 = vld [vmem:[%s10899_s9 + $0x98] sm:$0xff] }
 0x7bc   : > { %v10090_v23 = vld [vmem:[%s10899_s9 + $0xb8] sm:$0xff] }
 0x7bd   : > { %v10094_v26 = vld [vmem:[%s10899_s9 + $0xd8] sm:$0xff] }
 0x7be   : > { %v3347_v24 = vpop.f32.mrf.mxu2  ;;  %v3361_v25 = vpop.f32.mrf.mxu3  ;;  %v10098_v27 = vld [vmem:[%s10899_s9 + $0xf8] sm:$0xff] }
 0x7bf   : > { %v3348_v28 = vadd.f32 %v3347_v24, %v10868_v22  ;;  %v3362_v29 = vadd.f32 %v3361_v25, %v10868_v22  ;;  %v10085_v24 = vld [vmem:[%s10899_s9 + $0x90] sm:$0xff] }
 0x7c0   : > { %v10089_v25 = vld [vmem:[%s10899_s9 + $0xb0] sm:$0xff] }
 0x7c1   : > { %vm3366_vm9 = vcmp.ge.f32.partialorder %v3348_v28, 0.0  ;;  %v3370_v30 = vmul.f32 0.01, %v3348_v28  ;;  %vm3367_vm10 = vcmp.ge.f32.partialorder %v3362_v29, 0.0  ;;  %v3371_v31 = vmul.f32 0.01, %v3362_v29 }
 0x7c3   : > { %v3374_v34 = vsel %vm3366_vm9, %v3348_v28, %v3370_v30  ;;  %v3375_v35 = vsel %vm3367_vm10, %v3362_v29, %v3371_v31  ;;  %v10093_v29 = vld [vmem:[%s10899_s9 + $0xd0] sm:$0xff] }
 0x7c4   : > { %v3376_v36 = vpack.c.bf16 %v3374_v34, %v3372_v32  ;;  %v3377_v37 = vpack.c.bf16 %v3375_v35, %v3373_v33  ;;  %v10097_v30 = vld [vmem:[%s10899_s9 + $0xf0] sm:$0xff] }
 0x7c6   : > { %3385 = vmatpush.bf16.msrb.mxu0 %v3376_v36  ;;  %3398 = vmatpush.bf16.msrb.mxu1 %v3377_v37 }
 0x7c9   : > { %9004 = vmatmul.msk.bf16.vlgmr.msrb.gmra.mxu0 %vm2647_vm6, %v10875_v38  ;;  %9005 = vmatmul.msk.bf16.vlgmr.msrb.gmra.mxu1 %vm2647_vm6, %v10875_v38 }
 0x7ca   : > { %3477 = vmatpush.bf16.msra.mxu0 %v10084_v54  ;;  %3515 = vmatpush.bf16.msra.mxu1 %v10086_v21 }
 0x7ce   : > { %3478 = vmatpush.bf16.msra.mxu0 %v10083_v56  ;;  %3516 = vmatpush.bf16.msra.mxu1 %v10085_v24 }
 0x7d2   : > { %3620 = vmatpush.bf16.msrb.mxu0 %v10092_v57  ;;  %3655 = vmatpush.bf16.msrb.mxu1 %v10094_v26 }
 0x7d6   : > { %3621 = vmatpush.bf16.msrb.mxu0 %v10091_v58  ;;  %3656 = vmatpush.bf16.msrb.mxu1 %v10093_v29 }
 0x846   : > { %v3387_v40 = vpop.f32.mrf.mxu0  ;;  %v3400_v41 = vpop.f32.mrf.mxu1 }
 0x847   : > { %v3388_v42 = vadd.f32 %v3387_v40, %v10881_v39  ;;  %v3401_v43 = vadd.f32 %v3400_v41, %v10881_v39 }
 0x849   : > { %vm3404_vm11 = vcmp.ge.f32.partialorder %v3388_v42, 0.0  ;;  %v3406_v44 = vmul.f32 0.01, %v3388_v42  ;;  %vm3405_vm12 = vcmp.ge.f32.partialorder %v3401_v43, 0.0  ;;  %v3407_v45 = vmul.f32 0.01, %v3401_v43 }
 0x84b   : > { %v3408_v46 = vsel %vm3404_vm11, %v3388_v42, %v3406_v44  ;;  %v3409_v47 = vsel %vm3405_vm12, %v3401_v43, %v3407_v45 }
 0x84c   : > { %v3410_v48 = vpack.c.bf16 %v3408_v46, %v3408_v46  ;;  %v3411_v49 = vpack.c.bf16 %v3409_v47, %v3409_v47 }
 0x84e   : > { %v3389_v50 = vpop.f32.mrf.mxu0  ;;  %v3402_v51 = vpop.f32.mrf.mxu1  ;;  %v3413_v52 = vsel %vm2593_vm0, %v3410_v48, 0  ;;  %v3416_v53 = vsel %vm2593_vm0, %v3411_v49, 0 }
 0x84f   : > { %3425 = vmatpush.bf16.msrb.mxu2 %v3413_v52  ;;  %3438 = vmatpush.bf16.msrb.mxu3 %v3416_v53 }
 0x852   : > { %9006 = vmatmul.msk.bf16.vlgmr.msrb.gmra.mxu2 %vm2589_vm1, %v10890_v55  ;;  %9007 = vmatmul.msk.bf16.vlgmr.msrb.gmra.mxu3 %vm2589_vm1, %v10890_v55 }
 0x853   : > { %3550 = vmatpush.bf16.msra.mxu2 %v10088_v59  ;;  %3585 = vmatpush.bf16.msra.mxu3 %v10090_v23 }
 0x857   : > { %3551 = vmatpush.bf16.msra.mxu2 %v10087_v60  ;;  %3586 = vmatpush.bf16.msra.mxu3 %v10089_v25 }
 0x85b   : > { %3690 = vmatpush.bf16.msrb.mxu2 %v10096_v4  ;;  %3725 = vmatpush.bf16.msrb.mxu3 %v10098_v27 }
 0x85f   : > { %3691 = vmatpush.bf16.msrb.mxu2 %v10095_v5  ;;  %3726 = vmatpush.bf16.msrb.mxu3 %v10097_v30 }
 0x8d5   : > { %v3427_v61 = vpop.f32.mrf.mxu2  ;;  %v3440_v63 = vpop.f32.mrf.mxu3 }
 0x8d6   : > { %v3428_v0 = vadd.f32 %v3427_v61, %v10907_v62  ;;  %v3441_v1 = vadd.f32 %v3440_v63, %v10907_v62 }
 0x8d8   : > { %vm3444_vm13 = vcmp.ge.f32.partialorder %v3428_v0, 0.0  ;;  %v3446_v2 = vmul.f32 0.01, %v3428_v0  ;;  %vm3445_vm14 = vcmp.ge.f32.partialorder %v3441_v1, 0.0  ;;  %v3447_v3 = vmul.f32 0.01, %v3441_v1 }
 0x8da   : > { %v3448_v6 = vsel %vm3444_vm13, %v3428_v0, %v3446_v2  ;;  %v3449_v7 = vsel %vm3445_vm14, %v3441_v1, %v3447_v3 }
 0x8db   : > { %v3450_v8 = vpack.c.bf16 %v3449_v7, %v3448_v6 }
 0x8dd   : > { %v3429_v9 = vpop.f32.mrf.mxu2  ;;  %v3442_v10 = vpop.f32.mrf.mxu3  ;;  %9020 = vmatmul.msk.bf16.vlgmr.msra.gmra.mxu0 %vm2899_vm5, %v3450_v8  ;;  %v3490_v15 = vunpack.c.l.b16 %v3450_v8  ;;  %v3597_v19 = vunpack.c.h.b16 %v3450_v8 }
 0x8df   : > { %v3491_v18 = vpack.c.b16 %v3490_v15, %v3490_v15  ;;  %v3598_v20 = vpack.c.b16 %v3597_v19, %v3597_v19 }
 0x8e1   : > { %3492 = vrot.lane.b32.xlu1 %v3491_v18, %s10433_s10  ;;  %3562 = vrot.lane.b32.xlu0 %v3491_v18, %s10434_s11 }
 0x8e2   : > { %3527 = vrot.lane.b32.xlu2 %v3491_v18, %s10435_s12 }
 0x8e9   : > { %3632 = vrot.lane.b32.xlu1 %v3598_v20, %s10433_s10  ;;  %3702 = vrot.lane.b32.xlu0 %v3598_v20, %s10434_s11 }
 0x8ea   : > { %3667 = vrot.lane.b32.xlu2 %v3598_v20, %s10435_s12 }
 0x8ed   : > { %9072 = vmatmul.msk.bf16.vlgmr.msrb.gmra.mxu0 %vm2899_vm5, %v3598_v20 }
 0x93c   : > { %v3528_v28 = vpop.permute.xlu2 %3527 }
 0x93d   : > { %9046 = vmatmul.msk.bf16.vlgmr.msra.gmra.mxu2 %vm2899_vm5, %v3528_v28 }
 0x944   : > { %v3668_v31 = vpop.permute.xlu2 %3667 }
 0x94d   : > { %9098 = vmatmul.msk.bf16.vlgmr.msrb.gmra.mxu2 %vm2899_vm5, %v3668_v31 }
 0x953   : > { %v3493_v32 = vpop.permute.xlu1 %3492  ;;  %v3563_v33 = vpop.permute.xlu0 %3562 }
 0x954   : > { %9033 = vmatmul.msk.bf16.vlgmr.msra.gmra.mxu1 %vm2899_vm5, %v3493_v32  ;;  %9059 = vmatmul.msk.bf16.vlgmr.msra.gmra.mxu3 %vm2899_vm5, %v3563_v33 }
 0x95a   : > { %v3480_v34 = vpop.f32.mrf.mxu0 }
 0x95b   : > { %v3633_v36 = vpop.permute.xlu1 %3632  ;;  %v3703_v37 = vpop.permute.xlu0 %3702 }
 0x962   : > { %v3482_v35 = vpop.f32.mrf.mxu0 }
 0x964   : > { %9085 = vmatmul.msk.bf16.vlgmr.msrb.gmra.mxu1 %vm2899_vm5, %v3633_v36  ;;  %9111 = vmatmul.msk.bf16.vlgmr.msrb.gmra.mxu3 %vm2899_vm5, %v3703_v37 }
 0x96a   : > { %v3623_v40 = vpop.f32.mrf.mxu0 }
 0x972   : > { %v3625_v41 = vpop.f32.mrf.mxu0 }
 0x9c0   : > { %v3553_v42 = vpop.f32.mrf.mxu2 }
 0x9c8   : > { %v3555_v43 = vpop.f32.mrf.mxu2 }
 0x9d0   : > { %v3693_v44 = vpop.f32.mrf.mxu2 }
 0x9d1   : > { %v10278_v45 = vpack.i.bf16 %v3693_v44, %v3553_v42  ;;  %v3518_v46 = vpop.f32.mrf.mxu1 }
 0x9d3   : > { %10279 = vrot.lane.b32.xlu0 %v10278_v45, %s10435_s12 }
 0x9d7   : > { %v3588_v47 = vpop.f32.mrf.mxu3 }
 0x9d8   : > { %v3695_v48 = vpop.f32.mrf.mxu2 }
 0x9d9   : > { %v3520_v49 = vpop.f32.mrf.mxu1 }
 0x9df   : > { %v3590_v50 = vpop.f32.mrf.mxu3 }
 0x9e1   : > { %v3658_v51 = vpop.f32.mrf.mxu1 }
 0x9e2   : > { %v10273_v52 = vpack.i.bf16 %v3658_v51, %v3518_v46 }
 0x9e4   : > { %10274 = vrot.lane.b32.xlu2 %v10273_v52, %s10434_s11 }
 0x9e7   : > { %v3728_v53 = vpop.f32.mrf.mxu3 }
 0x9e8   : > { %v10283_v54 = vpack.i.bf16 %v3728_v53, %v3588_v47 }
 0x9e9   : > { %v3660_v56 = vpop.f32.mrf.mxu1 }
 0x9ea   : > { %10284 = vrot.lane.b32.xlu1 %v10283_v54, %s10433_s10  ;;  %v9118_v56 = vld [vmem:[%s10968_s14 + $0x1] ss:$8 sm:$0x3] }
 0x9ef   : > { %v3730_v57 = vpop.f32.mrf.mxu3 }
 0xa3e   : > { %v10275_v58 = vpop.permute.xlu2 %10274 }
 0xa3f   : > { %v10277_v60 = vunpack.i.h.bf16 %v10275_v58  ;;  %v10276_v61 = vunpack.i.l.bf16 %v10275_v58 }
 0xa41   : > { %v3756_v2 = vsel %vm2899_vm5, %v3480_v34, %v10276_v61  ;;  %v3759_v3 = vsel %vm2899_vm5, %v3623_v40, %v10277_v60  ;;  %v3887_v61 = vperm.slane %v9118_v56, 0 }
 0xa45   : > { %v10280_v59 = vpop.permute.xlu0 %10279 }
 0xa46   : > { %v10282_v63 = vunpack.i.h.bf16 %v10280_v59  ;;  %v10281_v0 = vunpack.i.l.bf16 %v10280_v59 }
 0xa48   : > { %v3757_v8 = vsel %vm3189_vm7, %v3756_v2, %v10281_v0  ;;  %v3760_v9 = vsel %vm3189_vm7, %v3759_v3, %v10282_v63  ;;  %v3888_v63 = vperm.slane %v9118_v56, 1  ;;  %v10108_v56 = vld [vmem:[%s10899_s9 + $0x148] sm:$0xff] }
 0xa5c   : > { %v10285_v1 = vpop.permute.xlu1 %10284 }
 0xa5d   : > { %v10287_v6 = vunpack.i.h.bf16 %v10285_v1  ;;  %v10286_v7 = vunpack.i.l.bf16 %v10285_v1 }
 0xa5f   : > { %v3758_v10 = vsel %vm3191_vm8, %v3757_v8, %v10286_v7  ;;  %v3761_v15 = vsel %vm3191_vm8, %v3760_v9, %v10287_v6 }
 0xa60   : > { %v3762_v18 = vpack.c.bf16 %v3758_v10, %v3758_v10  ;;  %v3763_v19 = vpack.c.bf16 %v3761_v15, %v3761_v15 }
 0xa62   : > { %v3765_v20 = vsel %vm2593_vm0, %v3762_v18, 0  ;;  %v3768_v4 = vsel %vm2593_vm0, %v3763_v19, 0 }
 0xa63   : > { %3777 = vmatpush.bf16.msra.mxu0 %v3765_v20  ;;  %3791 = vmatpush.bf16.msra.mxu1 %v3768_v4 }
 0xa66   : > { %9112 = vmatmul.msk.bf16.vlgmr.msra.gmra.mxu0 %vm2589_vm1, %v10858_v16  ;;  %9113 = vmatmul.msk.bf16.vlgmr.msra.gmra.mxu1 %vm2589_vm1, %v10858_v16 }
 0xae3   : > { %v3779_v5 = vpop.f32.mrf.mxu0  ;;  %v3793_v21 = vpop.f32.mrf.mxu1 }
 0xae4   : > { %v3780_v23 = vadd.f32 %v3779_v5, %v10864_v17  ;;  %v3794_v24 = vadd.f32 %v3793_v21, %v10864_v17 }
 0xae6   : > { %v3802_v27 = vmul.f32 0.01, %v3780_v23  ;;  %v3803_v28 = vmul.f32 0.01, %v3794_v24  ;;  %vm3798_vm15 = vcmp.ge.f32.partialorder %v3780_v23, 0.0  ;;  %vm3799_vm2 = vcmp.ge.f32.partialorder %v3794_v24, 0.0 }
 0xae8   : > { %v3806_v33 = vsel %vm3798_vm15, %v3780_v23, %v3802_v27  ;;  %v3807_v34 = vsel %vm3799_vm2, %v3794_v24, %v3803_v28 }
 0xaeb   : > { %v3781_v25 = vpop.f32.mrf.mxu0  ;;  %v3795_v26 = vpop.f32.mrf.mxu1 }
 0xaec   : > { %v3782_v29 = vadd.f32 %v3781_v25, %v10868_v22  ;;  %v3796_v30 = vadd.f32 %v3795_v26, %v10868_v22 }
 0xaee   : > { %vm3800_vm3 = vcmp.ge.f32.partialorder %v3782_v29, 0.0  ;;  %v3804_v31 = vmul.f32 0.01, %v3782_v29  ;;  %vm3801_vm4 = vcmp.ge.f32.partialorder %v3796_v30, 0.0  ;;  %v3805_v32 = vmul.f32 0.01, %v3796_v30 }
 0xaf0   : > { %v3808_v35 = vsel %vm3800_vm3, %v3782_v29, %v3804_v31  ;;  %v3809_v36 = vsel %vm3801_vm4, %v3796_v30, %v3805_v32 }
 0xaf1   : > { %v3810_v37 = vpack.c.bf16 %v3808_v35, %v3806_v33  ;;  %v3811_v40 = vpack.c.bf16 %v3809_v36, %v3807_v34 }
 0xaf3   : > { %3819 = vmatpush.bf16.msra.mxu2 %v3810_v37  ;;  %3832 = vmatpush.bf16.msra.mxu3 %v3811_v40 }
 0xaf6   : > { %9114 = vmatmul.msk.bf16.vlgmr.msra.gmra.mxu2 %vm2647_vm6, %v10875_v38  ;;  %9115 = vmatmul.msk.bf16.vlgmr.msra.gmra.mxu3 %vm2647_vm6, %v10875_v38 }
 0xb79   : > { %v3821_v41 = vpop.f32.mrf.mxu2  ;;  %v3834_v42 = vpop.f32.mrf.mxu3 }
 0xb7a   : > { %v3822_v43 = vadd.f32 %v3821_v41, %v10881_v39  ;;  %v3835_v44 = vadd.f32 %v3834_v42, %v10881_v39 }
 0xb7c   : > { %vm3838_vm9 = vcmp.ge.f32.partialorder %v3822_v43, 0.0  ;;  %v3840_v45 = vmul.f32 0.01, %v3822_v43  ;;  %vm3839_vm10 = vcmp.ge.f32.partialorder %v3835_v44, 0.0  ;;  %v3841_v46 = vmul.f32 0.01, %v3835_v44 }
 0xb7e   : > { %v3842_v47 = vsel %vm3838_vm9, %v3822_v43, %v3840_v45  ;;  %v3843_v48 = vsel %vm3839_vm10, %v3835_v44, %v3841_v46 }
 0xb7f   : > { %v3844_v49 = vpack.c.bf16 %v3842_v47, %v3842_v47  ;;  %v3845_v50 = vpack.c.bf16 %v3843_v48, %v3843_v48 }
 0xb81   : > { %v3823_v51 = vpop.f32.mrf.mxu2  ;;  %v3836_v52 = vpop.f32.mrf.mxu3  ;;  %v3847_v53 = vsel %vm2593_vm0, %v3844_v49, 0  ;;  %v3850_v54 = vsel %vm2593_vm0, %v3845_v50, 0 }
 0xb82   : > { %3859 = vmatpush.bf16.msrb.mxu0 %v3847_v53  ;;  %3872 = vmatpush.bf16.msrb.mxu1 %v3850_v54  ;;  %v10100_v53 = vld [vmem:[%s10899_s9 + $0x108] sm:$0xff]  ;;  %v10099_v54 = vld [vmem:[%s10899_s9 + $0x100] sm:$0xff] }
 0xb85   : > { %9116 = vmatmul.msk.bf16.vlgmr.msrb.gmra.mxu0 %vm2589_vm1, %v10890_v55  ;;  %9117 = vmatmul.msk.bf16.vlgmr.msrb.gmra.mxu1 %vm2589_vm1, %v10890_v55 }
 0xc02   : > { %v3861_v57 = vpop.f32.mrf.mxu0  ;;  %v3874_v58 = vpop.f32.mrf.mxu1 }
 0xc03   : > { %v3862_v59 = vadd.f32 %v3861_v57, %v10907_v62  ;;  %v3875_v60 = vadd.f32 %v3874_v58, %v10907_v62  ;;  %v10107_v57 = vld [vmem:[%s10899_s9 + $0x140] sm:$0xff]  ;;  %v10104_v58 = vld [vmem:[%s10899_s9 + $0x128] sm:$0xff] }
 0xc05   : > { %vm3878_vm11 = vcmp.ge.f32.partialorder %v3862_v59, 0.0  ;;  %v3880_v0 = vmul.f32 0.01, %v3862_v59  ;;  %vm3879_vm12 = vcmp.ge.f32.partialorder %v3875_v60, 0.0  ;;  %v3881_v1 = vmul.f32 0.01, %v3875_v60 }
 0xc07   : > { %v3882_v2 = vsel %vm3878_vm11, %v3862_v59, %v3880_v0  ;;  %v3883_v3 = vsel %vm3879_vm12, %v3875_v60, %v3881_v1  ;;  %v10103_v59 = vld [vmem:[%s10899_s9 + $0x120] sm:$0xff] }
 0xc08   : > { %v3891_v6 = vmul.f32 %v3887_v61, %v3882_v2  ;;  %v3892_v7 = vmul.f32 %v3888_v63, %v3883_v3 }
 0xc0a   : > { %v3863_v8 = vpop.f32.mrf.mxu0  ;;  %v3876_v9 = vpop.f32.mrf.mxu1  ;;  %v11072_v10 = vadd.f32 %v3891_v6, %v10974_v11  ;;  %v11075_v15 = vadd.f32 %v3892_v7, %v10977_v12 }
 0xc0c   : > { %v3895_v18 = vpack.c.bf16 %v11072_v10, %v11072_v10  ;;  %v3896_v19 = vpack.c.bf16 %v11075_v15, %v11075_v15 }
 0xc0e   : > { %v3898_v20 = vsel %vm2593_vm0, %v3895_v18, 0  ;;  %v3901_v4 = vsel %vm2593_vm0, %v3896_v19, 0 }
 0xc0f   : > { %3910 = vmatpush.bf16.msrb.mxu2 %v3898_v20  ;;  %3924 = vmatpush.bf16.msrb.mxu3 %v3901_v4 }
 0xc12   : > { %9119 = vmatmul.msk.bf16.vlgmr.msrb.gmra.mxu2 %vm2589_vm1, %v10858_v16  ;;  %9120 = vmatmul.msk.bf16.vlgmr.msrb.gmra.mxu3 %vm2589_vm1, %v10858_v16 }
 0xc95   : > { %v3912_v11 = vpop.f32.mrf.mxu2  ;;  %v3926_v12 = vpop.f32.mrf.mxu3 }
 0xc96   : > { %v3913_v5 = vadd.f32 %v3912_v11, %v10864_v17  ;;  %v3927_v21 = vadd.f32 %v3926_v12, %v10864_v17  ;;  %v10112_v11 = vld [vmem:[%s10899_s9 + $0x168] sm:$0xff]  ;;  %v10111_v12 = vld [vmem:[%s10899_s9 + $0x160] sm:$0xff] }
 0xc98   : > { %v3935_v25 = vmul.f32 0.01, %v3913_v5  ;;  %v3936_v26 = vmul.f32 0.01, %v3927_v21  ;;  %vm3931_vm13 = vcmp.ge.f32.partialorder %v3913_v5, 0.0  ;;  %vm3932_vm14 = vcmp.ge.f32.partialorder %v3927_v21, 0.0 }
 0xc9a   : > { %v3939_v31 = vsel %vm3931_vm13, %v3913_v5, %v3935_v25  ;;  %v3940_v32 = vsel %vm3932_vm14, %v3927_v21, %v3936_v26  ;;  %v10102_v5 = vld [vmem:[%s10899_s9 + $0x118] sm:$0xff] }
 0xc9b   : > { %v10106_v21 = vld [vmem:[%s10899_s9 + $0x138] sm:$0xff] }
 0xc9c   : > { %v10110_v25 = vld [vmem:[%s10899_s9 + $0x158] sm:$0xff] }
 0xc9d   : > { %v3914_v23 = vpop.f32.mrf.mxu2  ;;  %v3928_v24 = vpop.f32.mrf.mxu3  ;;  %v10114_v26 = vld [vmem:[%s10899_s9 + $0x178] sm:$0xff] }
 0xc9e   : > { %v3915_v27 = vadd.f32 %v3914_v23, %v10868_v22  ;;  %v3929_v28 = vadd.f32 %v3928_v24, %v10868_v22  ;;  %v10101_v23 = vld [vmem:[%s10899_s9 + $0x110] sm:$0xff] }
 0xc9f   : > { %v10105_v24 = vld [vmem:[%s10899_s9 + $0x130] sm:$0xff] }
 0xca0   : > { %vm3933_vm15 = vcmp.ge.f32.partialorder %v3915_v27, 0.0  ;;  %v3937_v29 = vmul.f32 0.01, %v3915_v27  ;;  %vm3934_vm2 = vcmp.ge.f32.partialorder %v3929_v28, 0.0  ;;  %v3938_v30 = vmul.f32 0.01, %v3929_v28 }
 0xca2   : > { %v3941_v33 = vsel %vm3933_vm15, %v3915_v27, %v3937_v29  ;;  %v3942_v34 = vsel %vm3934_vm2, %v3929_v28, %v3938_v30  ;;  %v10109_v28 = vld [vmem:[%s10899_s9 + $0x150] sm:$0xff] }
 0xca3   : > { %v3943_v35 = vpack.c.bf16 %v3941_v33, %v3939_v31  ;;  %v3944_v36 = vpack.c.bf16 %v3942_v34, %v3940_v32  ;;  %v10113_v29 = vld [vmem:[%s10899_s9 + $0x170] sm:$0xff] }
 0xca5   : > { %3952 = vmatpush.bf16.msra.mxu0 %v3943_v35  ;;  %3965 = vmatpush.bf16.msra.mxu1 %v3944_v36 }
 0xca8   : > { %9121 = vmatmul.msk.bf16.vlgmr.msra.gmra.mxu0 %vm2647_vm6, %v10875_v38  ;;  %9122 = vmatmul.msk.bf16.vlgmr.msra.gmra.mxu1 %vm2647_vm6, %v10875_v38 }
 0xca9   : > { %4044 = vmatpush.bf16.msrb.mxu0 %v10100_v53  ;;  %4082 = vmatpush.bf16.msrb.mxu1 %v10102_v5 }
 0xcad   : > { %4045 = vmatpush.bf16.msrb.mxu0 %v10099_v54  ;;  %4083 = vmatpush.bf16.msrb.mxu1 %v10101_v23 }
 0xcb1   : > { %4187 = vmatpush.bf16.msra.mxu0 %v10108_v56  ;;  %4222 = vmatpush.bf16.msra.mxu1 %v10110_v25 }
 0xcb5   : > { %4188 = vmatpush.bf16.msra.mxu0 %v10107_v57  ;;  %4223 = vmatpush.bf16.msra.mxu1 %v10109_v28 }
 0xd25   : > { %v3954_v37 = vpop.f32.mrf.mxu0  ;;  %v3967_v40 = vpop.f32.mrf.mxu1 }
 0xd26   : > { %v3955_v41 = vadd.f32 %v3954_v37, %v10881_v39  ;;  %v3968_v42 = vadd.f32 %v3967_v40, %v10881_v39 }
 0xd28   : > { %vm3971_vm3 = vcmp.ge.f32.partialorder %v3955_v41, 0.0  ;;  %v3973_v43 = vmul.f32 0.01, %v3955_v41  ;;  %vm3972_vm4 = vcmp.ge.f32.partialorder %v3968_v42, 0.0  ;;  %v3974_v44 = vmul.f32 0.01, %v3968_v42 }
 0xd2a   : > { %v3975_v45 = vsel %vm3971_vm3, %v3955_v41, %v3973_v43  ;;  %v3976_v46 = vsel %vm3972_vm4, %v3968_v42, %v3974_v44 }
 0xd2b   : > { %v3977_v47 = vpack.c.bf16 %v3975_v45, %v3975_v45  ;;  %v3978_v48 = vpack.c.bf16 %v3976_v46, %v3976_v46 }
 0xd2d   : > { %v3956_v49 = vpop.f32.mrf.mxu0  ;;  %v3969_v50 = vpop.f32.mrf.mxu1  ;;  %v3980_v51 = vsel %vm2593_vm0, %v3977_v47, 0  ;;  %v3983_v52 = vsel %vm2593_vm0, %v3978_v48, 0 }
 0xd2e   : > { %3992 = vmatpush.bf16.msra.mxu2 %v3980_v51  ;;  %4005 = vmatpush.bf16.msra.mxu3 %v3983_v52 }
 0xd31   : > { %9123 = vmatmul.msk.bf16.vlgmr.msra.gmra.mxu2 %vm2589_vm1, %v10890_v55  ;;  %9124 = vmatmul.msk.bf16.vlgmr.msra.gmra.mxu3 %vm2589_vm1, %v10890_v55 }
 0xd32   : > { %4117 = vmatpush.bf16.msrb.mxu2 %v10104_v58  ;;  %4152 = vmatpush.bf16.msrb.mxu3 %v10106_v21 }
 0xd36   : > { %4118 = vmatpush.bf16.msrb.mxu2 %v10103_v59  ;;  %4153 = vmatpush.bf16.msrb.mxu3 %v10105_v24 }
 0xd3a   : > { %4257 = vmatpush.bf16.msra.mxu2 %v10112_v11  ;;  %4292 = vmatpush.bf16.msra.mxu3 %v10114_v26 }
 0xd3e   : > { %4258 = vmatpush.bf16.msra.mxu2 %v10111_v12  ;;  %4293 = vmatpush.bf16.msra.mxu3 %v10113_v29 }
 0xdb4   : > { %v3994_v60 = vpop.f32.mrf.mxu2  ;;  %v4007_v61 = vpop.f32.mrf.mxu3 }
 0xdb5   : > { %v3995_v63 = vadd.f32 %v3994_v60, %v10907_v62  ;;  %v4008_v0 = vadd.f32 %v4007_v61, %v10907_v62 }
 0xdb7   : > { %vm4011_vm9 = vcmp.ge.f32.partialorder %v3995_v63, 0.0  ;;  %v4013_v1 = vmul.f32 0.01, %v3995_v63  ;;  %vm4012_vm10 = vcmp.ge.f32.partialorder %v4008_v0, 0.0  ;;  %v4014_v2 = vmul.f32 0.01, %v4008_v0 }
 0xdb9   : > { %v4015_v3 = vsel %vm4011_vm9, %v3995_v63, %v4013_v1  ;;  %v4016_v6 = vsel %vm4012_vm10, %v4008_v0, %v4014_v2 }
 0xdba   : > { %v4017_v7 = vpack.c.bf16 %v4016_v6, %v4015_v3 }
 0xdbc   : > { %v3996_v8 = vpop.f32.mrf.mxu2  ;;  %v4009_v9 = vpop.f32.mrf.mxu3  ;;  %9137 = vmatmul.msk.bf16.vlgmr.msrb.gmra.mxu0 %vm2899_vm5, %v4017_v7  ;;  %v4057_v18 = vunpack.c.l.b16 %v4017_v7  ;;  %v4164_v20 = vunpack.c.h.b16 %v4017_v7 }
 0xdbe   : > { %v4058_v19 = vpack.c.b16 %v4057_v18, %v4057_v18  ;;  %v4165_v4 = vpack.c.b16 %v4164_v20, %v4164_v20 }
 0xdc0   : > { %4059 = vrot.lane.b32.xlu1 %v4058_v19, %s10433_s10  ;;  %4129 = vrot.lane.b32.xlu0 %v4058_v19, %s10434_s11 }
 0xdc1   : > { %4094 = vrot.lane.b32.xlu2 %v4058_v19, %s10435_s12 }
 0xdc8   : > { %4199 = vrot.lane.b32.xlu1 %v4165_v4, %s10433_s10  ;;  %4269 = vrot.lane.b32.xlu0 %v4165_v4, %s10434_s11 }
 0xdc9   : > { %4234 = vrot.lane.b32.xlu2 %v4165_v4, %s10435_s12 }
 0xdcc   : > { %9189 = vmatmul.msk.bf16.vlgmr.msra.gmra.mxu0 %vm2899_vm5, %v4165_v4 }
 0xe1b   : > { %v4095_v27 = vpop.permute.xlu2 %4094 }
 0xe1c   : > { %9163 = vmatmul.msk.bf16.vlgmr.msrb.gmra.mxu2 %vm2899_vm5, %v4095_v27 }
 0xe23   : > { %v4235_v30 = vpop.permute.xlu2 %4234 }
 0xe2c   : > { %9215 = vmatmul.msk.bf16.vlgmr.msra.gmra.mxu2 %vm2899_vm5, %v4235_v30 }
 0xe32   : > { %v4060_v31 = vpop.permute.xlu1 %4059  ;;  %v4130_v32 = vpop.permute.xlu0 %4129 }
 0xe33   : > { %9150 = vmatmul.msk.bf16.vlgmr.msrb.gmra.mxu1 %vm2899_vm5, %v4060_v31  ;;  %9176 = vmatmul.msk.bf16.vlgmr.msrb.gmra.mxu3 %vm2899_vm5, %v4130_v32 }
 0xe39   : > { %v4047_v33 = vpop.f32.mrf.mxu0 }
 0xe3a   : > { %v4200_v35 = vpop.permute.xlu1 %4199  ;;  %v4270_v36 = vpop.permute.xlu0 %4269 }
 0xe41   : > { %v4049_v34 = vpop.f32.mrf.mxu0 }
 0xe43   : > { %9202 = vmatmul.msk.bf16.vlgmr.msra.gmra.mxu1 %vm2899_vm5, %v4200_v35  ;;  %9228 = vmatmul.msk.bf16.vlgmr.msra.gmra.mxu3 %vm2899_vm5, %v4270_v36 }
 0xe49   : > { %v4190_v37 = vpop.f32.mrf.mxu0 }
 0xe51   : > { %v4192_v40 = vpop.f32.mrf.mxu0 }
 0xe9f   : > { %v4120_v41 = vpop.f32.mrf.mxu2 }
 0xea7   : > { %v4122_v42 = vpop.f32.mrf.mxu2 }
 0xeaf   : > { %v4260_v43 = vpop.f32.mrf.mxu2 }
 0xeb0   : > { %v10293_v44 = vpack.i.bf16 %v4260_v43, %v4120_v41  ;;  %v4085_v45 = vpop.f32.mrf.mxu1 }
 0xeb2   : > { %10294 = vrot.lane.b32.xlu0 %v10293_v44, %s10435_s12 }
 0xeb6   : > { %v4155_v46 = vpop.f32.mrf.mxu3 }
 0xeb7   : > { %v4262_v47 = vpop.f32.mrf.mxu2 }
 0xeb8   : > { %v4087_v48 = vpop.f32.mrf.mxu1 }
 0xebe   : > { %v4157_v49 = vpop.f32.mrf.mxu3 }
 0xec0   : > { %v4225_v50 = vpop.f32.mrf.mxu1 }
 0xec1   : > { %v10288_v51 = vpack.i.bf16 %v4225_v50, %v4085_v45 }
 0xec3   : > { %10289 = vrot.lane.b32.xlu2 %v10288_v51, %s10434_s11 }
 0xec6   : > { %v4295_v52 = vpop.f32.mrf.mxu3 }
 0xec7   : > { %v10298_v53 = vpack.i.bf16 %v4295_v52, %v4155_v46 }
 0xec8   : > { %v4227_v54 = vpop.f32.mrf.mxu1 }
 0xec9   : > { %10299 = vrot.lane.b32.xlu1 %v10298_v53, %s10433_s10  ;;  %v9235_v54 = vld [vmem:[%s10968_s14 + $0x2] ss:$8 sm:$0x3] }
 0xece   : > { %v4297_v56 = vpop.f32.mrf.mxu3 }
 0xf1d   : > { %v10290_v57 = vpop.permute.xlu2 %10289 }
 0xf1e   : > { %v10292_v59 = vunpack.i.h.bf16 %v10290_v57  ;;  %v10291_v60 = vunpack.i.l.bf16 %v10290_v57 }
 0xf20   : > { %v4323_v1 = vsel %vm2899_vm5, %v4047_v33, %v10291_v60  ;;  %v4326_v2 = vsel %vm2899_vm5, %v4190_v37, %v10292_v59  ;;  %v4454_v60 = vperm.slane %v9235_v54, 0 }
 0xf24   : > { %v10295_v58 = vpop.permute.xlu0 %10294 }
 0xf25   : > { %v10297_v61 = vunpack.i.h.bf16 %v10295_v58  ;;  %v10296_v63 = vunpack.i.l.bf16 %v10295_v58 }
 0xf27   : > { %v4324_v7 = vsel %vm3189_vm7, %v4323_v1, %v10296_v63  ;;  %v4327_v8 = vsel %vm3189_vm7, %v4326_v2, %v10297_v61  ;;  %v4455_v61 = vperm.slane %v9235_v54, 1  ;;  %v10124_v54 = vld [vmem:[%s10899_s9 + $0x1c8] sm:$0xff] }
 0xf3b   : > { %v10300_v0 = vpop.permute.xlu1 %10299 }
 0xf3c   : > { %v10302_v3 = vunpack.i.h.bf16 %v10300_v0  ;;  %v10301_v6 = vunpack.i.l.bf16 %v10300_v0 }
 0xf3e   : > { %v4325_v9 = vsel %vm3191_vm8, %v4324_v7, %v10301_v6  ;;  %v4328_v18 = vsel %vm3191_vm8, %v4327_v8, %v10302_v3 }
 0xf3f   : > { %v4329_v19 = vpack.c.bf16 %v4325_v9, %v4325_v9  ;;  %v4330_v20 = vpack.c.bf16 %v4328_v18, %v4328_v18 }
 0xf41   : > { %v4332_v4 = vsel %vm2593_vm0, %v4329_v19, 0  ;;  %v4335_v11 = vsel %vm2593_vm0, %v4330_v20, 0 }
 0xf42   : > { %4344 = vmatpush.bf16.msrb.mxu0 %v4332_v4  ;;  %4358 = vmatpush.bf16.msrb.mxu1 %v4335_v11 }
 0xf45   : > { %9229 = vmatmul.msk.bf16.vlgmr.msrb.gmra.mxu0 %vm2589_vm1, %v10858_v16  ;;  %9230 = vmatmul.msk.bf16.vlgmr.msrb.gmra.mxu1 %vm2589_vm1, %v10858_v16 }
 0xfc2   : > { %v4346_v12 = vpop.f32.mrf.mxu0  ;;  %v4360_v5 = vpop.f32.mrf.mxu1 }
 0xfc3   : > { %v4347_v21 = vadd.f32 %v4346_v12, %v10864_v17  ;;  %v4361_v23 = vadd.f32 %v4360_v5, %v10864_v17 }
 0xfc5   : > { %v4369_v26 = vmul.f32 0.01, %v4347_v21  ;;  %v4370_v27 = vmul.f32 0.01, %v4361_v23  ;;  %vm4365_vm11 = vcmp.ge.f32.partialorder %v4347_v21, 0.0  ;;  %vm4366_vm12 = vcmp.ge.f32.partialorder %v4361_v23, 0.0 }
 0xfc7   : > { %v4373_v32 = vsel %vm4365_vm11, %v4347_v21, %v4369_v26  ;;  %v4374_v33 = vsel %vm4366_vm12, %v4361_v23, %v4370_v27 }
 0xfca   : > { %v4348_v24 = vpop.f32.mrf.mxu0  ;;  %v4362_v25 = vpop.f32.mrf.mxu1 }
 0xfcb   : > { %v4349_v28 = vadd.f32 %v4348_v24, %v10868_v22  ;;  %v4363_v29 = vadd.f32 %v4362_v25, %v10868_v22 }
 0xfcd   : > { %vm4367_vm13 = vcmp.ge.f32.partialorder %v4349_v28, 0.0  ;;  %v4371_v30 = vmul.f32 0.01, %v4349_v28  ;;  %vm4368_vm14 = vcmp.ge.f32.partialorder %v4363_v29, 0.0  ;;  %v4372_v31 = vmul.f32 0.01, %v4363_v29 }
 0xfcf   : > { %v4375_v34 = vsel %vm4367_vm13, %v4349_v28, %v4371_v30  ;;  %v4376_v35 = vsel %vm4368_vm14, %v4363_v29, %v4372_v31 }
 0xfd0   : > { %v4377_v36 = vpack.c.bf16 %v4375_v34, %v4373_v32  ;;  %v4378_v37 = vpack.c.bf16 %v4376_v35, %v4374_v33 }
 0xfd2   : > { %4386 = vmatpush.bf16.msrb.mxu2 %v4377_v36  ;;  %4399 = vmatpush.bf16.msrb.mxu3 %v4378_v37 }
 0xfd5   : > { %9231 = vmatmul.msk.bf16.vlgmr.msrb.gmra.mxu2 %vm2647_vm6, %v10875_v38  ;;  %9232 = vmatmul.msk.bf16.vlgmr.msrb.gmra.mxu3 %vm2647_vm6, %v10875_v38 }
0x1058   : > { %v4388_v40 = vpop.f32.mrf.mxu2  ;;  %v4401_v41 = vpop.f32.mrf.mxu3 }
0x1059   : > { %v4389_v42 = vadd.f32 %v4388_v40, %v10881_v39  ;;  %v4402_v43 = vadd.f32 %v4401_v41, %v10881_v39 }
0x105b   : > { %vm4405_vm15 = vcmp.ge.f32.partialorder %v4389_v42, 0.0  ;;  %v4407_v44 = vmul.f32 0.01, %v4389_v42  ;;  %vm4406_vm2 = vcmp.ge.f32.partialorder %v4402_v43, 0.0  ;;  %v4408_v45 = vmul.f32 0.01, %v4402_v43 }
0x105d   : > { %v4409_v46 = vsel %vm4405_vm15, %v4389_v42, %v4407_v44  ;;  %v4410_v47 = vsel %vm4406_vm2, %v4402_v43, %v4408_v45 }
0x105e   : > { %v4411_v48 = vpack.c.bf16 %v4409_v46, %v4409_v46  ;;  %v4412_v49 = vpack.c.bf16 %v4410_v47, %v4410_v47 }
0x1060   : > { %v4390_v50 = vpop.f32.mrf.mxu2  ;;  %v4403_v51 = vpop.f32.mrf.mxu3  ;;  %v4414_v52 = vsel %vm2593_vm0, %v4411_v48, 0  ;;  %v4417_v53 = vsel %vm2593_vm0, %v4412_v49, 0 }
0x1061   : > { %4426 = vmatpush.bf16.msra.mxu0 %v4414_v52  ;;  %4439 = vmatpush.bf16.msra.mxu1 %v4417_v53  ;;  %v10116_v52 = vld [vmem:[%s10899_s9 + $0x188] sm:$0xff]  ;;  %v10115_v53 = vld [vmem:[%s10899_s9 + $0x180] sm:$0xff] }
0x1064   : > { %9233 = vmatmul.msk.bf16.vlgmr.msra.gmra.mxu0 %vm2589_vm1, %v10890_v55  ;;  %9234 = vmatmul.msk.bf16.vlgmr.msra.gmra.mxu1 %vm2589_vm1, %v10890_v55 }
0x10e1   : > { %v4428_v56 = vpop.f32.mrf.mxu0  ;;  %v4441_v57 = vpop.f32.mrf.mxu1 }
0x10e2   : > { %v4429_v58 = vadd.f32 %v4428_v56, %v10907_v62  ;;  %v4442_v59 = vadd.f32 %v4441_v57, %v10907_v62  ;;  %v10123_v56 = vld [vmem:[%s10899_s9 + $0x1c0] sm:$0xff]  ;;  %v10120_v57 = vld [vmem:[%s10899_s9 + $0x1a8] sm:$0xff] }
0x10e4   : > { %vm4445_vm3 = vcmp.ge.f32.partialorder %v4429_v58, 0.0  ;;  %v4447_v63 = vmul.f32 0.01, %v4429_v58  ;;  %vm4446_vm4 = vcmp.ge.f32.partialorder %v4442_v59, 0.0  ;;  %v4448_v0 = vmul.f32 0.01, %v4442_v59 }
0x10e6   : > { %v4449_v1 = vsel %vm4445_vm3, %v4429_v58, %v4447_v63  ;;  %v4450_v2 = vsel %vm4446_vm4, %v4442_v59, %v4448_v0  ;;  %v10119_v58 = vld [vmem:[%s10899_s9 + $0x1a0] sm:$0xff] }
0x10e7   : > { %v4458_v3 = vmul.f32 %v4454_v60, %v4449_v1  ;;  %v4459_v6 = vmul.f32 %v4455_v61, %v4450_v2 }
0x10e9   : > { %v4430_v7 = vpop.f32.mrf.mxu0  ;;  %v4443_v8 = vpop.f32.mrf.mxu1  ;;  %v11170_v9 = vadd.f32 %v4458_v3, %v11072_v10  ;;  %v11173_v18 = vadd.f32 %v4459_v6, %v11075_v15 }
0x10eb   : > { %v4462_v19 = vpack.c.bf16 %v11170_v9, %v11170_v9  ;;  %v4463_v20 = vpack.c.bf16 %v11173_v18, %v11173_v18 }
0x10ed   : > { %v4465_v4 = vsel %vm2593_vm0, %v4462_v19, 0  ;;  %v4468_v11 = vsel %vm2593_vm0, %v4463_v20, 0 }
0x10ee   : > { %4477 = vmatpush.bf16.msra.mxu2 %v4465_v4  ;;  %4491 = vmatpush.bf16.msra.mxu3 %v4468_v11 }
0x10f1   : > { %9236 = vmatmul.msk.bf16.vlgmr.msra.gmra.mxu2 %vm2589_vm1, %v10858_v16  ;;  %9237 = vmatmul.msk.bf16.vlgmr.msra.gmra.mxu3 %vm2589_vm1, %v10858_v16 }
0x1174   : > { %v4479_v10 = vpop.f32.mrf.mxu2  ;;  %v4493_v15 = vpop.f32.mrf.mxu3 }
0x1175   : > { %v4480_v12 = vadd.f32 %v4479_v10, %v10864_v17  ;;  %v4494_v5 = vadd.f32 %v4493_v15, %v10864_v17  ;;  %v10128_v10 = vld [vmem:[%s10899_s9 + $0x1e8] sm:$0xff]  ;;  %v10127_v15 = vld [vmem:[%s10899_s9 + $0x1e0] sm:$0xff] }
0x1177   : > { %v4502_v24 = vmul.f32 0.01, %v4480_v12  ;;  %v4503_v25 = vmul.f32 0.01, %v4494_v5  ;;  %vm4498_vm9 = vcmp.ge.f32.partialorder %v4480_v12, 0.0  ;;  %vm4499_vm10 = vcmp.ge.f32.partialorder %v4494_v5, 0.0 }
0x1179   : > { %v4506_v30 = vsel %vm4498_vm9, %v4480_v12, %v4502_v24  ;;  %v4507_v31 = vsel %vm4499_vm10, %v4494_v5, %v4503_v25  ;;  %v10118_v12 = vld [vmem:[%s10899_s9 + $0x198] sm:$0xff] }
0x117a   : > { %v10122_v5 = vld [vmem:[%s10899_s9 + $0x1b8] sm:$0xff] }
0x117b   : > { %v10126_v24 = vld [vmem:[%s10899_s9 + $0x1d8] sm:$0xff] }
0x117c   : > { %v4481_v21 = vpop.f32.mrf.mxu2  ;;  %v4495_v23 = vpop.f32.mrf.mxu3  ;;  %v10130_v25 = vld [vmem:[%s10899_s9 + $0x1f8] sm:$0xff] }
0x117d   : > { %v4482_v26 = vadd.f32 %v4481_v21, %v10868_v22  ;;  %v4496_v27 = vadd.f32 %v4495_v23, %v10868_v22  ;;  %v10117_v21 = vld [vmem:[%s10899_s9 + $0x190] sm:$0xff] }
0x117e   : > { %v10121_v23 = vld [vmem:[%s10899_s9 + $0x1b0] sm:$0xff] }
0x117f   : > { %vm4500_vm11 = vcmp.ge.f32.partialorder %v4482_v26, 0.0  ;;  %v4504_v28 = vmul.f32 0.01, %v4482_v26  ;;  %vm4501_vm12 = vcmp.ge.f32.partialorder %v4496_v27, 0.0  ;;  %v4505_v29 = vmul.f32 0.01, %v4496_v27 }
0x1181   : > { %v4508_v32 = vsel %vm4500_vm11, %v4482_v26, %v4504_v28  ;;  %v4509_v33 = vsel %vm4501_vm12, %v4496_v27, %v4505_v29  ;;  %v10125_v27 = vld [vmem:[%s10899_s9 + $0x1d0] sm:$0xff] }
0x1182   : > { %v4510_v34 = vpack.c.bf16 %v4508_v32, %v4506_v30  ;;  %v4511_v35 = vpack.c.bf16 %v4509_v33, %v4507_v31  ;;  %v10129_v28 = vld [vmem:[%s10899_s9 + $0x1f0] sm:$0xff] }
0x1184   : > { %4519 = vmatpush.bf16.msrb.mxu0 %v4510_v34  ;;  %4532 = vmatpush.bf16.msrb.mxu1 %v4511_v35 }
0x1187   : > { %9238 = vmatmul.msk.bf16.vlgmr.msrb.gmra.mxu0 %vm2647_vm6, %v10875_v38  ;;  %9239 = vmatmul.msk.bf16.vlgmr.msrb.gmra.mxu1 %vm2647_vm6, %v10875_v38 }
0x1188   : > { %4611 = vmatpush.bf16.msra.mxu0 %v10116_v52  ;;  %4649 = vmatpush.bf16.msra.mxu1 %v10118_v12 }
0x118c   : > { %4612 = vmatpush.bf16.msra.mxu0 %v10115_v53  ;;  %4650 = vmatpush.bf16.msra.mxu1 %v10117_v21 }
0x1190   : > { %4754 = vmatpush.bf16.msrb.mxu0 %v10124_v54  ;;  %4789 = vmatpush.bf16.msrb.mxu1 %v10126_v24 }
0x1194   : > { %4755 = vmatpush.bf16.msrb.mxu0 %v10123_v56  ;;  %4790 = vmatpush.bf16.msrb.mxu1 %v10125_v27 }
0x1204   : > { %v4521_v36 = vpop.f32.mrf.mxu0  ;;  %v4534_v37 = vpop.f32.mrf.mxu1 }
0x1205   : > { %v4522_v40 = vadd.f32 %v4521_v36, %v10881_v39  ;;  %v4535_v41 = vadd.f32 %v4534_v37, %v10881_v39 }
0x1207   : > { %vm4538_vm13 = vcmp.ge.f32.partialorder %v4522_v40, 0.0  ;;  %v4540_v42 = vmul.f32 0.01, %v4522_v40  ;;  %vm4539_vm14 = vcmp.ge.f32.partialorder %v4535_v41, 0.0  ;;  %v4541_v43 = vmul.f32 0.01, %v4535_v41 }
0x1209   : > { %v4542_v44 = vsel %vm4538_vm13, %v4522_v40, %v4540_v42  ;;  %v4543_v45 = vsel %vm4539_vm14, %v4535_v41, %v4541_v43 }
0x120a   : > { %v4544_v46 = vpack.c.bf16 %v4542_v44, %v4542_v44  ;;  %v4545_v47 = vpack.c.bf16 %v4543_v45, %v4543_v45 }
0x120c   : > { %v4523_v48 = vpop.f32.mrf.mxu0  ;;  %v4536_v49 = vpop.f32.mrf.mxu1  ;;  %v4547_v50 = vsel %vm2593_vm0, %v4544_v46, 0  ;;  %v4550_v51 = vsel %vm2593_vm0, %v4545_v47, 0 }
0x120d   : > { %4559 = vmatpush.bf16.msrb.mxu2 %v4547_v50  ;;  %4572 = vmatpush.bf16.msrb.mxu3 %v4550_v51 }
0x1210   : > { %9240 = vmatmul.msk.bf16.vlgmr.msrb.gmra.mxu2 %vm2589_vm1, %v10890_v55  ;;  %9241 = vmatmul.msk.bf16.vlgmr.msrb.gmra.mxu3 %vm2589_vm1, %v10890_v55 }
0x1211   : > { %4684 = vmatpush.bf16.msra.mxu2 %v10120_v57  ;;  %4719 = vmatpush.bf16.msra.mxu3 %v10122_v5 }
0x1215   : > { %4685 = vmatpush.bf16.msra.mxu2 %v10119_v58  ;;  %4720 = vmatpush.bf16.msra.mxu3 %v10121_v23 }
0x1219   : > { %4824 = vmatpush.bf16.msrb.mxu2 %v10128_v10  ;;  %4859 = vmatpush.bf16.msrb.mxu3 %v10130_v25 }
0x121d   : > { %4825 = vmatpush.bf16.msrb.mxu2 %v10127_v15  ;;  %4860 = vmatpush.bf16.msrb.mxu3 %v10129_v28 }
0x1293   : > { %v4561_v59 = vpop.f32.mrf.mxu2  ;;  %v4574_v60 = vpop.f32.mrf.mxu3 }
0x1294   : > { %v4562_v61 = vadd.f32 %v4561_v59, %v10907_v62  ;;  %v4575_v63 = vadd.f32 %v4574_v60, %v10907_v62 }
0x1296   : > { %vm4578_vm15 = vcmp.ge.f32.partialorder %v4562_v61, 0.0  ;;  %v4580_v0 = vmul.f32 0.01, %v4562_v61  ;;  %vm4579_vm2 = vcmp.ge.f32.partialorder %v4575_v63, 0.0  ;;  %v4581_v1 = vmul.f32 0.01, %v4575_v63 }
0x1298   : > { %v4582_v2 = vsel %vm4578_vm15, %v4562_v61, %v4580_v0  ;;  %v4583_v3 = vsel %vm4579_vm2, %v4575_v63, %v4581_v1 }
0x1299   : > { %v4584_v6 = vpack.c.bf16 %v4583_v3, %v4582_v2 }
0x129b   : > { %v4563_v7 = vpop.f32.mrf.mxu2  ;;  %v4576_v8 = vpop.f32.mrf.mxu3  ;;  %9254 = vmatmul.msk.bf16.vlgmr.msra.gmra.mxu0 %vm2899_vm5, %v4584_v6  ;;  %v4624_v19 = vunpack.c.l.b16 %v4584_v6  ;;  %v4731_v4 = vunpack.c.h.b16 %v4584_v6 }
0x129d   : > { %v4625_v20 = vpack.c.b16 %v4624_v19, %v4624_v19  ;;  %v4732_v11 = vpack.c.b16 %v4731_v4, %v4731_v4 }
0x129f   : > { %4626 = vrot.lane.b32.xlu1 %v4625_v20, %s10433_s10  ;;  %4696 = vrot.lane.b32.xlu0 %v4625_v20, %s10434_s11 }
0x12a0   : > { %4661 = vrot.lane.b32.xlu2 %v4625_v20, %s10435_s12 }
0x12a7   : > { %4766 = vrot.lane.b32.xlu1 %v4732_v11, %s10433_s10  ;;  %4836 = vrot.lane.b32.xlu0 %v4732_v11, %s10434_s11 }
0x12a8   : > { %4801 = vrot.lane.b32.xlu2 %v4732_v11, %s10435_s12 }
0x12ab   : > { %9306 = vmatmul.msk.bf16.vlgmr.msrb.gmra.mxu0 %vm2899_vm5, %v4732_v11 }
0x12fa   : > { %v4662_v26 = vpop.permute.xlu2 %4661 }
0x12fb   : > { %9280 = vmatmul.msk.bf16.vlgmr.msra.gmra.mxu2 %vm2899_vm5, %v4662_v26 }
0x1302   : > { %v4802_v29 = vpop.permute.xlu2 %4801 }
0x130b   : > { %9332 = vmatmul.msk.bf16.vlgmr.msrb.gmra.mxu2 %vm2899_vm5, %v4802_v29 }
0x1311   : > { %v4627_v30 = vpop.permute.xlu1 %4626  ;;  %v4697_v31 = vpop.permute.xlu0 %4696 }
0x1312   : > { %9267 = vmatmul.msk.bf16.vlgmr.msra.gmra.mxu1 %vm2899_vm5, %v4627_v30  ;;  %9293 = vmatmul.msk.bf16.vlgmr.msra.gmra.mxu3 %vm2899_vm5, %v4697_v31 }
0x1318   : > { %v4614_v32 = vpop.f32.mrf.mxu0 }
0x1319   : > { %v4767_v34 = vpop.permute.xlu1 %4766  ;;  %v4837_v35 = vpop.permute.xlu0 %4836 }
0x1320   : > { %v4616_v33 = vpop.f32.mrf.mxu0 }
0x1322   : > { %9319 = vmatmul.msk.bf16.vlgmr.msrb.gmra.mxu1 %vm2899_vm5, %v4767_v34  ;;  %9345 = vmatmul.msk.bf16.vlgmr.msrb.gmra.mxu3 %vm2899_vm5, %v4837_v35 }
0x1328   : > { %v4757_v36 = vpop.f32.mrf.mxu0 }
0x1330   : > { %v4759_v37 = vpop.f32.mrf.mxu0 }
0x137e   : > { %v4687_v40 = vpop.f32.mrf.mxu2 }
0x1386   : > { %v4689_v41 = vpop.f32.mrf.mxu2 }
0x138e   : > { %v4827_v42 = vpop.f32.mrf.mxu2 }
0x138f   : > { %v10308_v43 = vpack.i.bf16 %v4827_v42, %v4687_v40  ;;  %v4652_v44 = vpop.f32.mrf.mxu1 }
0x1391   : > { %10309 = vrot.lane.b32.xlu0 %v10308_v43, %s10435_s12 }
0x1395   : > { %v4722_v45 = vpop.f32.mrf.mxu3 }
0x1396   : > { %v4829_v46 = vpop.f32.mrf.mxu2 }
0x1397   : > { %v4654_v47 = vpop.f32.mrf.mxu1 }
0x139d   : > { %v4724_v48 = vpop.f32.mrf.mxu3 }
0x139f   : > { %v4792_v49 = vpop.f32.mrf.mxu1 }
0x13a0   : > { %v10303_v50 = vpack.i.bf16 %v4792_v49, %v4652_v44 }
0x13a2   : > { %10304 = vrot.lane.b32.xlu2 %v10303_v50, %s10434_s11 }
0x13a5   : > { %v4862_v51 = vpop.f32.mrf.mxu3 }
0x13a6   : > { %v10313_v52 = vpack.i.bf16 %v4862_v51, %v4722_v45 }
0x13a7   : > { %v4794_v53 = vpop.f32.mrf.mxu1 }
0x13a8   : > { %10314 = vrot.lane.b32.xlu1 %v10313_v52, %s10433_s10  ;;  %v9352_v53 = vld [vmem:[%s10968_s14 + $0x3] ss:$8 sm:$0x3] }
0x13ad   : > { %v4864_v54 = vpop.f32.mrf.mxu3 }
0x13fc   : > { %v10305_v56 = vpop.permute.xlu2 %10304 }
0x13fd   : > { %v10307_v58 = vunpack.i.h.bf16 %v10305_v56  ;;  %v10306_v59 = vunpack.i.l.bf16 %v10305_v56 }
0x13ff   : > { %v4890_v0 = vsel %vm2899_vm5, %v4614_v32, %v10306_v59  ;;  %v4893_v1 = vsel %vm2899_vm5, %v4757_v36, %v10307_v58  ;;  %v5021_v59 = vperm.slane %v9352_v53, 0 }
0x1403   : > { %v10310_v57 = vpop.permute.xlu0 %10309 }
0x1404   : > { %v10312_v60 = vunpack.i.h.bf16 %v10310_v57  ;;  %v10311_v61 = vunpack.i.l.bf16 %v10310_v57 }
0x1406   : > { %v4891_v6 = vsel %vm3189_vm7, %v4890_v0, %v10311_v61  ;;  %v4894_v7 = vsel %vm3189_vm7, %v4893_v1, %v10312_v60  ;;  %v5022_v60 = vperm.slane %v9352_v53, 1  ;;  %v10140_v53 = vld [vmem:[%s10899_s9 + $0x248] sm:$0xff] }
0x141a   : > { %v10315_v63 = vpop.permute.xlu1 %10314 }
0x141b   : > { %v10317_v2 = vunpack.i.h.bf16 %v10315_v63  ;;  %v10316_v3 = vunpack.i.l.bf16 %v10315_v63 }
0x141d   : > { %v4892_v8 = vsel %vm3191_vm8, %v4891_v6, %v10316_v3  ;;  %v4895_v19 = vsel %vm3191_vm8, %v4894_v7, %v10317_v2 }
0x141e   : > { %v4896_v20 = vpack.c.bf16 %v4892_v8, %v4892_v8  ;;  %v4897_v4 = vpack.c.bf16 %v4895_v19, %v4895_v19 }
0x1420   : > { %v4899_v11 = vsel %vm2593_vm0, %v4896_v20, 0  ;;  %v4902_v10 = vsel %vm2593_vm0, %v4897_v4, 0 }
0x1421   : > { %4911 = vmatpush.bf16.msra.mxu0 %v4899_v11  ;;  %4925 = vmatpush.bf16.msra.mxu1 %v4902_v10 }
0x1424   : > { %9346 = vmatmul.msk.bf16.vlgmr.msra.gmra.mxu0 %vm2589_vm1, %v10858_v16  ;;  %9347 = vmatmul.msk.bf16.vlgmr.msra.gmra.mxu1 %vm2589_vm1, %v10858_v16 }
0x14a1   : > { %v4913_v15 = vpop.f32.mrf.mxu0  ;;  %v4927_v12 = vpop.f32.mrf.mxu1 }
0x14a2   : > { %v4914_v5 = vadd.f32 %v4913_v15, %v10864_v17  ;;  %v4928_v21 = vadd.f32 %v4927_v12, %v10864_v17 }
0x14a4   : > { %v4936_v25 = vmul.f32 0.01, %v4914_v5  ;;  %v4937_v26 = vmul.f32 0.01, %v4928_v21  ;;  %vm4932_vm3 = vcmp.ge.f32.partialorder %v4914_v5, 0.0  ;;  %vm4933_vm4 = vcmp.ge.f32.partialorder %v4928_v21, 0.0 }
0x14a6   : > { %v4940_v31 = vsel %vm4932_vm3, %v4914_v5, %v4936_v25  ;;  %v4941_v32 = vsel %vm4933_vm4, %v4928_v21, %v4937_v26 }
0x14a9   : > { %v4915_v23 = vpop.f32.mrf.mxu0  ;;  %v4929_v24 = vpop.f32.mrf.mxu1 }
0x14aa   : > { %v4916_v27 = vadd.f32 %v4915_v23, %v10868_v22  ;;  %v4930_v28 = vadd.f32 %v4929_v24, %v10868_v22 }
0x14ac   : > { %vm4934_vm9 = vcmp.ge.f32.partialorder %v4916_v27, 0.0  ;;  %v4938_v29 = vmul.f32 0.01, %v4916_v27  ;;  %vm4935_vm10 = vcmp.ge.f32.partialorder %v4930_v28, 0.0  ;;  %v4939_v30 = vmul.f32 0.01, %v4930_v28 }
0x14ae   : > { %v4942_v33 = vsel %vm4934_vm9, %v4916_v27, %v4938_v29  ;;  %v4943_v34 = vsel %vm4935_vm10, %v4930_v28, %v4939_v30 }
0x14af   : > { %v4944_v35 = vpack.c.bf16 %v4942_v33, %v4940_v31  ;;  %v4945_v36 = vpack.c.bf16 %v4943_v34, %v4941_v32 }
0x14b1   : > { %4953 = vmatpush.bf16.msra.mxu2 %v4944_v35  ;;  %4966 = vmatpush.bf16.msra.mxu3 %v4945_v36 }
0x14b4   : > { %9348 = vmatmul.msk.bf16.vlgmr.msra.gmra.mxu2 %vm2647_vm6, %v10875_v38  ;;  %9349 = vmatmul.msk.bf16.vlgmr.msra.gmra.mxu3 %vm2647_vm6, %v10875_v38 }
0x1537   : > { %v4955_v37 = vpop.f32.mrf.mxu2  ;;  %v4968_v40 = vpop.f32.mrf.mxu3 }
0x1538   : > { %v4956_v41 = vadd.f32 %v4955_v37, %v10881_v39  ;;  %v4969_v42 = vadd.f32 %v4968_v40, %v10881_v39 }
0x153a   : > { %vm4972_vm11 = vcmp.ge.f32.partialorder %v4956_v41, 0.0  ;;  %v4974_v43 = vmul.f32 0.01, %v4956_v41  ;;  %vm4973_vm12 = vcmp.ge.f32.partialorder %v4969_v42, 0.0  ;;  %v4975_v44 = vmul.f32 0.01, %v4969_v42 }
0x153c   : > { %v4976_v45 = vsel %vm4972_vm11, %v4956_v41, %v4974_v43  ;;  %v4977_v46 = vsel %vm4973_vm12, %v4969_v42, %v4975_v44 }
0x153d   : > { %v4978_v47 = vpack.c.bf16 %v4976_v45, %v4976_v45  ;;  %v4979_v48 = vpack.c.bf16 %v4977_v46, %v4977_v46 }
0x153f   : > { %v4957_v49 = vpop.f32.mrf.mxu2  ;;  %v4970_v50 = vpop.f32.mrf.mxu3  ;;  %v4981_v51 = vsel %vm2593_vm0, %v4978_v47, 0  ;;  %v4984_v52 = vsel %vm2593_vm0, %v4979_v48, 0 }
0x1540   : > { %4993 = vmatpush.bf16.msrb.mxu0 %v4981_v51  ;;  %5006 = vmatpush.bf16.msrb.mxu1 %v4984_v52  ;;  %v10132_v51 = vld [vmem:[%s10899_s9 + $0x208] sm:$0xff]  ;;  %v10131_v52 = vld [vmem:[%s10899_s9 + $0x200] sm:$0xff] }
0x1543   : > { %9350 = vmatmul.msk.bf16.vlgmr.msrb.gmra.mxu0 %vm2589_vm1, %v10890_v55  ;;  %9351 = vmatmul.msk.bf16.vlgmr.msrb.gmra.mxu1 %vm2589_vm1, %v10890_v55 }
0x15c0   : > { %v4995_v54 = vpop.f32.mrf.mxu0  ;;  %v5008_v56 = vpop.f32.mrf.mxu1 }
0x15c1   : > { %v4996_v57 = vadd.f32 %v4995_v54, %v10907_v62  ;;  %v5009_v58 = vadd.f32 %v5008_v56, %v10907_v62  ;;  %v10139_v54 = vld [vmem:[%s10899_s9 + $0x240] sm:$0xff]  ;;  %v10136_v56 = vld [vmem:[%s10899_s9 + $0x228] sm:$0xff] }
0x15c3   : > { %vm5012_vm13 = vcmp.ge.f32.partialorder %v4996_v57, 0.0  ;;  %v5014_v61 = vmul.f32 0.01, %v4996_v57  ;;  %vm5013_vm14 = vcmp.ge.f32.partialorder %v5009_v58, 0.0  ;;  %v5015_v63 = vmul.f32 0.01, %v5009_v58 }
0x15c5   : > { %v5016_v0 = vsel %vm5012_vm13, %v4996_v57, %v5014_v61  ;;  %v5017_v1 = vsel %vm5013_vm14, %v5009_v58, %v5015_v63  ;;  %v10135_v57 = vld [vmem:[%s10899_s9 + $0x220] sm:$0xff] }
0x15c6   : > { %v5025_v2 = vmul.f32 %v5021_v59, %v5016_v0  ;;  %v5026_v3 = vmul.f32 %v5022_v60, %v5017_v1 }
0x15c8   : > { %v4997_v6 = vpop.f32.mrf.mxu0  ;;  %v5010_v7 = vpop.f32.mrf.mxu1  ;;  %v11268_v8 = vadd.f32 %v5025_v2, %v11170_v9  ;;  %v11271_v19 = vadd.f32 %v5026_v3, %v11173_v18 }
0x15ca   : > { %v5029_v20 = vpack.c.bf16 %v11268_v8, %v11268_v8  ;;  %v5030_v4 = vpack.c.bf16 %v11271_v19, %v11271_v19 }
0x15cc   : > { %v5032_v11 = vsel %vm2593_vm0, %v5029_v20, 0  ;;  %v5035_v10 = vsel %vm2593_vm0, %v5030_v4, 0 }
0x15cd   : > { %5044 = vmatpush.bf16.msrb.mxu2 %v5032_v11  ;;  %5058 = vmatpush.bf16.msrb.mxu3 %v5035_v10 }
0x15d0   : > { %9353 = vmatmul.msk.bf16.vlgmr.msrb.gmra.mxu2 %vm2589_vm1, %v10858_v16  ;;  %9354 = vmatmul.msk.bf16.vlgmr.msrb.gmra.mxu3 %vm2589_vm1, %v10858_v16 }
0x1653   : > { %v5046_v9 = vpop.f32.mrf.mxu2  ;;  %v5060_v18 = vpop.f32.mrf.mxu3 }
0x1654   : > { %v5047_v15 = vadd.f32 %v5046_v9, %v10864_v17  ;;  %v5061_v12 = vadd.f32 %v5060_v18, %v10864_v17  ;;  %v10144_v9 = vld [vmem:[%s10899_s9 + $0x268] sm:$0xff]  ;;  %v10143_v18 = vld [vmem:[%s10899_s9 + $0x260] sm:$0xff] }
0x1656   : > { %v5069_v23 = vmul.f32 0.01, %v5047_v15  ;;  %v5070_v24 = vmul.f32 0.01, %v5061_v12  ;;  %vm5065_vm15 = vcmp.ge.f32.partialorder %v5047_v15, 0.0  ;;  %vm5066_vm2 = vcmp.ge.f32.partialorder %v5061_v12, 0.0 }
0x1658   : > { %v5073_v29 = vsel %vm5065_vm15, %v5047_v15, %v5069_v23  ;;  %v5074_v30 = vsel %vm5066_vm2, %v5061_v12, %v5070_v24  ;;  %v10134_v15 = vld [vmem:[%s10899_s9 + $0x218] sm:$0xff] }
0x1659   : > { %v10138_v12 = vld [vmem:[%s10899_s9 + $0x238] sm:$0xff] }
0x165a   : > { %v10142_v23 = vld [vmem:[%s10899_s9 + $0x258] sm:$0xff] }
0x165b   : > { %v5048_v5 = vpop.f32.mrf.mxu2  ;;  %v5062_v21 = vpop.f32.mrf.mxu3  ;;  %v10146_v24 = vld [vmem:[%s10899_s9 + $0x278] sm:$0xff] }
0x165c   : > { %v5049_v25 = vadd.f32 %v5048_v5, %v10868_v22  ;;  %v5063_v26 = vadd.f32 %v5062_v21, %v10868_v22  ;;  %v10133_v5 = vld [vmem:[%s10899_s9 + $0x210] sm:$0xff] }
0x165d   : > { %v10137_v21 = vld [vmem:[%s10899_s9 + $0x230] sm:$0xff] }
0x165e   : > { %vm5067_vm3 = vcmp.ge.f32.partialorder %v5049_v25, 0.0  ;;  %v5071_v27 = vmul.f32 0.01, %v5049_v25  ;;  %vm5068_vm4 = vcmp.ge.f32.partialorder %v5063_v26, 0.0  ;;  %v5072_v28 = vmul.f32 0.01, %v5063_v26 }
0x1660   : > { %v5075_v31 = vsel %vm5067_vm3, %v5049_v25, %v5071_v27  ;;  %v5076_v32 = vsel %vm5068_vm4, %v5063_v26, %v5072_v28  ;;  %v10141_v26 = vld [vmem:[%s10899_s9 + $0x250] sm:$0xff] }
0x1661   : > { %v5077_v33 = vpack.c.bf16 %v5075_v31, %v5073_v29  ;;  %v5078_v34 = vpack.c.bf16 %v5076_v32, %v5074_v30  ;;  %v10145_v27 = vld [vmem:[%s10899_s9 + $0x270] sm:$0xff] }
0x1663   : > { %5086 = vmatpush.bf16.msra.mxu0 %v5077_v33  ;;  %5099 = vmatpush.bf16.msra.mxu1 %v5078_v34 }
0x1666   : > { %9355 = vmatmul.msk.bf16.vlgmr.msra.gmra.mxu0 %vm2647_vm6, %v10875_v38  ;;  %9356 = vmatmul.msk.bf16.vlgmr.msra.gmra.mxu1 %vm2647_vm6, %v10875_v38 }
0x1667   : > { %5178 = vmatpush.bf16.msrb.mxu0 %v10132_v51  ;;  %5216 = vmatpush.bf16.msrb.mxu1 %v10134_v15 }
0x166b   : > { %5179 = vmatpush.bf16.msrb.mxu0 %v10131_v52  ;;  %5217 = vmatpush.bf16.msrb.mxu1 %v10133_v5 }
0x166f   : > { %5321 = vmatpush.bf16.msra.mxu0 %v10140_v53  ;;  %5356 = vmatpush.bf16.msra.mxu1 %v10142_v23 }
0x1673   : > { %5322 = vmatpush.bf16.msra.mxu0 %v10139_v54  ;;  %5357 = vmatpush.bf16.msra.mxu1 %v10141_v26 }
0x16e3   : > { %v5088_v35 = vpop.f32.mrf.mxu0  ;;  %v5101_v36 = vpop.f32.mrf.mxu1 }
0x16e4   : > { %v5089_v37 = vadd.f32 %v5088_v35, %v10881_v39  ;;  %v5102_v40 = vadd.f32 %v5101_v36, %v10881_v39 }
0x16e6   : > { %vm5105_vm9 = vcmp.ge.f32.partialorder %v5089_v37, 0.0  ;;  %v5107_v41 = vmul.f32 0.01, %v5089_v37  ;;  %vm5106_vm10 = vcmp.ge.f32.partialorder %v5102_v40, 0.0  ;;  %v5108_v42 = vmul.f32 0.01, %v5102_v40 }
0x16e8   : > { %v5109_v43 = vsel %vm5105_vm9, %v5089_v37, %v5107_v41  ;;  %v5110_v44 = vsel %vm5106_vm10, %v5102_v40, %v5108_v42 }
0x16e9   : > { %v5111_v45 = vpack.c.bf16 %v5109_v43, %v5109_v43  ;;  %v5112_v46 = vpack.c.bf16 %v5110_v44, %v5110_v44 }
0x16eb   : > { %v5090_v47 = vpop.f32.mrf.mxu0  ;;  %v5103_v48 = vpop.f32.mrf.mxu1  ;;  %v5114_v49 = vsel %vm2593_vm0, %v5111_v45, 0  ;;  %v5117_v50 = vsel %vm2593_vm0, %v5112_v46, 0 }
0x16ec   : > { %5126 = vmatpush.bf16.msra.mxu2 %v5114_v49  ;;  %5139 = vmatpush.bf16.msra.mxu3 %v5117_v50 }
0x16ef   : > { %9357 = vmatmul.msk.bf16.vlgmr.msra.gmra.mxu2 %vm2589_vm1, %v10890_v55  ;;  %9358 = vmatmul.msk.bf16.vlgmr.msra.gmra.mxu3 %vm2589_vm1, %v10890_v55 }
0x16f0   : > { %5251 = vmatpush.bf16.msrb.mxu2 %v10136_v56  ;;  %5286 = vmatpush.bf16.msrb.mxu3 %v10138_v12 }
0x16f4   : > { %5252 = vmatpush.bf16.msrb.mxu2 %v10135_v57  ;;  %5287 = vmatpush.bf16.msrb.mxu3 %v10137_v21 }
0x16f8   : > { %5391 = vmatpush.bf16.msra.mxu2 %v10144_v9  ;;  %5426 = vmatpush.bf16.msra.mxu3 %v10146_v24 }
0x16fc   : > { %5392 = vmatpush.bf16.msra.mxu2 %v10143_v18  ;;  %5427 = vmatpush.bf16.msra.mxu3 %v10145_v27 }
0x1772   : > { %v5128_v58 = vpop.f32.mrf.mxu2  ;;  %v5141_v59 = vpop.f32.mrf.mxu3 }
0x1773   : > { %v5129_v60 = vadd.f32 %v5128_v58, %v10907_v62  ;;  %v5142_v61 = vadd.f32 %v5141_v59, %v10907_v62 }
0x1775   : > { %vm5145_vm11 = vcmp.ge.f32.partialorder %v5129_v60, 0.0  ;;  %v5147_v63 = vmul.f32 0.01, %v5129_v60  ;;  %vm5146_vm12 = vcmp.ge.f32.partialorder %v5142_v61, 0.0  ;;  %v5148_v0 = vmul.f32 0.01, %v5142_v61 }
0x1777   : > { %v5149_v1 = vsel %vm5145_vm11, %v5129_v60, %v5147_v63  ;;  %v5150_v2 = vsel %vm5146_vm12, %v5142_v61, %v5148_v0 }
0x1778   : > { %v5151_v3 = vpack.c.bf16 %v5150_v2, %v5149_v1 }
0x177a   : > { %v5130_v6 = vpop.f32.mrf.mxu2  ;;  %v5143_v7 = vpop.f32.mrf.mxu3  ;;  %9371 = vmatmul.msk.bf16.vlgmr.msrb.gmra.mxu0 %vm2899_vm5, %v5151_v3  ;;  %v5191_v20 = vunpack.c.l.b16 %v5151_v3  ;;  %v5298_v11 = vunpack.c.h.b16 %v5151_v3 }
0x177c   : > { %v5192_v4 = vpack.c.b16 %v5191_v20, %v5191_v20  ;;  %v5299_v10 = vpack.c.b16 %v5298_v11, %v5298_v11 }
0x177e   : > { %5193 = vrot.lane.b32.xlu1 %v5192_v4, %s10433_s10  ;;  %5263 = vrot.lane.b32.xlu0 %v5192_v4, %s10434_s11 }
0x177f   : > { %5228 = vrot.lane.b32.xlu2 %v5192_v4, %s10435_s12 }
0x1786   : > { %5333 = vrot.lane.b32.xlu1 %v5299_v10, %s10433_s10  ;;  %5403 = vrot.lane.b32.xlu0 %v5299_v10, %s10434_s11 }
0x1787   : > { %5368 = vrot.lane.b32.xlu2 %v5299_v10, %s10435_s12 }
0x178a   : > { %9423 = vmatmul.msk.bf16.vlgmr.msra.gmra.mxu0 %vm2899_vm5, %v5299_v10 }
0x17d9   : > { %v5229_v25 = vpop.permute.xlu2 %5228 }
0x17da   : > { %9397 = vmatmul.msk.bf16.vlgmr.msrb.gmra.mxu2 %vm2899_vm5, %v5229_v25 }
0x17e1   : > { %v5369_v28 = vpop.permute.xlu2 %5368 }
0x17ea   : > { %9449 = vmatmul.msk.bf16.vlgmr.msra.gmra.mxu2 %vm2899_vm5, %v5369_v28 }
0x17f0   : > { %v5194_v29 = vpop.permute.xlu1 %5193  ;;  %v5264_v30 = vpop.permute.xlu0 %5263 }
0x17f1   : > { %9384 = vmatmul.msk.bf16.vlgmr.msrb.gmra.mxu1 %vm2899_vm5, %v5194_v29  ;;  %9410 = vmatmul.msk.bf16.vlgmr.msrb.gmra.mxu3 %vm2899_vm5, %v5264_v30 }
0x17f7   : > { %v5181_v31 = vpop.f32.mrf.mxu0 }
0x17f8   : > { %v5334_v33 = vpop.permute.xlu1 %5333  ;;  %v5404_v34 = vpop.permute.xlu0 %5403 }
0x17ff   : > { %v5183_v32 = vpop.f32.mrf.mxu0 }
0x1801   : > { %9436 = vmatmul.msk.bf16.vlgmr.msra.gmra.mxu1 %vm2899_vm5, %v5334_v33  ;;  %9462 = vmatmul.msk.bf16.vlgmr.msra.gmra.mxu3 %vm2899_vm5, %v5404_v34 }
0x1807   : > { %v5324_v35 = vpop.f32.mrf.mxu0 }
0x180f   : > { %v5326_v36 = vpop.f32.mrf.mxu0 }
0x185d   : > { %v5254_v37 = vpop.f32.mrf.mxu2 }
0x1865   : > { %v5256_v40 = vpop.f32.mrf.mxu2 }
0x186d   : > { %v5394_v41 = vpop.f32.mrf.mxu2 }
0x186e   : > { %v10323_v42 = vpack.i.bf16 %v5394_v41, %v5254_v37  ;;  %v5219_v43 = vpop.f32.mrf.mxu1 }
0x1870   : > { %10324 = vrot.lane.b32.xlu0 %v10323_v42, %s10435_s12 }
0x1874   : > { %v5289_v44 = vpop.f32.mrf.mxu3 }
0x1875   : > { %v5396_v45 = vpop.f32.mrf.mxu2 }
0x1876   : > { %v5221_v46 = vpop.f32.mrf.mxu1 }
0x187c   : > { %v5291_v47 = vpop.f32.mrf.mxu3 }
0x187e   : > { %v5359_v48 = vpop.f32.mrf.mxu1 }
0x187f   : > { %v10318_v49 = vpack.i.bf16 %v5359_v48, %v5219_v43 }
0x1881   : > { %10319 = vrot.lane.b32.xlu2 %v10318_v49, %s10434_s11 }
0x1884   : > { %v5429_v50 = vpop.f32.mrf.mxu3 }
0x1885   : > { %v10328_v51 = vpack.i.bf16 %v5429_v50, %v5289_v44 }
0x1886   : > { %v5361_v52 = vpop.f32.mrf.mxu1 }
0x1887   : > { %10329 = vrot.lane.b32.xlu1 %v10328_v51, %s10433_s10  ;;  %v9469_v52 = vld [vmem:[%s10968_s14 + $0x4] ss:$8 sm:$0x3] }
0x188c   : > { %v5431_v53 = vpop.f32.mrf.mxu3 }
0x18db   : > { %v10320_v54 = vpop.permute.xlu2 %10319 }
0x18dc   : > { %v10322_v57 = vunpack.i.h.bf16 %v10320_v54  ;;  %v10321_v58 = vunpack.i.l.bf16 %v10320_v54 }
0x18de   : > { %v5457_v63 = vsel %vm2899_vm5, %v5181_v31, %v10321_v58  ;;  %v5460_v0 = vsel %vm2899_vm5, %v5324_v35, %v10322_v57  ;;  %v5588_v58 = vperm.slane %v9469_v52, 0 }
0x18e2   : > { %v10325_v56 = vpop.permute.xlu0 %10324 }
0x18e3   : > { %v10327_v59 = vunpack.i.h.bf16 %v10325_v56  ;;  %v10326_v60 = vunpack.i.l.bf16 %v10325_v56 }
0x18e5   : > { %v5458_v3 = vsel %vm3189_vm7, %v5457_v63, %v10326_v60  ;;  %v5461_v6 = vsel %vm3189_vm7, %v5460_v0, %v10327_v59  ;;  %v5589_v59 = vperm.slane %v9469_v52, 1  ;;  %v10156_v52 = vld [vmem:[%s10899_s9 + $0x2c8] sm:$0xff] }
0x18f9   : > { %v10330_v61 = vpop.permute.xlu1 %10329 }
0x18fa   : > { %v10332_v1 = vunpack.i.h.bf16 %v10330_v61  ;;  %v10331_v2 = vunpack.i.l.bf16 %v10330_v61 }
0x18fc   : > { %v5459_v7 = vsel %vm3191_vm8, %v5458_v3, %v10331_v2  ;;  %v5462_v20 = vsel %vm3191_vm8, %v5461_v6, %v10332_v1 }
0x18fd   : > { %v5463_v4 = vpack.c.bf16 %v5459_v7, %v5459_v7  ;;  %v5464_v11 = vpack.c.bf16 %v5462_v20, %v5462_v20 }
0x18ff   : > { %v5466_v10 = vsel %vm2593_vm0, %v5463_v4, 0  ;;  %v5469_v9 = vsel %vm2593_vm0, %v5464_v11, 0 }
0x1900   : > { %5478 = vmatpush.bf16.msrb.mxu0 %v5466_v10  ;;  %5492 = vmatpush.bf16.msrb.mxu1 %v5469_v9 }
0x1903   : > { %9463 = vmatmul.msk.bf16.vlgmr.msrb.gmra.mxu0 %vm2589_vm1, %v10858_v16  ;;  %9464 = vmatmul.msk.bf16.vlgmr.msrb.gmra.mxu1 %vm2589_vm1, %v10858_v16 }
0x1980   : > { %v5480_v18 = vpop.f32.mrf.mxu0  ;;  %v5494_v15 = vpop.f32.mrf.mxu1 }
0x1981   : > { %v5481_v12 = vadd.f32 %v5480_v18, %v10864_v17  ;;  %v5495_v5 = vadd.f32 %v5494_v15, %v10864_v17 }
0x1983   : > { %v5503_v24 = vmul.f32 0.01, %v5481_v12  ;;  %v5504_v25 = vmul.f32 0.01, %v5495_v5  ;;  %vm5499_vm13 = vcmp.ge.f32.partialorder %v5481_v12, 0.0  ;;  %vm5500_vm14 = vcmp.ge.f32.partialorder %v5495_v5, 0.0 }
0x1985   : > { %v5507_v30 = vsel %vm5499_vm13, %v5481_v12, %v5503_v24  ;;  %v5508_v31 = vsel %vm5500_vm14, %v5495_v5, %v5504_v25 }
0x1988   : > { %v5482_v21 = vpop.f32.mrf.mxu0  ;;  %v5496_v23 = vpop.f32.mrf.mxu1 }
0x1989   : > { %v5483_v26 = vadd.f32 %v5482_v21, %v10868_v22  ;;  %v5497_v27 = vadd.f32 %v5496_v23, %v10868_v22 }
0x198b   : > { %vm5501_vm15 = vcmp.ge.f32.partialorder %v5483_v26, 0.0  ;;  %v5505_v28 = vmul.f32 0.01, %v5483_v26  ;;  %vm5502_vm2 = vcmp.ge.f32.partialorder %v5497_v27, 0.0  ;;  %v5506_v29 = vmul.f32 0.01, %v5497_v27 }
0x198d   : > { %v5509_v32 = vsel %vm5501_vm15, %v5483_v26, %v5505_v28  ;;  %v5510_v33 = vsel %vm5502_vm2, %v5497_v27, %v5506_v29 }
0x198e   : > { %v5511_v34 = vpack.c.bf16 %v5509_v32, %v5507_v30  ;;  %v5512_v35 = vpack.c.bf16 %v5510_v33, %v5508_v31 }
0x1990   : > { %5520 = vmatpush.bf16.msrb.mxu2 %v5511_v34  ;;  %5533 = vmatpush.bf16.msrb.mxu3 %v5512_v35 }
0x1993   : > { %9465 = vmatmul.msk.bf16.vlgmr.msrb.gmra.mxu2 %vm2647_vm6, %v10875_v38  ;;  %9466 = vmatmul.msk.bf16.vlgmr.msrb.gmra.mxu3 %vm2647_vm6, %v10875_v38 }
0x1a16   : > { %v5522_v36 = vpop.f32.mrf.mxu2  ;;  %v5535_v37 = vpop.f32.mrf.mxu3 }
0x1a17   : > { %v5523_v40 = vadd.f32 %v5522_v36, %v10881_v39  ;;  %v5536_v41 = vadd.f32 %v5535_v37, %v10881_v39 }
0x1a19   : > { %vm5539_vm3 = vcmp.ge.f32.partialorder %v5523_v40, 0.0  ;;  %v5541_v42 = vmul.f32 0.01, %v5523_v40  ;;  %vm5540_vm4 = vcmp.ge.f32.partialorder %v5536_v41, 0.0  ;;  %v5542_v43 = vmul.f32 0.01, %v5536_v41 }
0x1a1b   : > { %v5543_v44 = vsel %vm5539_vm3, %v5523_v40, %v5541_v42  ;;  %v5544_v45 = vsel %vm5540_vm4, %v5536_v41, %v5542_v43 }
0x1a1c   : > { %v5545_v46 = vpack.c.bf16 %v5543_v44, %v5543_v44  ;;  %v5546_v47 = vpack.c.bf16 %v5544_v45, %v5544_v45 }
0x1a1e   : > { %v5524_v48 = vpop.f32.mrf.mxu2  ;;  %v5537_v49 = vpop.f32.mrf.mxu3  ;;  %v5548_v50 = vsel %vm2593_vm0, %v5545_v46, 0  ;;  %v5551_v51 = vsel %vm2593_vm0, %v5546_v47, 0 }
0x1a1f   : > { %5560 = vmatpush.bf16.msra.mxu0 %v5548_v50  ;;  %5573 = vmatpush.bf16.msra.mxu1 %v5551_v51  ;;  %v10148_v50 = vld [vmem:[%s10899_s9 + $0x288] sm:$0xff]  ;;  %v10147_v51 = vld [vmem:[%s10899_s9 + $0x280] sm:$0xff] }
0x1a22   : > { %9467 = vmatmul.msk.bf16.vlgmr.msra.gmra.mxu0 %vm2589_vm1, %v10890_v55  ;;  %9468 = vmatmul.msk.bf16.vlgmr.msra.gmra.mxu1 %vm2589_vm1, %v10890_v55 }
0x1a9f   : > { %v5562_v53 = vpop.f32.mrf.mxu0  ;;  %v5575_v54 = vpop.f32.mrf.mxu1 }
0x1aa0   : > { %v5563_v56 = vadd.f32 %v5562_v53, %v10907_v62  ;;  %v5576_v57 = vadd.f32 %v5575_v54, %v10907_v62  ;;  %v10155_v53 = vld [vmem:[%s10899_s9 + $0x2c0] sm:$0xff]  ;;  %v10152_v54 = vld [vmem:[%s10899_s9 + $0x2a8] sm:$0xff] }
0x1aa2   : > { %vm5579_vm9 = vcmp.ge.f32.partialorder %v5563_v56, 0.0  ;;  %v5581_v60 = vmul.f32 0.01, %v5563_v56  ;;  %vm5580_vm10 = vcmp.ge.f32.partialorder %v5576_v57, 0.0  ;;  %v5582_v61 = vmul.f32 0.01, %v5576_v57 }
0x1aa4   : > { %v5583_v63 = vsel %vm5579_vm9, %v5563_v56, %v5581_v60  ;;  %v5584_v0 = vsel %vm5580_vm10, %v5576_v57, %v5582_v61  ;;  %v10151_v56 = vld [vmem:[%s10899_s9 + $0x2a0] sm:$0xff] }
0x1aa5   : > { %v5592_v1 = vmul.f32 %v5588_v58, %v5583_v63  ;;  %v5593_v2 = vmul.f32 %v5589_v59, %v5584_v0 }
0x1aa7   : > { %v5564_v3 = vpop.f32.mrf.mxu0  ;;  %v5577_v6 = vpop.f32.mrf.mxu1  ;;  %v11366_v7 = vadd.f32 %v5592_v1, %v11268_v8  ;;  %v11369_v20 = vadd.f32 %v5593_v2, %v11271_v19 }
0x1aa9   : > { %v5596_v4 = vpack.c.bf16 %v11366_v7, %v11366_v7  ;;  %v5597_v11 = vpack.c.bf16 %v11369_v20, %v11369_v20 }
0x1aab   : > { %v5599_v10 = vsel %vm2593_vm0, %v5596_v4, 0  ;;  %v5602_v9 = vsel %vm2593_vm0, %v5597_v11, 0 }
0x1aac   : > { %5611 = vmatpush.bf16.msra.mxu2 %v5599_v10  ;;  %5625 = vmatpush.bf16.msra.mxu3 %v5602_v9 }
0x1aaf   : > { %9470 = vmatmul.msk.bf16.vlgmr.msra.gmra.mxu2 %vm2589_vm1, %v10858_v16  ;;  %9471 = vmatmul.msk.bf16.vlgmr.msra.gmra.mxu3 %vm2589_vm1, %v10858_v16 }
0x1b32   : > { %v5613_v8 = vpop.f32.mrf.mxu2  ;;  %v5627_v19 = vpop.f32.mrf.mxu3 }
0x1b33   : > { %v5614_v18 = vadd.f32 %v5613_v8, %v10864_v17  ;;  %v5628_v15 = vadd.f32 %v5627_v19, %v10864_v17  ;;  %v10160_v8 = vld [vmem:[%s10899_s9 + $0x2e8] sm:$0xff]  ;;  %v10159_v19 = vld [vmem:[%s10899_s9 + $0x2e0] sm:$0xff] }
0x1b35   : > { %v5636_v21 = vmul.f32 0.01, %v5614_v18  ;;  %v5637_v23 = vmul.f32 0.01, %v5628_v15  ;;  %vm5632_vm11 = vcmp.ge.f32.partialorder %v5614_v18, 0.0  ;;  %vm5633_vm12 = vcmp.ge.f32.partialorder %v5628_v15, 0.0 }
0x1b37   : > { %v5640_v28 = vsel %vm5632_vm11, %v5614_v18, %v5636_v21  ;;  %v5641_v29 = vsel %vm5633_vm12, %v5628_v15, %v5637_v23  ;;  %v10150_v18 = vld [vmem:[%s10899_s9 + $0x298] sm:$0xff] }
0x1b38   : > { %v10154_v15 = vld [vmem:[%s10899_s9 + $0x2b8] sm:$0xff] }
0x1b39   : > { %v10158_v21 = vld [vmem:[%s10899_s9 + $0x2d8] sm:$0xff] }
0x1b3a   : > { %v5615_v12 = vpop.f32.mrf.mxu2  ;;  %v5629_v5 = vpop.f32.mrf.mxu3  ;;  %v10162_v23 = vld [vmem:[%s10899_s9 + $0x2f8] sm:$0xff] }
0x1b3b   : > { %v5616_v24 = vadd.f32 %v5615_v12, %v10868_v22  ;;  %v5630_v25 = vadd.f32 %v5629_v5, %v10868_v22  ;;  %v10149_v12 = vld [vmem:[%s10899_s9 + $0x290] sm:$0xff] }
0x1b3c   : > { %v10153_v5 = vld [vmem:[%s10899_s9 + $0x2b0] sm:$0xff] }
0x1b3d   : > { %vm5634_vm13 = vcmp.ge.f32.partialorder %v5616_v24, 0.0  ;;  %v5638_v26 = vmul.f32 0.01, %v5616_v24  ;;  %vm5635_vm14 = vcmp.ge.f32.partialorder %v5630_v25, 0.0  ;;  %v5639_v27 = vmul.f32 0.01, %v5630_v25 }
0x1b3f   : > { %v5642_v30 = vsel %vm5634_vm13, %v5616_v24, %v5638_v26  ;;  %v5643_v31 = vsel %vm5635_vm14, %v5630_v25, %v5639_v27  ;;  %v10157_v25 = vld [vmem:[%s10899_s9 + $0x2d0] sm:$0xff] }
0x1b40   : > { %v5644_v32 = vpack.c.bf16 %v5642_v30, %v5640_v28  ;;  %v5645_v33 = vpack.c.bf16 %v5643_v31, %v5641_v29  ;;  %v10161_v26 = vld [vmem:[%s10899_s9 + $0x2f0] sm:$0xff] }
0x1b42   : > { %5653 = vmatpush.bf16.msrb.mxu0 %v5644_v32  ;;  %5666 = vmatpush.bf16.msrb.mxu1 %v5645_v33 }
0x1b45   : > { %9472 = vmatmul.msk.bf16.vlgmr.msrb.gmra.mxu0 %vm2647_vm6, %v10875_v38  ;;  %9473 = vmatmul.msk.bf16.vlgmr.msrb.gmra.mxu1 %vm2647_vm6, %v10875_v38 }
0x1b46   : > { %5745 = vmatpush.bf16.msra.mxu0 %v10148_v50  ;;  %5783 = vmatpush.bf16.msra.mxu1 %v10150_v18 }
0x1b4a   : > { %5746 = vmatpush.bf16.msra.mxu0 %v10147_v51  ;;  %5784 = vmatpush.bf16.msra.mxu1 %v10149_v12 }
0x1b4e   : > { %5888 = vmatpush.bf16.msrb.mxu0 %v10156_v52  ;;  %5923 = vmatpush.bf16.msrb.mxu1 %v10158_v21 }
0x1b52   : > { %5889 = vmatpush.bf16.msrb.mxu0 %v10155_v53  ;;  %5924 = vmatpush.bf16.msrb.mxu1 %v10157_v25 }
0x1bc2   : > { %v5655_v34 = vpop.f32.mrf.mxu0  ;;  %v5668_v35 = vpop.f32.mrf.mxu1 }
0x1bc3   : > { %v5656_v36 = vadd.f32 %v5655_v34, %v10881_v39  ;;  %v5669_v37 = vadd.f32 %v5668_v35, %v10881_v39 }
0x1bc5   : > { %vm5672_vm15 = vcmp.ge.f32.partialorder %v5656_v36, 0.0  ;;  %v5674_v40 = vmul.f32 0.01, %v5656_v36  ;;  %vm5673_vm2 = vcmp.ge.f32.partialorder %v5669_v37, 0.0  ;;  %v5675_v41 = vmul.f32 0.01, %v5669_v37 }
0x1bc7   : > { %v5676_v42 = vsel %vm5672_vm15, %v5656_v36, %v5674_v40  ;;  %v5677_v43 = vsel %vm5673_vm2, %v5669_v37, %v5675_v41 }
0x1bc8   : > { %v5678_v44 = vpack.c.bf16 %v5676_v42, %v5676_v42  ;;  %v5679_v45 = vpack.c.bf16 %v5677_v43, %v5677_v43 }
0x1bca   : > { %v5657_v46 = vpop.f32.mrf.mxu0  ;;  %v5670_v47 = vpop.f32.mrf.mxu1  ;;  %v5681_v48 = vsel %vm2593_vm0, %v5678_v44, 0  ;;  %v5684_v49 = vsel %vm2593_vm0, %v5679_v45, 0 }
0x1bcb   : > { %5693 = vmatpush.bf16.msrb.mxu2 %v5681_v48  ;;  %5706 = vmatpush.bf16.msrb.mxu3 %v5684_v49 }
0x1bce   : > { %9474 = vmatmul.msk.bf16.vlgmr.msrb.gmra.mxu2 %vm2589_vm1, %v10890_v55  ;;  %9475 = vmatmul.msk.bf16.vlgmr.msrb.gmra.mxu3 %vm2589_vm1, %v10890_v55 }
0x1bcf   : > { %5818 = vmatpush.bf16.msra.mxu2 %v10152_v54  ;;  %5853 = vmatpush.bf16.msra.mxu3 %v10154_v15 }
0x1bd3   : > { %5819 = vmatpush.bf16.msra.mxu2 %v10151_v56  ;;  %5854 = vmatpush.bf16.msra.mxu3 %v10153_v5 }
0x1bd7   : > { %5958 = vmatpush.bf16.msrb.mxu2 %v10160_v8  ;;  %5993 = vmatpush.bf16.msrb.mxu3 %v10162_v23 }
0x1bdb   : > { %5959 = vmatpush.bf16.msrb.mxu2 %v10159_v19  ;;  %5994 = vmatpush.bf16.msrb.mxu3 %v10161_v26 }
0x1c51   : > { %v5695_v57 = vpop.f32.mrf.mxu2  ;;  %v5708_v58 = vpop.f32.mrf.mxu3 }
0x1c52   : > { %v5696_v59 = vadd.f32 %v5695_v57, %v10907_v62  ;;  %v5709_v60 = vadd.f32 %v5708_v58, %v10907_v62 }
0x1c54   : > { %vm5712_vm3 = vcmp.ge.f32.partialorder %v5696_v59, 0.0  ;;  %v5714_v61 = vmul.f32 0.01, %v5696_v59  ;;  %vm5713_vm4 = vcmp.ge.f32.partialorder %v5709_v60, 0.0  ;;  %v5715_v63 = vmul.f32 0.01, %v5709_v60 }
0x1c56   : > { %v5716_v0 = vsel %vm5712_vm3, %v5696_v59, %v5714_v61  ;;  %v5717_v1 = vsel %vm5713_vm4, %v5709_v60, %v5715_v63 }
0x1c57   : > { %v5718_v2 = vpack.c.bf16 %v5717_v1, %v5716_v0 }
0x1c59   : > { %v5697_v3 = vpop.f32.mrf.mxu2  ;;  %v5710_v6 = vpop.f32.mrf.mxu3  ;;  %9488 = vmatmul.msk.bf16.vlgmr.msra.gmra.mxu0 %vm2899_vm5, %v5718_v2  ;;  %v5758_v4 = vunpack.c.l.b16 %v5718_v2  ;;  %v5865_v10 = vunpack.c.h.b16 %v5718_v2 }
0x1c5b   : > { %v5759_v11 = vpack.c.b16 %v5758_v4, %v5758_v4  ;;  %v5866_v9 = vpack.c.b16 %v5865_v10, %v5865_v10 }
0x1c5d   : > { %5760 = vrot.lane.b32.xlu1 %v5759_v11, %s10433_s10  ;;  %5830 = vrot.lane.b32.xlu0 %v5759_v11, %s10434_s11 }
0x1c5e   : > { %5795 = vrot.lane.b32.xlu2 %v5759_v11, %s10435_s12 }
0x1c65   : > { %5900 = vrot.lane.b32.xlu1 %v5866_v9, %s10433_s10  ;;  %5970 = vrot.lane.b32.xlu0 %v5866_v9, %s10434_s11 }
0x1c66   : > { %5935 = vrot.lane.b32.xlu2 %v5866_v9, %s10435_s12 }
0x1c69   : > { %9540 = vmatmul.msk.bf16.vlgmr.msrb.gmra.mxu0 %vm2899_vm5, %v5866_v9 }
0x1cb8   : > { %v5796_v24 = vpop.permute.xlu2 %5795 }
0x1cb9   : > { %9514 = vmatmul.msk.bf16.vlgmr.msra.gmra.mxu2 %vm2899_vm5, %v5796_v24 }
0x1cc0   : > { %v5936_v27 = vpop.permute.xlu2 %5935 }
0x1cc9   : > { %9566 = vmatmul.msk.bf16.vlgmr.msrb.gmra.mxu2 %vm2899_vm5, %v5936_v27 }
0x1ccf   : > { %v5761_v28 = vpop.permute.xlu1 %5760  ;;  %v5831_v29 = vpop.permute.xlu0 %5830 }
0x1cd0   : > { %9501 = vmatmul.msk.bf16.vlgmr.msra.gmra.mxu1 %vm2899_vm5, %v5761_v28  ;;  %9527 = vmatmul.msk.bf16.vlgmr.msra.gmra.mxu3 %vm2899_vm5, %v5831_v29 }
0x1cd6   : > { %v5748_v30 = vpop.f32.mrf.mxu0 }
0x1cd7   : > { %v5901_v32 = vpop.permute.xlu1 %5900  ;;  %v5971_v33 = vpop.permute.xlu0 %5970 }
0x1cde   : > { %v5750_v31 = vpop.f32.mrf.mxu0 }
0x1ce0   : > { %9553 = vmatmul.msk.bf16.vlgmr.msrb.gmra.mxu1 %vm2899_vm5, %v5901_v32  ;;  %9579 = vmatmul.msk.bf16.vlgmr.msrb.gmra.mxu3 %vm2899_vm5, %v5971_v33 }
0x1ce6   : > { %v5891_v34 = vpop.f32.mrf.mxu0 }
0x1cee   : > { %v5893_v35 = vpop.f32.mrf.mxu0 }
0x1d3c   : > { %v5821_v36 = vpop.f32.mrf.mxu2 }
0x1d44   : > { %v5823_v37 = vpop.f32.mrf.mxu2 }
0x1d4c   : > { %v5961_v40 = vpop.f32.mrf.mxu2 }
0x1d4d   : > { %v10338_v41 = vpack.i.bf16 %v5961_v40, %v5821_v36  ;;  %v5786_v42 = vpop.f32.mrf.mxu1 }
0x1d4f   : > { %10339 = vrot.lane.b32.xlu0 %v10338_v41, %s10435_s12 }
0x1d53   : > { %v5856_v43 = vpop.f32.mrf.mxu3 }
0x1d54   : > { %v5963_v44 = vpop.f32.mrf.mxu2 }
0x1d55   : > { %v5788_v45 = vpop.f32.mrf.mxu1 }
0x1d5b   : > { %v5858_v46 = vpop.f32.mrf.mxu3 }
0x1d5d   : > { %v5926_v47 = vpop.f32.mrf.mxu1 }
0x1d5e   : > { %v10333_v48 = vpack.i.bf16 %v5926_v47, %v5786_v42 }
0x1d60   : > { %10334 = vrot.lane.b32.xlu2 %v10333_v48, %s10434_s11 }
0x1d63   : > { %v5996_v49 = vpop.f32.mrf.mxu3 }
0x1d64   : > { %v10343_v50 = vpack.i.bf16 %v5996_v49, %v5856_v43 }
0x1d65   : > { %v5928_v51 = vpop.f32.mrf.mxu1 }
0x1d66   : > { %10344 = vrot.lane.b32.xlu1 %v10343_v50, %s10433_s10  ;;  %v9586_v51 = vld [vmem:[%s10968_s14 + $0x5] ss:$8 sm:$0x3] }
0x1d6b   : > { %v5998_v52 = vpop.f32.mrf.mxu3 }
0x1dba   : > { %v10335_v53 = vpop.permute.xlu2 %10334 }
0x1dbb   : > { %v10337_v56 = vunpack.i.h.bf16 %v10335_v53  ;;  %v10336_v57 = vunpack.i.l.bf16 %v10335_v53 }
0x1dbd   : > { %v6024_v61 = vsel %vm2899_vm5, %v5748_v30, %v10336_v57  ;;  %v6027_v63 = vsel %vm2899_vm5, %v5891_v34, %v10337_v56  ;;  %v6155_v57 = vperm.slane %v9586_v51, 0 }
0x1dc1   : > { %v10340_v54 = vpop.permute.xlu0 %10339 }
0x1dc2   : > { %v10342_v58 = vunpack.i.h.bf16 %v10340_v54  ;;  %v10341_v59 = vunpack.i.l.bf16 %v10340_v54 }
0x1dc4   : > { %v6025_v2 = vsel %vm3189_vm7, %v6024_v61, %v10341_v59  ;;  %v6028_v3 = vsel %vm3189_vm7, %v6027_v63, %v10342_v58  ;;  %v6156_v58 = vperm.slane %v9586_v51, 1  ;;  %v10172_v51 = vld [vmem:[%s10899_s9 + $0x348] sm:$0xff] }
0x1dd8   : > { %v10345_v60 = vpop.permute.xlu1 %10344 }
0x1dd9   : > { %v10347_v0 = vunpack.i.h.bf16 %v10345_v60  ;;  %v10346_v1 = vunpack.i.l.bf16 %v10345_v60 }
0x1ddb   : > { %v6026_v6 = vsel %vm3191_vm8, %v6025_v2, %v10346_v1  ;;  %v6029_v4 = vsel %vm3191_vm8, %v6028_v3, %v10347_v0 }
0x1ddc   : > { %v6030_v11 = vpack.c.bf16 %v6026_v6, %v6026_v6  ;;  %v6031_v10 = vpack.c.bf16 %v6029_v4, %v6029_v4 }
0x1dde   : > { %v6033_v9 = vsel %vm2593_vm0, %v6030_v11, 0  ;;  %v6036_v8 = vsel %vm2593_vm0, %v6031_v10, 0 }
0x1ddf   : > { %6045 = vmatpush.bf16.msra.mxu0 %v6033_v9  ;;  %6059 = vmatpush.bf16.msra.mxu1 %v6036_v8 }
0x1de2   : > { %9580 = vmatmul.msk.bf16.vlgmr.msra.gmra.mxu0 %vm2589_vm1, %v10858_v16  ;;  %9581 = vmatmul.msk.bf16.vlgmr.msra.gmra.mxu1 %vm2589_vm1, %v10858_v16 }
0x1e5f   : > { %v6047_v19 = vpop.f32.mrf.mxu0  ;;  %v6061_v18 = vpop.f32.mrf.mxu1 }
0x1e60   : > { %v6048_v15 = vadd.f32 %v6047_v19, %v10864_v17  ;;  %v6062_v12 = vadd.f32 %v6061_v18, %v10864_v17 }
0x1e62   : > { %v6070_v23 = vmul.f32 0.01, %v6048_v15  ;;  %v6071_v24 = vmul.f32 0.01, %v6062_v12  ;;  %vm6066_vm9 = vcmp.ge.f32.partialorder %v6048_v15, 0.0  ;;  %vm6067_vm10 = vcmp.ge.f32.partialorder %v6062_v12, 0.0 }
0x1e64   : > { %v6074_v29 = vsel %vm6066_vm9, %v6048_v15, %v6070_v23  ;;  %v6075_v30 = vsel %vm6067_vm10, %v6062_v12, %v6071_v24 }
0x1e67   : > { %v6049_v5 = vpop.f32.mrf.mxu0  ;;  %v6063_v21 = vpop.f32.mrf.mxu1 }
0x1e68   : > { %v6050_v25 = vadd.f32 %v6049_v5, %v10868_v22  ;;  %v6064_v26 = vadd.f32 %v6063_v21, %v10868_v22 }
0x1e6a   : > { %vm6068_vm11 = vcmp.ge.f32.partialorder %v6050_v25, 0.0  ;;  %v6072_v27 = vmul.f32 0.01, %v6050_v25  ;;  %vm6069_vm12 = vcmp.ge.f32.partialorder %v6064_v26, 0.0  ;;  %v6073_v28 = vmul.f32 0.01, %v6064_v26 }
0x1e6c   : > { %v6076_v31 = vsel %vm6068_vm11, %v6050_v25, %v6072_v27  ;;  %v6077_v32 = vsel %vm6069_vm12, %v6064_v26, %v6073_v28 }
0x1e6d   : > { %v6078_v33 = vpack.c.bf16 %v6076_v31, %v6074_v29  ;;  %v6079_v34 = vpack.c.bf16 %v6077_v32, %v6075_v30 }
0x1e6f   : > { %6087 = vmatpush.bf16.msra.mxu2 %v6078_v33  ;;  %6100 = vmatpush.bf16.msra.mxu3 %v6079_v34 }
0x1e72   : > { %9582 = vmatmul.msk.bf16.vlgmr.msra.gmra.mxu2 %vm2647_vm6, %v10875_v38  ;;  %9583 = vmatmul.msk.bf16.vlgmr.msra.gmra.mxu3 %vm2647_vm6, %v10875_v38 }
0x1ef5   : > { %v6089_v35 = vpop.f32.mrf.mxu2  ;;  %v6102_v36 = vpop.f32.mrf.mxu3 }
0x1ef6   : > { %v6090_v37 = vadd.f32 %v6089_v35, %v10881_v39  ;;  %v6103_v40 = vadd.f32 %v6102_v36, %v10881_v39 }
0x1ef8   : > { %vm6106_vm13 = vcmp.ge.f32.partialorder %v6090_v37, 0.0  ;;  %v6108_v41 = vmul.f32 0.01, %v6090_v37  ;;  %vm6107_vm14 = vcmp.ge.f32.partialorder %v6103_v40, 0.0  ;;  %v6109_v42 = vmul.f32 0.01, %v6103_v40 }
0x1efa   : > { %v6110_v43 = vsel %vm6106_vm13, %v6090_v37, %v6108_v41  ;;  %v6111_v44 = vsel %vm6107_vm14, %v6103_v40, %v6109_v42 }
0x1efb   : > { %v6112_v45 = vpack.c.bf16 %v6110_v43, %v6110_v43  ;;  %v6113_v46 = vpack.c.bf16 %v6111_v44, %v6111_v44 }
0x1efd   : > { %v6091_v47 = vpop.f32.mrf.mxu2  ;;  %v6104_v48 = vpop.f32.mrf.mxu3  ;;  %v6115_v49 = vsel %vm2593_vm0, %v6112_v45, 0  ;;  %v6118_v50 = vsel %vm2593_vm0, %v6113_v46, 0 }
0x1efe   : > { %6127 = vmatpush.bf16.msrb.mxu0 %v6115_v49  ;;  %6140 = vmatpush.bf16.msrb.mxu1 %v6118_v50  ;;  %v10164_v49 = vld [vmem:[%s10899_s9 + $0x308] sm:$0xff]  ;;  %v10163_v50 = vld [vmem:[%s10899_s9 + $0x300] sm:$0xff] }
0x1f01   : > { %9584 = vmatmul.msk.bf16.vlgmr.msrb.gmra.mxu0 %vm2589_vm1, %v10890_v55  ;;  %9585 = vmatmul.msk.bf16.vlgmr.msrb.gmra.mxu1 %vm2589_vm1, %v10890_v55 }
0x1f7e   : > { %v6129_v52 = vpop.f32.mrf.mxu0  ;;  %v6142_v53 = vpop.f32.mrf.mxu1 }
0x1f7f   : > { %v6130_v54 = vadd.f32 %v6129_v52, %v10907_v62  ;;  %v6143_v56 = vadd.f32 %v6142_v53, %v10907_v62  ;;  %v10171_v52 = vld [vmem:[%s10899_s9 + $0x340] sm:$0xff]  ;;  %v10168_v53 = vld [vmem:[%s10899_s9 + $0x328] sm:$0xff] }
0x1f81   : > { %vm6146_vm15 = vcmp.ge.f32.partialorder %v6130_v54, 0.0  ;;  %v6148_v59 = vmul.f32 0.01, %v6130_v54  ;;  %vm6147_vm2 = vcmp.ge.f32.partialorder %v6143_v56, 0.0  ;;  %v6149_v60 = vmul.f32 0.01, %v6143_v56 }
0x1f83   : > { %v6150_v61 = vsel %vm6146_vm15, %v6130_v54, %v6148_v59  ;;  %v6151_v63 = vsel %vm6147_vm2, %v6143_v56, %v6149_v60  ;;  %v10167_v54 = vld [vmem:[%s10899_s9 + $0x320] sm:$0xff] }
0x1f84   : > { %v6159_v0 = vmul.f32 %v6155_v57, %v6150_v61  ;;  %v6160_v1 = vmul.f32 %v6156_v58, %v6151_v63 }
0x1f86   : > { %v6131_v2 = vpop.f32.mrf.mxu0  ;;  %v6144_v3 = vpop.f32.mrf.mxu1  ;;  %v11464_v6 = vadd.f32 %v6159_v0, %v11366_v7  ;;  %v11467_v4 = vadd.f32 %v6160_v1, %v11369_v20 }
0x1f88   : > { %v6163_v11 = vpack.c.bf16 %v11464_v6, %v11464_v6  ;;  %v6164_v10 = vpack.c.bf16 %v11467_v4, %v11467_v4 }
0x1f8a   : > { %v6166_v9 = vsel %vm2593_vm0, %v6163_v11, 0  ;;  %v6169_v8 = vsel %vm2593_vm0, %v6164_v10, 0 }
0x1f8b   : > { %6178 = vmatpush.bf16.msrb.mxu2 %v6166_v9  ;;  %6192 = vmatpush.bf16.msrb.mxu3 %v6169_v8 }
0x1f8e   : > { %9587 = vmatmul.msk.bf16.vlgmr.msrb.gmra.mxu2 %vm2589_vm1, %v10858_v16  ;;  %9588 = vmatmul.msk.bf16.vlgmr.msrb.gmra.mxu3 %vm2589_vm1, %v10858_v16 }
0x2011   : > { %v6180_v7 = vpop.f32.mrf.mxu2  ;;  %v6194_v20 = vpop.f32.mrf.mxu3 }
0x2012   : > { %v6181_v19 = vadd.f32 %v6180_v7, %v10864_v17  ;;  %v6195_v18 = vadd.f32 %v6194_v20, %v10864_v17  ;;  %v10176_v7 = vld [vmem:[%s10899_s9 + $0x368] sm:$0xff]  ;;  %v10175_v20 = vld [vmem:[%s10899_s9 + $0x360] sm:$0xff] }
0x2014   : > { %v6203_v5 = vmul.f32 0.01, %v6181_v19  ;;  %v6204_v21 = vmul.f32 0.01, %v6195_v18  ;;  %vm6199_vm3 = vcmp.ge.f32.partialorder %v6181_v19, 0.0  ;;  %vm6200_vm4 = vcmp.ge.f32.partialorder %v6195_v18, 0.0 }
0x2016   : > { %v6207_v27 = vsel %vm6199_vm3, %v6181_v19, %v6203_v5  ;;  %v6208_v28 = vsel %vm6200_vm4, %v6195_v18, %v6204_v21  ;;  %v10166_v19 = vld [vmem:[%s10899_s9 + $0x318] sm:$0xff] }
0x2017   : > { %v10170_v18 = vld [vmem:[%s10899_s9 + $0x338] sm:$0xff] }
0x2018   : > { %v10174_v5 = vld [vmem:[%s10899_s9 + $0x358] sm:$0xff] }
0x2019   : > { %v6182_v15 = vpop.f32.mrf.mxu2  ;;  %v6196_v12 = vpop.f32.mrf.mxu3  ;;  %v10178_v21 = vld [vmem:[%s10899_s9 + $0x378] sm:$0xff] }
0x201a   : > { %v6183_v23 = vadd.f32 %v6182_v15, %v10868_v22  ;;  %v6197_v24 = vadd.f32 %v6196_v12, %v10868_v22  ;;  %v10165_v15 = vld [vmem:[%s10899_s9 + $0x310] sm:$0xff] }
0x201b   : > { %v10169_v12 = vld [vmem:[%s10899_s9 + $0x330] sm:$0xff] }
0x201c   : > { %vm6201_vm9 = vcmp.ge.f32.partialorder %v6183_v23, 0.0  ;;  %v6205_v25 = vmul.f32 0.01, %v6183_v23  ;;  %vm6202_vm10 = vcmp.ge.f32.partialorder %v6197_v24, 0.0  ;;  %v6206_v26 = vmul.f32 0.01, %v6197_v24 }
0x201e   : > { %v6209_v29 = vsel %vm6201_vm9, %v6183_v23, %v6205_v25  ;;  %v6210_v30 = vsel %vm6202_vm10, %v6197_v24, %v6206_v26  ;;  %v10173_v24 = vld [vmem:[%s10899_s9 + $0x350] sm:$0xff] }
0x201f   : > { %v6211_v31 = vpack.c.bf16 %v6209_v29, %v6207_v27  ;;  %v6212_v32 = vpack.c.bf16 %v6210_v30, %v6208_v28  ;;  %v10177_v25 = vld [vmem:[%s10899_s9 + $0x370] sm:$0xff] }
0x2021   : > { %6220 = vmatpush.bf16.msra.mxu0 %v6211_v31  ;;  %6233 = vmatpush.bf16.msra.mxu1 %v6212_v32 }
0x2024   : > { %9589 = vmatmul.msk.bf16.vlgmr.msra.gmra.mxu0 %vm2647_vm6, %v10875_v38  ;;  %9590 = vmatmul.msk.bf16.vlgmr.msra.gmra.mxu1 %vm2647_vm6, %v10875_v38 }
0x2025   : > { %6312 = vmatpush.bf16.msrb.mxu0 %v10164_v49  ;;  %6350 = vmatpush.bf16.msrb.mxu1 %v10166_v19 }
0x2029   : > { %6313 = vmatpush.bf16.msrb.mxu0 %v10163_v50  ;;  %6351 = vmatpush.bf16.msrb.mxu1 %v10165_v15 }
0x202d   : > { %6455 = vmatpush.bf16.msra.mxu0 %v10172_v51  ;;  %6490 = vmatpush.bf16.msra.mxu1 %v10174_v5 }
0x2031   : > { %6456 = vmatpush.bf16.msra.mxu0 %v10171_v52  ;;  %6491 = vmatpush.bf16.msra.mxu1 %v10173_v24 }
0x20a1   : > { %v6222_v33 = vpop.f32.mrf.mxu0  ;;  %v6235_v34 = vpop.f32.mrf.mxu1 }
0x20a2   : > { %v6223_v35 = vadd.f32 %v6222_v33, %v10881_v39  ;;  %v6236_v36 = vadd.f32 %v6235_v34, %v10881_v39 }
0x20a4   : > { %vm6239_vm11 = vcmp.ge.f32.partialorder %v6223_v35, 0.0  ;;  %v6241_v37 = vmul.f32 0.01, %v6223_v35  ;;  %vm6240_vm12 = vcmp.ge.f32.partialorder %v6236_v36, 0.0  ;;  %v6242_v40 = vmul.f32 0.01, %v6236_v36 }
0x20a6   : > { %v6243_v41 = vsel %vm6239_vm11, %v6223_v35, %v6241_v37  ;;  %v6244_v42 = vsel %vm6240_vm12, %v6236_v36, %v6242_v40 }
0x20a7   : > { %v6245_v43 = vpack.c.bf16 %v6243_v41, %v6243_v41  ;;  %v6246_v44 = vpack.c.bf16 %v6244_v42, %v6244_v42 }
0x20a9   : > { %v6224_v45 = vpop.f32.mrf.mxu0  ;;  %v6237_v46 = vpop.f32.mrf.mxu1  ;;  %v6248_v47 = vsel %vm2593_vm0, %v6245_v43, 0  ;;  %v6251_v48 = vsel %vm2593_vm0, %v6246_v44, 0 }
0x20aa   : > { %6260 = vmatpush.bf16.msra.mxu2 %v6248_v47  ;;  %6273 = vmatpush.bf16.msra.mxu3 %v6251_v48 }
0x20ad   : > { %9591 = vmatmul.msk.bf16.vlgmr.msra.gmra.mxu2 %vm2589_vm1, %v10890_v55  ;;  %9592 = vmatmul.msk.bf16.vlgmr.msra.gmra.mxu3 %vm2589_vm1, %v10890_v55 }
0x20ae   : > { %6385 = vmatpush.bf16.msrb.mxu2 %v10168_v53  ;;  %6420 = vmatpush.bf16.msrb.mxu3 %v10170_v18 }
0x20b2   : > { %6386 = vmatpush.bf16.msrb.mxu2 %v10167_v54  ;;  %6421 = vmatpush.bf16.msrb.mxu3 %v10169_v12 }
0x20b6   : > { %6525 = vmatpush.bf16.msra.mxu2 %v10176_v7  ;;  %6560 = vmatpush.bf16.msra.mxu3 %v10178_v21 }
0x20ba   : > { %6526 = vmatpush.bf16.msra.mxu2 %v10175_v20  ;;  %6561 = vmatpush.bf16.msra.mxu3 %v10177_v25 }
0x2130   : > { %v6262_v56 = vpop.f32.mrf.mxu2  ;;  %v6275_v57 = vpop.f32.mrf.mxu3 }
0x2131   : > { %v6263_v58 = vadd.f32 %v6262_v56, %v10907_v62  ;;  %v6276_v59 = vadd.f32 %v6275_v57, %v10907_v62 }
0x2133   : > { %vm6279_vm13 = vcmp.ge.f32.partialorder %v6263_v58, 0.0  ;;  %v6281_v60 = vmul.f32 0.01, %v6263_v58  ;;  %vm6280_vm14 = vcmp.ge.f32.partialorder %v6276_v59, 0.0  ;;  %v6282_v61 = vmul.f32 0.01, %v6276_v59 }
0x2135   : > { %v6283_v63 = vsel %vm6279_vm13, %v6263_v58, %v6281_v60  ;;  %v6284_v0 = vsel %vm6280_vm14, %v6276_v59, %v6282_v61 }
0x2136   : > { %v6285_v1 = vpack.c.bf16 %v6284_v0, %v6283_v63 }
0x2138   : > { %v6264_v2 = vpop.f32.mrf.mxu2  ;;  %v6277_v3 = vpop.f32.mrf.mxu3  ;;  %9605 = vmatmul.msk.bf16.vlgmr.msrb.gmra.mxu0 %vm2899_vm5, %v6285_v1  ;;  %v6325_v11 = vunpack.c.l.b16 %v6285_v1  ;;  %v6432_v9 = vunpack.c.h.b16 %v6285_v1 }
0x213a   : > { %v6326_v10 = vpack.c.b16 %v6325_v11, %v6325_v11  ;;  %v6433_v8 = vpack.c.b16 %v6432_v9, %v6432_v9 }
0x213c   : > { %6327 = vrot.lane.b32.xlu1 %v6326_v10, %s10433_s10  ;;  %6397 = vrot.lane.b32.xlu0 %v6326_v10, %s10434_s11 }
0x213d   : > { %6362 = vrot.lane.b32.xlu2 %v6326_v10, %s10435_s12 }
0x2144   : > { %6467 = vrot.lane.b32.xlu1 %v6433_v8, %s10433_s10  ;;  %6537 = vrot.lane.b32.xlu0 %v6433_v8, %s10434_s11 }
0x2145   : > { %6502 = vrot.lane.b32.xlu2 %v6433_v8, %s10435_s12 }
0x2148   : > { %9657 = vmatmul.msk.bf16.vlgmr.msra.gmra.mxu0 %vm2899_vm5, %v6433_v8 }
0x2197   : > { %v6363_v23 = vpop.permute.xlu2 %6362 }
0x2198   : > { %9631 = vmatmul.msk.bf16.vlgmr.msrb.gmra.mxu2 %vm2899_vm5, %v6363_v23 }
0x219f   : > { %v6503_v26 = vpop.permute.xlu2 %6502 }
0x21a8   : > { %9683 = vmatmul.msk.bf16.vlgmr.msra.gmra.mxu2 %vm2899_vm5, %v6503_v26 }
0x21ae   : > { %v6328_v27 = vpop.permute.xlu1 %6327  ;;  %v6398_v28 = vpop.permute.xlu0 %6397 }
0x21af   : > { %9618 = vmatmul.msk.bf16.vlgmr.msrb.gmra.mxu1 %vm2899_vm5, %v6328_v27  ;;  %9644 = vmatmul.msk.bf16.vlgmr.msrb.gmra.mxu3 %vm2899_vm5, %v6398_v28 }
0x21b5   : > { %v6315_v29 = vpop.f32.mrf.mxu0 }
0x21b6   : > { %v6468_v31 = vpop.permute.xlu1 %6467  ;;  %v6538_v32 = vpop.permute.xlu0 %6537 }
0x21bd   : > { %v6317_v30 = vpop.f32.mrf.mxu0 }
0x21bf   : > { %9670 = vmatmul.msk.bf16.vlgmr.msra.gmra.mxu1 %vm2899_vm5, %v6468_v31  ;;  %9696 = vmatmul.msk.bf16.vlgmr.msra.gmra.mxu3 %vm2899_vm5, %v6538_v32 }
0x21c5   : > { %v6458_v33 = vpop.f32.mrf.mxu0 }
0x21cd   : > { %v6460_v34 = vpop.f32.mrf.mxu0 }
0x221b   : > { %v6388_v35 = vpop.f32.mrf.mxu2 }
0x2223   : > { %v6390_v36 = vpop.f32.mrf.mxu2 }
0x222b   : > { %v6528_v37 = vpop.f32.mrf.mxu2 }
0x222c   : > { %v10353_v40 = vpack.i.bf16 %v6528_v37, %v6388_v35  ;;  %v6353_v41 = vpop.f32.mrf.mxu1 }
0x222e   : > { %10354 = vrot.lane.b32.xlu0 %v10353_v40, %s10435_s12 }
0x2232   : > { %v6423_v42 = vpop.f32.mrf.mxu3 }
0x2233   : > { %v6530_v43 = vpop.f32.mrf.mxu2 }
0x2234   : > { %v6355_v44 = vpop.f32.mrf.mxu1 }
0x223a   : > { %v6425_v45 = vpop.f32.mrf.mxu3 }
0x223c   : > { %v6493_v46 = vpop.f32.mrf.mxu1 }
0x223d   : > { %v10348_v47 = vpack.i.bf16 %v6493_v46, %v6353_v41 }
0x223f   : > { %10349 = vrot.lane.b32.xlu2 %v10348_v47, %s10434_s11 }
0x2242   : > { %v6563_v48 = vpop.f32.mrf.mxu3 }
0x2243   : > { %v10358_v49 = vpack.i.bf16 %v6563_v48, %v6423_v42 }
0x2244   : > { %v6495_v50 = vpop.f32.mrf.mxu1 }
0x2245   : > { %10359 = vrot.lane.b32.xlu1 %v10358_v49, %s10433_s10  ;;  %v9703_v50 = vld [vmem:[%s10968_s14 + $0x6] ss:$8 sm:$0x3] }
0x224a   : > { %v6565_v51 = vpop.f32.mrf.mxu3 }
0x2299   : > { %v10350_v52 = vpop.permute.xlu2 %10349 }
0x229a   : > { %v10352_v54 = vunpack.i.h.bf16 %v10350_v52  ;;  %v10351_v56 = vunpack.i.l.bf16 %v10350_v52 }
0x229c   : > { %v6591_v60 = vsel %vm2899_vm5, %v6315_v29, %v10351_v56  ;;  %v6594_v61 = vsel %vm2899_vm5, %v6458_v33, %v10352_v54  ;;  %v6722_v56 = vperm.slane %v9703_v50, 0 }
0x22a0   : > { %v10355_v53 = vpop.permute.xlu0 %10354 }
0x22a1   : > { %v10357_v57 = vunpack.i.h.bf16 %v10355_v53  ;;  %v10356_v58 = vunpack.i.l.bf16 %v10355_v53 }
0x22a3   : > { %v6592_v1 = vsel %vm3189_vm7, %v6591_v60, %v10356_v58  ;;  %v6595_v2 = vsel %vm3189_vm7, %v6594_v61, %v10357_v57  ;;  %v6723_v57 = vperm.slane %v9703_v50, 1  ;;  %v10188_v50 = vld [vmem:[%s10899_s9 + $0x3c8] sm:$0xff] }
0x22b7   : > { %v10360_v59 = vpop.permute.xlu1 %10359 }
0x22b8   : > { %v10362_v63 = vunpack.i.h.bf16 %v10360_v59  ;;  %v10361_v0 = vunpack.i.l.bf16 %v10360_v59 }
0x22ba   : > { %v6593_v3 = vsel %vm3191_vm8, %v6592_v1, %v10361_v0  ;;  %v6596_v11 = vsel %vm3191_vm8, %v6595_v2, %v10362_v63 }
0x22bb   : > { %v6597_v10 = vpack.c.bf16 %v6593_v3, %v6593_v3  ;;  %v6598_v9 = vpack.c.bf16 %v6596_v11, %v6596_v11 }
0x22bd   : > { %v6600_v8 = vsel %vm2593_vm0, %v6597_v10, 0  ;;  %v6603_v7 = vsel %vm2593_vm0, %v6598_v9, 0 }
0x22be   : > { %6612 = vmatpush.bf16.msrb.mxu0 %v6600_v8  ;;  %6626 = vmatpush.bf16.msrb.mxu1 %v6603_v7 }
0x22c1   : > { %9697 = vmatmul.msk.bf16.vlgmr.msrb.gmra.mxu0 %vm2589_vm1, %v10858_v16  ;;  %9698 = vmatmul.msk.bf16.vlgmr.msrb.gmra.mxu1 %vm2589_vm1, %v10858_v16 }
0x233e   : > { %v6614_v20 = vpop.f32.mrf.mxu0  ;;  %v6628_v19 = vpop.f32.mrf.mxu1 }
0x233f   : > { %v6615_v18 = vadd.f32 %v6614_v20, %v10864_v17  ;;  %v6629_v15 = vadd.f32 %v6628_v19, %v10864_v17 }
0x2341   : > { %v6637_v21 = vmul.f32 0.01, %v6615_v18  ;;  %v6638_v23 = vmul.f32 0.01, %v6629_v15  ;;  %vm6633_vm15 = vcmp.ge.f32.partialorder %v6615_v18, 0.0  ;;  %vm6634_vm2 = vcmp.ge.f32.partialorder %v6629_v15, 0.0 }
0x2343   : > { %v6641_v28 = vsel %vm6633_vm15, %v6615_v18, %v6637_v21  ;;  %v6642_v29 = vsel %vm6634_vm2, %v6629_v15, %v6638_v23 }
0x2346   : > { %v6616_v12 = vpop.f32.mrf.mxu0  ;;  %v6630_v5 = vpop.f32.mrf.mxu1 }
0x2347   : > { %v6617_v24 = vadd.f32 %v6616_v12, %v10868_v22  ;;  %v6631_v25 = vadd.f32 %v6630_v5, %v10868_v22 }
0x2349   : > { %vm6635_vm3 = vcmp.ge.f32.partialorder %v6617_v24, 0.0  ;;  %v6639_v26 = vmul.f32 0.01, %v6617_v24  ;;  %vm6636_vm4 = vcmp.ge.f32.partialorder %v6631_v25, 0.0  ;;  %v6640_v27 = vmul.f32 0.01, %v6631_v25 }
0x234b   : > { %v6643_v30 = vsel %vm6635_vm3, %v6617_v24, %v6639_v26  ;;  %v6644_v31 = vsel %vm6636_vm4, %v6631_v25, %v6640_v27 }
0x234c   : > { %v6645_v32 = vpack.c.bf16 %v6643_v30, %v6641_v28  ;;  %v6646_v33 = vpack.c.bf16 %v6644_v31, %v6642_v29 }
0x234e   : > { %6654 = vmatpush.bf16.msrb.mxu2 %v6645_v32  ;;  %6667 = vmatpush.bf16.msrb.mxu3 %v6646_v33 }
0x2351   : > { %9699 = vmatmul.msk.bf16.vlgmr.msrb.gmra.mxu2 %vm2647_vm6, %v10875_v38  ;;  %9700 = vmatmul.msk.bf16.vlgmr.msrb.gmra.mxu3 %vm2647_vm6, %v10875_v38 }
0x23d4   : > { %v6656_v34 = vpop.f32.mrf.mxu2  ;;  %v6669_v35 = vpop.f32.mrf.mxu3 }
0x23d5   : > { %v6657_v36 = vadd.f32 %v6656_v34, %v10881_v39  ;;  %v6670_v37 = vadd.f32 %v6669_v35, %v10881_v39 }
0x23d7   : > { %vm6673_vm9 = vcmp.ge.f32.partialorder %v6657_v36, 0.0  ;;  %v6675_v40 = vmul.f32 0.01, %v6657_v36  ;;  %vm6674_vm10 = vcmp.ge.f32.partialorder %v6670_v37, 0.0  ;;  %v6676_v41 = vmul.f32 0.01, %v6670_v37 }
0x23d9   : > { %v6677_v42 = vsel %vm6673_vm9, %v6657_v36, %v6675_v40  ;;  %v6678_v43 = vsel %vm6674_vm10, %v6670_v37, %v6676_v41 }
0x23da   : > { %v6679_v44 = vpack.c.bf16 %v6677_v42, %v6677_v42  ;;  %v6680_v45 = vpack.c.bf16 %v6678_v43, %v6678_v43 }
0x23dc   : > { %v6658_v46 = vpop.f32.mrf.mxu2  ;;  %v6671_v47 = vpop.f32.mrf.mxu3  ;;  %v6682_v48 = vsel %vm2593_vm0, %v6679_v44, 0  ;;  %v6685_v49 = vsel %vm2593_vm0, %v6680_v45, 0 }
0x23dd   : > { %6694 = vmatpush.bf16.msra.mxu0 %v6682_v48  ;;  %6707 = vmatpush.bf16.msra.mxu1 %v6685_v49  ;;  %v10180_v48 = vld [vmem:[%s10899_s9 + $0x388] sm:$0xff]  ;;  %v10179_v49 = vld [vmem:[%s10899_s9 + $0x380] sm:$0xff] }
0x23e0   : > { %9701 = vmatmul.msk.bf16.vlgmr.msra.gmra.mxu0 %vm2589_vm1, %v10890_v55  ;;  %9702 = vmatmul.msk.bf16.vlgmr.msra.gmra.mxu1 %vm2589_vm1, %v10890_v55 }
0x245d   : > { %v6696_v51 = vpop.f32.mrf.mxu0  ;;  %v6709_v52 = vpop.f32.mrf.mxu1 }
0x245e   : > { %v6697_v53 = vadd.f32 %v6696_v51, %v10907_v62  ;;  %v6710_v54 = vadd.f32 %v6709_v52, %v10907_v62  ;;  %v10187_v51 = vld [vmem:[%s10899_s9 + $0x3c0] sm:$0xff]  ;;  %v10184_v52 = vld [vmem:[%s10899_s9 + $0x3a8] sm:$0xff] }
0x2460   : > { %vm6713_vm11 = vcmp.ge.f32.partialorder %v6697_v53, 0.0  ;;  %v6715_v58 = vmul.f32 0.01, %v6697_v53  ;;  %vm6714_vm12 = vcmp.ge.f32.partialorder %v6710_v54, 0.0  ;;  %v6716_v59 = vmul.f32 0.01, %v6710_v54 }
0x2462   : > { %v6717_v60 = vsel %vm6713_vm11, %v6697_v53, %v6715_v58  ;;  %v6718_v61 = vsel %vm6714_vm12, %v6710_v54, %v6716_v59  ;;  %v10183_v53 = vld [vmem:[%s10899_s9 + $0x3a0] sm:$0xff] }
0x2463   : > { %v6726_v63 = vmul.f32 %v6722_v56, %v6717_v60  ;;  %v6727_v0 = vmul.f32 %v6723_v57, %v6718_v61 }
0x2465   : > { %v6698_v1 = vpop.f32.mrf.mxu0  ;;  %v6711_v2 = vpop.f32.mrf.mxu1  ;;  %v11562_v3 = vadd.f32 %v6726_v63, %v11464_v6  ;;  %v11565_v11 = vadd.f32 %v6727_v0, %v11467_v4 }
0x2467   : > { %v6730_v10 = vpack.c.bf16 %v11562_v3, %v11562_v3  ;;  %v6731_v9 = vpack.c.bf16 %v11565_v11, %v11565_v11 }
0x2469   : > { %v6733_v8 = vsel %vm2593_vm0, %v6730_v10, 0  ;;  %v6736_v7 = vsel %vm2593_vm0, %v6731_v9, 0 }
0x246a   : > { %6745 = vmatpush.bf16.msra.mxu2 %v6733_v8  ;;  %6759 = vmatpush.bf16.msra.mxu3 %v6736_v7 }
0x246d   : > { %9704 = vmatmul.msk.bf16.vlgmr.msra.gmra.mxu2 %vm2589_vm1, %v10858_v16  ;;  %9705 = vmatmul.msk.bf16.vlgmr.msra.gmra.mxu3 %vm2589_vm1, %v10858_v16 }
0x24f0   : > { %v6747_v6 = vpop.f32.mrf.mxu2  ;;  %v6761_v4 = vpop.f32.mrf.mxu3 }
0x24f1   : > { %v6748_v20 = vadd.f32 %v6747_v6, %v10864_v17  ;;  %v6762_v19 = vadd.f32 %v6761_v4, %v10864_v17  ;;  %v10192_v6 = vld [vmem:[%s10899_s9 + $0x3e8] sm:$0xff]  ;;  %v10191_v4 = vld [vmem:[%s10899_s9 + $0x3e0] sm:$0xff] }
0x24f3   : > { %v6770_v12 = vmul.f32 0.01, %v6748_v20  ;;  %v6771_v5 = vmul.f32 0.01, %v6762_v19  ;;  %vm6766_vm13 = vcmp.ge.f32.partialorder %v6748_v20, 0.0  ;;  %vm6767_vm14 = vcmp.ge.f32.partialorder %v6762_v19, 0.0 }
0x24f5   : > { %v6774_v26 = vsel %vm6766_vm13, %v6748_v20, %v6770_v12  ;;  %v6775_v27 = vsel %vm6767_vm14, %v6762_v19, %v6771_v5  ;;  %v10182_v20 = vld [vmem:[%s10899_s9 + $0x398] sm:$0xff] }
0x24f6   : > { %v10186_v19 = vld [vmem:[%s10899_s9 + $0x3b8] sm:$0xff] }
0x24f7   : > { %v10190_v12 = vld [vmem:[%s10899_s9 + $0x3d8] sm:$0xff] }
0x24f8   : > { %v6749_v18 = vpop.f32.mrf.mxu2  ;;  %v6763_v15 = vpop.f32.mrf.mxu3  ;;  %v10194_v5 = vld [vmem:[%s10899_s9 + $0x3f8] sm:$0xff] }
0x24f9   : > { %v6750_v21 = vadd.f32 %v6749_v18, %v10868_v22  ;;  %v6764_v23 = vadd.f32 %v6763_v15, %v10868_v22  ;;  %v10181_v18 = vld [vmem:[%s10899_s9 + $0x390] sm:$0xff] }
0x24fa   : > { %v10185_v15 = vld [vmem:[%s10899_s9 + $0x3b0] sm:$0xff] }
0x24fb   : > { %vm6768_vm15 = vcmp.ge.f32.partialorder %v6750_v21, 0.0  ;;  %v6772_v24 = vmul.f32 0.01, %v6750_v21  ;;  %vm6769_vm2 = vcmp.ge.f32.partialorder %v6764_v23, 0.0  ;;  %v6773_v25 = vmul.f32 0.01, %v6764_v23 }
0x24fd   : > { %v6776_v28 = vsel %vm6768_vm15, %v6750_v21, %v6772_v24  ;;  %v6777_v29 = vsel %vm6769_vm2, %v6764_v23, %v6773_v25  ;;  %v10189_v23 = vld [vmem:[%s10899_s9 + $0x3d0] sm:$0xff] }
0x24fe   : > { %v6778_v30 = vpack.c.bf16 %v6776_v28, %v6774_v26  ;;  %v6779_v31 = vpack.c.bf16 %v6777_v29, %v6775_v27  ;;  %v10193_v24 = vld [vmem:[%s10899_s9 + $0x3f0] sm:$0xff]  ;;  %s11721_s9 = scalar_lea.vmem %s12025_s3, %s10065_s30 }
0x2500   : > { %6787 = vmatpush.bf16.msrb.mxu0 %v6778_v30  ;;  %6800 = vmatpush.bf16.msrb.mxu1 %v6779_v31 }
0x2503   : > { %9706 = vmatmul.msk.bf16.vlgmr.msrb.gmra.mxu0 %vm2647_vm6, %v10875_v38  ;;  %9707 = vmatmul.msk.bf16.vlgmr.msrb.gmra.mxu1 %vm2647_vm6, %v10875_v38 }
0x2504   : > { %6879 = vmatpush.bf16.msra.mxu0 %v10180_v48  ;;  %6917 = vmatpush.bf16.msra.mxu1 %v10182_v20 }
0x2508   : > { %6880 = vmatpush.bf16.msra.mxu0 %v10179_v49  ;;  %6918 = vmatpush.bf16.msra.mxu1 %v10181_v18 }
0x250c   : > { %7022 = vmatpush.bf16.msrb.mxu0 %v10188_v50  ;;  %7057 = vmatpush.bf16.msrb.mxu1 %v10190_v12 }
0x2510   : > { %7023 = vmatpush.bf16.msrb.mxu0 %v10187_v51  ;;  %7058 = vmatpush.bf16.msrb.mxu1 %v10189_v23  ;;  %v2559_v51 = vld [vmem:[%s12027_s5 + $0x170] sm:$0xff] }
0x2580   : > { %v6789_v32 = vpop.f32.mrf.mxu0  ;;  %v6802_v33 = vpop.f32.mrf.mxu1 }
0x2581   : > { %v6790_v34 = vadd.f32 %v6789_v32, %v10881_v39  ;;  %v6803_v35 = vadd.f32 %v6802_v33, %v10881_v39 }
0x2583   : > { %vm6806_vm3 = vcmp.ge.f32.partialorder %v6790_v34, 0.0  ;;  %v6808_v36 = vmul.f32 0.01, %v6790_v34  ;;  %vm6807_vm4 = vcmp.ge.f32.partialorder %v6803_v35, 0.0  ;;  %v6809_v37 = vmul.f32 0.01, %v6803_v35 }
0x2585   : > { %v6810_v40 = vsel %vm6806_vm3, %v6790_v34, %v6808_v36  ;;  %v6811_v41 = vsel %vm6807_vm4, %v6803_v35, %v6809_v37 }
0x2586   : > { %v6812_v42 = vpack.c.bf16 %v6810_v40, %v6810_v40  ;;  %v6813_v43 = vpack.c.bf16 %v6811_v41, %v6811_v41 }
0x2588   : > { %v6791_v44 = vpop.f32.mrf.mxu0  ;;  %v6804_v45 = vpop.f32.mrf.mxu1  ;;  %v6815_v46 = vsel %vm2593_vm0, %v6812_v42, 0  ;;  %v6818_v47 = vsel %vm2593_vm0, %v6813_v43, 0  ;;  %v2560_v43 = vld [vmem:[%s12027_s5 + $0x178] sm:$0xff] }
0x2589   : > { %6827 = vmatpush.bf16.msrb.mxu2 %v6815_v46  ;;  %6840 = vmatpush.bf16.msrb.mxu3 %v6818_v47 }
0x258c   : > { %9708 = vmatmul.msk.bf16.vlgmr.msrb.gmra.mxu2 %vm2589_vm1, %v10890_v55  ;;  %9709 = vmatmul.msk.bf16.vlgmr.msrb.gmra.mxu3 %vm2589_vm1, %v10890_v55 }
0x258d   : > { %6952 = vmatpush.bf16.msra.mxu2 %v10184_v52  ;;  %6987 = vmatpush.bf16.msra.mxu3 %v10186_v19 }
0x2591   : > { %6953 = vmatpush.bf16.msra.mxu2 %v10183_v53  ;;  %6988 = vmatpush.bf16.msra.mxu3 %v10185_v15  ;;  %v2561_v53 = vld [vmem:[%s12027_s5 + $0x180] sm:$0xff] }
0x2595   : > { %7092 = vmatpush.bf16.msrb.mxu2 %v10192_v6  ;;  %7127 = vmatpush.bf16.msrb.mxu3 %v10194_v5 }
0x2599   : > { %7093 = vmatpush.bf16.msrb.mxu2 %v10191_v4  ;;  %7128 = vmatpush.bf16.msrb.mxu3 %v10193_v24 }
0x260f   : > { %v6829_v54 = vpop.f32.mrf.mxu2  ;;  %v6842_v56 = vpop.f32.mrf.mxu3 }
0x2610   : > { %v6830_v57 = vadd.f32 %v6829_v54, %v10907_v62  ;;  %v6843_v58 = vadd.f32 %v6842_v56, %v10907_v62  ;;  %v2562_v54 = vld [vmem:[%s12027_s5 + $0x188] sm:$0xff] }
0x2612   : > { %vm6846_vm9 = vcmp.ge.f32.partialorder %v6830_v57, 0.0  ;;  %v6848_v59 = vmul.f32 0.01, %v6830_v57  ;;  %vm6847_vm10 = vcmp.ge.f32.partialorder %v6843_v58, 0.0  ;;  %v6849_v60 = vmul.f32 0.01, %v6843_v58 }
0x2614   : > { %v6850_v61 = vsel %vm6846_vm9, %v6830_v57, %v6848_v59  ;;  %v6851_v63 = vsel %vm6847_vm10, %v6843_v58, %v6849_v60 }
0x2615   : > { %v6852_v0 = vpack.c.bf16 %v6851_v63, %v6850_v61 }
0x2617   : > { %v6831_v1 = vpop.f32.mrf.mxu2  ;;  %v6844_v2 = vpop.f32.mrf.mxu3  ;;  %9722 = vmatmul.msk.bf16.vlgmr.msra.gmra.mxu0 %vm2899_vm5, %v6852_v0  ;;  %v6892_v10 = vunpack.c.l.b16 %v6852_v0  ;;  %v6999_v8 = vunpack.c.h.b16 %v6852_v0 }
0x2619   : > { %v6893_v9 = vpack.c.b16 %v6892_v10, %v6892_v10  ;;  %v7000_v7 = vpack.c.b16 %v6999_v8, %v6999_v8 }
0x261b   : > { %6894 = vrot.lane.b32.xlu1 %v6893_v9, %s10433_s10  ;;  %6964 = vrot.lane.b32.xlu0 %v6893_v9, %s10434_s11 }
0x261c   : > { %6929 = vrot.lane.b32.xlu2 %v6893_v9, %s10435_s12 }
0x2623   : > { %7034 = vrot.lane.b32.xlu1 %v7000_v7, %s10433_s10  ;;  %7104 = vrot.lane.b32.xlu0 %v7000_v7, %s10434_s11 }
0x2624   : > { %7069 = vrot.lane.b32.xlu2 %v7000_v7, %s10435_s12 }
0x2627   : > { %9774 = vmatmul.msk.bf16.vlgmr.msrb.gmra.mxu0 %vm2899_vm5, %v7000_v7 }
0x2676   : > { %v6930_v21 = vpop.permute.xlu2 %6929 }
0x2677   : > { %9748 = vmatmul.msk.bf16.vlgmr.msra.gmra.mxu2 %vm2899_vm5, %v6930_v21 }
0x267e   : > { %v7070_v25 = vpop.permute.xlu2 %7069 }
0x2687   : > { %9800 = vmatmul.msk.bf16.vlgmr.msrb.gmra.mxu2 %vm2899_vm5, %v7070_v25 }
0x268d   : > { %v6895_v26 = vpop.permute.xlu1 %6894  ;;  %v6965_v27 = vpop.permute.xlu0 %6964 }
0x268e   : > { %9735 = vmatmul.msk.bf16.vlgmr.msra.gmra.mxu1 %vm2899_vm5, %v6895_v26  ;;  %9761 = vmatmul.msk.bf16.vlgmr.msra.gmra.mxu3 %vm2899_vm5, %v6965_v27 }
0x2694   : > { %v6882_v28 = vpop.f32.mrf.mxu0 }
0x2695   : > { %v7035_v30 = vpop.permute.xlu1 %7034  ;;  %v7105_v31 = vpop.permute.xlu0 %7104 }
0x269c   : > { %v6884_v29 = vpop.f32.mrf.mxu0 }
0x269e   : > { %9787 = vmatmul.msk.bf16.vlgmr.msrb.gmra.mxu1 %vm2899_vm5, %v7035_v30  ;;  %9813 = vmatmul.msk.bf16.vlgmr.msrb.gmra.mxu3 %vm2899_vm5, %v7105_v31 }
0x26a4   : > { %v7025_v32 = vpop.f32.mrf.mxu0 }
0x26ac   : > { %v7027_v33 = vpop.f32.mrf.mxu0 }
0x26fa   : > { %v6955_v34 = vpop.f32.mrf.mxu2 }
0x2702   : > { %v6957_v35 = vpop.f32.mrf.mxu2 }
0x270a   : > { %v7095_v36 = vpop.f32.mrf.mxu2 }
0x270b   : > { %v10368_v37 = vpack.i.bf16 %v7095_v36, %v6955_v34  ;;  %v6920_v40 = vpop.f32.mrf.mxu1 }
0x270d   : > { %10369 = vrot.lane.b32.xlu0 %v10368_v37, %s10435_s12 }
0x2711   : > { %v6990_v41 = vpop.f32.mrf.mxu3 }
0x2712   : > { %v7097_v42 = vpop.f32.mrf.mxu2 }
0x2713   : > { %v6922_v44 = vpop.f32.mrf.mxu1 }
0x2715   : > { %7374 = vperm.xlu0 %10255, %v2560_v43  }
0x2719   : > { %v6992_v45 = vpop.f32.mrf.mxu3 }
0x271b   : > { %v7060_v46 = vpop.f32.mrf.mxu1 }
0x271c   : > { %v10363_v47 = vpack.i.bf16 %v7060_v46, %v6920_v40 }
0x271e   : > { %10364 = vrot.lane.b32.xlu2 %v10363_v47, %s10434_s11 }
0x2721   : > { %v7130_v48 = vpop.f32.mrf.mxu3 }
0x2722   : > { %v10373_v49 = vpack.i.bf16 %v7130_v48, %v6990_v41 }
0x2723   : > { %v7062_v50 = vpop.f32.mrf.mxu1 }
0x2724   : > { %10374 = vrot.lane.b32.xlu1 %v10373_v49, %s10433_s10  ;;  %v2504_v49 = vld [vmem:[%s12027_s5 + $0x48] sm:$0xff] }
0x2726   : > { %7369 = vperm.xlu2 %10257, %v2559_v51   ;;  %v9820_v51 = vld [vmem:[%s10968_s14 + $0x7] ss:$8 sm:$0x3] }
0x2729   : > { %v7132_v52 = vpop.f32.mrf.mxu3 }
0x272c   : > { %7397 = vperm.xlu1 %10256, %v2561_v53  }
0x272e   : > { %7439 = vperm.xlu2 %10257, %v2562_v54  }
0x2778   : > { %v10365_v56 = vpop.permute.xlu2 %10364 }
0x2779   : > { %v10367_v58 = vunpack.i.h.bf16 %v10365_v56  ;;  %v10366_v59 = vunpack.i.l.bf16 %v10365_v56  ;;  %v7289_v56 = vperm.slane %v9820_v51, 0 }
0x277b   : > { %v7158_v0 = vsel %vm2899_vm5, %v6882_v28, %v10366_v59  ;;  %v7161_v1 = vsel %vm2899_vm5, %v7025_v32, %v10367_v58 }
0x277f   : > { %v10370_v57 = vpop.permute.xlu0 %10369 }
0x2780   : > { %v10372_v60 = vunpack.i.h.bf16 %v10370_v57  ;;  %v10371_v61 = vunpack.i.l.bf16 %v10370_v57  ;;  %v7290_v57 = vperm.slane %v9820_v51, 1 }
0x2782   : > { %v7159_v9 = vsel %vm3189_vm7, %v7158_v0, %v10371_v61  ;;  %v7162_v8 = vsel %vm3189_vm7, %v7161_v1, %v10372_v60 }
0x2796   : > { %v10375_v63 = vpop.permute.xlu1 %10374 }
0x2797   : > { %v10377_v2 = vunpack.i.h.bf16 %v10375_v63  ;;  %v10376_v10 = vunpack.i.l.bf16 %v10375_v63 }
0x2799   : > { %v7160_v7 = vsel %vm3191_vm8, %v7159_v9, %v10376_v10  ;;  %v7163_v6 = vsel %vm3191_vm8, %v7162_v8, %v10377_v2  ;;  %v2507_v8 = vld [vmem:[%s12027_s5 + $0x58] sm:$0xff] }
0x279a   : > { %v7164_v4 = vpack.c.bf16 %v7160_v7, %v7160_v7  ;;  %v7165_v20 = vpack.c.bf16 %v7163_v6, %v7163_v6 }
0x279c   : > { %v7167_v19 = vsel %vm2593_vm0, %v7164_v4, 0  ;;  %v7170_v18 = vsel %vm2593_vm0, %v7165_v20, 0 }
0x279d   : > { %7179 = vmatpush.bf16.msra.mxu0 %v7167_v19  ;;  %7193 = vmatpush.bf16.msra.mxu1 %v7170_v18 }
0x27a0   : > { %9814 = vmatmul.msk.bf16.vlgmr.msra.gmra.mxu0 %vm2589_vm1, %v10858_v16  ;;  %9815 = vmatmul.msk.bf16.vlgmr.msra.gmra.mxu1 %vm2589_vm1, %v10858_v16 }
0x281d   : > { %v7181_v15 = vpop.f32.mrf.mxu0  ;;  %v7195_v12 = vpop.f32.mrf.mxu1 }
0x281e   : > { %v7182_v5 = vadd.f32 %v7181_v15, %v10864_v17  ;;  %v7196_v21 = vadd.f32 %v7195_v12, %v10864_v17 }
0x2820   : > { %v7204_v25 = vmul.f32 0.01, %v7182_v5  ;;  %v7205_v26 = vmul.f32 0.01, %v7196_v21  ;;  %vm7200_vm11 = vcmp.ge.f32.partialorder %v7182_v5, 0.0  ;;  %vm7201_vm12 = vcmp.ge.f32.partialorder %v7196_v21, 0.0 }
0x2822   : > { %v7208_v30 = vsel %vm7200_vm11, %v7182_v5, %v7204_v25  ;;  %v7209_v31 = vsel %vm7201_vm12, %v7196_v21, %v7205_v26  ;;  %v7370_v21 = vpop.permute.xlu2 %7369 }
0x2825   : > { %v7183_v23 = vpop.f32.mrf.mxu0  ;;  %v7197_v24 = vpop.f32.mrf.mxu1 }
0x2826   : > { %v7184_v27 = vadd.f32 %v7183_v23, %v10868_v22  ;;  %v7198_v28 = vadd.f32 %v7197_v24, %v10868_v22 }
0x2828   : > { %vm7202_vm13 = vcmp.ge.f32.partialorder %v7184_v27, 0.0  ;;  %v7206_v29 = vmul.f32 0.01, %v7184_v27  ;;  %vm7203_vm14 = vcmp.ge.f32.partialorder %v7198_v28, 0.0  ;;  %v7207_v16 = vmul.f32 0.01, %v7198_v28 }
0x282a   : > { %v7210_v32 = vsel %vm7202_vm13, %v7184_v27, %v7206_v29  ;;  %v7211_v33 = vsel %vm7203_vm14, %v7198_v28, %v7207_v16 }
0x282b   : > { %v7212_v34 = vpack.c.bf16 %v7210_v32, %v7208_v30  ;;  %v7213_v17 = vpack.c.bf16 %v7211_v33, %v7209_v31  ;;  %v7375_v30 = vpop.permute.xlu0 %7374 }
0x282d   : > { %7221 = vmatpush.bf16.msra.mxu2 %v7212_v34  ;;  %7234 = vmatpush.bf16.msra.mxu3 %v7213_v17 }
0x2830   : > { %9816 = vmatmul.msk.bf16.vlgmr.msra.gmra.mxu2 %vm2647_vm6, %v10875_v38  ;;  %9817 = vmatmul.msk.bf16.vlgmr.msra.gmra.mxu3 %vm2647_vm6, %v10875_v38 }
0x28b3   : > { %v7223_v22 = vpop.f32.mrf.mxu2  ;;  %v7236_v35 = vpop.f32.mrf.mxu3 }
0x28b4   : > { %v7224_v36 = vadd.f32 %v7223_v22, %v10881_v39  ;;  %v7237_v37 = vadd.f32 %v7236_v35, %v10881_v39  ;;  %v2503_v39 = vld [vmem:[%s12027_s5 + $0x40] sm:$0xff] }
0x28b5   : > { %v2505_v50 = vpack.c.bf16 %v2504_v49, %v2503_v39  ;;  %v2509_v35 = vld [vmem:[%s12027_s5 + $0x60] sm:$0xff] }
0x28b6   : > { %vm7240_vm15 = vcmp.ge.f32.partialorder %v7224_v36, 0.0  ;;  %v7242_v40 = vmul.f32 0.01, %v7224_v36  ;;  %vm7241_vm2 = vcmp.ge.f32.partialorder %v7237_v37, 0.0  ;;  %v7243_v41 = vmul.f32 0.01, %v7237_v37 }
0x28b8   : > { %v7244_v42 = vsel %vm7240_vm15, %v7224_v36, %v7242_v40  ;;  %v7245_v43 = vsel %vm7241_vm2, %v7237_v37, %v7243_v41 }
0x28b9   : > { %v7246_v44 = vpack.c.bf16 %v7244_v42, %v7244_v42  ;;  %v7247_v45 = vpack.c.bf16 %v7245_v43, %v7245_v43 }
0x28bb   : > { %v7225_v46 = vpop.f32.mrf.mxu2  ;;  %v7238_v47 = vpop.f32.mrf.mxu3  ;;  %v7249_v48 = vsel %vm2593_vm0, %v7246_v44, 0  ;;  %v7252_v38 = vsel %vm2593_vm0, %v7247_v45, 0  ;;  %v2510_v44 = vpack.c.bf16 %v2509_v35, %v2509_v35 }
0x28bc   : > { %7261 = vmatpush.bf16.msrb.mxu0 %v7249_v48  ;;  %7274 = vmatpush.bf16.msrb.mxu1 %v7252_v38  ;;  %v7398_v45 = vpop.permute.xlu1 %7397 }
0x28bf   : > { %9818 = vmatmul.msk.bf16.vlgmr.msrb.gmra.mxu0 %vm2589_vm1, %v10890_v55  ;;  %9819 = vmatmul.msk.bf16.vlgmr.msrb.gmra.mxu1 %vm2589_vm1, %v10890_v55 }
0x28c0   : > { %7346 = vmatpush.bf16.msra.mxu0 %v10803_v13  ;;  %7360 = vmatpush.bf16.msra.mxu1 %v10806_v14 }
0x28cf   : > { %9823 = vmatmul.msk.bf16.vlgmr.msra.gmra.mxu0 %vm2589_vm1, %v2505_v50  ;;  %9824 = vmatmul.msk.bf16.vlgmr.msra.gmra.mxu1 %vm2589_vm1, %v2505_v50 }
0x293c   : > { %v7263_v52 = vpop.f32.mrf.mxu0  ;;  %v7276_v53 = vpop.f32.mrf.mxu1 }
0x293d   : > { %v7264_v54 = vadd.f32 %v7263_v52, %v10907_v62  ;;  %v7277_v55 = vadd.f32 %v7276_v53, %v10907_v62  ;;  %v2506_v62 = vld [vmem:[%s12027_s5 + $0x50] sm:$0xff]  ;;  %v2511_v52 = vld [vmem:[%s12027_s5 + $0x68] sm:$0xff] }
0x293e   : > { %v2508_v19 = vpack.c.bf16 %v2507_v8, %v2506_v62 }
0x293f   : > { %vm7280_vm3 = vcmp.ge.f32.partialorder %v7264_v54, 0.0  ;;  %v7282_v58 = vmul.f32 0.01, %v7264_v54  ;;  %vm7281_vm4 = vcmp.ge.f32.partialorder %v7277_v55, 0.0  ;;  %v7283_v59 = vmul.f32 0.01, %v7277_v55 }
0x2941   : > { %v7284_v60 = vsel %vm7280_vm3, %v7264_v54, %v7282_v58  ;;  %v7285_v61 = vsel %vm7281_vm4, %v7277_v55, %v7283_v59  ;;  %v2512_v59 = vpack.c.bf16 %v2511_v52, %v2511_v52 }
0x2942   : > { %v7293_v63 = vmul.f32 %v7289_v56, %v7284_v60  ;;  %v7294_v0 = vmul.f32 %v7290_v57, %v7285_v61  ;;  %v10196_v60 = vld [vmem:[%s11721_s9 + $0x8] sm:$0xff]  ;;  %v10195_v61 = vld [vmem:[%s11721_s9] sm:$0xff] }
0x2944   : > { %v7265_v1 = vpop.f32.mrf.mxu0  ;;  %v7278_v2 = vpop.f32.mrf.mxu1  ;;  %v7295_v10 = vadd.f32 %v7293_v63, %v11562_v3  ;;  %v7296_v9 = vadd.f32 %v7294_v0, %v11565_v11  ;;  %v10204_v63 = vld [vmem:[%s11721_s9 + $0x48] sm:$0xff]  ;;  %v10203_v0 = vld [vmem:[%s11721_s9 + $0x40] sm:$0xff] }
0x2945   : > { %v10202_v1 = vld [vmem:[%s11721_s9 + $0x38] sm:$0xff]  ;;  %v10201_v2 = vld [vmem:[%s11721_s9 + $0x30] sm:$0xff] }
0x2946   : > { %v7297_v7 = vpack.c.bf16 %v7295_v10, %v7295_v10  ;;  %v7298_v6 = vpack.c.bf16 %v7296_v9, %v7296_v9  ;;  %v7440_v10 = vpop.permute.xlu2 %7439 }
0x2948   : > { %v11690_v4 = vsel %vm2593_vm0, %v7297_v7, 0  ;;  %v11693_v20 = vsel %vm2593_vm0, %v7298_v6, 0 }
0x2949   : > { %7315 = vmatpush.bf16.msrb.mxu2 %v11690_v4  ;;  %7329 = vmatpush.bf16.msrb.mxu3 %v11693_v20 }
0x294c   : > { %9821 = vmatmul.msk.bf16.vlgmr.msrb.gmra.mxu2 %vm2589_vm1, %v2508_v19  ;;  %9822 = vmatmul.msk.bf16.vlgmr.msrb.gmra.mxu3 %vm2589_vm1, %v2508_v19  ;;  %v7348_v3 = vpop.f32.mrf.mxu0  ;;  %v7362_v11 = vpop.f32.mrf.mxu1 }
0x2954   : > { %v7350_v25 = vpop.f32.mrf.mxu0  ;;  %v7364_v26 = vpop.f32.mrf.mxu1 }
0x29cf   : > { %v7317_v18 = vpop.f32.mrf.mxu2  ;;  %v7331_v15 = vpop.f32.mrf.mxu3 }
0x29d0   : > { %v7349_v12 = vadd.f32 %v7348_v3, %v7317_v18  ;;  %v7363_v5 = vadd.f32 %v7362_v11, %v7331_v15 }
0x29d2   : > { %v7377_v23 = vadd.f32 %v7370_v21, %v7349_v12  ;;  %v7378_v24 = vadd.f32 %v7370_v21, %v7363_v5 }
0x29d4   : > { %v7385_v31 = vmul.f32 0.01, %v7377_v23  ;;  %v7386_v32 = vmul.f32 0.01, %v7378_v24  ;;  %vm7381_vm9 = vcmp.ge.f32.partialorder %v7377_v23, 0.0  ;;  %vm7382_vm10 = vcmp.ge.f32.partialorder %v7378_v24, 0.0 }
0x29d6   : > { %v7389_v36 = vsel %vm7381_vm9, %v7377_v23, %v7385_v31  ;;  %v7390_v37 = vsel %vm7382_vm10, %v7378_v24, %v7386_v32  ;;  %v10206_v31 = vld [vmem:[%s11721_s9 + $0x58] sm:$0xff]  ;;  %v10208_v32 = vld [vmem:[%s11721_s9 + $0x68] sm:$0xff] }
0x29d7   : > { %v7319_v27 = vpop.f32.mrf.mxu2  ;;  %v7333_v28 = vpop.f32.mrf.mxu3 }
0x29d8   : > { %v7351_v29 = vadd.f32 %v7350_v25, %v7319_v27  ;;  %v7365_v16 = vadd.f32 %v7364_v26, %v7333_v28  ;;  %v10210_v25 = vld [vmem:[%s11721_s9 + $0x78] sm:$0xff]  ;;  %v10209_v26 = vld [vmem:[%s11721_s9 + $0x70] sm:$0xff]  ;;  %v10200_v28 = vld [vmem:[%s11721_s9 + $0x28] sm:$0xff] }
0x29d9   : > { %v10198_v27 = vld [vmem:[%s11721_s9 + $0x18] sm:$0xff] }
0x29da   : > { %v7379_v33 = vadd.f32 %v7375_v30, %v7351_v29  ;;  %v7380_v34 = vadd.f32 %v7375_v30, %v7365_v16  ;;  %v10197_v29 = vld [vmem:[%s11721_s9 + $0x10] sm:$0xff]  ;;  %v10199_v16 = vld [vmem:[%s11721_s9 + $0x20] sm:$0xff] }
0x29dc   : > { %vm7383_vm11 = vcmp.ge.f32.partialorder %v7379_v33, 0.0  ;;  %v7387_v17 = vmul.f32 0.01, %v7379_v33  ;;  %vm7384_vm12 = vcmp.ge.f32.partialorder %v7380_v34, 0.0  ;;  %v7388_v22 = vmul.f32 0.01, %v7380_v34 }
0x29de   : > { %v7391_v40 = vsel %vm7383_vm11, %v7379_v33, %v7387_v17  ;;  %v7392_v41 = vsel %vm7384_vm12, %v7380_v34, %v7388_v22  ;;  %v10205_v33 = vld [vmem:[%s11721_s9 + $0x50] sm:$0xff]  ;;  %v10207_v34 = vld [vmem:[%s11721_s9 + $0x60] sm:$0xff] }
0x29df   : > { %v7393_v42 = vpack.c.bf16 %v7391_v40, %v7389_v36  ;;  %v7394_v43 = vpack.c.bf16 %v7392_v41, %v7390_v37 }
0x29e1   : > { %7410 = vmatpush.bf16.msra.mxu2 %v7393_v42  ;;  %7423 = vmatpush.bf16.msra.mxu3 %v7394_v43 }
0x29e4   : > { %9825 = vmatmul.msk.bf16.vlgmr.msra.gmra.mxu2 %vm2647_vm6, %v2510_v44  ;;  %9826 = vmatmul.msk.bf16.vlgmr.msra.gmra.mxu3 %vm2647_vm6, %v2510_v44 }
0x29e5   : > { %7509 = vmatpush.bf16.msrb.mxu2 %v10196_v60  ;;  %7547 = vmatpush.bf16.msrb.mxu3 %v10198_v27 }
0x29e9   : > { %7510 = vmatpush.bf16.msrb.mxu2 %v10195_v61  ;;  %7548 = vmatpush.bf16.msrb.mxu3 %v10197_v29 }
0x29ed   : > { %7652 = vmatpush.bf16.msra.mxu2 %v10204_v63  ;;  %7687 = vmatpush.bf16.msra.mxu3 %v10206_v31 }
0x29f1   : > { %7653 = vmatpush.bf16.msra.mxu2 %v10203_v0  ;;  %7688 = vmatpush.bf16.msra.mxu3 %v10205_v33 }
0x2a67   : > { %v7412_v46 = vpop.f32.mrf.mxu2  ;;  %v7425_v47 = vpop.f32.mrf.mxu3 }
0x2a68   : > { %v7413_v48 = vadd.f32 %v7412_v46, %v7398_v45  ;;  %v7426_v38 = vadd.f32 %v7425_v47, %v7398_v45 }
0x2a6a   : > { %vm7429_vm13 = vcmp.ge.f32.partialorder %v7413_v48, 0.0  ;;  %v7431_v39 = vmul.f32 0.01, %v7413_v48  ;;  %vm7430_vm14 = vcmp.ge.f32.partialorder %v7426_v38, 0.0  ;;  %v7432_v49 = vmul.f32 0.01, %v7426_v38 }
0x2a6c   : > { %v7433_v50 = vsel %vm7429_vm13, %v7413_v48, %v7431_v39  ;;  %v7434_v51 = vsel %vm7430_vm14, %v7426_v38, %v7432_v49  ;;  %v2565_v39 = vld [vmem:[%s12027_s5 + $0x1a0] sm:$0xff] }
0x2a6d   : > { %v7435_v53 = vpack.c.bf16 %v7433_v50, %v7433_v50  ;;  %v7436_v54 = vpack.c.bf16 %v7434_v51, %v7434_v51 }
0x2a6f   : > { %v7414_v55 = vpop.f32.mrf.mxu2  ;;  %v7427_v56 = vpop.f32.mrf.mxu3  ;;  %v7446_v57 = vsel %vm2593_vm0, %v7435_v53, 0  ;;  %v7449_v58 = vsel %vm2593_vm0, %v7436_v54, 0 }
0x2a70   : > { %7458 = vmatpush.bf16.msrb.mxu0 %v7446_v57  ;;  %7471 = vmatpush.bf16.msrb.mxu1 %v7449_v58  ;;  %v2564_v57 = vld [vmem:[%s12027_s5 + $0x198] sm:$0xff] }
0x2a73   : > { %9827 = vmatmul.msk.bf16.vlgmr.msrb.gmra.mxu0 %vm2589_vm1, %v2512_v59  ;;  %9828 = vmatmul.msk.bf16.vlgmr.msrb.gmra.mxu1 %vm2589_vm1, %v2512_v59  ;;  %v2563_v59 = vld [vmem:[%s12027_s5 + $0x190] sm:$0xff] }
0x2a74   : > { %7617 = vmatpush.bf16.msra.mxu1 %v10202_v1  ;;  %7582 = vmatpush.bf16.msra.mxu0 %v10200_v28  ;;  %v2566_v28 = vld [vmem:[%s12027_s5 + $0x1a8] sm:$0xff] }
0x2a78   : > { %7618 = vmatpush.bf16.msra.mxu1 %v10201_v2  ;;  %7583 = vmatpush.bf16.msra.mxu0 %v10199_v16 }
0x2a7c   : > { %7757 = vmatpush.bf16.msrb.mxu1 %v10210_v25  ;;  %7722 = vmatpush.bf16.msrb.mxu0 %v10208_v32 }
0x2a80   : > { %7758 = vmatpush.bf16.msrb.mxu1 %v10209_v26  ;;  %7723 = vmatpush.bf16.msrb.mxu0 %v10207_v34 }
0x2af0   : > { %v7460_v9 = vpop.f32.mrf.mxu0  ;;  %v7473_v62 = vpop.f32.mrf.mxu1 }
0x2af1   : > { %v7461_v8 = vadd.f32 %v7460_v9, %v7440_v10  ;;  %v7474_v7 = vadd.f32 %v7473_v62, %v7440_v10 }
0x2af3   : > { %vm7477_vm15 = vcmp.ge.f32.partialorder %v7461_v8, 0.0  ;;  %v7479_v6 = vmul.f32 0.01, %v7461_v8  ;;  %vm7478_vm2 = vcmp.ge.f32.partialorder %v7474_v7, 0.0  ;;  %v7480_v19 = vmul.f32 0.01, %v7474_v7 }
0x2af5   : > { %v7481_v3 = vsel %vm7477_vm15, %v7461_v8, %v7479_v6  ;;  %v7482_v11 = vsel %vm7478_vm2, %v7474_v7, %v7480_v19 }
0x2af6   : > { %v7483_v18 = vpack.c.bf16 %v7482_v11, %v7481_v3 }
0x2af8   : > { %v7462_v15 = vpop.f32.mrf.mxu0  ;;  %v7475_v12 = vpop.f32.mrf.mxu1  ;;  %9837 = vmatmul.msk.bf16.vlgmr.msrb.gmra.mxu2 %vm2899_vm5, %v7483_v18  ;;  %v7522_v5 = vunpack.c.l.b16 %v7483_v18  ;;  %v7629_v23 = vunpack.c.h.b16 %v7483_v18 }
0x2afa   : > { %v7523_v21 = vpack.c.b16 %v7522_v5, %v7522_v5  ;;  %v7630_v24 = vpack.c.b16 %v7629_v23, %v7629_v23  ;;  %v2513_v5 = vld [vmem:[%s12027_s5 + $0x70] sm:$0xff] }
0x2afc   : > { %7594 = vrot.lane.b32.xlu2 %v7523_v21, %s10434_s11  ;;  %7559 = vrot.lane.b32.xlu1 %v7523_v21, %s10435_s12 }
0x2afd   : > { %7524 = vrot.lane.b32.xlu0 %v7523_v21, %s10433_s10  ;;  %v2514_v21 = vld [vmem:[%s12027_s5 + $0x78] sm:$0xff] }
0x2afe   : > { %v2515_v27 = vpack.c.bf16 %v2514_v21, %v2513_v5  ;;  %v10226_v5 = vld [vmem:[%s11805_s24 + $0x78] sm:$0xff]  ;;  %v10223_v21 = vld [vmem:[%s11805_s24 + $0x60] sm:$0xff] }
0x2b04   : > { %7734 = vrot.lane.b32.xlu2 %v7630_v24, %s10434_s11  ;;  %7699 = vrot.lane.b32.xlu1 %v7630_v24, %s10435_s12 }
0x2b05   : > { %7664 = vrot.lane.b32.xlu0 %v7630_v24, %s10433_s10 }
0x2b08   : > { %9889 = vmatmul.msk.bf16.vlgmr.msra.gmra.mxu2 %vm2899_vm5, %v7630_v24 }
0x2b56   : > { %v7595_v30 = vpop.permute.xlu2 %7594 }
0x2b57   : > { %9876 = vmatmul.msk.bf16.vlgmr.msra.gmra.mxu1 %vm2899_vm5, %v7595_v30 }
0x2b5e   : > { %v7735_v17 = vpop.permute.xlu2 %7734 }
0x2b67   : > { %9928 = vmatmul.msk.bf16.vlgmr.msrb.gmra.mxu1 %vm2899_vm5, %v7735_v17 }
0x2b6e   : > { %v7560_v22 = vpop.permute.xlu1 %7559 }
0x2b6f   : > { %v7525_v35 = vpop.permute.xlu0 %7524  ;;  %9863 = vmatmul.msk.bf16.vlgmr.msra.gmra.mxu0 %vm2899_vm5, %v7560_v22 }
0x2b70   : > { %9850 = vmatmul.msk.bf16.vlgmr.msrb.gmra.mxu3 %vm2899_vm5, %v7525_v35 }
0x2b76   : > { %v7700_v37 = vpop.permute.xlu1 %7699 }
0x2b77   : > { %v7665_v40 = vpop.permute.xlu0 %7664 }
0x2b7b   : > { %v7512_v36 = vpop.f32.mrf.mxu2 }
0x2b7f   : > { %9915 = vmatmul.msk.bf16.vlgmr.msrb.gmra.mxu0 %vm2899_vm5, %v7700_v37 }
0x2b80   : > { %9902 = vmatmul.msk.bf16.vlgmr.msra.gmra.mxu3 %vm2899_vm5, %v7665_v40 }
0x2b83   : > { %v7514_v41 = vpop.f32.mrf.mxu2 }
0x2b8b   : > { %v7655_v42 = vpop.f32.mrf.mxu2 }
0x2b93   : > { %v7657_v43 = vpop.f32.mrf.mxu2 }
0x2bd4   : > { %v7620_v44 = vpop.f32.mrf.mxu1 }
0x2bdc   : > { %v7622_v45 = vpop.f32.mrf.mxu1 }
0x2bdd   : > { %v10212_v45 = vld [vmem:[%s11805_s24 + $0x8] sm:$0xff] }
0x2be4   : > { %v7760_v46 = vpop.f32.mrf.mxu1 }
0x2be5   : > { %v10388_v47 = vpack.i.bf16 %v7760_v46, %v7620_v44 }
0x2be7   : > { %10389 = vrot.lane.b32.xlu2 %v10388_v47, %s10433_s10 }
0x2bec   : > { %v7585_v48 = vpop.f32.mrf.mxu0  ;;  %v7762_v38 = vpop.f32.mrf.mxu1 }
0x2bed   : > { %v10214_v38 = vld [vmem:[%s11805_s24 + $0x18] sm:$0xff] }
0x2bef   : > { %7863 = vperm.xlu2 %10257, %v2565_v39  }
0x2bf3   : > { %v7550_v49 = vpop.f32.mrf.mxu3 }
0x2bf4   : > { %v7587_v50 = vpop.f32.mrf.mxu0 }
0x2bf5   : > { %v10211_v50 = vld [vmem:[%s11805_s24] sm:$0xff] }
0x2bfb   : > { %v7552_v51 = vpop.f32.mrf.mxu3 }
0x2bfc   : > { %v7725_v52 = vpop.f32.mrf.mxu0  ;;  %v10213_v51 = vld [vmem:[%s11805_s24 + $0x10] sm:$0xff] }
0x2bfd   : > { %v10383_v53 = vpack.i.bf16 %v7725_v52, %v7585_v48  ;;  %v10220_v52 = vld [vmem:[%s11805_s24 + $0x48] sm:$0xff] }
0x2bff   : > { %10384 = vrot.lane.b32.xlu1 %v10383_v53, %s10435_s12  ;;  %v10222_v53 = vld [vmem:[%s11805_s24 + $0x58] sm:$0xff] }
0x2c03   : > { %v7690_v54 = vpop.f32.mrf.mxu3 }
0x2c04   : > { %v10378_v55 = vpack.i.bf16 %v7690_v54, %v7550_v49  ;;  %v7727_v56 = vpop.f32.mrf.mxu0  ;;  %v10219_v54 = vld [vmem:[%s11805_s24 + $0x40] sm:$0xff] }
0x2c06   : > { %10379 = vrot.lane.b32.xlu0 %v10378_v55, %s10434_s11  ;;  %v10221_v55 = vld [vmem:[%s11805_s24 + $0x50] sm:$0xff] }
0x2c07   : > { %7802 = vperm.xlu1 %10256, %v2564_v57  }
0x2c0b   : > { %v7692_v58 = vpop.f32.mrf.mxu3 }
0x2c0e   : > { %7797 = vperm.xlu0 %10255, %v2563_v59  }
0x2c41   : > { %v10390_v61 = vpop.permute.xlu2 %10389 }
0x2c42   : > { %v10392_v9 = vunpack.i.h.bf16 %v10390_v61  ;;  %v10391_v62 = vunpack.i.l.bf16 %v10390_v61 }
0x2c49   : > { %v7864_v56 = vpop.permute.xlu2 %7863 }
0x2c71   : > { %v10385_v60 = vpop.permute.xlu1 %10384 }
0x2c72   : > { %v10387_v2 = vunpack.i.h.bf16 %v10385_v60  ;;  %v10386_v10 = vunpack.i.l.bf16 %v10385_v60 }
0x2c78   : > { %v10380_v63 = vpop.permute.xlu0 %10379 }
0x2c79   : > { %v10382_v0 = vunpack.i.h.bf16 %v10380_v63  ;;  %v10381_v1 = vunpack.i.l.bf16 %v10380_v63  ;;  %v7803_v33 = vpop.permute.xlu1 %7802 }
0x2c7b   : > { %v7788_v8 = vsel %vm2899_vm5, %v7512_v36, %v10381_v1  ;;  %v7791_v7 = vsel %vm2899_vm5, %v7655_v42, %v10382_v0  ;;  %v2516_v42 = vld [vmem:[%s12027_s5 + $0x80] sm:$0xff] }
0x2c7c   : > { %v7789_v6 = vsel %vm3189_vm7, %v7788_v8, %v10386_v10  ;;  %v7792_v19 = vsel %vm3189_vm7, %v7791_v7, %v10387_v2  ;;  %v2517_v49 = vpack.c.bf16 %v2516_v42, %v2516_v42  ;;  %v10218_v8 = vld [vmem:[%s11805_s24 + $0x38] sm:$0xff] }
0x2c7d   : > { %v7790_v3 = vsel %vm3191_vm8, %v7789_v6, %v10391_v62  ;;  %v7793_v11 = vsel %vm3191_vm8, %v7792_v19, %v10392_v9  ;;  %v10216_v9 = vld [vmem:[%s11805_s24 + $0x28] sm:$0xff] }
0x2c7e   : > { %v11771_v18 = vpack.c.bf16 %v7793_v11, %v7790_v3 }
0x2c80   : > { %v7807_v15 = vunpack.c.h.b16 %v11771_v18  ;;  %v7806_v12 = vunpack.c.l.b16 %v11771_v18  ;;  %v7798_v30 = vpop.permute.xlu0 %7797 }
0x2c82   : > { %v7808_v23 = vpack.c.b16 %v7806_v12, %v7806_v12  ;;  %v11781_v24 = vpack.c.b16 %v7807_v15, %v7807_v15  ;;  %v10217_v15 = vld [vmem:[%s11805_s24 + $0x30] sm:$0xff]  ;;  %v10224_v12 = vld [vmem:[%s11805_s24 + $0x68] sm:$0xff] }
0x2c84   : > { %8005 = vrot.lane.b32.xlu2 %v7808_v23, %s10433_s10  ;;  %8087 = vrot.lane.b32.xlu1 %v7808_v23, %s10434_s11  ;;  %v7814_v25 = vsel %vm2593_vm0, %v7808_v23, 0  ;;  %v7817_v26 = vsel %vm2593_vm0, %v11781_v24, 0 }
0x2c85   : > { %8046 = vrot.lane.b32.xlu0 %v7808_v23, %s10435_s12  ;;  %7826 = vmatpush.bf16.msrb.mxu2 %v7814_v25 }
0x2c86   : > { %7840 = vmatpush.bf16.msrb.mxu3 %v7817_v26 }
0x2c88   : > { %9929 = vmatmul.msk.bf16.vlgmr.msrb.gmra.mxu2 %vm2589_vm1, %v2515_v27 }
0x2c89   : > { %9930 = vmatmul.msk.bf16.vlgmr.msrb.gmra.mxu3 %vm2589_vm1, %v2515_v27 }
0x2c8c   : > { %8164 = vrot.lane.b32.xlu2 %v11781_v24, %s10433_s10  ;;  %8246 = vrot.lane.b32.xlu1 %v11781_v24, %s10434_s11 }
0x2c8d   : > { %8205 = vrot.lane.b32.xlu0 %v11781_v24, %s10435_s12 }
0x2c95   : > { %7905 = vperm.xlu0 %10255, %v2566_v28  }
0x2cde   : > { %v8006_v57 = vpop.permute.xlu2 %8005 }
0x2ce6   : > { %v8165_v58 = vpop.permute.xlu2 %8164 }
0x2cf7   : > { %v8047_v28 = vpop.permute.xlu0 %8046 }
0x2d0b   : > { %v7828_v29 = vpop.f32.mrf.mxu2 }
0x2d0c   : > { %v7842_v16 = vpop.f32.mrf.mxu3  ;;  %v7829_v31 = vadd.f32 %v7828_v29, %v7798_v30  ;;  %v8088_v29 = vpop.permute.xlu1 %8087 }
0x2d0d   : > { %v7843_v32 = vadd.f32 %v7842_v16, %v7798_v30 }
0x2d0e   : > { %v7851_v17 = vmul.f32 0.01, %v7829_v31  ;;  %vm7847_vm3 = vcmp.ge.f32.partialorder %v7829_v31, 0.0 }
0x2d0f   : > { %v7852_v36 = vmul.f32 0.01, %v7843_v32  ;;  %vm7848_vm4 = vcmp.ge.f32.partialorder %v7843_v32, 0.0 }
0x2d10   : > { %v7855_v43 = vsel %vm7847_vm3, %v7829_v31, %v7851_v17 }
0x2d11   : > { %v7856_v46 = vsel %vm7848_vm4, %v7843_v32, %v7852_v36 }
0x2d13   : > { %v7830_v34 = vpop.f32.mrf.mxu2 }
0x2d14   : > { %v7831_v22 = vadd.f32 %v7830_v34, %v7803_v33  ;;  %v7844_v35 = vpop.f32.mrf.mxu3  ;;  %v8206_v34 = vpop.permute.xlu0 %8205 }
0x2d15   : > { %v7845_v37 = vadd.f32 %v7844_v35, %v7803_v33  ;;  %v8247_v17 = vpop.permute.xlu1 %8246 }
0x2d16   : > { %vm7849_vm9 = vcmp.ge.f32.partialorder %v7831_v22, 0.0  ;;  %v7853_v40 = vmul.f32 0.01, %v7831_v22 }
0x2d17   : > { %vm7850_vm10 = vcmp.ge.f32.partialorder %v7845_v37, 0.0  ;;  %v7854_v41 = vmul.f32 0.01, %v7845_v37 }
0x2d18   : > { %v7857_v44 = vsel %vm7849_vm9, %v7831_v22, %v7853_v40  ;;  %v9935_v22 = vld [vmem:[%s10968_s14 + $0x11] ss:$8 sm:$0x3] }
0x2d19   : > { %v7859_v47 = vpack.c.bf16 %v7857_v44, %v7855_v43  ;;  %v7858_v48 = vsel %vm7850_vm10, %v7845_v37, %v7854_v41  ;;  %v7952_v37 = vperm.slane %v9935_v22, 0  ;;  %v7953_v42 = vperm.slane %v9935_v22, 1 }
0x2d1a   : > { %v7860_v39 = vpack.c.bf16 %v7858_v48, %v7856_v46 }
0x2d1b   : > { %7876 = vmatpush.bf16.msra.mxu0 %v7859_v47 }
0x2d1c   : > { %7889 = vmatpush.bf16.msra.mxu1 %v7860_v39  ;;  %v7906_v35 = vpop.permute.xlu0 %7905 }
0x2d1e   : > { %9931 = vmatmul.msk.bf16.vlgmr.msra.gmra.mxu0 %vm2647_vm6, %v2517_v49 }
0x2d1f   : > { %7986 = vmatpush.bf16.msrb.mxu0 %v10212_v45  ;;  %9932 = vmatmul.msk.bf16.vlgmr.msra.gmra.mxu1 %vm2647_vm6, %v2517_v49 }
0x2d20   : > { %8028 = vmatpush.bf16.msrb.mxu1 %v10214_v38 }
0x2d23   : > { %7987 = vmatpush.bf16.msrb.mxu0 %v10211_v50 }
0x2d24   : > { %8029 = vmatpush.bf16.msrb.mxu1 %v10213_v51 }
0x2d27   : > { %8145 = vmatpush.bf16.msra.mxu0 %v10220_v52 }
0x2d28   : > { %8187 = vmatpush.bf16.msra.mxu1 %v10222_v53 }
0x2d2b   : > { %8146 = vmatpush.bf16.msra.mxu0 %v10219_v54 }
0x2d2c   : > { %8188 = vmatpush.bf16.msra.mxu1 %v10221_v55 }
0x2d2e   : > { %9944 = vmatmul.msk.bf16.vlgmr.msrb.gmra.mxu0 %vm2899_vm5, %v11771_v18  ;;  %v10215_v18 = vld [vmem:[%s11805_s24 + $0x20] sm:$0xff] }
0x2d2f   : > { %9957 = vmatmul.msk.bf16.vlgmr.msrb.gmra.mxu1 %vm2899_vm5, %v8006_v57  ;;  %8325 = vmatpush.bf16.msrb.mxu0 %v11690_v4 }
0x2d30   : > { %8344 = vmatpush.bf16.msrb.mxu1 %v11693_v20  ;;  %v2518_v20 = vld [vmem:[%s12027_s5 + $0x88] sm:$0xff] }
0x2d31   : > { %v2519_v19 = vpack.c.bf16 %v2518_v20, %v2518_v20 }
0x2d3e   : > { %9996 = vmatmul.msk.bf16.vlgmr.msra.gmra.mxu0 %vm2899_vm5, %v11781_v24  ;;  %v10225_v24 = vld [vmem:[%s11805_s24 + $0x70] sm:$0xff] }
0x2d3f   : > { %10009 = vmatmul.msk.bf16.vlgmr.msra.gmra.mxu1 %vm2899_vm5, %v8165_v58 }
0x2d9b   : > { %v7878_v59 = vpop.f32.mrf.mxu0 }
0x2d9c   : > { %v7879_v60 = vadd.f32 %v7878_v59, %v7864_v56  ;;  %v7891_v61 = vpop.f32.mrf.mxu1 }
0x2d9d   : > { %v7892_v63 = vadd.f32 %v7891_v61, %v7864_v56 }
0x2d9e   : > { %vm7895_vm11 = vcmp.ge.f32.partialorder %v7879_v60, 0.0  ;;  %v7897_v0 = vmul.f32 0.01, %v7879_v60 }
0x2d9f   : > { %vm7896_vm12 = vcmp.ge.f32.partialorder %v7892_v63, 0.0  ;;  %v7898_v1 = vmul.f32 0.01, %v7892_v63 }
0x2da0   : > { %v7899_v4 = vsel %vm7895_vm11, %v7879_v60, %v7897_v0 }
0x2da1   : > { %v7901_v2 = vpack.c.bf16 %v7899_v4, %v7899_v4  ;;  %v7900_v10 = vsel %vm7896_vm12, %v7892_v63, %v7898_v1 }
0x2da2   : > { %v7902_v62 = vpack.c.bf16 %v7900_v10, %v7900_v10 }
0x2da3   : > { %v7880_v7 = vpop.f32.mrf.mxu0  ;;  %v7912_v6 = vsel %vm2593_vm0, %v7901_v2, 0 }
0x2da4   : > { %v7893_v3 = vpop.f32.mrf.mxu1  ;;  %7924 = vmatpush.bf16.msra.mxu2 %v7912_v6  ;;  %v7915_v11 = vsel %vm2593_vm0, %v7902_v62, 0  ;;  %v2569_v62 = vld [vmem:[%s12027_s5 + $0x1c0] sm:$0xff]  ;;  %v2568_v6 = vld [vmem:[%s12027_s5 + $0x1b8] sm:$0xff] }
0x2da5   : > { %7937 = vmatpush.bf16.msra.mxu3 %v7915_v11  ;;  %v2567_v3 = vld [vmem:[%s12027_s5 + $0x1b0] sm:$0xff]  ;;  %v2570_v11 = vld [vmem:[%s12027_s5 + $0x1c8] sm:$0xff] }
0x2da7   : > { %9933 = vmatmul.msk.bf16.vlgmr.msra.gmra.mxu2 %vm2589_vm1, %v2519_v19 }
0x2da8   : > { %8069 = vmatpush.bf16.msrb.mxu2 %v10216_v9  ;;  %9934 = vmatmul.msk.bf16.vlgmr.msra.gmra.mxu3 %vm2589_vm1, %v2519_v19  ;;  %v2573_v19 = vld [vmem:[%s12027_s5 + $0x1e0] sm:$0xff] }
0x2da9   : > { %8110 = vmatpush.bf16.msrb.mxu3 %v10218_v8 }
0x2dab   : > { %v11842_v23 = vpop.f32.mrf.mxu0 }
0x2dac   : > { %8070 = vmatpush.bf16.msrb.mxu2 %v10215_v18  ;;  %v11845_v25 = vpop.f32.mrf.mxu1  ;;  %v2572_v18 = vld [vmem:[%s12027_s5 + $0x1d8] sm:$0xff] }
0x2dad   : > { %8111 = vmatpush.bf16.msrb.mxu3 %v10217_v15  ;;  %v2571_v15 = vld [vmem:[%s12027_s5 + $0x1d0] sm:$0xff] }
0x2db0   : > { %8228 = vmatpush.bf16.msra.mxu2 %v10224_v12  ;;  %v2574_v12 = vld [vmem:[%s12027_s5 + $0x1e8] sm:$0x1] }
0x2db1   : > { %8269 = vmatpush.bf16.msra.mxu3 %v10226_v5  ;;  %v2520_v5 = vld [vmem:[%s12027_s5 + $0x90] sm:$0xff] }
0x2db3   : > { %v7991_v26 = vpop.f32.mrf.mxu0 }
0x2db4   : > { %8229 = vmatpush.bf16.msra.mxu2 %v10223_v21  ;;  %v8033_v27 = vpop.f32.mrf.mxu1  ;;  %v2521_v21 = vld [vmem:[%s12027_s5 + $0x98] sm:$0xff] }
0x2db5   : > { %8270 = vmatpush.bf16.msra.mxu3 %v10225_v24  ;;  %v2524_v24 = vpack.c.bf16 %v2521_v21, %v2520_v5  ;;  %v2527_v26 = vld [vmem:[%s12027_s5 + $0xb8] sm:$0xff] }
0x2db7   : > { %9970 = vmatmul.msk.bf16.vlgmr.msrb.gmra.mxu2 %vm2899_vm5, %v8047_v28  ;;  %v2522_v28 = vld [vmem:[%s12027_s5 + $0xa0] sm:$0xff] }
0x2db8   : > { %9983 = vmatmul.msk.bf16.vlgmr.msrb.gmra.mxu3 %vm2899_vm5, %v8088_v29  ;;  %8369 = vmatpush.bf16.msrb.mxu2 %v10803_v13  ;;  %v2523_v29 = vld [vmem:[%s12027_s5 + $0xa8] sm:$0xff] }
0x2db9   : > { %8388 = vmatpush.bf16.msrb.mxu3 %v10806_v14 }
0x2dbb   : > { %v11851_v16 = vpop.f32.mrf.mxu0 }
0x2dbc   : > { %v11853_v30 = vpop.f32.mrf.mxu1 }
0x2dbd   : > { %v10393_v31 = vpack.i.bf16 %v11853_v30, %v11845_v25  ;;  %v2526_v25 = vld [vmem:[%s12027_s5 + $0xb0] sm:$0xff]  ;;  %v2525_v30 = vpack.c.bf16 %v2523_v29, %v2522_v28 }
0x2dbe   : > { %v2530_v27 = vpack.c.bf16 %v2527_v26, %v2526_v25 }
0x2dc0   : > { %10036 = vmatmul.msk.bf16.vlgmr.msrb.gmra.mxu0 %vm2589_vm1, %v2530_v27  ;;  %10038 = vmatmul.msk.bf16.vlgmr.msrb.gmra.mxu1 %vm2589_vm1, %v2530_v27 }
0x2dc3   : > { %v8150_v32 = vpop.f32.mrf.mxu0 }
0x2dc4   : > { %v8192_v33 = vpop.f32.mrf.mxu1  ;;  %v2529_v32 = vld [vmem:[%s12027_s5 + $0xc8] sm:$0xff] }
0x2dc7   : > { %10022 = vmatmul.msk.bf16.vlgmr.msra.gmra.mxu2 %vm2899_vm5, %v8206_v34 }
0x2dc8   : > { %10035 = vmatmul.msk.bf16.vlgmr.msra.gmra.mxu3 %vm2899_vm5, %v8247_v17 }
0x2dd7   : > { %10040 = vmatmul.msk.bf16.vlgmr.msrb.gmra.mxu2 %vm2589_vm1, %v2524_v24 }
0x2dd8   : > { %10042 = vmatmul.msk.bf16.vlgmr.msrb.gmra.mxu3 %vm2589_vm1, %v2524_v24 }
0x2de7   : > { %10041 = vmatmul.msk.bf16.gmra.mxu2 %vm2589_vm1, %v2525_v30 }
0x2de8   : > { %10043 = vmatmul.msk.bf16.gmra.mxu3 %vm2589_vm1, %v2525_v30 }
0x2e2a   : > { %v7926_v13 = vpop.f32.mrf.mxu2 }
0x2e2b   : > { %v7927_v36 = vadd.f32 %v7926_v13, %v7906_v35  ;;  %v7939_v14 = vpop.f32.mrf.mxu3 }
0x2e2c   : > { %v7940_v40 = vadd.f32 %v7939_v14, %v7906_v35 }
0x2e2d   : > { %vm7943_vm13 = vcmp.ge.f32.partialorder %v7927_v36, 0.0  ;;  %v7945_v41 = vmul.f32 0.01, %v7927_v36 }
0x2e2e   : > { %vm7944_vm14 = vcmp.ge.f32.partialorder %v7940_v40, 0.0  ;;  %v7946_v43 = vmul.f32 0.01, %v7940_v40 }
0x2e2f   : > { %v7947_v44 = vsel %vm7943_vm13, %v7927_v36, %v7945_v41  ;;  %v2539_v41 = vld [vmem:[%s12027_s5 + $0xf8] sm:$0xff] }
0x2e30   : > { %v7956_v45 = vmul.f32 %v7952_v37, %v7947_v44  ;;  %v7948_v46 = vsel %vm7944_vm14, %v7940_v40, %v7946_v43  ;;  %v2538_v40 = vld [vmem:[%s12027_s5 + $0xf0] sm:$0xff] }
0x2e31   : > { %v7957_v47 = vmul.f32 %v7953_v42, %v7948_v46  ;;  %v2542_v44 = vpack.c.bf16 %v2539_v41, %v2538_v40 }
0x2e32   : > { %v7928_v48 = vpop.f32.mrf.mxu2  ;;  %8035 = vrot.lane.b32.xlu0 %v7956_v45, %s10435_s12  ;;  %7994 = vrot.lane.b32.xlu1 %v7956_v45, %s10433_s10  ;;  %v7958_v59 = vsel %vm2899_vm5, %v7956_v45, 0.0 }
0x2e33   : > { %v7941_v38 = vpop.f32.mrf.mxu3  ;;  %8153 = vrot.lane.b32.xlu2 %v7957_v47, %s10433_s10  ;;  %v8117_v58 = vsel %vm2899_vm5, %v7957_v47, 0.0 }
0x2e3a   : > { %v8072_v39 = vpop.f32.mrf.mxu2  ;;  %8235 = vrot.lane.b32.xlu0 %v7957_v47, %s10434_s11  ;;  %8194 = vrot.lane.b32.xlu1 %v7957_v47, %s10435_s12 }
0x2e3b   : > { %v8113_v49 = vpop.f32.mrf.mxu3  ;;  %8076 = vrot.lane.b32.xlu2 %v7956_v45, %s10434_s11 }
0x2e3d   : > { %v8346_v5 = vpop.f32.mrf.mxu1 }
0x2e42   : > { %v8074_v50 = vpop.f32.mrf.mxu2 }
0x2e43   : > { %v8115_v51 = vpop.f32.mrf.mxu3  ;;  %v2540_v50 = vld [vmem:[%s12027_s5 + $0x100] sm:$0xff] }
0x2e44   : > { %v2541_v51 = vld [vmem:[%s12027_s5 + $0x108] sm:$0xff] }
0x2e45   : > { %v8348_v26 = vpop.f32.mrf.mxu1 }
0x2e4a   : > { %v8231_v52 = vpop.f32.mrf.mxu2 }
0x2e4b   : > { %v10398_v53 = vpack.i.bf16 %v8231_v52, %v8072_v39  ;;  %v8272_v54 = vpop.f32.mrf.mxu3 }
0x2e4c   : > { %v10403_v55 = vpack.i.bf16 %v8272_v54, %v8113_v49 }
0x2e52   : > { %v8233_v56 = vpop.f32.mrf.mxu2 }
0x2e53   : > { %v8274_v57 = vpop.f32.mrf.mxu3 }
0x2e64   : > { %8118 = vadd.xlane.f32.xlu0 %v8117_v58  ;;  %7959 = vadd.xlane.f32.xlu1 %v7958_v59 }
0x2e8d   : > { %v8154_v60 = vpop.permute.xlu2 %8153 }
0x2e8e   : > { %v8156_v10 = vsel %vm2899_vm5, %v8154_v60, 0.0 }
0x2e95   : > { %v8077_v61 = vpop.permute.xlu2 %8076 }
0x2e96   : > { %v8079_v63 = vsel %vm2899_vm5, %v8077_v61, 0.0 }
0x2e97   : > { %8080 = vadd.xlane.f32.xlu0 %v8079_v63 }
0x2ea4   : > { %v8036_v0 = vpop.permute.xlu0 %8035  ;;  %v7995_v1 = vpop.permute.xlu1 %7994 }
0x2ea5   : > { %v7997_v4 = vsel %vm2899_vm5, %v7995_v1, 0.0  ;;  %v8038_v20 = vsel %vm2899_vm5, %v8036_v0, 0.0 }
0x2ea6   : > { %7998 = vadd.xlane.f32.xlu2 %v7997_v4  ;;  %8039 = vadd.xlane.f32.xlu1 %v8038_v20 }
0x2eab   : > { %10399 = vrot.lane.b32.xlu0 %v10398_v53, %s10435_s12  ;;  %v2543_v53 = vpack.c.bf16 %v2541_v51, %v2540_v50  ;;  %s2486_s12 = scalar_lea.vmem %s12028_s6, %s8875_s29 }
0x2eac   : > { %v8236_v2 = vpop.permute.xlu0 %8235  ;;  %v8195_v8 = vpop.permute.xlu1 %8194 }
0x2ead   : > { %v8238_v9 = vsel %vm2899_vm5, %v8236_v2, 0.0  ;;  %v8197_v7 = vsel %vm2899_vm5, %v8195_v8, 0.0 }
0x2eae   : > { %8157 = vadd.xlane.f32.xlu2 %v8156_v10  ;;  %8239 = vadd.xlane.f32.xlu1 %v8238_v9 }
0x2eb3   : > { %8532 = vperm.xlu0 %10255, %v2569_v62  }
0x2eb6   : > { %8198 = vadd.xlane.f32.xlu2 %v8197_v7 }
0x2ebb   : > { %8527 = vperm.xlu0 %10255, %v2568_v6  }
0x2ec3   : > { %8633 = vperm.xlu0 %10255, %v2573_v19   ;;  %v2534_v19 = vld [vmem:[%s12027_s5 + $0xe0] sm:$0xff] }
0x2ec7   : > { %10404 = vrot.lane.b32.xlu1 %v10403_v55, %s10433_s10 }
0x2ece   : > { %10394 = vrot.lane.b32.xlu2 %v10393_v31, %s10434_s11  ;;  %v2528_v31 = vld [vmem:[%s12027_s5 + $0xc0] sm:$0xff] }
0x2ecf   : > { %8522 = vperm.xlu1 %10256, %v2567_v3   ;;  %v2531_v33 = vpack.c.bf16 %v2529_v32, %v2528_v31  ;;  %v2535_v3 = vld [vmem:[%s12027_s5 + $0xe8] sm:$0xff] }
0x2ed1   : > { %10037 = vmatmul.msk.bf16.gmra.mxu0 %vm2589_vm1, %v2531_v33  ;;  %10039 = vmatmul.msk.bf16.gmra.mxu1 %vm2589_vm1, %v2531_v33 }
0x2ed6   : > { %8537 = vperm.xlu2 %10257, %v2570_v11   ;;  %v2537_v11 = vpack.c.bf16 %v2535_v3, %v2534_v19 }
0x2ed7   : > { %8583 = vperm.xlu1 %10256, %v2572_v18   ;;  %v7960_v34 = vpop.xlane.xlu1 %7959  ;;  %v8119_v17 = vpop.xlane.xlu0 %8118 }
0x2ed8   : > { %v8371_v18 = vpop.f32.mrf.mxu2 }
0x2ede   : > { %8578 = vperm.xlu2 %10257, %v2571_v15   ;;  %v8390_v15 = vpop.f32.mrf.mxu3 }
0x2edf   : > { %v8391_v51 = vadd.f32 %v8390_v15, %v8346_v5 }
0x2ee0   : > { %v8373_v21 = vpop.f32.mrf.mxu2 }
0x2ee6   : > { %8675 = vperm.xlu2 %10257, %v2574_v12   ;;  %v8327_v12 = vpop.f32.mrf.mxu0  ;;  %v8392_v24 = vpop.f32.mrf.mxu3 }
0x2ee7   : > { %v8372_v50 = vadd.f32 %v8371_v18, %v8327_v12 }
0x2ee8   : > { %v8376_v27 = vpop.f32.mrf.mxu2 }
0x2eee   : > { %v8329_v25 = vpop.f32.mrf.mxu0  ;;  %v8395_v28 = vpop.f32.mrf.mxu3 }
0x2ef0   : > { %v8378_v31 = vpop.f32.mrf.mxu2 }
0x2ef6   : > { %v8397_v32 = vpop.f32.mrf.mxu3 }
0x2f0a   : > { %v8081_v36 = vpop.xlane.xlu0 %8080 }
0x2f19   : > { %v7999_v22 = vpop.xlane.xlu2 %7998  ;;  %v8040_v35 = vpop.xlane.xlu1 %8039 }
0x2f1a   : > { %v8276_v13 = vsel %vm2899_vm5, %v7960_v34, %v7999_v22 }
0x2f1b   : > { %v8277_v14 = vsel %vm3189_vm7, %v8276_v13, %v8040_v35 }
0x2f1c   : > { %v8278_v37 = vsel %vm3191_vm8, %v8277_v14, %v8081_v36 }
0x2f1d   : > { %v8460_v42 = vpack.c.bf16 %v8278_v37, %v8278_v37  ;;  %v10400_v57 = vpop.permute.xlu0 %10399 }
0x2f1e   : > { %v10402_v60 = vunpack.i.h.bf16 %v10400_v57  ;;  %v10401_v61 = vunpack.i.l.bf16 %v10400_v57 }
0x2f1f   : > { %v8469_v43 = vsel %vm2593_vm0, %v8460_v42, 0 }
0x2f20   : > { %8481 = vmatpush.bf16.msra.mxu2 %v8469_v43 }
0x2f21   : > { %v8158_v45 = vpop.xlane.xlu2 %8157  ;;  %v8240_v48 = vpop.xlane.xlu1 %8239 }
0x2f22   : > { %v8279_v46 = vsel %vm2899_vm5, %v8119_v17, %v8158_v45 }
0x2f23   : > { %10048 = vmatmul.msk.bf16.vlgmr.msra.gmra.mxu2 %vm2589_vm1, %v2542_v44 }
0x2f25   : > { %v8533_v41 = vpop.permute.xlu0 %8532 }
0x2f29   : > { %v8199_v47 = vpop.xlane.xlu2 %8198 }
0x2f2a   : > { %v8280_v38 = vsel %vm3189_vm7, %v8279_v46, %v8199_v47  ;;  %v8374_v46 = vadd.f32 %v8373_v21, %v8329_v25  ;;  %v8393_v47 = vadd.f32 %v8392_v24, %v8348_v26 }
0x2f2b   : > { %v8281_v39 = vsel %vm3191_vm8, %v8280_v38, %v8240_v48 }
0x2f2c   : > { %v8461_v49 = vpack.c.bf16 %v8281_v39, %v8281_v39 }
0x2f2e   : > { %v8472_v52 = vsel %vm2593_vm0, %v8461_v49, 0 }
0x2f2f   : > { %8500 = vmatpush.bf16.msra.mxu3 %v8472_v52 }
0x2f31   : > { %v10395_v54 = vpop.permute.xlu2 %10394 }
0x2f32   : > { %10050 = vmatmul.msk.bf16.vlgmr.msra.gmra.mxu3 %vm2589_vm1, %v2542_v44  ;;  %v10397_v55 = vunpack.i.h.bf16 %v10395_v54  ;;  %v10396_v56 = vunpack.i.l.bf16 %v10395_v54 }
0x2f33   : > { %10049 = vmatmul.msk.bf16.gmra.mxu2 %vm2589_vm1, %v2543_v53 }
0x2f34   : > { %v8309_v58 = vsel %vm2899_vm5, %v11851_v16, %v10397_v55  ;;  %v8306_v59 = vsel %vm2899_vm5, %v11842_v23, %v10396_v56  ;;  %v2532_v16 = vld [vmem:[%s12027_s5 + $0xd0] sm:$0xff]  ;;  %v2533_v23 = vld [vmem:[%s12027_s5 + $0xd8] sm:$0xff] }
0x2f35   : > { %v8307_v4 = vsel %vm3189_vm7, %v8306_v59, %v10401_v61  ;;  %v8310_v20 = vsel %vm3189_vm7, %v8309_v58, %v10402_v60  ;;  %v2536_v6 = vpack.c.bf16 %v2533_v23, %v2532_v16 }
0x2f39   : > { %v10405_v63 = vpop.permute.xlu1 %10404 }
0x2f3a   : > { %v10407_v0 = vunpack.i.h.bf16 %v10405_v63  ;;  %v10406_v1 = vunpack.i.l.bf16 %v10405_v63 }
0x2f3c   : > { %v8308_v2 = vsel %vm3191_vm8, %v8307_v4, %v10406_v1  ;;  %v8311_v10 = vsel %vm3191_vm8, %v8310_v20, %v10407_v0  ;;  %v8528_v20 = vpop.permute.xlu0 %8527 }
0x2f3d   : > { %v8400_v9 = vpack.c.bf16 %v8308_v2, %v8308_v2  ;;  %v8401_v62 = vpack.c.bf16 %v8311_v10, %v8311_v10 }
0x2f3f   : > { %v8409_v8 = vsel %vm2593_vm0, %v8400_v9, 0  ;;  %v8412_v7 = vsel %vm2593_vm0, %v8401_v62, 0 }
0x2f40   : > { %8421 = vmatpush.bf16.msra.mxu0 %v8409_v8  ;;  %8440 = vmatpush.bf16.msra.mxu1 %v8412_v7 }
0x2f42   : > { %10051 = vmatmul.msk.bf16.gmra.mxu3 %vm2589_vm1, %v2543_v53 }
0x2f43   : > { %10044 = vmatmul.msk.bf16.vlgmr.msra.gmra.mxu0 %vm2589_vm1, %v2536_v6  ;;  %10046 = vmatmul.msk.bf16.vlgmr.msra.gmra.mxu1 %vm2589_vm1, %v2536_v6  ;;  %v8523_v6 = vpop.permute.xlu1 %8522 }
0x2f4e   : > { %v8332_v29 = vpop.f32.mrf.mxu0  ;;  %v8351_v30 = vpop.f32.mrf.mxu1 }
0x2f4f   : > { %v8377_v42 = vadd.f32 %v8376_v27, %v8332_v29  ;;  %v8396_v43 = vadd.f32 %v8395_v28, %v8351_v30 }
0x2f53   : > { %10045 = vmatmul.msk.bf16.gmra.mxu0 %vm2589_vm1, %v2537_v11  ;;  %10047 = vmatmul.msk.bf16.gmra.mxu1 %vm2589_vm1, %v2537_v11  ;;  %v8538_v11 = vpop.permute.xlu2 %8537 }
0x2f56   : > { %v8334_v33 = vpop.f32.mrf.mxu0  ;;  %v8353_v34 = vpop.f32.mrf.mxu1 }
0x2f57   : > { %v8379_v60 = vadd.f32 %v8378_v31, %v8334_v33  ;;  %v8398_v61 = vadd.f32 %v8397_v32, %v8353_v34 }
0x2fa6   : > { %v8483_v17 = vpop.f32.mrf.mxu2 }
0x2fae   : > { %v8485_v36 = vpop.f32.mrf.mxu2 }
0x2fb5   : > { %v8502_v22 = vpop.f32.mrf.mxu3 }
0x2fb6   : > { %v8488_v44 = vpop.f32.mrf.mxu2 }
0x2fbd   : > { %v8504_v14 = vpop.f32.mrf.mxu3 }
0x2fbe   : > { %v8490_v8 = vpop.f32.mrf.mxu2 }
0x2fc0   : > { %v8423_v35 = vpop.f32.mrf.mxu0  ;;  %v8442_v13 = vpop.f32.mrf.mxu1 }
0x2fc1   : > { %v8452_v54 = vadd.f32 %v8423_v35, %v8372_v50  ;;  %v8453_v55 = vadd.f32 %v8442_v13, %v8391_v51 }
0x2fc3   : > { %v8512_v63 = vadd.f32 %v8483_v17, %v8452_v54  ;;  %v8513_v0 = vadd.f32 %v8502_v22, %v8453_v55 }
0x2fc5   : > { %v8507_v45 = vpop.f32.mrf.mxu3  ;;  %v8540_v18 = vadd.f32 %v8523_v6, %v8512_v63  ;;  %v8541_v15 = vadd.f32 %v8523_v6, %v8513_v0 }
0x2fc7   : > { %v8556_v29 = vmul.f32 0.01, %v8540_v18  ;;  %v8557_v30 = vmul.f32 0.01, %v8541_v15  ;;  %vm8548_vm9 = vcmp.ge.f32.partialorder %v8540_v18, 0.0  ;;  %vm8549_vm10 = vcmp.ge.f32.partialorder %v8541_v15, 0.0 }
0x2fc8   : > { %v8425_v37 = vpop.f32.mrf.mxu0  ;;  %v8444_v40 = vpop.f32.mrf.mxu1 }
0x2fc9   : > { %v8454_v52 = vadd.f32 %v8425_v37, %v8374_v46  ;;  %v8455_v53 = vadd.f32 %v8444_v40, %v8393_v47  ;;  %v8564_v37 = vsel %vm8548_vm9, %v8540_v18, %v8556_v29  ;;  %v8565_v40 = vsel %vm8549_vm10, %v8541_v15, %v8557_v30  ;;  %v8579_v46 = vpop.permute.xlu2 %8578 }
0x2fcb   : > { %v8514_v58 = vadd.f32 %v8485_v36, %v8454_v52  ;;  %v8515_v59 = vadd.f32 %v8504_v14, %v8455_v53  ;;  %v2544_v36 = vld [vmem:[%s12027_s5 + $0x110] sm:$0xff]  ;;  %v2545_v14 = vld [vmem:[%s12027_s5 + $0x118] sm:$0xff] }
0x2fcd   : > { %v8542_v9 = vadd.f32 %v8528_v20, %v8514_v58  ;;  %v8543_v62 = vadd.f32 %v8528_v20, %v8515_v59  ;;  %v8509_v7 = vpop.f32.mrf.mxu3 }
0x2fcf   : > { %v8558_v25 = vmul.f32 0.01, %v8542_v9  ;;  %v8559_v26 = vmul.f32 0.01, %v8543_v62  ;;  %vm8550_vm3 = vcmp.ge.f32.partialorder %v8542_v9, 0.0  ;;  %vm8551_vm4 = vcmp.ge.f32.partialorder %v8543_v62, 0.0 }
0x2fd0   : > { %v8428_v48 = vpop.f32.mrf.mxu0  ;;  %v8447_v38 = vpop.f32.mrf.mxu1 }
0x2fd1   : > { %v8456_v39 = vadd.f32 %v8428_v48, %v8377_v42  ;;  %v8457_v49 = vadd.f32 %v8447_v38, %v8396_v43  ;;  %v8566_v35 = vsel %vm8550_vm3, %v8542_v9, %v8558_v25  ;;  %v8567_v13 = vsel %vm8551_vm4, %v8543_v62, %v8559_v26  ;;  %v8584_v38 = vpop.permute.xlu1 %8583 }
0x2fd2   : > { %v8573_v42 = vpack.c.bf16 %v8567_v13, %v8565_v40  ;;  %v2546_v43 = vpack.c.bf16 %v2545_v14, %v2544_v36 }
0x2fd3   : > { %v8516_v56 = vadd.f32 %v8488_v44, %v8456_v39  ;;  %v8517_v57 = vadd.f32 %v8507_v45, %v8457_v49 }
0x2fd5   : > { %v8544_v2 = vadd.f32 %v8533_v41, %v8516_v56  ;;  %v8545_v10 = vadd.f32 %v8533_v41, %v8517_v57  ;;  %v8572_v41 = vpack.c.bf16 %v8566_v35, %v8564_v37  ;;  %v2547_v56 = vld [vmem:[%s12027_s5 + $0x120] sm:$0xff] }
0x2fd6   : > { %v2548_v0 = vpack.c.bf16 %v2547_v56, %v2547_v56 }
0x2fd7   : > { %v8560_v12 = vmul.f32 0.01, %v8544_v2  ;;  %v8561_v5 = vmul.f32 0.01, %v8545_v10  ;;  %vm8552_vm7 = vcmp.ge.f32.partialorder %v8544_v2, 0.0  ;;  %vm8553_vm8 = vcmp.ge.f32.partialorder %v8545_v10, 0.0 }
0x2fd8   : > { %v8430_v1 = vpop.f32.mrf.mxu0  ;;  %v8449_v4 = vpop.f32.mrf.mxu1 }
0x2fd9   : > { %v8458_v16 = vadd.f32 %v8430_v1, %v8379_v60  ;;  %v8459_v23 = vadd.f32 %v8449_v4, %v8398_v61  ;;  %v8568_v31 = vsel %vm8552_vm7, %v8544_v2, %v8560_v12  ;;  %v8569_v33 = vsel %vm8553_vm8, %v8545_v10, %v8561_v5  ;;  %v8634_v1 = vpop.permute.xlu0 %8633  ;;  %v10058_v12 = vld [vmem:[%s10968_s14 + $0x10] ss:$8 sm:$0x3] }
0x2fda   : > { %v10059_v5 = vadd.f32 -1.0, %v10058_v12 }
0x2fdb   : > { %v8518_v19 = vadd.f32 %v8490_v8, %v8458_v16  ;;  %v8519_v3 = vadd.f32 %v8509_v7, %v8459_v23  ;;  %v2549_v8 = vld [vmem:[%s12027_s5 + $0x128] sm:$0x1] }
0x2fdd   : > { %v8546_v21 = vadd.f32 %v8538_v11, %v8518_v19  ;;  %v8547_v24 = vadd.f32 %v8538_v11, %v8519_v3  ;;  %v2550_v11 = vpack.c.bf16 %v2549_v8, %v2549_v8 }
0x2fdf   : > { %vm8554_vm15 = vcmp.ge.f32.partialorder %v8546_v21, 0.0  ;;  %v8562_v27 = vmul.f32 0.01, %v8546_v21  ;;  %vm8555_vm2 = vcmp.ge.f32.partialorder %v8547_v24, 0.0  ;;  %v8563_v28 = vmul.f32 0.01, %v8547_v24 }
0x2fe1   : > { %v8570_v32 = vsel %vm8554_vm15, %v8546_v21, %v8562_v27  ;;  %v8571_v34 = vsel %vm8555_vm2, %v8547_v24, %v8563_v28  ;;  %v8716_v21 = vmul.f32 10000.0, %v10059_v5  ;;  %v8676_v24 = vpop.permute.xlu2 %8675 }
0x2fe2   : > { %v8574_v17 = vpack.c.bf16 %v8570_v32, %v8568_v31  ;;  %v8575_v22 = vpack.c.bf16 %v8571_v34, %v8569_v33  ;;  %v8730_v31 = vlaneseq }
0x2fe3   : > { %v8719_v25 = vperm.slane %v8716_v21, 1  ;;  %v8718_v29 = vperm.slane %v8716_v21, 0 }
0x2fe4   : > { %8595 = vmatpush.bf16.msrb.mxu0 %v8574_v17  ;;  %8609 = vmatpush.bf16.msrb.mxu1 %v8575_v22 }
0x2fe8   : > { %8596 = vmatpush.bf16.msrb.mxu0 %v8572_v41  ;;  %8610 = vmatpush.bf16.msrb.mxu1 %v8573_v42 }
0x2feb   : > { %10052 = vmatmul.msk.bf16.vlgmr.msrb.gmra.mxu0 %vm2899_vm5, %v2546_v43  ;;  %10053 = vmatmul.msk.bf16.vlgmr.msrb.gmra.mxu1 %vm2899_vm5, %v2546_v43 }
0x3068   : > { %v8598_v44 = vpop.f32.mrf.mxu0  ;;  %v8612_v45 = vpop.f32.mrf.mxu1 }
0x3069   : > { %v8599_v47 = vadd.f32 %v8598_v44, %v8579_v46  ;;  %v8613_v48 = vadd.f32 %v8612_v45, %v8579_v46 }
0x306b   : > { %v8621_v50 = vmul.f32 0.01, %v8599_v47  ;;  %v8622_v51 = vmul.f32 0.01, %v8613_v48  ;;  %vm8617_vm11 = vcmp.ge.f32.partialorder %v8599_v47, 0.0  ;;  %vm8618_vm12 = vcmp.ge.f32.partialorder %v8613_v48, 0.0 }
0x306d   : > { %v8625_v57 = vsel %vm8617_vm11, %v8599_v47, %v8621_v50  ;;  %v8626_v58 = vsel %vm8618_vm12, %v8613_v48, %v8622_v51 }
0x3070   : > { %v8600_v39 = vpop.f32.mrf.mxu0  ;;  %v8614_v49 = vpop.f32.mrf.mxu1 }
0x3071   : > { %v8601_v52 = vadd.f32 %v8600_v39, %v8584_v38  ;;  %v8615_v53 = vadd.f32 %v8614_v49, %v8584_v38 }
0x3073   : > { %vm8619_vm13 = vcmp.ge.f32.partialorder %v8601_v52, 0.0  ;;  %v8623_v54 = vmul.f32 0.01, %v8601_v52  ;;  %vm8620_vm14 = vcmp.ge.f32.partialorder %v8615_v53, 0.0  ;;  %v8624_v55 = vmul.f32 0.01, %v8615_v53 }
0x3075   : > { %v8627_v59 = vsel %vm8619_vm13, %v8601_v52, %v8623_v54  ;;  %v8628_v60 = vsel %vm8620_vm14, %v8615_v53, %v8624_v55 }
0x3076   : > { %v8629_v61 = vpack.c.bf16 %v8627_v59, %v8625_v57  ;;  %v8630_v63 = vpack.c.bf16 %v8628_v60, %v8626_v58 }
0x3078   : > { %8646 = vmatpush.bf16.msrb.mxu2 %v8629_v61  ;;  %8659 = vmatpush.bf16.msrb.mxu3 %v8630_v63 }
0x307b   : > { %10054 = vmatmul.msk.bf16.vlgmr.msrb.gmra.mxu2 %vm2647_vm6, %v2548_v0  ;;  %10055 = vmatmul.msk.bf16.vlgmr.msrb.gmra.mxu3 %vm2647_vm6, %v2548_v0 }
0x30fe   : > { %v8648_v4 = vpop.f32.mrf.mxu2  ;;  %v8661_v20 = vpop.f32.mrf.mxu3 }
0x30ff   : > { %v8649_v2 = vadd.f32 %v8648_v4, %v8634_v1  ;;  %v8662_v10 = vadd.f32 %v8661_v20, %v8634_v1 }
0x3101   : > { %vm8665_vm5 = vcmp.ge.f32.partialorder %v8649_v2, 0.0  ;;  %v8667_v16 = vmul.f32 0.01, %v8649_v2  ;;  %vm8666_vm7 = vcmp.ge.f32.partialorder %v8662_v10, 0.0  ;;  %v8668_v23 = vmul.f32 0.01, %v8662_v10 }
0x3103   : > { %v8669_v9 = vsel %vm8665_vm5, %v8649_v2, %v8667_v16  ;;  %v8670_v62 = vsel %vm8666_vm7, %v8662_v10, %v8668_v23 }
0x3104   : > { %v8671_v7 = vpack.c.bf16 %v8669_v9, %v8669_v9  ;;  %v8672_v6 = vpack.c.bf16 %v8670_v62, %v8670_v62 }
0x3106   : > { %v8682_v19 = vsel %vm2593_vm0, %v8671_v7, 0  ;;  %v8685_v3 = vsel %vm2593_vm0, %v8672_v6, 0  ;;  %v8650_v18 = vpop.f32.mrf.mxu2  ;;  %v8663_v15 = vpop.f32.mrf.mxu3  ;;  %vm8727_vm0 = vcmask 1040384  }
0x3107   : > { %8694 = vmatpush.bf16.msra.mxu0 %v8682_v19  ;;  %8707 = vmatpush.bf16.msra.mxu1 %v8685_v3 }
0x310a   : > { %10056 = vmatmul.msk.bf16.vlgmr.msra.gmra.mxu0 %vm2589_vm1, %v2550_v11  ;;  %10057 = vmatmul.msk.bf16.vlgmr.msra.gmra.mxu1 %vm2589_vm1, %v2550_v11  ;;  %vm8732_vm1 = vcmp.lt.s32.totalorder %v8730_v31, 256 }
0x3187   : > { %v8696_v26 = vpop.f32.mrf.mxu0  ;;  %v8709_v27 = vpop.f32.mrf.mxu1 }
0x3188   : > { %v8697_v28 = vadd.f32 %v8696_v26, %v8676_v24  ;;  %v8710_v30 = vadd.f32 %v8709_v27, %v8676_v24 }
0x318a   : > { %v8723_v32 = vadd.f32 %v8719_v25, %v8710_v30  ;;  %v8722_v33 = vadd.f32 %v8718_v29, %v8697_v28 }
0x318c   : > { %v8726_v34 = vrot.slane %v8723_v32, 7 }
0x318e   : > { %v8728_v17 = vsel %vm8727_vm0, %v8722_v33, %v8726_v34 }
0x318f   : > { %8734 = vst.msk [vmem:[%s2486_s12] ss:$8 sm:$0x3] %vm8732_vm1, %v8728_v17  ;;  %v8698_v22 = vpop.f32.mrf.mxu0  ;;  %v8711_v35 = vpop.f32.mrf.mxu1 }
0x3190 PF: > { %p13_p10 = scmp.ge.s32.totalorder %s10488_s25, 4   ;;  %s12030_s21 = smov %s10426_s22 }
0x3191   : > { %s12031_s22 = smov %s10497_s28  ;;  %s12032_s23 = smov %s10488_s25 }
0x3192   :  { %15 = sbr.rel (!%p13_p10) target bundleno = 2 (0x2), region = 261 }

</bundles_post_ra>
